<compile_context>
chip_gen: v5e
topology: v5e:2x2
jax: 0.10.0
libtpu: 0.0.40
codegen_flags: <defaults>
</compile_context>

<pallas_src>
import functools

import jax
import jax.numpy as jnp
from jax import lax
from jax.experimental import pallas as pl
from jax.experimental.pallas import tpu as pltpu

HIGHEST = jax.lax.Precision.HIGHEST


def _rcab_kernel(x_ref, wb1_ref, b1_ref, wb2_ref, b2_ref,
                 wdu1_ref, bdu1_ref, wdu2_ref, bdu2_ref,
                 out_ref, xpad_ref, *, H, W, C, K):
    """One batch image per grid step, lane-packed (H, W*C) layout.

    x_ref    : (1, H, W*C)  f32   input image (NHWC rows packed into lanes)
    wb1/wb2  : (K, W*C, W*C) bf16 block-banded conv weights (one band per dy)
    b1/b2    : (1, W*C)     f32   biases tiled across W
    wdu1     : (C, C//r)          CA squeeze weight;  bdu1: (1, C//r)
    wdu2     : (C//r, C)          CA excite weight;   bdu2: (1, C)
    out_ref  : (1, H, W*C)        lane-dense output block
    xpad_ref : (H+2p, W*C) f32    VMEM scratch with H-direction halo rows
    """
    pad = K // 2
    WC = W * C
    f32 = jnp.float32
    bf16 = jnp.bfloat16

    x0 = x_ref[0]                                       # (H, WC) f32

    # H-direction halo: two full-width zero rows.  W halo is encoded in the
    # banded weights and never touches the scratch.
    xpad_ref[:pad, :] = jnp.zeros((pad, WC), f32)
    xpad_ref[pad + H:, :] = jnp.zeros((pad, WC), f32)
    xpad_ref[pad:pad + H, :] = x0

    def conv_banded(wb_ref, bias_row):
        # sum_dy  (H, WC)_bf16 @ (WC, WC)_bf16  ->  f32 accumulator
        acc = jnp.zeros((H, WC), f32)
        for dy in range(K):                              # static unroll
            lhs = xpad_ref[dy:dy + H, :].astype(bf16)    # sublane-offset view
            acc = acc + jnp.dot(lhs, wb_ref[dy], preferred_element_type=f32)
        return acc + bias_row

    # ---------------- conv1 + bias + ReLU, restage into scratch --------------
    act1 = jnp.maximum(conv_banded(wb1_ref, b1_ref[...]), 0.0)   # (H, WC)
    # interior-only store: halo rows stay zero for conv2
    xpad_ref[pad:pad + H, :] = act1

    # ---------------- conv2 + bias -------------------------------------------
    conv2 = conv_banded(wb2_ref, b2_ref[...])                    # (H, WC) f32

    # ---------------- channel attention (exact f32) ---------------------------
    colsum = jnp.sum(conv2, axis=0, keepdims=True)               # (1, WC)
    pooled = jnp.zeros((1, C), f32)
    for w in range(W):                                           # fold lane groups of C
        pooled = pooled + colsum[:, w * C:(w + 1) * C]
    pooled = pooled * (1.0 / (H * W))                            # == AdaptiveAvgPool2d(1)

    hid = jnp.maximum(
        jnp.dot(pooled, wdu1_ref[...], preferred_element_type=f32) + bdu1_ref[...], 0.0)
    gate = jax.nn.sigmoid(
        jnp.dot(hid, wdu2_ref[...], preferred_element_type=f32) + bdu2_ref[...])  # (1, C)
    gate_row = jnp.concatenate([gate] * W, axis=1)               # (1, WC), exact

    # ---------------- gate + residual, full-width lane-dense store ------------
    out_ref[0] = (conv2 * gate_row + x0).astype(out_ref.dtype)


def _build_banded_weights(w_hwio, W):
    """Fold the K dx taps of an HWIO conv weight into K block-banded
    (W*C, W*C) matrices (one per dy), encoding W-direction 'SAME' padding
    as zero blocks.  Column order matches the (H, W*C) lane packing."""
    K, _, C, _ = w_hwio.shape
    pad = K // 2
    bands = []
    for dy in range(K):
        m = jnp.zeros((W * C, W * C), jnp.float32)
        for dx in range(K):
            # ones at [w_in, w_out] with w_in = w_out + dx - pad
            shift = jnp.eye(W, k=pad - dx, dtype=jnp.float32)
            m = m + jnp.kron(shift, w_hwio[dy, dx])
        bands.append(m)
    return jnp.stack(bands).astype(jnp.bfloat16)                 # (K, W*C, W*C)


def rcab_forward(x_nchw, w1, b1, w2, b2, wdu1, bdu1, wdu2, bdu2, *, kernel_size=3):
    """x_nchw: (B, C, H, W) f32.  w1, w2: (K, K, C, C) HWIO (cross-correlation,
    same convention as PyTorch Conv2d).  b1, b2: (1, C).
    wdu1: (C, C//r), bdu1: (1, C//r), wdu2: (C//r, C), bdu2: (1, C)."""
    K = kernel_size
    pad = K // 2
    x = jnp.transpose(x_nchw, (0, 2, 3, 1))                      # NCHW -> NHWC
    B, H, W, C = x.shape
    Cr = wdu1.shape[1]
    WC = W * C

    x_packed = x.reshape(B, H, WC)                               # lane-dense (free)
    wb1 = _build_banded_weights(w1, W)                           # (K, WC, WC) bf16
    wb2 = _build_banded_weights(w2, W)
    b1_row = jnp.tile(b1, (1, W))                                # (1, WC)
    b2_row = jnp.tile(b2, (1, W))

    kernel = functools.partial(_rcab_kernel, H=H, W=W, C=C, K=K)

    out = pl.pallas_call(
        kernel,
        out_shape=jax.ShapeDtypeStruct((B, H, WC), x.dtype),     # lane-dense output
        grid_spec=pltpu.PrefetchScalarGridSpec(
            num_scalar_prefetch=0,
            grid=(B,),
            in_specs=[
                pl.BlockSpec((1, H, WC), lambda b: (b, 0, 0)),       # x
                pl.BlockSpec((K, WC, WC), lambda b: (0, 0, 0)),      # wb1
                pl.BlockSpec((1, WC), lambda b: (0, 0)),             # b1
                pl.BlockSpec((K, WC, WC), lambda b: (0, 0, 0)),      # wb2
                pl.BlockSpec((1, WC), lambda b: (0, 0)),             # b2
                pl.BlockSpec((C, Cr), lambda b: (0, 0)),             # wdu1
                pl.BlockSpec((1, Cr), lambda b: (0, 0)),             # bdu1
                pl.BlockSpec((Cr, C), lambda b: (0, 0)),             # wdu2
                pl.BlockSpec((1, C), lambda b: (0, 0)),              # bdu2
            ],
            out_specs=pl.BlockSpec((1, H, WC), lambda b: (b, 0, 0)),
            scratch_shapes=[
                pltpu.VMEM((H + 2 * pad, WC), jnp.float32),
            ],
        ),
        compiler_params=pltpu.CompilerParams(
            dimension_semantics=("parallel",),
            vmem_limit_bytes=32 * 1024 * 1024,
        ),
    )(x_packed, wb1, b1_row, wb2, b2_row, wdu1, bdu1, wdu2, bdu2)

    out = out.reshape(B, H, W, C)                                # free reshape
    return jnp.transpose(out, (0, 3, 1, 2))                      # NHWC -> NCHW


def rcab_reference(x_nchw, w1, b1, w2, b2, wdu1, bdu1, wdu2, bdu2):
    """Pure-JAX reference (mirrors the PyTorch module), full f32 precision."""
    x = jnp.transpose(x_nchw, (0, 2, 3, 1))
    dn = ('NHWC', 'HWIO', 'NHWC')
    y = lax.conv_general_dilated(x, w1, (1, 1), 'SAME', dimension_numbers=dn,
                                 precision=HIGHEST) + b1.reshape(1, 1, 1, -1)
    y = jnp.maximum(y, 0.0)
    y = lax.conv_general_dilated(y, w2, (1, 1), 'SAME', dimension_numbers=dn,
                                 precision=HIGHEST) + b2.reshape(1, 1, 1, -1)
    pooled = jnp.mean(y, axis=(1, 2), keepdims=True)
    h = jnp.maximum(jnp.einsum('bhwc,cr->bhwr', pooled, wdu1, precision=HIGHEST)
                    + bdu1.reshape(1, 1, 1, -1), 0.0)
    gate = jax.nn.sigmoid(jnp.einsum('bhwr,rc->bhwc', h, wdu2, precision=HIGHEST)
                          + bdu2.reshape(1, 1, 1, -1))
    out = x + y * gate
    return jnp.transpose(out, (0, 3, 1, 2))


if __name__ == "__main__":
    # RCAB(conv=default_conv, n_feat=32, kernel_size=3, reduction=4)
    B, C, H, W = 2, 32, 16, 16
    K, reduction = 3, 4
    Cr = C // reduction

    keys = jax.random.split(jax.random.PRNGKey(0), 10)
    x = jax.random.normal(keys[0], (B, C, H, W), jnp.float32)          # NCHW input
    w1 = 0.05 * jax.random.normal(keys[1], (K, K, C, C), jnp.float32)  # conv1 weight (HWIO)
    b1 = 0.05 * jax.random.normal(keys[2], (1, C), jnp.float32)
    w2 = 0.05 * jax.random.normal(keys[3], (K, K, C, C), jnp.float32)  # conv2 weight (HWIO)
    b2 = 0.05 * jax.random.normal(keys[4], (1, C), jnp.float32)
    wdu1 = 0.1 * jax.random.normal(keys[5], (C, Cr), jnp.float32)      # 1x1 conv_du[0]
    bdu1 = 0.1 * jax.random.normal(keys[6], (1, Cr), jnp.float32)
    wdu2 = 0.1 * jax.random.normal(keys[7], (Cr, C), jnp.float32)      # 1x1 conv_du[2]
    bdu2 = 0.1 * jax.random.normal(keys[8], (1, C), jnp.float32)

    out = rcab_forward(x, w1, b1, w2, b2, wdu1, bdu1, wdu2, bdu2, kernel_size=K)
    out = jax.block_until_ready(out)

    ref = rcab_reference(x, w1, b1, w2, b2, wdu1, bdu1, wdu2, bdu2)
    assert out.shape == (B, C, H, W) and out.dtype == jnp.float32
    # Conv matmuls run with bf16 operands (f32 accumulation) vs. the f32-HIGHEST
    # reference; tolerance is loosened accordingly.
    err = float(jnp.max(jnp.abs(out - ref)))
    assert jnp.allclose(out, ref, atol=2e-2, rtol=2e-2), err

    print("KERNEL_OK")
</pallas_src>

<mosaic_0001>
module attributes {stable_mosaic.version = 11 : i64} {
  func.func @_rcab_kernel(%arg0: i32, %arg1: memref<1x16x512xf32, #tpu.memory_space<vmem>>, %arg2: memref<3x512x512xbf16, #tpu.memory_space<vmem>>, %arg3: memref<1x512xf32, #tpu.memory_space<vmem>>, %arg4: memref<3x512x512xbf16, #tpu.memory_space<vmem>>, %arg5: memref<1x512xf32, #tpu.memory_space<vmem>>, %arg6: memref<32x8xf32, #tpu.memory_space<vmem>>, %arg7: memref<1x8xf32, #tpu.memory_space<vmem>>, %arg8: memref<8x32xf32, #tpu.memory_space<vmem>>, %arg9: memref<1x32xf32, #tpu.memory_space<vmem>>, %arg10: memref<1x16x512xf32, #tpu.memory_space<vmem>>, %arg11: memref<18x512xf32, #tpu.memory_space<vmem>>) attributes {dimension_semantics = [#tpu.dimension_semantics<parallel>], iteration_bounds = array<i64: 2>, scalar_prefetch = 0 : i64, scratch_operands = 1 : i64, tpu.core_type = #tpu.core_type<tc>, window_params = [{transform_indices = @transform_0, window_bounds = array<i64: 1, 16, 512>}, {pipeline_mode = #tpu.pipeline_mode<synchronous>, transform_indices = @transform_1, window_bounds = array<i64: 3, 512, 512>}, {pipeline_mode = #tpu.pipeline_mode<synchronous>, transform_indices = @transform_2, window_bounds = array<i64: 1, 512>}, {pipeline_mode = #tpu.pipeline_mode<synchronous>, transform_indices = @transform_3, window_bounds = array<i64: 3, 512, 512>}, {pipeline_mode = #tpu.pipeline_mode<synchronous>, transform_indices = @transform_4, window_bounds = array<i64: 1, 512>}, {pipeline_mode = #tpu.pipeline_mode<synchronous>, transform_indices = @transform_5, window_bounds = array<i64: 32, 8>}, {pipeline_mode = #tpu.pipeline_mode<synchronous>, transform_indices = @transform_6, window_bounds = array<i64: 1, 8>}, {pipeline_mode = #tpu.pipeline_mode<synchronous>, transform_indices = @transform_7, window_bounds = array<i64: 8, 32>}, {pipeline_mode = #tpu.pipeline_mode<synchronous>, transform_indices = @transform_8, window_bounds = array<i64: 1, 32>}, {transform_indices = @transform_9, window_bounds = array<i64: 1, 16, 512>}]} {
    %c0 = arith.constant 0 : index
    %c0_0 = arith.constant 0 : index
    %c0_1 = arith.constant 0 : index
    %0 = vector.load %arg1[%c0, %c0_0, %c0_1] : memref<1x16x512xf32, #tpu.memory_space<vmem>>, vector<1x16x512xf32>
    %1 = vector.shape_cast %0 : vector<1x16x512xf32> to vector<16x512xf32>
    %cst = arith.constant 0.000000e+00 : f32
    %2 = vector.broadcast %cst : f32 to vector<1x512xf32>
    %c0_2 = arith.constant 0 : index
    %c0_3 = arith.constant 0 : index
    %3 = vector.load %arg11[%c0_2, %c0_3] : memref<18x512xf32, #tpu.memory_space<vmem>>, vector<1x512xf32>
    tpu.vector_store %arg11[%c0_2, %c0_3], %2 {strides = array<i32>} : memref<18x512xf32, #tpu.memory_space<vmem>>, vector<1x512xf32>,
    %cst_4 = arith.constant 0.000000e+00 : f32
    %4 = vector.broadcast %cst_4 : f32 to vector<1x512xf32>
    %c17 = arith.constant 17 : index
    %c0_5 = arith.constant 0 : index
    %5 = vector.load %arg11[%c17, %c0_5] : memref<18x512xf32, #tpu.memory_space<vmem>>, vector<1x512xf32>
    tpu.vector_store %arg11[%c17, %c0_5], %4 {strides = array<i32>} : memref<18x512xf32, #tpu.memory_space<vmem>>, vector<1x512xf32>,
    %c1 = arith.constant 1 : index
    %c0_6 = arith.constant 0 : index
    %6 = vector.load %arg11[%c1, %c0_6] : memref<18x512xf32, #tpu.memory_space<vmem>>, vector<16x512xf32>
    tpu.vector_store %arg11[%c1, %c0_6], %1 {strides = array<i32>} : memref<18x512xf32, #tpu.memory_space<vmem>>, vector<16x512xf32>,
    %c0_7 = arith.constant 0 : index
    %c0_8 = arith.constant 0 : index
    %7 = vector.load %arg3[%c0_7, %c0_8] : memref<1x512xf32, #tpu.memory_space<vmem>>, vector<1x512xf32>
    %cst_9 = arith.constant 0.000000e+00 : f32
    %8 = vector.broadcast %cst_9 : f32 to vector<16x512xf32>
    %c0_10 = arith.constant 0 : index
    %c0_11 = arith.constant 0 : index
    %9 = vector.load %arg11[%c0_10, %c0_11] : memref<18x512xf32, #tpu.memory_space<vmem>>, vector<16x512xf32>
    %10 = arith.truncf %9 : vector<16x512xf32> to vector<16x512xbf16>
    %c0_12 = arith.constant 0 : index
    %c0_13 = arith.constant 0 : index
    %c0_14 = arith.constant 0 : index
    %11 = vector.load %arg2[%c0_12, %c0_13, %c0_14] : memref<3x512x512xbf16, #tpu.memory_space<vmem>>, vector<1x512x512xbf16>
    %12 = vector.shape_cast %11 : vector<1x512x512xbf16> to vector<512x512xbf16>
    %cst_15 = arith.constant dense<0.000000e+00> : vector<16x512xf32>
    %13 = tpu.matmul %10, %12, %cst_15 {dimension_numbers = #tpu.dot_dimension_numbers<[1], [0], [0], [1], [0, 0, 1, 1], [], []>} : vector<16x512xbf16>, vector<512x512xbf16>, vector<16x512xf32> -> vector<16x512xf32>
    %14 = arith.addf %8, %13 : vector<16x512xf32>
    %c1_16 = arith.constant 1 : index
    %c0_17 = arith.constant 0 : index
    %15 = vector.load %arg11[%c1_16, %c0_17] : memref<18x512xf32, #tpu.memory_space<vmem>>, vector<16x512xf32>
    %16 = arith.truncf %15 : vector<16x512xf32> to vector<16x512xbf16>
    %c1_18 = arith.constant 1 : index
    %c0_19 = arith.constant 0 : index
    %c0_20 = arith.constant 0 : index
    %17 = vector.load %arg2[%c1_18, %c0_19, %c0_20] : memref<3x512x512xbf16, #tpu.memory_space<vmem>>, vector<1x512x512xbf16>
    %18 = vector.shape_cast %17 : vector<1x512x512xbf16> to vector<512x512xbf16>
    %cst_21 = arith.constant dense<0.000000e+00> : vector<16x512xf32>
    %19 = tpu.matmul %16, %18, %cst_21 {dimension_numbers = #tpu.dot_dimension_numbers<[1], [0], [0], [1], [0, 0, 1, 1], [], []>} : vector<16x512xbf16>, vector<512x512xbf16>, vector<16x512xf32> -> vector<16x512xf32>
    %20 = arith.addf %14, %19 : vector<16x512xf32>
    %c2 = arith.constant 2 : index
    %c0_22 = arith.constant 0 : index
    %21 = vector.load %arg11[%c2, %c0_22] : memref<18x512xf32, #tpu.memory_space<vmem>>, vector<16x512xf32>
    %22 = arith.truncf %21 : vector<16x512xf32> to vector<16x512xbf16>
    %c2_23 = arith.constant 2 : index
    %c0_24 = arith.constant 0 : index
    %c0_25 = arith.constant 0 : index
    %23 = vector.load %arg2[%c2_23, %c0_24, %c0_25] : memref<3x512x512xbf16, #tpu.memory_space<vmem>>, vector<1x512x512xbf16>
    %24 = vector.shape_cast %23 : vector<1x512x512xbf16> to vector<512x512xbf16>
    %cst_26 = arith.constant dense<0.000000e+00> : vector<16x512xf32>
    %25 = tpu.matmul %22, %24, %cst_26 {dimension_numbers = #tpu.dot_dimension_numbers<[1], [0], [0], [1], [0, 0, 1, 1], [], []>} : vector<16x512xbf16>, vector<512x512xbf16>, vector<16x512xf32> -> vector<16x512xf32>
    %26 = arith.addf %20, %25 : vector<16x512xf32>
    %27 = vector.broadcast %7 : vector<1x512xf32> to vector<16x512xf32>
    %28 = arith.addf %26, %27 : vector<16x512xf32>
    %cst_27 = arith.constant 0.000000e+00 : f32
    %29 = vector.broadcast %cst_27 : f32 to vector<16x512xf32>
    %30 = arith.maximumf %28, %29 : vector<16x512xf32>
    %c1_28 = arith.constant 1 : index
    %c0_29 = arith.constant 0 : index
    %31 = vector.load %arg11[%c1_28, %c0_29] : memref<18x512xf32, #tpu.memory_space<vmem>>, vector<16x512xf32>
    tpu.vector_store %arg11[%c1_28, %c0_29], %30 {strides = array<i32>} : memref<18x512xf32, #tpu.memory_space<vmem>>, vector<16x512xf32>,
    %c0_30 = arith.constant 0 : index
    %c0_31 = arith.constant 0 : index
    %32 = vector.load %arg5[%c0_30, %c0_31] : memref<1x512xf32, #tpu.memory_space<vmem>>, vector<1x512xf32>
    %cst_32 = arith.constant 0.000000e+00 : f32
    %33 = vector.broadcast %cst_32 : f32 to vector<16x512xf32>
    %c0_33 = arith.constant 0 : index
    %c0_34 = arith.constant 0 : index
    %34 = vector.load %arg11[%c0_33, %c0_34] : memref<18x512xf32, #tpu.memory_space<vmem>>, vector<16x512xf32>
    %35 = arith.truncf %34 : vector<16x512xf32> to vector<16x512xbf16>
    %c0_35 = arith.constant 0 : index
    %c0_36 = arith.constant 0 : index
    %c0_37 = arith.constant 0 : index
    %36 = vector.load %arg4[%c0_35, %c0_36, %c0_37] : memref<3x512x512xbf16, #tpu.memory_space<vmem>>, vector<1x512x512xbf16>
    %37 = vector.shape_cast %36 : vector<1x512x512xbf16> to vector<512x512xbf16>
    %cst_38 = arith.constant dense<0.000000e+00> : vector<16x512xf32>
    %38 = tpu.matmul %35, %37, %cst_38 {dimension_numbers = #tpu.dot_dimension_numbers<[1], [0], [0], [1], [0, 0, 1, 1], [], []>} : vector<16x512xbf16>, vector<512x512xbf16>, vector<16x512xf32> -> vector<16x512xf32>
    %39 = arith.addf %33, %38 : vector<16x512xf32>
    %c1_39 = arith.constant 1 : index
    %c0_40 = arith.constant 0 : index
    %40 = vector.load %arg11[%c1_39, %c0_40] : memref<18x512xf32, #tpu.memory_space<vmem>>, vector<16x512xf32>
    %41 = arith.truncf %40 : vector<16x512xf32> to vector<16x512xbf16>
    %c1_41 = arith.constant 1 : index
    %c0_42 = arith.constant 0 : index
    %c0_43 = arith.constant 0 : index
    %42 = vector.load %arg4[%c1_41, %c0_42, %c0_43] : memref<3x512x512xbf16, #tpu.memory_space<vmem>>, vector<1x512x512xbf16>
    %43 = vector.shape_cast %42 : vector<1x512x512xbf16> to vector<512x512xbf16>
    %cst_44 = arith.constant dense<0.000000e+00> : vector<16x512xf32>
    %44 = tpu.matmul %41, %43, %cst_44 {dimension_numbers = #tpu.dot_dimension_numbers<[1], [0], [0], [1], [0, 0, 1, 1], [], []>} : vector<16x512xbf16>, vector<512x512xbf16>, vector<16x512xf32> -> vector<16x512xf32>
    %45 = arith.addf %39, %44 : vector<16x512xf32>
    %c2_45 = arith.constant 2 : index
    %c0_46 = arith.constant 0 : index
    %46 = vector.load %arg11[%c2_45, %c0_46] : memref<18x512xf32, #tpu.memory_space<vmem>>, vector<16x512xf32>
    %47 = arith.truncf %46 : vector<16x512xf32> to vector<16x512xbf16>
    %c2_47 = arith.constant 2 : index
    %c0_48 = arith.constant 0 : index
    %c0_49 = arith.constant 0 : index
    %48 = vector.load %arg4[%c2_47, %c0_48, %c0_49] : memref<3x512x512xbf16, #tpu.memory_space<vmem>>, vector<1x512x512xbf16>
    %49 = vector.shape_cast %48 : vector<1x512x512xbf16> to vector<512x512xbf16>
    %cst_50 = arith.constant dense<0.000000e+00> : vector<16x512xf32>
    %50 = tpu.matmul %47, %49, %cst_50 {dimension_numbers = #tpu.dot_dimension_numbers<[1], [0], [0], [1], [0, 0, 1, 1], [], []>} : vector<16x512xbf16>, vector<512x512xbf16>, vector<16x512xf32> -> vector<16x512xf32>
    %51 = arith.addf %45, %50 : vector<16x512xf32>
    %52 = vector.broadcast %32 : vector<1x512xf32> to vector<16x512xf32>
    %53 = arith.addf %51, %52 : vector<16x512xf32>
    %cst_51 = arith.constant dense<0.000000e+00> : vector<512xf32>
    %54 = vector.multi_reduction <add>, %53, %cst_51 [0] : vector<16x512xf32> to vector<512xf32>
    %55 = vector.shape_cast %54 : vector<512xf32> to vector<1x512xf32>
    %cst_52 = arith.constant 0.000000e+00 : f32
    %56 = vector.broadcast %cst_52 : f32 to vector<1x32xf32>
    %57 = vector.extract_strided_slice %55 {offsets = [0, 0], sizes = [1, 32], strides = [1, 1]} : vector<1x512xf32> to vector<1x32xf32>
    %58 = arith.addf %56, %57 : vector<1x32xf32>
    %59 = vector.extract_strided_slice %55 {offsets = [0, 32], sizes = [1, 32], strides = [1, 1]} : vector<1x512xf32> to vector<1x32xf32>
    %60 = arith.addf %58, %59 : vector<1x32xf32>
    %61 = vector.extract_strided_slice %55 {offsets = [0, 64], sizes = [1, 32], strides = [1, 1]} : vector<1x512xf32> to vector<1x32xf32>
    %62 = arith.addf %60, %61 : vector<1x32xf32>
    %63 = vector.extract_strided_slice %55 {offsets = [0, 96], sizes = [1, 32], strides = [1, 1]} : vector<1x512xf32> to vector<1x32xf32>
    %64 = arith.addf %62, %63 : vector<1x32xf32>
    %65 = vector.extract_strided_slice %55 {offsets = [0, 128], sizes = [1, 32], strides = [1, 1]} : vector<1x512xf32> to vector<1x32xf32>
    %66 = arith.addf %64, %65 : vector<1x32xf32>
    %67 = vector.extract_strided_slice %55 {offsets = [0, 160], sizes = [1, 32], strides = [1, 1]} : vector<1x512xf32> to vector<1x32xf32>
    %68 = arith.addf %66, %67 : vector<1x32xf32>
    %69 = vector.extract_strided_slice %55 {offsets = [0, 192], sizes = [1, 32], strides = [1, 1]} : vector<1x512xf32> to vector<1x32xf32>
    %70 = arith.addf %68, %69 : vector<1x32xf32>
    %71 = vector.extract_strided_slice %55 {offsets = [0, 224], sizes = [1, 32], strides = [1, 1]} : vector<1x512xf32> to vector<1x32xf32>
    %72 = arith.addf %70, %71 : vector<1x32xf32>
    %73 = vector.extract_strided_slice %55 {offsets = [0, 256], sizes = [1, 32], strides = [1, 1]} : vector<1x512xf32> to vector<1x32xf32>
    %74 = arith.addf %72, %73 : vector<1x32xf32>
    %75 = vector.extract_strided_slice %55 {offsets = [0, 288], sizes = [1, 32], strides = [1, 1]} : vector<1x512xf32> to vector<1x32xf32>
    %76 = arith.addf %74, %75 : vector<1x32xf32>
    %77 = vector.extract_strided_slice %55 {offsets = [0, 320], sizes = [1, 32], strides = [1, 1]} : vector<1x512xf32> to vector<1x32xf32>
    %78 = arith.addf %76, %77 : vector<1x32xf32>
    %79 = vector.extract_strided_slice %55 {offsets = [0, 352], sizes = [1, 32], strides = [1, 1]} : vector<1x512xf32> to vector<1x32xf32>
    %80 = arith.addf %78, %79 : vector<1x32xf32>
    %81 = vector.extract_strided_slice %55 {offsets = [0, 384], sizes = [1, 32], strides = [1, 1]} : vector<1x512xf32> to vector<1x32xf32>
    %82 = arith.addf %80, %81 : vector<1x32xf32>
    %83 = vector.extract_strided_slice %55 {offsets = [0, 416], sizes = [1, 32], strides = [1, 1]} : vector<1x512xf32> to vector<1x32xf32>
    %84 = arith.addf %82, %83 : vector<1x32xf32>
    %85 = vector.extract_strided_slice %55 {offsets = [0, 448], sizes = [1, 32], strides = [1, 1]} : vector<1x512xf32> to vector<1x32xf32>
    %86 = arith.addf %84, %85 : vector<1x32xf32>
    %87 = vector.extract_strided_slice %55 {offsets = [0, 480], sizes = [1, 32], strides = [1, 1]} : vector<1x512xf32> to vector<1x32xf32>
    %88 = arith.addf %86, %87 : vector<1x32xf32>
    %cst_53 = arith.constant 3.906250e-03 : f32
    %89 = vector.broadcast %cst_53 : f32 to vector<1x32xf32>
    %90 = arith.mulf %88, %89 : vector<1x32xf32>
    %c0_54 = arith.constant 0 : index
    %c0_55 = arith.constant 0 : index
    %91 = vector.load %arg6[%c0_54, %c0_55] : memref<32x8xf32, #tpu.memory_space<vmem>>, vector<32x8xf32>
    %cst_56 = arith.constant dense<0.000000e+00> : vector<1x8xf32>
    %92 = tpu.matmul %90, %91, %cst_56 {dimension_numbers = #tpu.dot_dimension_numbers<[1], [0], [0], [1], [0, 0, 1, 1], [], []>} : vector<1x32xf32>, vector<32x8xf32>, vector<1x8xf32> -> vector<1x8xf32>
    %c0_57 = arith.constant 0 : index
    %c0_58 = arith.constant 0 : index
    %93 = vector.load %arg7[%c0_57, %c0_58] : memref<1x8xf32, #tpu.memory_space<vmem>>, vector<1x8xf32>
    %94 = arith.addf %92, %93 : vector<1x8xf32>
    %cst_59 = arith.constant 0.000000e+00 : f32
    %95 = vector.broadcast %cst_59 : f32 to vector<1x8xf32>
    %96 = arith.maximumf %94, %95 : vector<1x8xf32>
    %c0_60 = arith.constant 0 : index
    %c0_61 = arith.constant 0 : index
    %97 = vector.load %arg8[%c0_60, %c0_61] : memref<8x32xf32, #tpu.memory_space<vmem>>, vector<8x32xf32>
    %cst_62 = arith.constant dense<0.000000e+00> : vector<1x32xf32>
    %98 = tpu.matmul %96, %97, %cst_62 {dimension_numbers = #tpu.dot_dimension_numbers<[1], [0], [0], [1], [0, 0, 1, 1], [], []>} : vector<1x8xf32>, vector<8x32xf32>, vector<1x32xf32> -> vector<1x32xf32>
    %c0_63 = arith.constant 0 : index
    %c0_64 = arith.constant 0 : index
    %99 = vector.load %arg9[%c0_63, %c0_64] : memref<1x32xf32, #tpu.memory_space<vmem>>, vector<1x32xf32>
    %100 = arith.addf %98, %99 : vector<1x32xf32>
    %101 = arith.negf %100 : vector<1x32xf32>
    %102 = math.exp %101 : vector<1x32xf32>
    %cst_65 = arith.constant 1.000000e+00 : f32
    %103 = vector.broadcast %cst_65 : f32 to vector<1x32xf32>
    %104 = arith.addf %103, %102 : vector<1x32xf32>
    %105 = arith.divf %103, %104 : vector<1x32xf32>
    %106 = tpu.concatenate %105, %105, %105, %105, %105, %105, %105, %105, %105, %105, %105, %105, %105, %105, %105, %105 in 1 : vector<1x32xf32>, vector<1x32xf32>, vector<1x32xf32>, vector<1x32xf32>, vector<1x32xf32>, vector<1x32xf32>, vector<1x32xf32>, vector<1x32xf32>, vector<1x32xf32>, vector<1x32xf32>, vector<1x32xf32>, vector<1x32xf32>, vector<1x32xf32>, vector<1x32xf32>, vector<1x32xf32>, vector<1x32xf32> -> vector<1x512xf32>
    %107 = vector.broadcast %106 : vector<1x512xf32> to vector<16x512xf32>
    %108 = arith.mulf %53, %107 : vector<16x512xf32>
    %109 = arith.addf %108, %1 : vector<16x512xf32>
    %c0_66 = arith.constant 0 : index
    %c0_67 = arith.constant 0 : index
    %c0_68 = arith.constant 0 : index
    %110 = vector.load %arg10[%c0_66, %c0_67, %c0_68] : memref<1x16x512xf32, #tpu.memory_space<vmem>>, vector<1x16x512xf32>
    %111 = vector.shape_cast %110 : vector<1x16x512xf32> to vector<16x512xf32>
    %112 = vector.shape_cast %109 : vector<16x512xf32> to vector<1x16x512xf32>
    tpu.vector_store %arg10[%c0_66, %c0_67, %c0_68], %112 {strides = array<i32>} : memref<1x16x512xf32, #tpu.memory_space<vmem>>, vector<1x16x512xf32>,
    return
  }
  func.func @transform_0(%arg0: i32) -> (i32, i32, i32) {
    %c0_i32 = arith.constant 0 : i32
    %c0_i32_0 = arith.constant 0 : i32
    %c0_i32_1 = arith.constant 0 : i32
    return %arg0, %c0_i32, %c0_i32_0 : i32, i32, i32
  }
  func.func @transform_1(%arg0: i32) -> (i32, i32, i32) {
    %c0_i32 = arith.constant 0 : i32
    %c0_i32_0 = arith.constant 0 : i32
    %c0_i32_1 = arith.constant 0 : i32
    %c0_i32_2 = arith.constant 0 : i32
    return %c0_i32, %c0_i32_0, %c0_i32_1 : i32, i32, i32
  }
  func.func @transform_2(%arg0: i32) -> (i32, i32) {
    %c0_i32 = arith.constant 0 : i32
    %c0_i32_0 = arith.constant 0 : i32
    %c0_i32_1 = arith.constant 0 : i32
    return %c0_i32, %c0_i32_0 : i32, i32
  }
  func.func @transform_3(%arg0: i32) -> (i32, i32, i32) {
    %c0_i32 = arith.constant 0 : i32
    %c0_i32_0 = arith.constant 0 : i32
    %c0_i32_1 = arith.constant 0 : i32
    %c0_i32_2 = arith.constant 0 : i32
    return %c0_i32, %c0_i32_0, %c0_i32_1 : i32, i32, i32
  }
  func.func @transform_4(%arg0: i32) -> (i32, i32) {
    %c0_i32 = arith.constant 0 : i32
    %c0_i32_0 = arith.constant 0 : i32
    %c0_i32_1 = arith.constant 0 : i32
    return %c0_i32, %c0_i32_0 : i32, i32
  }
  func.func @transform_5(%arg0: i32) -> (i32, i32) {
    %c0_i32 = arith.constant 0 : i32
    %c0_i32_0 = arith.constant 0 : i32
    %c0_i32_1 = arith.constant 0 : i32
    return %c0_i32, %c0_i32_0 : i32, i32
  }
  func.func @transform_6(%arg0: i32) -> (i32, i32) {
    %c0_i32 = arith.constant 0 : i32
    %c0_i32_0 = arith.constant 0 : i32
    %c0_i32_1 = arith.constant 0 : i32
    return %c0_i32, %c0_i32_0 : i32, i32
  }
  func.func @transform_7(%arg0: i32) -> (i32, i32) {
    %c0_i32 = arith.constant 0 : i32
    %c0_i32_0 = arith.constant 0 : i32
    %c0_i32_1 = arith.constant 0 : i32
    return %c0_i32, %c0_i32_0 : i32, i32
  }
  func.func @transform_8(%arg0: i32) -> (i32, i32) {
    %c0_i32 = arith.constant 0 : i32
    %c0_i32_0 = arith.constant 0 : i32
    %c0_i32_1 = arith.constant 0 : i32
    return %c0_i32, %c0_i32_0 : i32, i32
  }
  func.func @transform_9(%arg0: i32) -> (i32, i32, i32) {
    %c0_i32 = arith.constant 0 : i32
    %c0_i32_0 = arith.constant 0 : i32
    %c0_i32_1 = arith.constant 0 : i32
    return %arg0, %c0_i32, %c0_i32_0 : i32, i32, i32
  }
}

</mosaic_0001>

<bundles_post_ra>
// kernel: tpu_custom_call.1
= control target key start
LH: loop header
LB: loop body
LE: loop exit
PB: predicated region body
PF: predicated region fallthrough
CT: control target
= control target key end

     0   :  { %s12451_s0 = inlined_call_operand.hbm [shape: f32[2,16,512], index: 0, kind: input, shape index: {}]   ;;  %s12452_s1 = inlined_call_operand.hbm [shape: bf16[3,512,512], index: 1, kind: input, shape index: {}]   ;;  %s12453_s2 = inlined_call_operand.hbm [shape: f32[1,512], index: 2, kind: input, shape index: {}]   ;;  %s12454_s3 = inlined_call_operand.hbm [shape: bf16[3,512,512], index: 3, kind: input, shape index: {}]   ;;  %s12455_s4 = inlined_call_operand.hbm [shape: f32[1,512], index: 4, kind: input, shape index: {}]   ;;  %s12456_s5 = inlined_call_operand.vmem [shape: f32[32,8], index: 5, kind: input, shape index: {}]   ;;  %s12457_s6 = inlined_call_operand.hbm [shape: f32[1,8], index: 6, kind: input, shape index: {}]   ;;  %s12458_s7 = inlined_call_operand.hbm [shape: f32[8,32], index: 7, kind: input, shape index: {}]   ;;  %s12459_s8 = inlined_call_operand.hbm [shape: f32[1,32], index: 8, kind: input, shape index: {}]   ;;  %s12460_s9 = inlined_call_operand.hbm [shape: f32[2,16,512], index: 9, kind: output, shape index: {}]  }
   0x1   :  { %12461 = sst [smem:[#allocation24_spill]] %s12452_s1 }
   0x2   :  { %12462 = sst [smem:[#allocation25_spill]] %s12453_s2 }
   0x3   :  { %12463 = sst [smem:[#allocation26_spill]] %s12454_s3 }
   0x4   :  { %12464 = sst [smem:[#allocation27_spill]] %s12455_s4 }
   0x5   :  { %14 = vsyncpa [#allocation4], 0 }
   0x6   :  { %16 = vsyncpa [#allocation4 + $0x1], 0 }
   0x7   :  { %17 = vsyncpa [#allocation7], 0 }
   0x8   :  { %18 = vsyncpa [#allocation10], 0 }
   0x9   :  { %19 = vsyncpa [#allocation13], 0 }
   0xa   :  { %20 = vsyncpa [#allocation16], 0 }
   0xb   :  { %21 = vsyncpa [#allocation5], 0 }
   0xc   :  { %23 = vsyncpa [#allocation5 + $0x1], 0  ;;  %s11584_s30 = smov 0   ;;  %s11586_s10 = smov 0  }
   0xd   :  { %s11588_s11 = smov 0   ;;  %s11590_s12 = smov 0  }
   0xe LB: > { %s12465_s1 = sld [smem:[#allocation24_spill]]  ;;  %s11608_s16 = sadd.s32 4294967295, %s11516_s12   ;;  %s11516_s12 = sphi %s11590_s12, %s12482_s12   ;;  %s11512_s11 = sphi %s11588_s11, %s12481_s11   ;;  %s11508_s10 = sphi %s11586_s10, %s12480_s10   ;;  %s11504_s30 = sphi %s11584_s30, %s12479_s30  }
   0xf   : > { %p7180_p0 = scmp.ge.s32.totalorder %s11516_s12, 1  ;;  %p50_p1 = scmp.eq.s32.totalorder %s11608_s16, 0 }
  0x10   : > { %p254_p2 = scmp.lt.s32.totalorder %s11516_s12, 3  ;;  %s11518_s18 = smov [#allocation6]  }
  0x11   : > { %s267_s19 = sshll.u32 %s11518_s18, 4  ;;  %s12467_s3 = sld [smem:[#allocation26_spill]]  ;;  %s268_s19 = int_to_ptr.vmem [resolvable:$true] %s267_s19 }
  0x12   : > { %p11613_p3 = pnand %p7180_p0, %p254_p2  ;;  %s321_s26 = sshll.u32 %s12457_s6, 4  ;;  %s322_s26 = int_to_ptr.hbm [resolvable:$true] %s321_s26 }
  0x13   : > { %s11519_s27 = smov [#allocation9]   ;;  %s11520_s29 = smov 256  }
  0x14   : > { %s265_s15 = sshll.u32 %s12465_s1, 4  ;;  %p11084_p4 = pneg %p11613_p3  ;;  %s266_s15 = int_to_ptr.hbm [resolvable:$true] %s265_s15 }
  0x15   : > { %s293_s28 = sshll.u32 %s11519_s27, 4  ;;  %s11521_s13 = smov 16   ;;  %s294_s28 = int_to_ptr.vmem [resolvable:$true] %s293_s28 }
  0x16   : > { %p11625_p6 = pnand %p11084_p4, %p50_p1  ;;  %s12469_s2 = sld [smem:[#allocation25_spill]] }
  0x17   : > { %s291_s22 = sshll.u32 %s12467_s3, 4  ;;  %s11522_s21 = smov [#allocation12]   ;;  %s292_s22 = int_to_ptr.hbm [resolvable:$true] %s291_s22 }
  0x18   : > { %11087 = dma.hbm_to_vmem [thread:$0]  (!%p11625_p6), %s266_s15, 49152, %s268_s19, [#allocation7], %s11520_s29, %s11520_s29, %s11521_s13  }
  0x19   : > { %11093 = dma.hbm_to_vmem [thread:$0]  (!%p11625_p6), %s292_s22, 49152, %s294_s28, [#allocation10], %s11520_s29, %s11520_s29, %s11521_s13  }
  0x1a   : > { %s323_s1 = sshll.u32 %s11522_s21, 4  ;;  %s11523_s24 = smov [#allocation8]   ;;  %s324_s1 = int_to_ptr.vmem [resolvable:$true] %s323_s1 }
  0x1b   : > { %11099 = dma.hbm_to_vmem [thread:$0]  (!%p11625_p6), %s322_s26, 16, %s324_s1, [#allocation13]  }
  0x1c   : > { %s280_s20 = sshll.u32 %s12469_s2, 4  ;;  %s282_s25 = sshll.u32 %s11523_s24, 4  ;;  %s281_s20 = int_to_ptr.hbm [resolvable:$true] %s280_s20  ;;  %s283_s25 = int_to_ptr.vmem [resolvable:$true] %s282_s25 }
  0x1d   : > { %s12470_s4 = sld [smem:[#allocation27_spill]]  ;;  %s333_s28 = sshll.u32 %s12458_s7, 4  ;;  %s334_s28 = int_to_ptr.hbm [resolvable:$true] %s333_s28 }
  0x1e   : > { %11090 = dma.hbm_to_vmem [thread:$0]  (!%p11625_p6), %s281_s20, 64, %s283_s25, [#allocation7]  }
  0x1f   : > { %s11524_s29 = smov [#allocation11]   ;;  %s11525_s3 = smov [#allocation14]  }
  0x20   : > { %s308_s1 = sshll.u32 %s11524_s29, 4  ;;  %s335_s26 = sshll.u32 %s11525_s3, 4  ;;  %s309_s1 = int_to_ptr.vmem [resolvable:$true] %s308_s1  ;;  %s336_s26 = int_to_ptr.vmem [resolvable:$true] %s335_s26 }
  0x21   : > { %s345_s18 = sshll.u32 %s12459_s8, 4  ;;  %s11526_s20 = smov [#allocation15]   ;;  %s346_s18 = int_to_ptr.hbm [resolvable:$true] %s345_s18 }
  0x22   : > { %11102 = dma.hbm_to_vmem [thread:$0]  (!%p11625_p6), %s334_s28, 128, %s336_s26, [#allocation13]  }
  0x23   : > { %s306_s15 = sshll.u32 %s12470_s4, 4  ;;  %s347_s21 = sshll.u32 %s11526_s20, 4  ;;  %s307_s15 = int_to_ptr.hbm [resolvable:$true] %s306_s15  ;;  %s348_s21 = int_to_ptr.vmem [resolvable:$true] %s347_s21 }
  0x24   : > { %11096 = dma.hbm_to_vmem [thread:$0]  (!%p11625_p6), %s307_s15, 64, %s309_s1, [#allocation10]  }
  0x25   : > { %11105 = dma.hbm_to_vmem [thread:$0]  (!%p11625_p6), %s346_s18, 16, %s348_s21, [#allocation16]  }
  0x26   : > { %s7179_s24 = sadd.s32 4294967294, %s11516_s12   ;;  %s11660_s25 = sadd.s32 1, %s11516_s12  }
  0x27   : > { %s36_s27 = sadd.s32 1, %s11512_s11  ;;  %s33_s15 = ssub.s32 %s11516_s12, %s11660_s25 }
  0x28   : > { %p43_p7 = scmp.ne.s32.totalorder %s11512_s11, %s11508_s10  ;;  %p34_p8 = scmp.eq.s32.totalorder %s33_s15, 0 }
  0x29   : > { %p44_p9 = scmp.eq.s32.totalorder %s11516_s12, 0  ;;  %p49_p10 = scmp.ne.s32.totalorder %s11508_s10, %s11504_s30 }
  0x2a   : > { %p241_p11 = scmp.eq.s32.totalorder %s11608_s16, 1  ;;  %p247_p2 = scmp.eq.s32.totalorder %s7179_s24, 1 }
  0x2b   : > { %s11672_s19 = scalar_select %p34_p8, %s11512_s11, %s36_s27  }
  0x2c   : > { %p11674_p12 = por %p44_p9, %p43_p7  ;;  %p11680_p13 = por %p50_p1, %p49_p10 }
  0x2d   : > { %p11684_p0 = por %p241_p11, %p43_p7  ;;  %p11121_p4 = scmp.lt.s32.totalorder %s11516_s12, 2 }
  0x2e   : > { %s358_s29 = sand.u32 1, %s11512_s11   ;;  %p11690_p6 = por %p247_p2, %p49_p10 }
  0x2f   : > { %s7189_s3 = sshll.u32 %s358_s29, 6  ;;  %s10282_s26 = sshll.u32 %s11516_s12, 6 }
  0x30   : > { %s367_s18 = scalar_lea.hbm %s12451_s0, %s10282_s26  ;;  %s362_s21 = scalar_lea.vmem [#allocation3], %s7189_s3 }
  0x31   : > { %s368_s20 = sshll.u32 %s367_s18, 4  ;;  %s370_s27 = sshll.u32 %s362_s21, 4  ;;  %s369_s20 = int_to_ptr.hbm [resolvable:$true] %s368_s20  ;;  %s371_s27 = int_to_ptr.vmem [resolvable:$true] %s370_s27 }
  0x32   : > { %p11700_p7 = pnand %p11121_p4, %p11674_p12  ;;  %s359_s15 = scalar_lea.sflag [#allocation4], %s358_s29 }
  0x33   : > { %s11404_s2 = sshra.s32 %s369_s20, 4  ;;  %s11411_s13 = scalar_lea.hbm %s12451_s0, 128  ;;  %s11405_s2 = int_to_ptr.hbm [resolvable:$true] %s11404_s2 }
  0x34   : > { %s11406_s4 = scalar_lea.hbm %s11405_s2, 64  ;;  %p11408_p9 = pneg %p11700_p7 }
  0x35   : > { %p11407_p8 = scmp.ne.s32.totalorder %s11405_s2, %s11406_s4  ;;  %p11412_p12 = scmp.lt.s32.totalorder %s11405_s2, %s12451_s0 }
  0x36   : > { %p11413_p2 = scmp.lt.s32.totalorder %s11411_s13, %s11406_s4 }
  0x37   : > { %p11409_p10 = pnand %p11408_p9, %p11407_p8 }
  0x38   : > { %p11414_p4 = por %p11413_p2, %p11412_p12 }
  0x39   : > { %p11410_p11 = pneg %p11409_p10 }
  0x3b   : > { %p11415_p5 = pnand %p11414_p4, %p11410_p11 }
  0x3d   : > { %11418 = shalt.err (!%p11415_p5)
}
  0x3e   : > { %s11527_s29 = smov 512   ;;  %s11528_s18 = smov 32  }
  0x3f   : > { %11109 = dma.hbm_to_vmem [thread:$0]  (!%p11700_p7), %s369_s20, 1024, %s371_s27, %s359_s15, %s11527_s29, %s11527_s29, %s11528_s18  }
  0x40   : > { %382 = sbr.rel (%p11613_p3) target bundleno = 1660 (0x67c), region = 56  ;;  %s11717_s21 = sand.u32 (!%p11613_p3), 1, %s11508_s10  }
  0x41   : > { %s7193_s2 = sshll.u32 (!%p11613_p3), %s11717_s21, 6  ;;  %s385_s4 = scalar_lea.sflag (!%p11613_p3), [#allocation4], %s11717_s21 }
  0x42   : > { %s11723_s26 = scalar_lea.vmem (!%p11613_p3), [#allocation3], %s7193_s2 }
  0x45   : > { %11479 = dma.done.wait (%p11680_p13), %s385_s4, 1024  }
  0x46   : > { %11481 = vsyncadd (%p11680_p13), %s385_s4, 4294966272 }
  0x47   : > { %11483 = dma.done.wait (%p50_p1), [#allocation7], 49216  }
  0x48   : > { %11485 = vsyncadd (%p50_p1), [#allocation7], 4294918080 }
  0x49   : > { %11487 = dma.done.wait (%p50_p1), [#allocation10], 49216  }
  0x4a   : > { %11489 = vsyncadd (%p50_p1), [#allocation10], 4294918080 }
  0x4b   : > { %11491 = dma.done.wait (%p50_p1), [#allocation13], 144  }
  0x4c   : > { %11493 = vsyncadd (%p50_p1), [#allocation13], 4294967152 }
  0x4d   : > { %11495 = dma.done.wait (%p50_p1), [#allocation16], 16  }
  0x4e   : > { %11497 = vsyncadd (%p50_p1), [#allocation16], 4294967280  ;;  %v7316_v0 = vld [vmem:[#allocation6 + $0x4e0] sm:$0xf]  ;;  %v10441_v1 = vld [vmem:[#allocation6 + $0x4ec] sm:$0xf0] }
  0x4f   : > { %v7444_v2 = vld [vmem:[#allocation6 + $0x5e0] sm:$0xf]  ;;  %v7317_v3 = vor.u32 %v10441_v1, %v7316_v0  ;;  %v10473_v4 = vld [vmem:[#allocation6 + $0x5ec] sm:$0xf0]  ;;  %vm484_vm0 = vcmask 1040384   ;;  %vm2741_vm3 = vcmask 1046528  }
  0x50   : > { %v7572_v5 = vld [vmem:[#allocation6 + $0x6e0] sm:$0xf]  ;;  %v10505_v6 = vld [vmem:[#allocation6 + $0x6ec] sm:$0xf0]  ;;  %v7445_v7 = vor.u32 %v10473_v4, %v7444_v2  ;;  %vm807_vm1 = vsmask.f32 7424 }
  0x51   : > { %v7573_v8 = vor.u32 %v10505_v6, %v7572_v5  ;;  %v7700_v9 = vld [vmem:[#allocation6 + $0x7e0] sm:$0xf]  ;;  %v10537_v10 = vld [vmem:[#allocation6 + $0x7ec] sm:$0xf0]  ;;  %1500 = vmatpush.bf16.msra.mxu0 %v7317_v3  ;;  %s11530_s17 = smov 32   ;;  %s11531_s23 = smov 96  }
  0x52   : > { %v7300_v11 = vld [vmem:[#allocation6 + $0x4c0] sm:$0xf]  ;;  %v7701_v12 = vor.u32 %v10537_v10, %v7700_v9  ;;  %v10437_v13 = vld [vmem:[#allocation6 + $0x4cc] sm:$0xf0]  ;;  %1514 = vmatpush.bf16.msra.mxu1 %v7445_v7  ;;  %s11532_s20 = smov 64   ;;  %vm6913_vm4 = vcmask 261120  }
  0x53   : > { %v7428_v14 = vld [vmem:[#allocation6 + $0x5c0] sm:$0xf]  ;;  %v10469_v15 = vld [vmem:[#allocation6 + $0x5cc] sm:$0xf0]  ;;  %1528 = vmatpush.bf16.msra.mxu2 %v7573_v8  ;;  %v7301_v16 = vor.u32 %v10437_v13, %v7300_v11  ;;  %vm6940_vm5 = vcmask 64512   ;;  %vm6994_vm10 = vcmask 523264  }
  0x54   : > { %v7429_v17 = vor.u32 %v10469_v15, %v7428_v14  ;;  %v7556_v18 = vld [vmem:[#allocation6 + $0x6c0] sm:$0xf]  ;;  %v10501_v19 = vld [vmem:[#allocation6 + $0x6cc] sm:$0xf0]  ;;  %1542 = vmatpush.bf16.msra.mxu3 %v7701_v12  ;;  %vm6996_vm11 = vcmask 785408   ;;  %s11051_s18 = sshll.u32 %s11608_s16, 6 }
  0x55   : > { %v7684_v20 = vld [vmem:[#allocation6 + $0x7c0] sm:$0xf]  ;;  %v7557_v21 = vor.u32 %v10501_v19, %v7556_v18  ;;  %v10533_v22 = vld [vmem:[#allocation6 + $0x7cc] sm:$0xf0]  ;;  %1501 = vmatpush.bf16.msra.mxu0 %v7301_v16 }
  0x56   : > { %v7284_v23 = vld [vmem:[#allocation6 + $0x4a0] sm:$0xf]  ;;  %v10433_v24 = vld [vmem:[#allocation6 + $0x4ac] sm:$0xf0]  ;;  %v7685_v25 = vor.u32 %v10533_v22, %v7684_v20  ;;  %1515 = vmatpush.bf16.msra.mxu1 %v7429_v17 }
  0x57   : > { %v7412_v26 = vld [vmem:[#allocation6 + $0x5a0] sm:$0xf]  ;;  %v10465_v27 = vld [vmem:[#allocation6 + $0x5ac] sm:$0xf0]  ;;  %v7285_v29 = vor.u32 %v10433_v24, %v7284_v23  ;;  %1529 = vmatpush.bf16.msra.mxu2 %v7557_v21 }
  0x58   : > { %v7540_v28 = vld [vmem:[#allocation6 + $0x6a0] sm:$0xf]  ;;  %v10497_v30 = vld [vmem:[#allocation6 + $0x6ac] sm:$0xf0]  ;;  %v7413_v33 = vor.u32 %v10465_v27, %v7412_v26  ;;  %1543 = vmatpush.bf16.msra.mxu3 %v7685_v25 }
  0x59   : > { %v7668_v31 = vld [vmem:[#allocation6 + $0x7a0] sm:$0xf]  ;;  %v10529_v32 = vld [vmem:[#allocation6 + $0x7ac] sm:$0xf0]  ;;  %v7541_v34 = vor.u32 %v10497_v30, %v7540_v28  ;;  %1502 = vmatpush.bf16.msra.mxu0 %v7285_v29  ;;  %v10439_v28 = vld [vmem:[#allocation6 + $0x4e4] sm:$0xf] }
  0x5a   : > { %v7268_v35 = vld [vmem:[#allocation6 + $0x480] sm:$0xf]  ;;  %v10429_v36 = vld [vmem:[#allocation6 + $0x48c] sm:$0xf0]  ;;  %v7669_v38 = vor.u32 %v10529_v32, %v7668_v31  ;;  %1516 = vmatpush.bf16.msra.mxu1 %v7413_v33  ;;  %v7318_v29 = vld [vmem:[#allocation6 + $0x4f0] sm:$0xf0] }
  0x5b   : > { %v7396_v37 = vld [vmem:[#allocation6 + $0x580] sm:$0xf]  ;;  %v10461_v39 = vld [vmem:[#allocation6 + $0x58c] sm:$0xf0]  ;;  %v7269_v44 = vor.u32 %v10429_v36, %v7268_v35  ;;  %1530 = vmatpush.bf16.msra.mxu2 %v7541_v34  ;;  %v10471_v30 = vld [vmem:[#allocation6 + $0x5e4] sm:$0xf] }
  0x5c   : > { %v7524_v40 = vld [vmem:[#allocation6 + $0x680] sm:$0xf]  ;;  %v10493_v41 = vld [vmem:[#allocation6 + $0x68c] sm:$0xf0]  ;;  %v7397_v45 = vor.u32 %v10461_v39, %v7396_v37  ;;  %1544 = vmatpush.bf16.msra.mxu3 %v7669_v38  ;;  %v7446_v32 = vld [vmem:[#allocation6 + $0x5f0] sm:$0xf0] }
  0x5d   : > { %v7652_v42 = vld [vmem:[#allocation6 + $0x780] sm:$0xf]  ;;  %v10525_v43 = vld [vmem:[#allocation6 + $0x78c] sm:$0xf0]  ;;  %v7525_v46 = vor.u32 %v10493_v41, %v7524_v40  ;;  %1503 = vmatpush.bf16.msra.mxu0 %v7269_v44  ;;  %v10503_v33 = vld [vmem:[#allocation6 + $0x6e4] sm:$0xf]  ;;  %v7321_v40 = vor.u32 %v10439_v28, %v7318_v29  ;;  %v7449_v41 = vor.u32 %v10471_v30, %v7446_v32 }
  0x5e   : > { %v7252_v47 = vld [vmem:[#allocation6 + $0x460] sm:$0xf]  ;;  %v10425_v48 = vld [vmem:[#allocation6 + $0x46c] sm:$0xf0]  ;;  %v7653_v50 = vor.u32 %v10525_v43, %v7652_v42  ;;  %1517 = vmatpush.bf16.msra.mxu1 %v7397_v45  ;;  %v7574_v34 = vld [vmem:[#allocation6 + $0x6f0] sm:$0xf0] }
  0x5f   : > { %v7380_v49 = vld [vmem:[#allocation6 + $0x560] sm:$0xf]  ;;  %v10457_v51 = vld [vmem:[#allocation6 + $0x56c] sm:$0xf0]  ;;  %v7253_v56 = vor.u32 %v10425_v48, %v7252_v47  ;;  %1531 = vmatpush.bf16.msra.mxu2 %v7525_v46  ;;  %v10535_v37 = vld [vmem:[#allocation6 + $0x7e4] sm:$0xf]  ;;  %v7577_v42 = vor.u32 %v10503_v33, %v7574_v34 }
  0x60   : > { %v7508_v52 = vld [vmem:[#allocation6 + $0x660] sm:$0xf]  ;;  %v10489_v53 = vld [vmem:[#allocation6 + $0x66c] sm:$0xf0]  ;;  %v7381_v57 = vor.u32 %v10457_v51, %v7380_v49  ;;  %1545 = vmatpush.bf16.msra.mxu3 %v7653_v50  ;;  %v7702_v38 = vld [vmem:[#allocation6 + $0x7f0] sm:$0xf0] }
  0x61   : > { %v7636_v54 = vld [vmem:[#allocation6 + $0x760] sm:$0xf]  ;;  %v10521_v55 = vld [vmem:[#allocation6 + $0x76c] sm:$0xf0]  ;;  %v7509_v58 = vor.u32 %v10489_v53, %v7508_v52  ;;  %1504 = vmatpush.bf16.msra.mxu0 %v7253_v56  ;;  %v10435_v43 = vld [vmem:[#allocation6 + $0x4c4] sm:$0xf]  ;;  %v7705_v46 = vor.u32 %v10535_v37, %v7702_v38 }
  0x62   : > { %v7236_v59 = vld [vmem:[#allocation6 + $0x440] sm:$0xf]  ;;  %v10421_v60 = vld [vmem:[#allocation6 + $0x44c] sm:$0xf0]  ;;  %v7637_v62 = vor.u32 %v10521_v55, %v7636_v54  ;;  %1518 = vmatpush.bf16.msra.mxu1 %v7381_v57  ;;  %v7302_v44 = vld [vmem:[#allocation6 + $0x4d0] sm:$0xf0] }
  0x63   : > { %v7364_v61 = vld [vmem:[#allocation6 + $0x540] sm:$0xf]  ;;  %v10453_v63 = vld [vmem:[#allocation6 + $0x54c] sm:$0xf0]  ;;  %v7237_v4 = vor.u32 %v10421_v60, %v7236_v59  ;;  %1532 = vmatpush.bf16.msra.mxu2 %v7509_v58  ;;  %v10467_v45 = vld [vmem:[#allocation6 + $0x5c4] sm:$0xf]  ;;  %v7305_v52 = vor.u32 %v10435_v43, %v7302_v44 }
  0x64   : > { %v7492_v0 = vld [vmem:[#allocation6 + $0x640] sm:$0xf]  ;;  %v10485_v1 = vld [vmem:[#allocation6 + $0x64c] sm:$0xf0]  ;;  %v7365_v5 = vor.u32 %v10453_v63, %v7364_v61  ;;  %1546 = vmatpush.bf16.msra.mxu3 %v7637_v62  ;;  %v7430_v47 = vld [vmem:[#allocation6 + $0x5d0] sm:$0xf0] }
  0x65   : > { %v7620_v2 = vld [vmem:[#allocation6 + $0x740] sm:$0xf]  ;;  %v10517_v3 = vld [vmem:[#allocation6 + $0x74c] sm:$0xf0]  ;;  %v7493_v6 = vor.u32 %v10485_v1, %v7492_v0  ;;  %1505 = vmatpush.bf16.msra.mxu0 %v7237_v4  ;;  %v10499_v48 = vld [vmem:[#allocation6 + $0x6c4] sm:$0xf]  ;;  %v7433_v54 = vor.u32 %v10467_v45, %v7430_v47 }
  0x66   : > { %v7220_v7 = vld [vmem:[#allocation6 + $0x420] sm:$0xf]  ;;  %v10417_v8 = vld [vmem:[#allocation6 + $0x42c] sm:$0xf0]  ;;  %v7621_v10 = vor.u32 %v10517_v3, %v7620_v2  ;;  %1519 = vmatpush.bf16.msra.mxu1 %v7365_v5  ;;  %v7558_v49 = vld [vmem:[#allocation6 + $0x6d0] sm:$0xf0] }
  0x67   : > { %v7348_v9 = vld [vmem:[#allocation6 + $0x520] sm:$0xf]  ;;  %v10449_v11 = vld [vmem:[#allocation6 + $0x52c] sm:$0xf0]  ;;  %v7221_v16 = vor.u32 %v10417_v8, %v7220_v7  ;;  %1533 = vmatpush.bf16.msra.mxu2 %v7493_v6  ;;  %v10531_v50 = vld [vmem:[#allocation6 + $0x7c4] sm:$0xf]  ;;  %v7561_v55 = vor.u32 %v10499_v48, %v7558_v49 }
  0x68   : > { %v7476_v12 = vld [vmem:[#allocation6 + $0x620] sm:$0xf]  ;;  %v10481_v13 = vld [vmem:[#allocation6 + $0x62c] sm:$0xf0]  ;;  %v7349_v19 = vor.u32 %v10449_v11, %v7348_v9  ;;  %1547 = vmatpush.bf16.msra.mxu3 %v7621_v10  ;;  %v7686_v51 = vld [vmem:[#allocation6 + $0x7d0] sm:$0xf0] }
  0x69   : > { %v7604_v14 = vld [vmem:[#allocation6 + $0x720] sm:$0xf]  ;;  %v10513_v15 = vld [vmem:[#allocation6 + $0x72c] sm:$0xf0]  ;;  %v7477_v20 = vor.u32 %v10481_v13, %v7476_v12  ;;  %1506 = vmatpush.bf16.msra.mxu0 %v7221_v16  ;;  %v10431_v53 = vld [vmem:[#allocation6 + $0x4a4] sm:$0xf]  ;;  %v7689_v59 = vor.u32 %v10531_v50, %v7686_v51 }
  0x6a   : > { %v7204_v17 = vld [vmem:[#allocation6 + $0x400] sm:$0xf]  ;;  %v10413_v18 = vld [vmem:[#allocation6 + $0x40c] sm:$0xf0]  ;;  %v7605_v24 = vor.u32 %v10513_v15, %v7604_v14  ;;  %1520 = vmatpush.bf16.msra.mxu1 %v7349_v19  ;;  %v7286_v56 = vld [vmem:[#allocation6 + $0x4b0] sm:$0xf0] }
  0x6b   : > { %v7332_v21 = vld [vmem:[#allocation6 + $0x500] sm:$0xf]  ;;  %v10445_v22 = vld [vmem:[#allocation6 + $0x50c] sm:$0xf0]  ;;  %v7205_v31 = vor.u32 %v10413_v18, %v7204_v17  ;;  %1534 = vmatpush.bf16.msra.mxu2 %v7477_v20  ;;  %v10463_v57 = vld [vmem:[#allocation6 + $0x5a4] sm:$0xf]  ;;  %v7289_v2 = vor.u32 %v10431_v53, %v7286_v56 }
  0x6c   : > { %v7460_v23 = vld [vmem:[#allocation6 + $0x600] sm:$0xf]  ;;  %v10477_v25 = vld [vmem:[#allocation6 + $0x60c] sm:$0xf0]  ;;  %v7333_v35 = vor.u32 %v10445_v22, %v7332_v21  ;;  %1548 = vmatpush.bf16.msra.mxu3 %v7605_v24  ;;  %v7414_v58 = vld [vmem:[#allocation6 + $0x5b0] sm:$0xf0] }
  0x6d   : > { %v7588_v26 = vld [vmem:[#allocation6 + $0x700] sm:$0xf]  ;;  %v10509_v27 = vld [vmem:[#allocation6 + $0x70c] sm:$0xf0]  ;;  %v7461_v36 = vor.u32 %v10477_v25, %v7460_v23  ;;  %1507 = vmatpush.bf16.msra.mxu0 %v7205_v31  ;;  %v10495_v60 = vld [vmem:[#allocation6 + $0x6a4] sm:$0xf]  ;;  %v7417_v8 = vor.u32 %v10463_v57, %v7414_v58 }
  0x6e   : > { %v7589_v39 = vor.u32 %v10509_v27, %v7588_v26  ;;  %1521 = vmatpush.bf16.msra.mxu1 %v7333_v35  ;;  %v7542_v61 = vld [vmem:[#allocation6 + $0x6b0] sm:$0xf0]  ;;  %v10527_v62 = vld [vmem:[#allocation6 + $0x7a4] sm:$0xf]  ;;  %v462_v13 = vld [vmem:[%s11723_s26 + $0x18] sm:$0xff] }
  0x6f   : > { %1535 = vmatpush.bf16.msra.mxu2 %v7461_v36  ;;  %v7670_v63 = vld [vmem:[#allocation6 + $0x7b0] sm:$0xf0]  ;;  %v10427_v0 = vld [vmem:[#allocation6 + $0x484] sm:$0xf]  ;;  %v7545_v9 = vor.u32 %v10495_v60, %v7542_v61  ;;  %v466_v14 = vld [vmem:[%s11723_s26 + $0x38] sm:$0xff]  ;;  %v488_v18 = vrot.slane %v462_v13, 7 }
  0x70   : > { %1549 = vmatpush.bf16.msra.mxu3 %v7589_v39  ;;  %v7270_v1 = vld [vmem:[#allocation6 + $0x490] sm:$0xf0]  ;;  %v10459_v3 = vld [vmem:[#allocation6 + $0x584] sm:$0xf]  ;;  %v7673_v15 = vor.u32 %v10527_v62, %v7670_v63  ;;  %v495_v19 = vrot.slane %v466_v14, 7  ;;  %v11752_v34 = vld [vmem:[%s11723_s26 + $0x8] sm:$0xff] }
  0x71   : > { %1556 = vmatpush.bf16.msrb.mxu0 %v7321_v40  ;;  %v7398_v4 = vld [vmem:[#allocation6 + $0x590] sm:$0xf0]  ;;  %v10491_v5 = vld [vmem:[#allocation6 + $0x684] sm:$0xf]  ;;  %v7273_v22 = vor.u32 %v10427_v0, %v7270_v1  ;;  %512 = vst [vmem:[#allocation2 + $0x18] sm:$0xfe] %v488_v18 }
  0x72   : > { %1570 = vmatpush.bf16.msrb.mxu1 %v7449_v41  ;;  %v461_v6 = vld [vmem:[%s11723_s26 + $0x10] sm:$0xff]  ;;  %v10523_v16 = vld [vmem:[#allocation6 + $0x784] sm:$0xf]  ;;  %v7401_v27 = vor.u32 %v10459_v3, %v7398_v4  ;;  %520 = vst [vmem:[#allocation2 + $0x58] sm:$0x1] %v495_v19  ;;  %v11763_v41 = vld [vmem:[%s11723_s26 + $0x28] sm:$0xff] }
  0x73   : > { %1584 = vmatpush.bf16.msrb.mxu2 %v7577_v42  ;;  %v465_v7 = vld [vmem:[%s11723_s26 + $0x30] sm:$0xff]  ;;  %v487_v11 = vrot.slane %v461_v6, 7  ;;  %v10423_v20 = vld [vmem:[#allocation6 + $0x464] sm:$0xf]  ;;  %v486_v42 = vrot.slane %v11752_v34, 7  ;;  %v491_v47 = vrot.slane %v11763_v41, 7 }
  0x74   : > { %1598 = vmatpush.bf16.msrb.mxu3 %v7705_v46  ;;  %v7526_v10 = vld [vmem:[#allocation6 + $0x690] sm:$0xf0]  ;;  %v493_v12 = vrot.slane %v465_v7, 7  ;;  %v10455_v23 = vld [vmem:[#allocation6 + $0x564] sm:$0xf] }
  0x75   : > { %1557 = vmatpush.bf16.msrb.mxu0 %v7305_v52  ;;  %v7654_v17 = vld [vmem:[#allocation6 + $0x790] sm:$0xf0]  ;;  %511 = vst [vmem:[#allocation2 + $0x10] sm:$0xfe] %v487_v11  ;;  %v10487_v25 = vld [vmem:[#allocation6 + $0x664] sm:$0xf]  ;;  %v7529_v28 = vor.u32 %v10491_v5, %v7526_v10 }
  0x76   : > { %1571 = vmatpush.bf16.msrb.mxu1 %v7433_v54  ;;  %v7254_v21 = vld [vmem:[#allocation6 + $0x470] sm:$0xf0]  ;;  %519 = vst [vmem:[#allocation2 + $0x50] sm:$0x1] %v493_v12  ;;  %v10519_v29 = vld [vmem:[#allocation6 + $0x764] sm:$0xf]  ;;  %v7657_v31 = vor.u32 %v10523_v16, %v7654_v17  ;;  %v11769_v46 = vsel %vm484_vm0, %v487_v11, %v493_v12  ;;  %v11773_v54 = vsel %vm484_vm0, %v488_v18, %v495_v19 }
  0x77   : > { %1585 = vmatpush.bf16.msrb.mxu2 %v7561_v55  ;;  %v7382_v24 = vld [vmem:[#allocation6 + $0x570] sm:$0xf0]  ;;  %v459_v32 = vld [vmem:[%s11723_s26] sm:$0xff]  ;;  %v7257_v43 = vor.u32 %v10423_v20, %v7254_v21  ;;  %510 = vst [vmem:[#allocation2 + $0x8] sm:$0xfe] %v486_v42 }
  0x78   : > { %1599 = vmatpush.bf16.msrb.mxu3 %v7689_v59  ;;  %v7510_v26 = vld [vmem:[#allocation6 + $0x670] sm:$0xf0]  ;;  %v463_v33 = vld [vmem:[%s11723_s26 + $0x20] sm:$0xff]  ;;  %v485_v39 = vrot.slane %v459_v32, 7  ;;  %v7385_v48 = vor.u32 %v10455_v23, %v7382_v24  ;;  %v665_v1 = vld [vmem:[#allocation2 + $0x18] sm:$0xfe] }
  0x79   : > { %1558 = vmatpush.bf16.msrb.mxu0 %v7289_v2  ;;  %v7638_v30 = vld [vmem:[#allocation6 + $0x770] sm:$0xf0]  ;;  %v11754_v35 = vld [vmem:[#allocation6 + $0x444] sm:$0xf]  ;;  %v489_v40 = vrot.slane %v463_v33, 7  ;;  %v7513_v49 = vor.u32 %v10487_v25, %v7510_v26  ;;  %v673_v7 = vpack.c.bf16 %v11773_v54, %v665_v1  ;;  %v11825_v33 = vsel %vm484_vm0, %v486_v42, %v491_v47 }
  0x7a   : > { %1572 = vmatpush.bf16.msrb.mxu1 %v7417_v8  ;;  %v11756_v36 = vld [vmem:[#allocation6 + $0x450] sm:$0xf0]  ;;  %v11758_v37 = vld [vmem:[#allocation6 + $0x544] sm:$0xf]  ;;  %509 = vst [vmem:[#allocation2] sm:$0xfe] %v485_v39  ;;  %v7641_v52 = vor.u32 %v10519_v29, %v7638_v30 }
  0x7b   : > { %1586 = vmatpush.bf16.msrb.mxu2 %v7545_v9  ;;  %v11760_v38 = vld [vmem:[#allocation6 + $0x550] sm:$0xf0]  ;;  %v11766_v44 = vld [vmem:[#allocation6 + $0x644] sm:$0xf]  ;;  %517 = vst [vmem:[#allocation2 + $0x40] sm:$0x1] %v489_v40  ;;  %v7241_v62 = vor.u32 %v11754_v35, %v11756_v36  ;;  %v11803_v13 = vsel %vm484_vm0, %v485_v39, %v489_v40 }
  0x7c   : > { %1600 = vmatpush.bf16.msrb.mxu3 %v7673_v15  ;;  %v7494_v45 = vld [vmem:[#allocation6 + $0x650] sm:$0xf0]  ;;  %v10515_v50 = vld [vmem:[#allocation6 + $0x744] sm:$0xf]  ;;  %v7369_v63 = vor.u32 %v11758_v37, %v11760_v38  ;;  %518 = vst [vmem:[#allocation2 + $0x48] sm:$0x1] %v491_v47 }
  0x7d   : > { %1559 = vmatpush.bf16.msrb.mxu0 %v7273_v22  ;;  %v7622_v51 = vld [vmem:[#allocation6 + $0x750] sm:$0xf0]  ;;  %v11775_v55 = vld [vmem:[#allocation6 + $0x424] sm:$0xf]  ;;  %v668_v57 = vld [vmem:[#allocation2 + $0x50] sm:$0x1]  ;;  %v7497_v3 = vor.u32 %v11766_v44, %v7494_v45 }
  0x7e   : > { %1573 = vmatpush.bf16.msrb.mxu1 %v7401_v27  ;;  %v664_v53 = vld [vmem:[#allocation2 + $0x10] sm:$0xfe]  ;;  %v11780_v59 = vld [vmem:[#allocation6 + $0x524] sm:$0xf]  ;;  %v676_v0 = vpack.c.bf16 %v668_v57, %v668_v57  ;;  %v669_v6 = vld [vmem:[#allocation2 + $0x58] sm:$0x1]  ;;  %v7625_v10 = vor.u32 %v10515_v50, %v7622_v51 }
  0x7f   : > { %1587 = vmatpush.bf16.msrb.mxu2 %v7529_v28  ;;  %v11777_v56 = vld [vmem:[#allocation6 + $0x430] sm:$0xf0]  ;;  %v672_v58 = vpack.c.bf16 %v11769_v46, %v664_v53  ;;  %v11784_v61 = vld [vmem:[#allocation6 + $0x624] sm:$0xf]  ;;  %v677_v12 = vpack.c.bf16 %v669_v6, %v669_v6  ;;  %v845_v17 = vshrl.u32 %v673_v7, 16  ;;  %v847_v18 = vshll.u32 %v673_v7, 16 }
  0x80   : > { %1601 = vmatpush.bf16.msrb.mxu3 %v7657_v31  ;;  %v11782_v60 = vld [vmem:[#allocation6 + $0x530] sm:$0xf0]  ;;  %v11798_v8 = vld [vmem:[#allocation6 + $0x724] sm:$0xf]  ;;  %v840_v11 = vshll.u32 %v676_v0, 16  ;;  %v7225_v19 = vor.u32 %v11775_v55, %v11777_v56 }
  0x81   : > { %1560 = vmatpush.bf16.msrb.mxu0 %v7257_v43  ;;  %v11792_v2 = vld [vmem:[#allocation6 + $0x630] sm:$0xf0]  ;;  %v833_v4 = vshrl.u32 %v672_v58, 16  ;;  %v835_v5 = vshll.u32 %v672_v58, 16  ;;  %v11805_v14 = vld [vmem:[#allocation6 + $0x404] sm:$0xf]  ;;  %v7353_v24 = vor.u32 %v11780_v59, %v11782_v60 }
  0x82   : > { %1574 = vmatpush.bf16.msrb.mxu1 %v7385_v48  ;;  %v11800_v9 = vld [vmem:[#allocation6 + $0x730] sm:$0xf0]  ;;  %v11811_v20 = vld [vmem:[#allocation6 + $0x504] sm:$0xf]  ;;  %v842_v22 = vrot.slane %v840_v11, 1  ;;  %v852_v23 = vshll.u32 %v677_v12, 16  ;;  %v7481_v25 = vor.u32 %v11784_v61, %v11792_v2 }
  0x83   : > { %1588 = vmatpush.bf16.msrb.mxu2 %v7513_v49  ;;  %v11807_v15 = vld [vmem:[#allocation6 + $0x410] sm:$0xf0]  ;;  %v837_v16 = vrot.slane %v835_v5, 1  ;;  %v662_v26 = vld [vmem:[#allocation2] sm:$0xfe]  ;;  %v849_v30 = vrot.slane %v847_v18, 1  ;;  %v7609_v37 = vor.u32 %v11798_v8, %v11800_v9 }
  0x84   : > { %1602 = vmatpush.bf16.msrb.mxu3 %v7641_v52  ;;  %v11813_v21 = vld [vmem:[#allocation6 + $0x510] sm:$0xf0]  ;;  %v10475_v27 = vld [vmem:[#allocation6 + $0x604] sm:$0xf]  ;;  %v666_v31 = vld [vmem:[#allocation2 + $0x40] sm:$0x1]  ;;  %v670_v32 = vpack.c.bf16 %v11803_v13, %v662_v26  ;;  %v7209_v40 = vor.u32 %v11805_v14, %v11807_v15 }
  0x85   : > { %1561 = vmatpush.bf16.msrb.mxu0 %v7241_v62  ;;  %v7462_v28 = vld [vmem:[#allocation6 + $0x610] sm:$0xf0]  ;;  %v838_v29 = vor.u32 %v837_v16, %v833_v4  ;;  %v7580_v35 = vld [vmem:[#allocation6 + $0x6e8] sm:$0xf]  ;;  %v854_v36 = vrot.slane %v852_v23, 1  ;;  %v674_v38 = vpack.c.bf16 %v666_v31, %v666_v31  ;;  %v850_v34 = vor.u32 %v849_v30, %v845_v17 }
  0x86   : > { %1575 = vmatpush.bf16.msrb.mxu1 %v7369_v63  ;;  %v663_v39 = vld [vmem:[#allocation2 + $0x8] sm:$0xfe]  ;;  %v10507_v43 = vld [vmem:[#allocation6 + $0x704] sm:$0xf]  ;;  %v10506_v44 = vld [vmem:[#allocation6 + $0x6f4] sm:$0xf0]  ;;  %v7337_v52 = vor.u32 %v11811_v20, %v11813_v21  ;;  %v7465_v58 = vor.u32 %v10475_v27, %v7462_v28 }
  0x87   : > { %1589 = vmatpush.bf16.msrb.mxu2 %v7497_v3  ;;  %v11832_v41 = vsel %vm807_vm1, %v838_v29, %v842_v22  ;;  %v809_v45 = vshrl.u32 %v670_v32, 16  ;;  %v811_v42 = vshll.u32 %v670_v32, 16  ;;  %v667_v47 = vld [vmem:[#allocation2 + $0x48] sm:$0x1]  ;;  %v7590_v48 = vld [vmem:[#allocation6 + $0x710] sm:$0xf0]  ;;  %v671_v50 = vpack.c.bf16 %v11825_v33, %v663_v39 }
  0x88   : > { %1603 = vmatpush.bf16.msrb.mxu3 %v7625_v10  ;;  %1536 = vmatmul.bf16.vlgmr.msra.gmra.mxu2 %v11832_v41  ;;  %v816_v49 = vshll.u32 %v674_v38, 16  ;;  %v675_v51 = vpack.c.bf16 %v667_v47, %v667_v47  ;;  %v7324_v53 = vld [vmem:[#allocation6 + $0x4e8] sm:$0xf]  ;;  %v10442_v55 = vld [vmem:[#allocation6 + $0x4f4] sm:$0xf0]  ;;  %v11839_v56 = vsel %vm807_vm1, %v850_v34, %v854_v36  ;;  %v7581_v59 = vor.u32 %v10506_v44, %v7580_v35 }
  0x89   : > { %1562 = vmatpush.bf16.msrb.mxu0 %v7225_v19  ;;  %v813_v57 = vrot.slane %v811_v42, 1  ;;  %v7708_v60 = vld [vmem:[#allocation6 + $0x7e8] sm:$0xf]  ;;  %v10538_v61 = vld [vmem:[#allocation6 + $0x7f4] sm:$0xf0]  ;;  %1550 = vmatmul.bf16.vlgmr.msra.gmra.mxu3 %v11839_v56  ;;  %v821_v63 = vshrl.u32 %v671_v50, 16  ;;  %v7593_v4 = vor.u32 %v10507_v43, %v7590_v48  ;;  %v7325_v5 = vor.u32 %v10442_v55, %v7324_v53 }
  0x8a   : > { %1576 = vmatpush.bf16.msrb.mxu1 %v7353_v24  ;;  %v818_v62 = vrot.slane %v816_v49, 1  ;;  %v823_v0 = vshll.u32 %v671_v50, 16  ;;  %v828_v1 = vshll.u32 %v675_v51, 16  ;;  %v7452_v2 = vld [vmem:[#allocation6 + $0x5e8] sm:$0xf]  ;;  %v7709_v11 = vor.u32 %v10538_v61, %v7708_v60 }
  0x8b   : > { %1590 = vmatpush.bf16.msrb.mxu2 %v7481_v25  ;;  %v814_v3 = vor.u32 %v813_v57, %v809_v45  ;;  %v10474_v6 = vld [vmem:[#allocation6 + $0x5f4] sm:$0xf0]  ;;  %v7564_v7 = vld [vmem:[#allocation6 + $0x6c8] sm:$0xf] }
  0x8c   : > { %1604 = vmatpush.bf16.msrb.mxu3 %v7609_v37  ;;  %v10502_v8 = vld [vmem:[#allocation6 + $0x6d4] sm:$0xf0]  ;;  %v825_v9 = vrot.slane %v823_v0, 1  ;;  %v830_v10 = vrot.slane %v828_v1, 1  ;;  %v7308_v12 = vld [vmem:[#allocation6 + $0x4c8] sm:$0xf]  ;;  %v7453_v19 = vor.u32 %v10474_v6, %v7452_v2 }
  0x8d   : > { %1563 = vmatpush.bf16.msrb.mxu0 %v7209_v40  ;;  %v10438_v14 = vld [vmem:[#allocation6 + $0x4d4] sm:$0xf0]  ;;  %v11843_v15 = vsel %vm807_vm1, %v814_v3, %v818_v62  ;;  %v7692_v16 = vld [vmem:[#allocation6 + $0x7c8] sm:$0xf]  ;;  %v7565_v21 = vor.u32 %v10502_v8, %v7564_v7 }
  0x8e   : > { %1577 = vmatpush.bf16.msrb.mxu1 %v7337_v52  ;;  %v10534_v17 = vld [vmem:[#allocation6 + $0x7d4] sm:$0xf0]  ;;  %1508 = vmatmul.bf16.vlgmr.msra.gmra.mxu0 %v11843_v15  ;;  %v826_v18 = vor.u32 %v825_v9, %v821_v63  ;;  %v7436_v20 = vld [vmem:[#allocation6 + $0x5c8] sm:$0xf]  ;;  %v7309_v22 = vor.u32 %v10438_v14, %v7308_v12 }
  0x8f   : > { %1591 = vmatpush.bf16.msrb.mxu2 %v7465_v58  ;;  %v10470_v23 = vld [vmem:[#allocation6 + $0x5d4] sm:$0xf0]  ;;  %v7548_v24 = vld [vmem:[#allocation6 + $0x6a8] sm:$0xf]  ;;  %v7693_v27 = vor.u32 %v10534_v17, %v7692_v16 }
  0x90   : > { %1605 = vmatpush.bf16.msrb.mxu3 %v7593_v4  ;;  %v10498_v25 = vld [vmem:[#allocation6 + $0x6b4] sm:$0xf0]  ;;  %v11847_v26 = vsel %vm807_vm1, %v826_v18, %v830_v10  ;;  %v7292_v28 = vld [vmem:[#allocation6 + $0x4a8] sm:$0xf]  ;;  %v7437_v32 = vor.u32 %v10470_v23, %v7436_v20 }
  0x91   : > { %1612 = vmatpush.bf16.msra.mxu0 %v7325_v5  ;;  %v10434_v29 = vld [vmem:[#allocation6 + $0x4b4] sm:$0xf0]  ;;  %1522 = vmatmul.bf16.vlgmr.msra.gmra.mxu1 %v11847_v26  ;;  %v7676_v30 = vld [vmem:[#allocation6 + $0x7a8] sm:$0xf]  ;;  %v7549_v36 = vor.u32 %v10498_v25, %v7548_v24 }
  0x92   : > { %v10530_v31 = vld [vmem:[#allocation6 + $0x7b4] sm:$0xf0]  ;;  %1626 = vmatpush.bf16.msra.mxu1 %v7453_v19  ;;  %v7420_v35 = vld [vmem:[#allocation6 + $0x5a8] sm:$0xf]  ;;  %v7293_v37 = vor.u32 %v10434_v29, %v7292_v28 }
  0x93   : > { %1640 = vmatpush.bf16.msra.mxu2 %v7581_v59  ;;  %v10466_v38 = vld [vmem:[#allocation6 + $0x5b4] sm:$0xf0]  ;;  %v7532_v39 = vld [vmem:[#allocation6 + $0x688] sm:$0xf]  ;;  %v7677_v43 = vor.u32 %v10530_v31, %v7676_v30 }
  0x94   : > { %1654 = vmatpush.bf16.msra.mxu3 %v7709_v11  ;;  %v10494_v40 = vld [vmem:[#allocation6 + $0x694] sm:$0xf0]  ;;  %v7276_v44 = vld [vmem:[#allocation6 + $0x488] sm:$0xf]  ;;  %v7421_v47 = vor.u32 %v10466_v38, %v7420_v35  ;;  %v7582_v38 = vld [vmem:[#allocation6 + $0x6f8] sm:$0xf0] }
  0x95   : > { %1613 = vmatpush.bf16.msra.mxu0 %v7309_v22  ;;  %v10430_v34 = vld [vmem:[#allocation6 + $0x494] sm:$0xf0]  ;;  %v7660_v45 = vld [vmem:[#allocation6 + $0x788] sm:$0xf]  ;;  %v7533_v49 = vor.u32 %v10494_v40, %v7532_v39  ;;  %v10440_v40 = vld [vmem:[#allocation6 + $0x4ec] sm:$0xf] }
  0x96   : > { %v10526_v42 = vld [vmem:[#allocation6 + $0x794] sm:$0xf0]  ;;  %1627 = vmatpush.bf16.msra.mxu1 %v7437_v32  ;;  %v7404_v48 = vld [vmem:[#allocation6 + $0x588] sm:$0xf]  ;;  %v7277_v50 = vor.u32 %v10430_v34, %v7276_v44 }
  0x97   : > { %1641 = vmatpush.bf16.msra.mxu2 %v7565_v21  ;;  %v10462_v51 = vld [vmem:[#allocation6 + $0x594] sm:$0xf0]  ;;  %v7516_v52 = vld [vmem:[#allocation6 + $0x668] sm:$0xf]  ;;  %v7661_v55 = vor.u32 %v10526_v42, %v7660_v45  ;;  %v10536_v45 = vld [vmem:[#allocation6 + $0x7ec] sm:$0xf] }
  0x98   : > { %1655 = vmatpush.bf16.msra.mxu3 %v7693_v27  ;;  %v10490_v53 = vld [vmem:[#allocation6 + $0x674] sm:$0xf0]  ;;  %v7260_v57 = vld [vmem:[#allocation6 + $0x468] sm:$0xf]  ;;  %1592 = vmatmul.bf16.vlgmr.msrb.gmra.mxu2 %v11832_v41  ;;  %v7405_v61 = vor.u32 %v10462_v51, %v7404_v48  ;;  %v7710_v42 = vld [vmem:[#allocation6 + $0x7f8] sm:$0xf0] }
  0x99   : > { %1614 = vmatpush.bf16.msra.mxu0 %v7293_v37  ;;  %v10426_v58 = vld [vmem:[#allocation6 + $0x474] sm:$0xf0]  ;;  %v7644_v59 = vld [vmem:[#allocation6 + $0x768] sm:$0xf]  ;;  %v7517_v63 = vor.u32 %v10490_v53, %v7516_v52  ;;  %1606 = vmatmul.bf16.vlgmr.msrb.gmra.mxu3 %v11839_v56  ;;  %v10504_v37 = vld [vmem:[#allocation6 + $0x6ec] sm:$0xf] }
  0x9a   : > { %v10522_v60 = vld [vmem:[#allocation6 + $0x774] sm:$0xf0]  ;;  %1628 = vmatpush.bf16.msra.mxu1 %v7421_v47  ;;  %v7388_v62 = vld [vmem:[#allocation6 + $0x568] sm:$0xf]  ;;  %v7261_v0 = vor.u32 %v10426_v58, %v7260_v57  ;;  %v7585_v51 = vor.u32 %v10504_v37, %v7582_v38  ;;  %v10500_v57 = vld [vmem:[#allocation6 + $0x6cc] sm:$0xf] }
  0x9b   : > { %1642 = vmatpush.bf16.msra.mxu2 %v7549_v36  ;;  %v10458_v1 = vld [vmem:[#allocation6 + $0x574] sm:$0xf0]  ;;  %v7500_v2 = vld [vmem:[#allocation6 + $0x648] sm:$0xf]  ;;  %v7645_v4 = vor.u32 %v10522_v60, %v7644_v59  ;;  %v7566_v58 = vld [vmem:[#allocation6 + $0x6d8] sm:$0xf0]  ;;  %v7713_v59 = vor.u32 %v10536_v45, %v7710_v42 }
  0x9c   : > { %1656 = vmatpush.bf16.msra.mxu3 %v7677_v43  ;;  %v10486_v3 = vld [vmem:[#allocation6 + $0x654] sm:$0xf0]  ;;  %v7244_v5 = vld [vmem:[#allocation6 + $0x448] sm:$0xf]  ;;  %v7389_v9 = vor.u32 %v10458_v1, %v7388_v62  ;;  %v7326_v43 = vld [vmem:[#allocation6 + $0x4f8] sm:$0xf0] }
  0x9d   : > { %1615 = vmatpush.bf16.msra.mxu0 %v7277_v50  ;;  %v10422_v6 = vld [vmem:[#allocation6 + $0x454] sm:$0xf0]  ;;  %v7628_v7 = vld [vmem:[#allocation6 + $0x748] sm:$0xf]  ;;  %v7501_v11 = vor.u32 %v10486_v3, %v7500_v2  ;;  %v10472_v50 = vld [vmem:[#allocation6 + $0x5ec] sm:$0xf]  ;;  %v7329_v53 = vor.u32 %v10440_v40, %v7326_v43  ;;  %v7569_v3 = vor.u32 %v10500_v57, %v7566_v58 }
  0x9e   : > { %v10518_v8 = vld [vmem:[#allocation6 + $0x754] sm:$0xf0]  ;;  %1629 = vmatpush.bf16.msra.mxu1 %v7405_v61  ;;  %v7372_v10 = vld [vmem:[#allocation6 + $0x548] sm:$0xf]  ;;  %v7245_v12 = vor.u32 %v10422_v6, %v7244_v5  ;;  %1564 = vmatmul.bf16.vlgmr.msrb.gmra.mxu0 %v11843_v15  ;;  %v10436_v60 = vld [vmem:[#allocation6 + $0x4cc] sm:$0xf] }
  0x9f   : > { %1643 = vmatpush.bf16.msra.mxu2 %v7533_v49  ;;  %v10454_v14 = vld [vmem:[#allocation6 + $0x554] sm:$0xf0]  ;;  %v7484_v16 = vld [vmem:[#allocation6 + $0x628] sm:$0xf]  ;;  %v7629_v18 = vor.u32 %v10518_v8, %v7628_v7  ;;  %v7310_v61 = vld [vmem:[#allocation6 + $0x4d8] sm:$0xf0] }
  0xa0   : > { %1657 = vmatpush.bf16.msra.mxu3 %v7661_v55  ;;  %v10482_v17 = vld [vmem:[#allocation6 + $0x634] sm:$0xf0]  ;;  %v7228_v19 = vld [vmem:[#allocation6 + $0x428] sm:$0xf]  ;;  %v7373_v23 = vor.u32 %v10454_v14, %v7372_v10  ;;  %v7454_v55 = vld [vmem:[#allocation6 + $0x5f8] sm:$0xf0] }
  0xa1   : > { %1616 = vmatpush.bf16.msra.mxu0 %v7261_v0  ;;  %v10418_v20 = vld [vmem:[#allocation6 + $0x434] sm:$0xf0]  ;;  %v7612_v21 = vld [vmem:[#allocation6 + $0x728] sm:$0xf]  ;;  %1578 = vmatmul.bf16.vlgmr.msrb.gmra.mxu1 %v11847_v26  ;;  %v7485_v27 = vor.u32 %v10482_v17, %v7484_v16  ;;  %v7694_v0 = vld [vmem:[#allocation6 + $0x7d8] sm:$0xf0]  ;;  %v7457_v1 = vor.u32 %v10472_v50, %v7454_v55 }
  0xa2   : > { %v10514_v22 = vld [vmem:[#allocation6 + $0x734] sm:$0xf0]  ;;  %1630 = vmatpush.bf16.msra.mxu1 %v7389_v9  ;;  %v7356_v24 = vld [vmem:[#allocation6 + $0x528] sm:$0xf]  ;;  %v7229_v29 = vor.u32 %v10418_v20, %v7228_v19  ;;  %v10468_v2 = vld [vmem:[#allocation6 + $0x5cc] sm:$0xf] }
  0xa3   : > { %1644 = vmatpush.bf16.msra.mxu2 %v7517_v63  ;;  %v10450_v25 = vld [vmem:[#allocation6 + $0x534] sm:$0xf0]  ;;  %v7212_v28 = vld [vmem:[#allocation6 + $0x408] sm:$0xf]  ;;  %v7613_v35 = vor.u32 %v10514_v22, %v7612_v21  ;;  %v10532_v63 = vld [vmem:[#allocation6 + $0x7cc] sm:$0xf] }
  0xa4   : > { %1658 = vmatpush.bf16.msra.mxu3 %v7645_v4  ;;  %v10414_v30 = vld [vmem:[#allocation6 + $0x414] sm:$0xf0]  ;;  %v7468_v31 = vld [vmem:[#allocation6 + $0x608] sm:$0xf]  ;;  %v7357_v44 = vor.u32 %v10450_v25, %v7356_v24  ;;  %v7313_v4 = vor.u32 %v10436_v60, %v7310_v61  ;;  %v7438_v5 = vld [vmem:[#allocation6 + $0x5d8] sm:$0xf0]  ;;  %v7697_v8 = vor.u32 %v10532_v63, %v7694_v0 }
  0xa5   : > { %1617 = vmatpush.bf16.msra.mxu0 %v7245_v12  ;;  %v10478_v32 = vld [vmem:[#allocation6 + $0x614] sm:$0xf0]  ;;  %v7596_v36 = vld [vmem:[#allocation6 + $0x708] sm:$0xf]  ;;  %v7213_v47 = vor.u32 %v10414_v30, %v7212_v28  ;;  %v10496_v6 = vld [vmem:[#allocation6 + $0x6ac] sm:$0xf]  ;;  %v7441_v14 = vor.u32 %v10468_v2, %v7438_v5 }
  0xa6   : > { %v10510_v39 = vld [vmem:[#allocation6 + $0x714] sm:$0xf0]  ;;  %1631 = vmatpush.bf16.msra.mxu1 %v7373_v23  ;;  %v7469_v34 = vor.u32 %v10478_v32, %v7468_v31  ;;  %v7340_v48 = vld [vmem:[#allocation6 + $0x508] sm:$0xf]  ;;  %v7550_v7 = vld [vmem:[#allocation6 + $0x6b8] sm:$0xf0] }
  0xa7   : > { %1645 = vmatpush.bf16.msra.mxu2 %v7501_v11  ;;  %v10446_v49 = vld [vmem:[#allocation6 + $0x514] sm:$0xf0]  ;;  %v7597_v52 = vor.u32 %v10510_v39, %v7596_v36  ;;  %v10432_v9 = vld [vmem:[#allocation6 + $0x4ac] sm:$0xf]  ;;  %v7294_v10 = vld [vmem:[#allocation6 + $0x4b8] sm:$0xf0]  ;;  %v7553_v17 = vor.u32 %v10496_v6, %v7550_v7 }
  0xa8   : > { %1659 = vmatpush.bf16.msra.mxu3 %v7629_v18  ;;  %v7341_v62 = vor.u32 %v10446_v49, %v7340_v48  ;;  %v10528_v11 = vld [vmem:[#allocation6 + $0x7ac] sm:$0xf]  ;;  %v7678_v12 = vld [vmem:[#allocation6 + $0x7b8] sm:$0xf0]  ;;  %v7297_v18 = vor.u32 %v10432_v9, %v7294_v10 }
  0xa9   : > { %1618 = vmatpush.bf16.msra.mxu0 %v7229_v29  ;;  %v10464_v16 = vld [vmem:[#allocation6 + $0x5ac] sm:$0xf]  ;;  %v7422_v19 = vld [vmem:[#allocation6 + $0x5b8] sm:$0xf0]  ;;  %v7681_v22 = vor.u32 %v10528_v11, %v7678_v12 }
  0xaa   : > { %1632 = vmatpush.bf16.msra.mxu1 %v7357_v44  ;;  %v10492_v20 = vld [vmem:[#allocation6 + $0x68c] sm:$0xf]  ;;  %v7534_v21 = vld [vmem:[#allocation6 + $0x698] sm:$0xf0]  ;;  %v7425_v28 = vor.u32 %v10464_v16, %v7422_v19  ;;  %v10377_v19 = vld [vmem:[#allocation6 + $0x2ec] sm:$0xf0] }
  0xab   : > { %1646 = vmatpush.bf16.msra.mxu2 %v7485_v27  ;;  %v10428_v23 = vld [vmem:[#allocation6 + $0x48c] sm:$0xf]  ;;  %v7278_v24 = vld [vmem:[#allocation6 + $0x498] sm:$0xf0]  ;;  %v7537_v30 = vor.u32 %v10492_v20, %v7534_v21  ;;  %v467_v20 = vlaneseq }
  0xac   : > { %1660 = vmatpush.bf16.msra.mxu3 %v7613_v35  ;;  %v10524_v25 = vld [vmem:[#allocation6 + $0x78c] sm:$0xf]  ;;  %v7662_v27 = vld [vmem:[#allocation6 + $0x798] sm:$0xf0]  ;;  %v7281_v31 = vor.u32 %v10428_v23, %v7278_v24  ;;  %v10313_v23 = vld [vmem:[#allocation6 + $0xec] sm:$0xf0] }
  0xad   : > { %1619 = vmatpush.bf16.msra.mxu0 %v7213_v47  ;;  %v10460_v29 = vld [vmem:[#allocation6 + $0x58c] sm:$0xf]  ;;  %v7406_v32 = vld [vmem:[#allocation6 + $0x598] sm:$0xf0]  ;;  %v7665_v37 = vor.u32 %v10524_v25, %v7662_v27  ;;  %vm11858_vm2 = vcmp.lt.s32.totalorder %v467_v20, 512 }
  0xae   : > { %1633 = vmatpush.bf16.msra.mxu1 %v7341_v62  ;;  %v10488_v35 = vld [vmem:[#allocation6 + $0x66c] sm:$0xf]  ;;  %v7518_v36 = vld [vmem:[#allocation6 + $0x678] sm:$0xf0]  ;;  %v7409_v44 = vor.u32 %v10460_v29, %v7406_v32  ;;  %v10409_v29 = vld [vmem:[#allocation6 + $0x3ec] sm:$0xf0] }
  0xaf   : > { %1647 = vmatpush.bf16.msra.mxu2 %v7469_v34  ;;  %v10424_v38 = vld [vmem:[#allocation6 + $0x46c] sm:$0xf]  ;;  %v7262_v39 = vld [vmem:[#allocation6 + $0x478] sm:$0xf0]  ;;  %v7521_v45 = vor.u32 %v10488_v35, %v7518_v36  ;;  %v7956_v32 = vld [vmem:[#allocation6 + $0x1e0] sm:$0xf] }
  0xb0   : > { %1661 = vmatpush.bf16.msra.mxu3 %v7597_v52  ;;  %1620 = vmatmul.bf16.vlgmr.msra.gmra.mxu0 %v11843_v15  ;;  %v10520_v40 = vld [vmem:[#allocation6 + $0x76c] sm:$0xf]  ;;  %v7646_v43 = vld [vmem:[#allocation6 + $0x778] sm:$0xf0]  ;;  %v7265_v42 = vor.u32 %v10424_v38, %v7262_v39  ;;  %v10345_v39 = vld [vmem:[#allocation6 + $0x1ec] sm:$0xf0] }
  0xb1   : > { %1668 = vmatpush.bf16.msrb.mxu0 %v7329_v53  ;;  %1634 = vmatmul.bf16.vlgmr.msra.gmra.mxu1 %v11847_v26  ;;  %v10456_v34 = vld [vmem:[#allocation6 + $0x56c] sm:$0xf]  ;;  %v7390_v47 = vld [vmem:[#allocation6 + $0x578] sm:$0xf0]  ;;  %v7649_v50 = vor.u32 %v10520_v40, %v7646_v43  ;;  %v8068_v40 = vld [vmem:[#allocation6 + $0x2c0] sm:$0xf] }
  0xb2   : > { %1648 = vmatmul.bf16.vlgmr.msra.gmra.mxu2 %v11832_v41  ;;  %1682 = vmatpush.bf16.msrb.mxu1 %v7457_v1  ;;  %v10484_v48 = vld [vmem:[#allocation6 + $0x64c] sm:$0xf]  ;;  %v7502_v49 = vld [vmem:[#allocation6 + $0x658] sm:$0xf0]  ;;  %v7393_v57 = vor.u32 %v10456_v34, %v7390_v47  ;;  %v10373_v43 = vld [vmem:[#allocation6 + $0x2cc] sm:$0xf0] }
  0xb3   : > { %1696 = vmatpush.bf16.msrb.mxu2 %v7585_v51  ;;  %1662 = vmatmul.bf16.vlgmr.msra.gmra.mxu3 %v11839_v56  ;;  %v10420_v51 = vld [vmem:[#allocation6 + $0x44c] sm:$0xf]  ;;  %v7246_v52 = vld [vmem:[#allocation6 + $0x458] sm:$0xf0]  ;;  %v7812_v34 = vld [vmem:[#allocation6 + $0xc0] sm:$0xf] }
  0xb4   : > { %1710 = vmatpush.bf16.msrb.mxu3 %v7713_v59  ;;  %v10516_v53 = vld [vmem:[#allocation6 + $0x74c] sm:$0xf]  ;;  %v7630_v55 = vld [vmem:[#allocation6 + $0x758] sm:$0xf0]  ;;  %v7505_v59 = vor.u32 %v10484_v48, %v7502_v49  ;;  %v7249_v60 = vor.u32 %v10420_v51, %v7246_v52  ;;  %v10405_v48 = vld [vmem:[#allocation6 + $0x3cc] sm:$0xf0]  ;;  %v8069_v52 = vor.u32 %v10373_v43, %v8068_v40 }
  0xb5   : > { %1669 = vmatpush.bf16.msrb.mxu0 %v7313_v4  ;;  %v10452_v58 = vld [vmem:[#allocation6 + $0x54c] sm:$0xf]  ;;  %v7374_v61 = vld [vmem:[#allocation6 + $0x558] sm:$0xf0]  ;;  %v7633_v0 = vor.u32 %v10516_v53, %v7630_v55  ;;  %v11529_v49 = vmov 0.0  }
  0xb6   : > { %1683 = vmatpush.bf16.msrb.mxu1 %v7441_v14  ;;  %v10480_v62 = vld [vmem:[#allocation6 + $0x62c] sm:$0xf]  ;;  %v7486_v63 = vld [vmem:[#allocation6 + $0x638] sm:$0xf0]  ;;  %v7377_v5 = vor.u32 %v10452_v58, %v7374_v61  ;;  %v7940_v51 = vld [vmem:[#allocation6 + $0x1c0] sm:$0xf] }
  0xb7   : > { %1697 = vmatpush.bf16.msrb.mxu2 %v7569_v3  ;;  %v10416_v1 = vld [vmem:[#allocation6 + $0x42c] sm:$0xf]  ;;  %v7230_v2 = vld [vmem:[#allocation6 + $0x438] sm:$0xf0]  ;;  %v10341_v55 = vld [vmem:[#allocation6 + $0x1cc] sm:$0xf0] }
  0xb8   : > { %1711 = vmatpush.bf16.msrb.mxu3 %v7697_v8  ;;  %v10512_v3 = vld [vmem:[#allocation6 + $0x72c] sm:$0xf]  ;;  %v7614_v4 = vld [vmem:[#allocation6 + $0x738] sm:$0xf0]  ;;  %v7489_v8 = vor.u32 %v10480_v62, %v7486_v63  ;;  %v7233_v10 = vor.u32 %v10416_v1, %v7230_v2  ;;  %v10369_v58 = vld [vmem:[#allocation6 + $0x2ac] sm:$0xf0] }
  0xb9   : > { %1670 = vmatpush.bf16.msrb.mxu0 %v7297_v18  ;;  %v10448_v6 = vld [vmem:[#allocation6 + $0x52c] sm:$0xf]  ;;  %v7358_v7 = vld [vmem:[#allocation6 + $0x538] sm:$0xf0]  ;;  %v7617_v16 = vor.u32 %v10512_v3, %v7614_v4  ;;  %v8084_v18 = vld [vmem:[#allocation6 + $0x2e0] sm:$0xf] }
  0xba   : > { %1684 = vmatpush.bf16.msrb.mxu1 %v7425_v28  ;;  %v10412_v9 = vld [vmem:[#allocation6 + $0x40c] sm:$0xf]  ;;  %v7214_v11 = vld [vmem:[#allocation6 + $0x418] sm:$0xf0]  ;;  %v7361_v24 = vor.u32 %v10448_v6, %v7358_v7  ;;  %v8212_v28 = vld [vmem:[#allocation6 + $0x3e0] sm:$0xf]  ;;  %v8085_v35 = vor.u32 %v10377_v19, %v8084_v18 }
  0xbb   : > { %1698 = vmatpush.bf16.msrb.mxu2 %v7553_v17  ;;  %v10476_v12 = vld [vmem:[#allocation6 + $0x60c] sm:$0xf]  ;;  %v7470_v14 = vld [vmem:[#allocation6 + $0x618] sm:$0xf0]  ;;  %v10305_v61 = vld [vmem:[#allocation6 + $0xac] sm:$0xf0] }
  0xbc   : > { %1712 = vmatpush.bf16.msrb.mxu3 %v7681_v22  ;;  %v10508_v17 = vld [vmem:[#allocation6 + $0x70c] sm:$0xf]  ;;  %v7598_v21 = vld [vmem:[#allocation6 + $0x718] sm:$0xf0]  ;;  %v7828_v22 = vld [vmem:[#allocation6 + $0xe0] sm:$0xf]  ;;  %v7473_v27 = vor.u32 %v10476_v12, %v7470_v14 }
  0xbd   : > { %1671 = vmatpush.bf16.msrb.mxu0 %v7281_v31  ;;  %v10444_v25 = vld [vmem:[#allocation6 + $0x50c] sm:$0xf]  ;;  %v7342_v31 = vld [vmem:[#allocation6 + $0x518] sm:$0xf0]  ;;  %v7829_v38 = vor.u32 %v10313_v23, %v7828_v22  ;;  %v8180_v62 = vld [vmem:[#allocation6 + $0x3a0] sm:$0xf] }
  0xbe   : > { %1685 = vmatpush.bf16.msrb.mxu1 %v7409_v44  ;;  %v8213_v44 = vor.u32 %v10409_v29, %v8212_v28  ;;  %v7345_v47 = vor.u32 %v10444_v25, %v7342_v31  ;;  %471 = vst.msk [vmem:[#allocation2] ss:$8 sm:$0xf] %vm11858_vm2, %v11529_v49  ;;  %v10401_v63 = vld [vmem:[#allocation6 + $0x3ac] sm:$0xf0] }
  0xbf   : > { %1699 = vmatpush.bf16.msrb.mxu2 %v7537_v30  ;;  %v7217_v30 = vor.u32 %v10412_v9, %v7214_v11  ;;  %v7924_v1 = vld [vmem:[#allocation6 + $0x1a0] sm:$0xf]  ;;  %474 = vst.msk [vmem:[#allocation2 + $0x41] ss:$8 sm:$0xf] %vm11858_vm2, %v11529_v49 }
  0xc0   : > { %1713 = vmatpush.bf16.msrb.mxu3 %v7665_v37  ;;  %v7601_v37 = vor.u32 %v10508_v17, %v7598_v21  ;;  %v10337_v4 = vld [vmem:[#allocation6 + $0x1ac] sm:$0xf0]  ;;  %v7780_v7 = vld [vmem:[#allocation6 + $0x80] sm:$0xf] }
  0xc1   : > { %1672 = vmatpush.bf16.msrb.mxu0 %v7265_v42  ;;  %v8196_v42 = vld [vmem:[#allocation6 + $0x3c0] sm:$0xf]  ;;  %v10365_v6 = vld [vmem:[#allocation6 + $0x28c] sm:$0xf0] }
  0xc2   : > { %1686 = vmatpush.bf16.msrb.mxu1 %v7393_v57  ;;  %v8052_v57 = vld [vmem:[#allocation6 + $0x2a0] sm:$0xf]  ;;  %v10397_v9 = vld [vmem:[#allocation6 + $0x38c] sm:$0xf0] }
  0xc3   : > { %1700 = vmatpush.bf16.msrb.mxu2 %v7521_v45  ;;  %v10309_v45 = vld [vmem:[#allocation6 + $0xcc] sm:$0xf0]  ;;  %v8053_v2 = vor.u32 %v10369_v58, %v8052_v57  ;;  %v7908_v11 = vld [vmem:[#allocation6 + $0x180] sm:$0xf] }
  0xc4   : > { %1714 = vmatpush.bf16.msrb.mxu3 %v7649_v50  ;;  %v7957_v50 = vor.u32 %v10345_v39, %v7956_v32  ;;  %v7813_v53 = vor.u32 %v10309_v45, %v7812_v34  ;;  %v8020_v17 = vld [vmem:[#allocation6 + $0x260] sm:$0xf]  ;;  %v10361_v18 = vld [vmem:[#allocation6 + $0x26c] sm:$0xf0] }
  0xc5   : > { %1673 = vmatpush.bf16.msrb.mxu0 %v7249_v60  ;;  %v7796_v60 = vld [vmem:[#allocation6 + $0xa0] sm:$0xf]  ;;  %v10297_v20 = vld [vmem:[#allocation6 + $0x6c] sm:$0xf0] }
  0xc6   : > { %1687 = vmatpush.bf16.msrb.mxu1 %v7377_v5  ;;  %v7797_v3 = vor.u32 %v10305_v61, %v7796_v60  ;;  %v8036_v5 = vld [vmem:[#allocation6 + $0x280] sm:$0xf]  ;;  %v10393_v22 = vld [vmem:[#allocation6 + $0x36c] sm:$0xf0] }
  0xc7   : > { %1701 = vmatpush.bf16.msrb.mxu2 %v7505_v59  ;;  %v8197_v59 = vor.u32 %v10405_v48, %v8196_v42  ;;  %v8037_v12 = vor.u32 %v10365_v6, %v8036_v5  ;;  %v7764_v19 = vld [vmem:[#allocation6 + $0x60] sm:$0xf]  ;;  %v10357_v29 = vld [vmem:[#allocation6 + $0x24c] sm:$0xf0] }
  0xc8   : > { %1715 = vmatpush.bf16.msrb.mxu3 %v7633_v0  ;;  %v7941_v0 = vor.u32 %v10341_v55, %v7940_v51  ;;  %v8148_v21 = vld [vmem:[#allocation6 + $0x360] sm:$0xf]  ;;  %v7765_v25 = vor.u32 %v10297_v20, %v7764_v19  ;;  %v10293_v32 = vld [vmem:[#allocation6 + $0x4c] sm:$0xf0] }
  0xc9   : > { %1674 = vmatpush.bf16.msrb.mxu0 %v7233_v10  ;;  %v7925_v10 = vor.u32 %v10337_v4, %v7924_v1  ;;  %v7892_v23 = vld [vmem:[#allocation6 + $0x160] sm:$0xf]  ;;  %v10389_v36 = vld [vmem:[#allocation6 + $0x34c] sm:$0xf0]  ;;  %v7830_v4 = vld [vmem:[#allocation6 + $0xf0] sm:$0xf0] }
  0xca   : > { %1688 = vmatpush.bf16.msrb.mxu1 %v7361_v24  ;;  %v8021_v24 = vor.u32 %v10361_v18, %v8020_v17  ;;  %v8004_v28 = vld [vmem:[#allocation6 + $0x240] sm:$0xf]  ;;  %v10325_v43 = vld [vmem:[#allocation6 + $0x14c] sm:$0xf0]  ;;  %v7958_v17 = vld [vmem:[#allocation6 + $0x1f0] sm:$0xf0] }
  0xcb   : > { %1702 = vmatpush.bf16.msrb.mxu2 %v7489_v8  ;;  %v10301_v8 = vld [vmem:[#allocation6 + $0x8c] sm:$0xf0]  ;;  %v7748_v31 = vld [vmem:[#allocation6 + $0x40] sm:$0xf]  ;;  %v8005_v39 = vor.u32 %v10357_v29, %v8004_v28  ;;  %v525_v18 = vld [vmem:[#allocation2 + $0x18] sm:$0xff] }
  0xcc   : > { %1716 = vmatpush.bf16.msrb.mxu3 %v7617_v16  ;;  %v7781_v14 = vor.u32 %v10301_v8, %v7780_v7  ;;  %v10333_v16 = vld [vmem:[#allocation6 + $0x18c] sm:$0xf0]  ;;  %v7749_v40 = vor.u32 %v10293_v32, %v7748_v31  ;;  %v7732_v42 = vld [vmem:[#allocation6 + $0x20] sm:$0xf]  ;;  %v8214_v7 = vld [vmem:[#allocation6 + $0x3f0] sm:$0xf0] }
  0xcd   : > { %1675 = vmatpush.bf16.msrb.mxu0 %v7217_v30  ;;  %v8149_v30 = vor.u32 %v10393_v22, %v8148_v21  ;;  %v10353_v34 = vld [vmem:[#allocation6 + $0x22c] sm:$0xf0]  ;;  %v8116_v48 = vld [vmem:[#allocation6 + $0x320] sm:$0xf]  ;;  %v7814_v21 = vld [vmem:[#allocation6 + $0xd0] sm:$0xf0] }
  0xce   : > { %1689 = vmatpush.bf16.msrb.mxu1 %v7345_v47  ;;  %v10289_v47 = vld [vmem:[#allocation6 + $0x2c] sm:$0xf0]  ;;  %v7860_v51 = vld [vmem:[#allocation6 + $0x120] sm:$0xf]  ;;  %v10371_v22 = vld [vmem:[#allocation6 + $0x2c4] sm:$0xf] }
  0xcf   : > { %1703 = vmatpush.bf16.msrb.mxu2 %v7473_v27  ;;  %v10329_v27 = vld [vmem:[#allocation6 + $0x16c] sm:$0xf0]  ;;  %v7716_v55 = vld [vmem:[#allocation6] sm:$0xf]  ;;  %v7733_v57 = vor.u32 %v10289_v47, %v7732_v42  ;;  %v8198_v28 = vld [vmem:[#allocation6 + $0x3d0] sm:$0xf0] }
  0xd0   : > { %1717 = vmatpush.bf16.msrb.mxu3 %v7601_v37  ;;  %1676 = vmatmul.bf16.vlgmr.msrb.gmra.mxu0 %v11843_v15  ;;  %v8164_v15 = vld [vmem:[#allocation6 + $0x380] sm:$0xf]  ;;  %v7893_v37 = vor.u32 %v10329_v27, %v7892_v23  ;;  %v10385_v49 = vld [vmem:[#allocation6 + $0x32c] sm:$0xf0]  ;;  %v10403_v27 = vld [vmem:[#allocation6 + $0x3c4] sm:$0xf] }
  0xd1   : > { %2364 = vmatpush.bf16.msra.mxu0 %v7829_v38  ;;  %1690 = vmatmul.bf16.vlgmr.msrb.gmra.mxu1 %v11847_v26  ;;  %v7909_v26 = vor.u32 %v10333_v16, %v7908_v11  ;;  %v7876_v38 = vld [vmem:[#allocation6 + $0x140] sm:$0xf]  ;;  %v10285_v58 = vld [vmem:[#allocation6 + $0xc] sm:$0xf0]  ;;  %v8117_v61 = vor.u32 %v10385_v49, %v8116_v48  ;;  %v10339_v32 = vld [vmem:[#allocation6 + $0x1c4] sm:$0xf] }
  0xd2   : > { %1704 = vmatmul.bf16.vlgmr.msrb.gmra.mxu2 %v11832_v41  ;;  %2378 = vmatpush.bf16.msra.mxu1 %v7957_v50  ;;  %v8181_v41 = vor.u32 %v10401_v63, %v8180_v62  ;;  %v7877_v50 = vor.u32 %v10325_v43, %v7876_v38  ;;  %v10349_v60 = vld [vmem:[#allocation6 + $0x20c] sm:$0xf0]  ;;  %v8100_v62 = vld [vmem:[#allocation6 + $0x300] sm:$0xf]  ;;  %v10375_v63 = vld [vmem:[#allocation6 + $0x2e4] sm:$0xf] }
  0xd3   : > { %2392 = vmatpush.bf16.msra.mxu2 %v8085_v35  ;;  %1718 = vmatmul.bf16.vlgmr.msrb.gmra.mxu3 %v11839_v56  ;;  %v8165_v56 = vor.u32 %v10397_v9, %v8164_v15  ;;  %v8132_v35 = vld [vmem:[#allocation6 + $0x340] sm:$0xf]  ;;  %v524_v8 = vld [vmem:[#allocation2 + $0x10] sm:$0xff]  ;;  %v7717_v15 = vor.u32 %v10285_v58, %v7716_v55  ;;  %v10367_v43 = vld [vmem:[#allocation6 + $0x2a4] sm:$0xf] }
  0xd4   : > { %2406 = vmatpush.bf16.msra.mxu3 %v8213_v44  ;;  %v7988_v44 = vld [vmem:[#allocation6 + $0x220] sm:$0xf]  ;;  %v8133_v45 = vor.u32 %v10389_v36, %v8132_v35  ;;  %v10317_v9 = vld [vmem:[#allocation6 + $0x10c] sm:$0xf0]  ;;  %v11871_v20 = vpack.c.bf16 %v11769_v46, %v524_v8  ;;  %v7942_v35 = vld [vmem:[#allocation6 + $0x1d0] sm:$0xf0] }
  0xd5   : > { %2365 = vmatpush.bf16.msra.mxu0 %v7813_v53  ;;  %v7989_v53 = vor.u32 %v10353_v34, %v7988_v44  ;;  %v7844_v1 = vld [vmem:[#allocation6 + $0x100] sm:$0xf]  ;;  %v8054_v44 = vld [vmem:[#allocation6 + $0x2b0] sm:$0xf0]  ;;  %v10399_v34 = vld [vmem:[#allocation6 + $0x3a4] sm:$0xf]  ;;  %v7945_v42 = vor.u32 %v10339_v32, %v7942_v35 }
  0xd6   : > { %2379 = vmatpush.bf16.msra.mxu1 %v7941_v0  ;;  %v8086_v0 = vld [vmem:[#allocation6 + $0x2f0] sm:$0xf0]  ;;  %v7845_v23 = vor.u32 %v10317_v9, %v7844_v1  ;;  %v10335_v48 = vld [vmem:[#allocation6 + $0x1a4] sm:$0xf] }
  0xd7   : > { %2393 = vmatpush.bf16.msra.mxu2 %v8069_v52  ;;  %v10321_v52 = vld [vmem:[#allocation6 + $0x12c] sm:$0xf0]  ;;  %v8089_v11 = vor.u32 %v10375_v63, %v8086_v0  ;;  %v7926_v49 = vld [vmem:[#allocation6 + $0x1b0] sm:$0xf0]  ;;  %v10363_v55 = vld [vmem:[#allocation6 + $0x284] sm:$0xf] }
  0xd8   : > { %2407 = vmatpush.bf16.msra.mxu3 %v8197_v59  ;;  %v7972_v59 = vld [vmem:[#allocation6 + $0x200] sm:$0xf]  ;;  %v7861_v5 = vor.u32 %v10321_v52, %v7860_v51  ;;  %v10299_v51 = vld [vmem:[#allocation6 + $0x84] sm:$0xf]  ;;  %v7910_v63 = vld [vmem:[#allocation6 + $0x190] sm:$0xf0] }
  0xd9   : > { %2366 = vmatpush.bf16.msra.mxu0 %v7797_v3  ;;  %v10311_v3 = vld [vmem:[#allocation6 + $0xe4] sm:$0xf]  ;;  %v7973_v6 = vor.u32 %v10349_v60, %v7972_v59  ;;  %v8166_v59 = vld [vmem:[#allocation6 + $0x390] sm:$0xf0]  ;;  %v7929_v60 = vor.u32 %v10335_v48, %v7926_v49 }
  0xda   : > { %2380 = vmatpush.bf16.msra.mxu1 %v7925_v10  ;;  %v10343_v10 = vld [vmem:[#allocation6 + $0x1e4] sm:$0xf]  ;;  %v7833_v16 = vor.u32 %v10311_v3, %v7830_v4  ;;  %v7766_v3 = vld [vmem:[#allocation6 + $0x70] sm:$0xf0] }
  0xdb   : > { %2394 = vmatpush.bf16.msra.mxu2 %v8053_v2  ;;  %v10381_v2 = vld [vmem:[#allocation6 + $0x30c] sm:$0xf0]  ;;  %v7961_v29 = vor.u32 %v10343_v10, %v7958_v17  ;;  %v10395_v58 = vld [vmem:[#allocation6 + $0x384] sm:$0xf]  ;;  %v7894_v9 = vld [vmem:[#allocation6 + $0x170] sm:$0xf0] }
  0xdc   : > { %2408 = vmatpush.bf16.msra.mxu3 %v8181_v41  ;;  %v10407_v41 = vld [vmem:[#allocation6 + $0x3e4] sm:$0xf]  ;;  %v8006_v17 = vld [vmem:[#allocation6 + $0x250] sm:$0xf0] }
  0xdd   : > { %2367 = vmatpush.bf16.msra.mxu0 %v7781_v14  ;;  %v8101_v14 = vor.u32 %v10381_v2, %v8100_v62  ;;  %v8217_v19 = vor.u32 %v10407_v41, %v8214_v7  ;;  %v10331_v62 = vld [vmem:[#allocation6 + $0x184] sm:$0xf]  ;;  %v8169_v2 = vor.u32 %v10395_v58, %v8166_v59  ;;  %v8150_v41 = vld [vmem:[#allocation6 + $0x370] sm:$0xf0]  ;;  %v10410_v58 = vld [vmem:[#allocation6 + $0x3f4] sm:$0xf0] }
  0xde   : > { %2381 = vmatpush.bf16.msra.mxu1 %v7909_v26  ;;  %v8070_v26 = vld [vmem:[#allocation6 + $0x2d0] sm:$0xf0]  ;;  %v10295_v1 = vld [vmem:[#allocation6 + $0x64] sm:$0xf]  ;;  %v7913_v7 = vor.u32 %v10331_v62, %v7910_v63 }
  0xdf   : > { %2395 = vmatpush.bf16.msra.mxu2 %v8037_v12  ;;  %v522_v12 = vld [vmem:[#allocation2] sm:$0xff]  ;;  %v8073_v36 = vor.u32 %v10371_v22, %v8070_v26  ;;  %v7769_v8 = vor.u32 %v10295_v1, %v7766_v3  ;;  %v7878_v26 = vld [vmem:[#allocation6 + $0x150] sm:$0xf0]  ;;  %v7964_v1 = vld [vmem:[#allocation6 + $0x1e8] sm:$0xf] }
  0xe0   : > { %2409 = vmatpush.bf16.msra.mxu3 %v8165_v56  ;;  %v10307_v56 = vld [vmem:[#allocation6 + $0xc4] sm:$0xf]  ;;  %v8118_v35 = vld [vmem:[#allocation6 + $0x330] sm:$0xf0] }
  0xe1   : > { %2368 = vmatpush.bf16.msra.mxu0 %v7765_v25  ;;  %v523_v25 = vld [vmem:[#allocation2 + $0x8] sm:$0xff]  ;;  %v7817_v31 = vor.u32 %v10307_v56, %v7814_v21  ;;  %v10359_v4 = vld [vmem:[#allocation6 + $0x264] sm:$0xf]  ;;  %v8134_v56 = vld [vmem:[#allocation6 + $0x350] sm:$0xf0] }
  0xe2   : > { %2382 = vmatpush.bf16.msra.mxu1 %v7893_v37  ;;  %v10303_v37 = vld [vmem:[#allocation6 + $0xa4] sm:$0xf]  ;;  %v11881_v38 = vpack.c.bf16 %v11825_v33, %v523_v25  ;;  %v8102_v49 = vld [vmem:[#allocation6 + $0x310] sm:$0xf0] }
  0xe3   : > { %2396 = vmatpush.bf16.msra.mxu2 %v8021_v24  ;;  %v11874_v24 = vpack.c.bf16 %v11803_v13, %v522_v12  ;;  %v10323_v22 = vld [vmem:[#allocation6 + $0x144] sm:$0xf] }
  0xe4   : > { %2410 = vmatpush.bf16.msra.mxu3 %v8149_v30  ;;  %v11877_v30 = vpack.c.bf16 %v11773_v54, %v525_v18  ;;  %v10387_v18 = vld [vmem:[#allocation6 + $0x344] sm:$0xf] }
  0xe5   : > { %2369 = vmatpush.bf16.msra.mxu0 %v7749_v40  ;;  %v7798_v40 = vld [vmem:[#allocation6 + $0xb0] sm:$0xf0]  ;;  %v10287_v25 = vld [vmem:[#allocation6 + $0x24] sm:$0xf] }
  0xe6   : > { %2383 = vmatpush.bf16.msra.mxu1 %v7877_v50  ;;  %v7801_v47 = vor.u32 %v10303_v37, %v7798_v40  ;;  %v8057_v50 = vor.u32 %v10367_v43, %v8054_v44  ;;  %v10383_v32 = vld [vmem:[#allocation6 + $0x324] sm:$0xf] }
  0xe7   : > { %2397 = vmatpush.bf16.msra.mxu2 %v8005_v39  ;;  %v8201_v39 = vor.u32 %v10403_v27, %v8198_v28  ;;  %v8137_v27 = vor.u32 %v10387_v18, %v8134_v56  ;;  %v7734_v28 = vld [vmem:[#allocation6 + $0x30] sm:$0xf0]  ;;  %v10319_v37 = vld [vmem:[#allocation6 + $0x124] sm:$0xf]  ;;  %v10306_v18 = vld [vmem:[#allocation6 + $0xb4] sm:$0xf0] }
  0xe8   : > { %2411 = vmatpush.bf16.msra.mxu3 %v8133_v45  ;;  %v8182_v45 = vld [vmem:[#allocation6 + $0x3b0] sm:$0xf0]  ;;  %v7737_v40 = vor.u32 %v10287_v25, %v7734_v28  ;;  %v10283_v44 = vld [vmem:[#allocation6 + $0x4] sm:$0xf]  ;;  %v10338_v28 = vld [vmem:[#allocation6 + $0x1b4] sm:$0xf0] }
  0xe9   : > { %2370 = vmatpush.bf16.msra.mxu0 %v7733_v57  ;;  %v8185_v52 = vor.u32 %v10399_v34, %v8182_v45  ;;  %v8038_v57 = vld [vmem:[#allocation6 + $0x290] sm:$0xf0]  ;;  %v10347_v45 = vld [vmem:[#allocation6 + $0x204] sm:$0xf] }
  0xea   : > { %2384 = vmatpush.bf16.msra.mxu1 %v7861_v5  ;;  %v8041_v0 = vor.u32 %v10363_v55, %v8038_v57  ;;  %v8022_v5 = vld [vmem:[#allocation6 + $0x270] sm:$0xf0]  ;;  %v10379_v48 = vld [vmem:[#allocation6 + $0x304] sm:$0xf]  ;;  %v10378_v55 = vld [vmem:[#allocation6 + $0x2f4] sm:$0xf0] }
  0xeb   : > { %2398 = vmatpush.bf16.msra.mxu2 %v7989_v53  ;;  %v7782_v53 = vld [vmem:[#allocation6 + $0x90] sm:$0xf0]  ;;  %v8025_v10 = vor.u32 %v10359_v4, %v8022_v5  ;;  %v8220_v57 = vld [vmem:[#allocation6 + $0x3e8] sm:$0xf]  ;;  %v8105_v63 = vor.u32 %v10379_v48, %v8102_v49  ;;  %v10298_v49 = vld [vmem:[#allocation6 + $0x74] sm:$0xf0] }
  0xec   : > { %2412 = vmatpush.bf16.msra.mxu3 %v8117_v61  ;;  %v7785_v61 = vor.u32 %v10299_v51, %v7782_v53  ;;  %v7718_v34 = vld [vmem:[#allocation6 + $0x10] sm:$0xf0]  ;;  %v10314_v51 = vld [vmem:[#allocation6 + $0xf4] sm:$0xf0]  ;;  %v8221_v4 = vor.u32 %v10410_v58, %v8220_v57  ;;  %v7820_v5 = vld [vmem:[#allocation6 + $0xc8] sm:$0xf] }
  0xed   : > { %2371 = vmatpush.bf16.msra.mxu0 %v7717_v15  ;;  %v10327_v15 = vld [vmem:[#allocation6 + $0x164] sm:$0xf]  ;;  %v7721_v59 = vor.u32 %v10283_v44, %v7718_v34  ;;  %v7772_v48 = vld [vmem:[#allocation6 + $0x68] sm:$0xf] }
  0xee   : > { %2385 = vmatpush.bf16.msra.mxu1 %v7845_v23  ;;  %v8156_v58 = vld [vmem:[#allocation6 + $0x368] sm:$0xf] }
  0xef   : > { %2399 = vmatpush.bf16.msra.mxu2 %v7973_v6  ;;  %v10391_v6 = vld [vmem:[#allocation6 + $0x364] sm:$0xf] }
  0xf0   : > { %2413 = vmatpush.bf16.msra.mxu3 %v8101_v14  ;;  %2372 = vmatmul.bf16.vlgmr.msra.gmra.mxu0 %v11874_v24  ;;  %v8153_v12 = vor.u32 %v10391_v6, %v8150_v41  ;;  %v7750_v14 = vld [vmem:[#allocation6 + $0x50] sm:$0xf0]  ;;  %v10310_v6 = vld [vmem:[#allocation6 + $0xd4] sm:$0xf0] }
  0xf1   : > { %2420 = vmatpush.bf16.msrb.mxu0 %v7833_v16  ;;  %2386 = vmatmul.bf16.vlgmr.msra.gmra.mxu1 %v11881_v38  ;;  %v10355_v16 = vld [vmem:[#allocation6 + $0x244] sm:$0xf] }
  0xf2   : > { %2400 = vmatmul.bf16.vlgmr.msra.gmra.mxu2 %v11871_v20  ;;  %2434 = vmatpush.bf16.msrb.mxu1 %v7961_v29  ;;  %v8009_v23 = vor.u32 %v10355_v16, %v8006_v17  ;;  %v10351_v29 = vld [vmem:[#allocation6 + $0x224] sm:$0xf]  ;;  %v7804_v17 = vld [vmem:[#allocation6 + $0xa8] sm:$0xf] }
  0xf3   : > { %2448 = vmatpush.bf16.msrb.mxu2 %v8089_v11  ;;  %2414 = vmatmul.bf16.vlgmr.msra.gmra.mxu3 %v11877_v30  ;;  %v10291_v11 = vld [vmem:[#allocation6 + $0x44] sm:$0xf]  ;;  %v7805_v25 = vor.u32 %v10306_v18, %v7804_v17  ;;  %v10290_v17 = vld [vmem:[#allocation6 + $0x34] sm:$0xf0] }
  0xf4   : > { %2462 = vmatpush.bf16.msrb.mxu3 %v8217_v19  ;;  %v7897_v19 = vor.u32 %v10327_v15, %v7894_v9  ;;  %v7753_v21 = vor.u32 %v10291_v11, %v7750_v14  ;;  %v8204_v9 = vld [vmem:[#allocation6 + $0x3c8] sm:$0xf]  ;;  %v7821_v11 = vor.u32 %v10310_v6, %v7820_v5  ;;  %v10342_v14 = vld [vmem:[#allocation6 + $0x1d4] sm:$0xf0] }
  0xf5   : > { %2421 = vmatpush.bf16.msrb.mxu0 %v7817_v31  ;;  %v7990_v31 = vld [vmem:[#allocation6 + $0x230] sm:$0xf0]  ;;  %v8012_v6 = vld [vmem:[#allocation6 + $0x248] sm:$0xf] }
  0xf6   : > { %2435 = vmatpush.bf16.msrb.mxu1 %v7945_v42  ;;  %v7993_v43 = vor.u32 %v10351_v29, %v7990_v31  ;;  %v8121_v42 = vor.u32 %v10383_v32, %v8118_v35  ;;  %v7788_v31 = vld [vmem:[#allocation6 + $0x88] sm:$0xf]  ;;  %v10302_v32 = vld [vmem:[#allocation6 + $0x94] sm:$0xf0] }
  0xf7   : > { %2449 = vmatpush.bf16.msrb.mxu2 %v8073_v36  ;;  %v7881_v36 = vor.u32 %v10323_v22, %v7878_v26  ;;  %v8188_v26 = vld [vmem:[#allocation6 + $0x3a8] sm:$0xf]  ;;  %v7789_v34 = vor.u32 %v10302_v32, %v7788_v31  ;;  %v10322_v31 = vld [vmem:[#allocation6 + $0x134] sm:$0xf0] }
  0xf8   : > { %2463 = vmatpush.bf16.msrb.mxu3 %v8201_v39  ;;  %v7862_v39 = vld [vmem:[#allocation6 + $0x130] sm:$0xf0]  ;;  %v7724_v32 = vld [vmem:[#allocation6 + $0x8] sm:$0xf] }
  0xf9   : > { %2422 = vmatpush.bf16.msrb.mxu0 %v7801_v47  ;;  %v7974_v47 = vld [vmem:[#allocation6 + $0x210] sm:$0xf0]  ;;  %v7865_v53 = vor.u32 %v10319_v37, %v7862_v39  ;;  %v10366_v37 = vld [vmem:[#allocation6 + $0x294] sm:$0xf0] }
  0xfa   : > { %2436 = vmatpush.bf16.msrb.mxu1 %v7929_v60  ;;  %v10315_v60 = vld [vmem:[#allocation6 + $0x104] sm:$0xf]  ;;  %v7977_v62 = vor.u32 %v10347_v45, %v7974_v47  ;;  %v7916_v45 = vld [vmem:[#allocation6 + $0x188] sm:$0xf] }
  0xfb   : > { %2450 = vmatpush.bf16.msrb.mxu2 %v8057_v50  ;;  %v7836_v50 = vld [vmem:[#allocation6 + $0xe8] sm:$0xf] }
  0xfc   : > { %2464 = vmatpush.bf16.msrb.mxu3 %v8185_v52  ;;  %v8092_v52 = vld [vmem:[#allocation6 + $0x2e8] sm:$0xf] }
  0xfd   : > { %2423 = vmatpush.bf16.msrb.mxu0 %v7785_v61  ;;  %v7846_v61 = vld [vmem:[#allocation6 + $0x110] sm:$0xf0]  ;;  %v8093_v3 = vor.u32 %v10378_v55, %v8092_v52  ;;  %v8028_v52 = vld [vmem:[#allocation6 + $0x268] sm:$0xf] }
  0xfe   : > { %2437 = vmatpush.bf16.msrb.mxu1 %v7913_v7  ;;  %v7849_v41 = vor.u32 %v10315_v60, %v7846_v61  ;;  %v8076_v7 = vld [vmem:[#allocation6 + $0x2c8] sm:$0xf] }
  0xff   : > { %2451 = vmatpush.bf16.msrb.mxu2 %v8041_v0  ;;  %v7837_v0 = vor.u32 %v10314_v51, %v7836_v50 }
 0x100   : > { %2465 = vmatpush.bf16.msrb.mxu3 %v8169_v2  ;;  %v10346_v2 = vld [vmem:[#allocation6 + $0x1f4] sm:$0xf0] }
 0x101   : > { %2424 = vmatpush.bf16.msrb.mxu0 %v7769_v8  ;;  %v10374_v8 = vld [vmem:[#allocation6 + $0x2d4] sm:$0xf0]  ;;  %v7965_v15 = vor.u32 %v10346_v2, %v7964_v1  ;;  %v7756_v2 = vld [vmem:[#allocation6 + $0x48] sm:$0xf] }
 0x102   : > { %2438 = vmatpush.bf16.msrb.mxu1 %v7897_v19  ;;  %v8077_v16 = vor.u32 %v10374_v8, %v8076_v7  ;;  %v8060_v19 = vld [vmem:[#allocation6 + $0x2a8] sm:$0xf] }
 0x103   : > { %2452 = vmatpush.bf16.msrb.mxu2 %v8025_v10  ;;  %v10406_v10 = vld [vmem:[#allocation6 + $0x3d4] sm:$0xf0]  ;;  %v8140_v8 = vld [vmem:[#allocation6 + $0x348] sm:$0xf] }
 0x104   : > { %2466 = vmatpush.bf16.msrb.mxu3 %v8153_v12  ;;  %v7948_v12 = vld [vmem:[#allocation6 + $0x1c8] sm:$0xf]  ;;  %v8205_v56 = vor.u32 %v10406_v10, %v8204_v9 }
 0x105   : > { %2425 = vmatpush.bf16.msrb.mxu0 %v7753_v21  ;;  %v10370_v21 = vld [vmem:[#allocation6 + $0x2b4] sm:$0xf0]  ;;  %v7949_v22 = vor.u32 %v10342_v14, %v7948_v12 }
 0x106   : > { %2439 = vmatpush.bf16.msrb.mxu1 %v7881_v36  ;;  %v8061_v29 = vor.u32 %v10370_v21, %v8060_v19  ;;  %v8044_v36 = vld [vmem:[#allocation6 + $0x288] sm:$0xf]  ;;  %v10326_v12 = vld [vmem:[#allocation6 + $0x154] sm:$0xf0] }
 0x107   : > { %2453 = vmatpush.bf16.msrb.mxu2 %v8009_v23  ;;  %v10402_v23 = vld [vmem:[#allocation6 + $0x3b4] sm:$0xf0]  ;;  %v8045_v47 = vor.u32 %v10366_v37, %v8044_v36  ;;  %v7996_v19 = vld [vmem:[#allocation6 + $0x228] sm:$0xf] }
 0x108   : > { %2467 = vmatpush.bf16.msrb.mxu3 %v8137_v27  ;;  %v7932_v27 = vld [vmem:[#allocation6 + $0x1a8] sm:$0xf]  ;;  %v8189_v35 = vor.u32 %v10402_v23, %v8188_v26  ;;  %v10354_v21 = vld [vmem:[#allocation6 + $0x234] sm:$0xf0] }
 0x109   : > { %2426 = vmatpush.bf16.msrb.mxu0 %v7737_v40  ;;  %v7933_v39 = vor.u32 %v10338_v28, %v7932_v27  ;;  %v8172_v40 = vld [vmem:[#allocation6 + $0x388] sm:$0xf]  ;;  %v10286_v36 = vld [vmem:[#allocation6 + $0x14] sm:$0xf0] }
 0x10a   : > { %2440 = vmatpush.bf16.msrb.mxu1 %v7865_v53  ;;  %v10362_v53 = vld [vmem:[#allocation6 + $0x274] sm:$0xf0]  ;;  %v8124_v23 = vld [vmem:[#allocation6 + $0x328] sm:$0xf] }
 0x10b   : > { %2454 = vmatpush.bf16.msrb.mxu2 %v7993_v43  ;;  %v10398_v43 = vld [vmem:[#allocation6 + $0x394] sm:$0xf0]  ;;  %v1509_v44 = vpop.f32.mrf.mxu0  ;;  %v1537_v50 = vpop.f32.mrf.mxu2  ;;  %v8029_v1 = vor.u32 %v10362_v53, %v8028_v52  ;;  %v7980_v37 = vld [vmem:[#allocation6 + $0x208] sm:$0xf]  ;;  %v10408_v53 = vld [vmem:[#allocation6 + $0x3ec] sm:$0xf] }
 0x10c   : > { %2468 = vmatpush.bf16.msrb.mxu3 %v8121_v42  ;;  %v10334_v42 = vld [vmem:[#allocation6 + $0x194] sm:$0xf0]  ;;  %v8173_v51 = vor.u32 %v10398_v43, %v8172_v40  ;;  %v1551_v61 = vpop.f32.mrf.mxu3 }
 0x10d   : > { %2427 = vmatpush.bf16.msrb.mxu0 %v7721_v59  ;;  %v7917_v57 = vor.u32 %v10334_v42, %v7916_v45  ;;  %v10394_v59 = vld [vmem:[#allocation6 + $0x374] sm:$0xf0]  ;;  %v10312_v45 = vld [vmem:[#allocation6 + $0xec] sm:$0xf]  ;;  %v7838_v42 = vld [vmem:[#allocation6 + $0xf8] sm:$0xf0] }
 0x10e   : > { %2441 = vmatpush.bf16.msrb.mxu1 %v7849_v41  ;;  %v1523_v55 = vpop.f32.mrf.mxu1  ;;  %v8157_v5 = vor.u32 %v10394_v59, %v8156_v58  ;;  %v10358_v41 = vld [vmem:[#allocation6 + $0x254] sm:$0xf0]  ;;  %v7841_v58 = vor.u32 %v10312_v45, %v7838_v42  ;;  %v10344_v59 = vld [vmem:[#allocation6 + $0x1ec] sm:$0xf] }
 0x10f   : > { %2455 = vmatpush.bf16.msrb.mxu2 %v7977_v62  ;;  %v1524_v60 = vadd.f32 %v1523_v55, %v1509_v44  ;;  %v7773_v62 = vor.u32 %v10298_v49, %v7772_v48  ;;  %v8013_v14 = vor.u32 %v10358_v41, %v8012_v6  ;;  %v7852_v44 = vld [vmem:[#allocation6 + $0x108] sm:$0xf]  ;;  %v10382_v48 = vld [vmem:[#allocation6 + $0x314] sm:$0xf0]  ;;  %v10376_v49 = vld [vmem:[#allocation6 + $0x2ec] sm:$0xf] }
 0x110   : > { %2469 = vmatpush.bf16.msrb.mxu3 %v8105_v63  ;;  %2428 = vmatmul.bf16.vlgmr.msrb.gmra.mxu0 %v11874_v24  ;;  %v7900_v63 = vld [vmem:[#allocation6 + $0x168] sm:$0xf]  ;;  %v10318_v52 = vld [vmem:[#allocation6 + $0x114] sm:$0xf0]  ;;  %v8222_v55 = vld [vmem:[#allocation6 + $0x3f8] sm:$0xf0] }
 0x111   : > { %2476 = vmatpush.bf16.msra.mxu0 %v7837_v0  ;;  %2442 = vmatmul.bf16.vlgmr.msrb.gmra.mxu1 %v11881_v38  ;;  %v10330_v0 = vld [vmem:[#allocation6 + $0x174] sm:$0xf0]  ;;  %v8078_v41 = vld [vmem:[#allocation6 + $0x2d8] sm:$0xf0]  ;;  %v10364_v45 = vld [vmem:[#allocation6 + $0x28c] sm:$0xf] }
 0x112   : > { %2490 = vmatpush.bf16.msra.mxu1 %v7965_v15  ;;  %2456 = vmatmul.bf16.vlgmr.msrb.gmra.mxu2 %v11871_v20  ;;  %v7901_v7 = vor.u32 %v10330_v0, %v7900_v63  ;;  %v10390_v15 = vld [vmem:[#allocation6 + $0x354] sm:$0xf0]  ;;  %v7853_v0 = vor.u32 %v10318_v52, %v7852_v44  ;;  %v10300_v44 = vld [vmem:[#allocation6 + $0x8c] sm:$0xf] }
 0x113   : > { %2504 = vmatpush.bf16.msra.mxu2 %v8093_v3  ;;  %2470 = vmatmul.bf16.vlgmr.msrb.gmra.mxu3 %v11877_v30  ;;  %v10294_v3 = vld [vmem:[#allocation6 + $0x54] sm:$0xf0]  ;;  %v11892_v18 = vpop.f32.mrf.mxu0  ;;  %v11896_v27 = vpop.f32.mrf.mxu2  ;;  %v10332_v52 = vld [vmem:[#allocation6 + $0x18c] sm:$0xf] }
 0x114   : > { %2518 = vmatpush.bf16.msra.mxu3 %v8221_v4  ;;  %v1538_v4 = vadd.f32 %v1537_v50, %v1524_v60  ;;  %v7757_v10 = vor.u32 %v10294_v3, %v7756_v2  ;;  %v11898_v40 = vpop.f32.mrf.mxu3  ;;  %v8094_v50 = vld [vmem:[#allocation6 + $0x2f8] sm:$0xf0]  ;;  %v10308_v2 = vld [vmem:[#allocation6 + $0xcc] sm:$0xf] }
 0x115   : > { %2477 = vmatpush.bf16.msra.mxu0 %v7821_v11  ;;  %v7884_v11 = vld [vmem:[#allocation6 + $0x148] sm:$0xf]  ;;  %v7966_v60 = vld [vmem:[#allocation6 + $0x1f8] sm:$0xf0] }
 0x116   : > { %2491 = vmatpush.bf16.msra.mxu1 %v7949_v22  ;;  %v11890_v9 = vadd.f32 %v1551_v61, %v1538_v4  ;;  %v11894_v22 = vpop.f32.mrf.mxu1  ;;  %v7885_v26 = vor.u32 %v10326_v12, %v7884_v11  ;;  %v7822_v3 = vld [vmem:[#allocation6 + $0xd8] sm:$0xf0]  ;;  %v10372_v4 = vld [vmem:[#allocation6 + $0x2cc] sm:$0xf]  ;;  %v7969_v6 = vor.u32 %v10344_v59, %v7966_v60 }
 0x117   : > { %2505 = vmatpush.bf16.msra.mxu2 %v8077_v16  ;;  %v7740_v16 = vld [vmem:[#allocation6 + $0x28] sm:$0xf]  ;;  %v10340_v11 = vld [vmem:[#allocation6 + $0x1cc] sm:$0xf]  ;;  %v7950_v12 = vld [vmem:[#allocation6 + $0x1d8] sm:$0xf0] }
 0x118   : > { %2519 = vmatpush.bf16.msra.mxu3 %v8205_v56  ;;  %v8141_v56 = vor.u32 %v10390_v15, %v8140_v8  ;;  %v7741_v28 = vor.u32 %v10290_v17, %v7740_v16  ;;  %v8206_v8 = vld [vmem:[#allocation6 + $0x3d8] sm:$0xf0]  ;;  %v10296_v60 = vld [vmem:[#allocation6 + $0x6c] sm:$0xf] }
 0x119   : > { %2478 = vmatpush.bf16.msra.mxu0 %v7805_v25  ;;  %v10386_v25 = vld [vmem:[#allocation6 + $0x334] sm:$0xf0] }
 0x11a   : > { %2492 = vmatpush.bf16.msra.mxu1 %v7933_v39  ;;  %v10350_v39 = vld [vmem:[#allocation6 + $0x214] sm:$0xf0]  ;;  %v8125_v43 = vor.u32 %v10386_v25, %v8124_v23  ;;  %v10368_v23 = vld [vmem:[#allocation6 + $0x2ac] sm:$0xf]  ;;  %v7953_v25 = vor.u32 %v10340_v11, %v7950_v12  ;;  %v8014_v12 = vld [vmem:[#allocation6 + $0x258] sm:$0xf0] }
 0x11b   : > { %2506 = vmatpush.bf16.msra.mxu2 %v8061_v29  ;;  %v7868_v29 = vld [vmem:[#allocation6 + $0x128] sm:$0xf]  ;;  %v1565_v63 = vpop.f32.mrf.mxu0 }
 0x11c   : > { %2520 = vmatpush.bf16.msra.mxu3 %v8189_v35  ;;  %v7997_v35 = vor.u32 %v10354_v21, %v7996_v19  ;;  %v1607_v17 = vpop.f32.mrf.mxu3  ;;  %v10304_v21 = vld [vmem:[#allocation6 + $0xac] sm:$0xf] }
 0x11d   : > { %2479 = vmatpush.bf16.msra.mxu0 %v7789_v34  ;;  %v8108_v34 = vld [vmem:[#allocation6 + $0x308] sm:$0xf] }
 0x11e   : > { %2493 = vmatpush.bf16.msra.mxu1 %v7917_v57  ;;  %v7981_v57 = vor.u32 %v10350_v39, %v7980_v37  ;;  %v8109_v61 = vor.u32 %v10382_v48, %v8108_v34  ;;  %v7790_v34 = vld [vmem:[#allocation6 + $0x98] sm:$0xf0]  ;;  %v10396_v48 = vld [vmem:[#allocation6 + $0x38c] sm:$0xf] }
 0x11f   : > { %2507 = vmatpush.bf16.msra.mxu2 %v8045_v47  ;;  %v7869_v47 = vor.u32 %v10322_v31, %v7868_v29  ;;  %v10400_v29 = vld [vmem:[#allocation6 + $0x3ac] sm:$0xf]  ;;  %v8190_v31 = vld [vmem:[#allocation6 + $0x3b8] sm:$0xf0] }
 0x120   : > { %2521 = vmatpush.bf16.msra.mxu3 %v8173_v51  ;;  %v7725_v51 = vor.u32 %v10286_v36, %v7724_v32  ;;  %v7934_v36 = vld [vmem:[#allocation6 + $0x1b8] sm:$0xf0] }
 0x121   : > { %2480 = vmatpush.bf16.msra.mxu0 %v7773_v62  ;;  %v8097_v62 = vor.u32 %v10376_v49, %v8094_v50  ;;  %v8174_v49 = vld [vmem:[#allocation6 + $0x398] sm:$0xf0] }
 0x122   : > { %2494 = vmatpush.bf16.msra.mxu1 %v7901_v7  ;;  %v10404_v7 = vld [vmem:[#allocation6 + $0x3cc] sm:$0xf]  ;;  %v8177_v59 = vor.u32 %v10396_v48, %v8174_v49 }
 0x123   : > { %2508 = vmatpush.bf16.msra.mxu2 %v8029_v1  ;;  %v8225_v1 = vor.u32 %v10408_v53, %v8222_v55  ;;  %v8209_v19 = vor.u32 %v10404_v7, %v8206_v8  ;;  %v11906_v50 = vpop.f32.mrf.mxu0  ;;  %v7918_v53 = vld [vmem:[#allocation6 + $0x198] sm:$0xf0]  ;;  %v7793_v55 = vor.u32 %v10300_v44, %v7790_v34  ;;  %v10292_v8 = vld [vmem:[#allocation6 + $0x4c] sm:$0xf] }
 0x124   : > { %2522 = vmatpush.bf16.msra.mxu3 %v8157_v5  ;;  %v1579_v5 = vpop.f32.mrf.mxu1  ;;  %v10384_v44 = vld [vmem:[#allocation6 + $0x32c] sm:$0xf]  ;;  %v8126_v34 = vld [vmem:[#allocation6 + $0x338] sm:$0xf0] }
 0x125   : > { %2481 = vmatpush.bf16.msra.mxu0 %v7757_v10  ;;  %v1580_v15 = vadd.f32 %v1579_v5, %v1565_v63  ;;  %v1593_v10 = vpop.f32.mrf.mxu2  ;;  %v7921_v63 = vor.u32 %v10332_v52, %v7918_v53  ;;  %v7902_v5 = vld [vmem:[#allocation6 + $0x178] sm:$0xf0]  ;;  %v10284_v52 = vld [vmem:[#allocation6 + $0xc] sm:$0xf] }
 0x126   : > { %2495 = vmatpush.bf16.msra.mxu1 %v7885_v26  ;;  %v7806_v26 = vld [vmem:[#allocation6 + $0xb8] sm:$0xf0] }
 0x127   : > { %2509 = vmatpush.bf16.msra.mxu2 %v8013_v14  ;;  %v7825_v14 = vor.u32 %v10308_v2, %v7822_v3  ;;  %v1594_v16 = vadd.f32 %v1593_v10, %v1580_v15  ;;  %v7809_v37 = vor.u32 %v10304_v21, %v7806_v26  ;;  %v8158_v2 = vld [vmem:[#allocation6 + $0x378] sm:$0xf0]  ;;  %v11912_v3 = vpop.f32.mrf.mxu3  ;;  %v10356_v10 = vld [vmem:[#allocation6 + $0x24c] sm:$0xf] }
 0x128   : > { %2523 = vmatpush.bf16.msra.mxu3 %v8141_v56  ;;  %v8081_v56 = vor.u32 %v10372_v4, %v8078_v41  ;;  %v10328_v4 = vld [vmem:[#allocation6 + $0x16c] sm:$0xf]  ;;  %v7758_v15 = vld [vmem:[#allocation6 + $0x58] sm:$0xf0] }
 0x129   : > { %2482 = vmatpush.bf16.msra.mxu0 %v7741_v28  ;;  %v8062_v28 = vld [vmem:[#allocation6 + $0x2b8] sm:$0xf0]  ;;  %v11901_v32 = vadd.f32 %v1607_v17, %v1594_v16  ;;  %v7905_v11 = vor.u32 %v10328_v4, %v7902_v5  ;;  %v10569_v4 = vld [vmem:[#allocation6 + $0x8ec] sm:$0xf0]  ;;  %v8468_v5 = vld [vmem:[#allocation6 + $0x9e0] sm:$0xf] }
 0x12a   : > { %2496 = vmatpush.bf16.msra.mxu1 %v7869_v47  ;;  %v8065_v39 = vor.u32 %v10368_v23, %v8062_v28  ;;  %v8046_v47 = vld [vmem:[#allocation6 + $0x298] sm:$0xf0]  ;;  %v7761_v23 = vor.u32 %v10292_v8, %v7758_v15  ;;  %v8017_v28 = vor.u32 %v10356_v10, %v8014_v12  ;;  %v10633_v8 = vld [vmem:[#allocation6 + $0xaec] sm:$0xf0] }
 0x12b   : > { %2510 = vmatpush.bf16.msra.mxu2 %v7997_v35  ;;  %v10336_v35 = vld [vmem:[#allocation6 + $0x1ac] sm:$0xf]  ;;  %v8142_v16 = vld [vmem:[#allocation6 + $0x358] sm:$0xf0]  ;;  %v10665_v12 = vld [vmem:[#allocation6 + $0xbec] sm:$0xf0] }
 0x12c   : > { %2524 = vmatpush.bf16.msra.mxu3 %v8125_v43  ;;  %v8193_v43 = vor.u32 %v10400_v29, %v8190_v31  ;;  %v7937_v42 = vor.u32 %v10336_v35, %v7934_v36  ;;  %v7886_v21 = vld [vmem:[#allocation6 + $0x158] sm:$0xf0]  ;;  %v10288_v31 = vld [vmem:[#allocation6 + $0x2c] sm:$0xf] }
 0x12d   : > { %2483 = vmatpush.bf16.msra.mxu0 %v7725_v51  ;;  %v11908_v51 = vpop.f32.mrf.mxu1  ;;  %v1621_v17 = vpop.f32.mrf.mxu0  ;;  %v7742_v35 = vld [vmem:[#allocation6 + $0x38] sm:$0xf0]  ;;  %v10352_v36 = vld [vmem:[#allocation6 + $0x22c] sm:$0xf] }
 0x12e   : > { %2497 = vmatpush.bf16.msra.mxu1 %v7853_v0  ;;  %v8030_v0 = vld [vmem:[#allocation6 + $0x278] sm:$0xf0]  ;;  %v7745_v49 = vor.u32 %v10288_v31, %v7742_v35  ;;  %v8708_v31 = vld [vmem:[#allocation6 + $0xbc0] sm:$0xf]  ;;  %v10661_v35 = vld [vmem:[#allocation6 + $0xbcc] sm:$0xf0] }
 0x12f   : > { %2511 = vmatpush.bf16.msra.mxu2 %v7981_v57  ;;  %v11910_v57 = vpop.f32.mrf.mxu2  ;;  %v7726_v53 = vld [vmem:[#allocation6 + $0x18] sm:$0xf0] }
 0x130   : > { %2525 = vmatpush.bf16.msra.mxu3 %v8109_v61  ;;  %2484 = vmatmul.bf16.vlgmr.msra.gmra.mxu0 %v11874_v24  ;;  %v7774_v61 = vld [vmem:[#allocation6 + $0x78] sm:$0xf0] }
 0x131   : > { %2532 = vmatpush.bf16.msrb.mxu0 %v7841_v58  ;;  %2498 = vmatmul.bf16.vlgmr.msra.gmra.mxu1 %v11881_v38  ;;  %v8049_v58 = vor.u32 %v10364_v45, %v8046_v47  ;;  %v7870_v47 = vld [vmem:[#allocation6 + $0x138] sm:$0xf0] }
 0x132   : > { %2546 = vmatpush.bf16.msrb.mxu1 %v7969_v6  ;;  %2512 = vmatmul.bf16.vlgmr.msra.gmra.mxu2 %v11871_v20  ;;  %v7777_v6 = vor.u32 %v10296_v60, %v7774_v61  ;;  %v7854_v60 = vld [vmem:[#allocation6 + $0x118] sm:$0xf0]  ;;  %v10348_v61 = vld [vmem:[#allocation6 + $0x20c] sm:$0xf] }
 0x133   : > { %2560 = vmatpush.bf16.msrb.mxu2 %v8097_v62  ;;  %2526 = vmatmul.bf16.vlgmr.msra.gmra.mxu3 %v11877_v30  ;;  %v10360_v62 = vld [vmem:[#allocation6 + $0x26c] sm:$0xf] }
 0x134   : > { %2574 = vmatpush.bf16.msrb.mxu3 %v8225_v1  ;;  %v10392_v1 = vld [vmem:[#allocation6 + $0x36c] sm:$0xf]  ;;  %v8033_v41 = vor.u32 %v10360_v62, %v8030_v0 }
 0x135   : > { %2533 = vmatpush.bf16.msrb.mxu0 %v7825_v14  ;;  %v8161_v7 = vor.u32 %v10392_v1, %v8158_v2  ;;  %v10388_v14 = vld [vmem:[#allocation6 + $0x34c] sm:$0xf]  ;;  %v8110_v1 = vld [vmem:[#allocation6 + $0x318] sm:$0xf0]  ;;  %v8340_v2 = vld [vmem:[#allocation6 + $0x8e0] sm:$0xf] }
 0x136   : > { %2547 = vmatpush.bf16.msrb.mxu1 %v7953_v25  ;;  %v8145_v29 = vor.u32 %v10388_v14, %v8142_v16  ;;  %v1663_v45 = vpop.f32.mrf.mxu3  ;;  %v10380_v0 = vld [vmem:[#allocation6 + $0x30c] sm:$0xf]  ;;  %v8341_v16 = vor.u32 %v10569_v4, %v8340_v2  ;;  %v10653_v4 = vld [vmem:[#allocation6 + $0xb8c] sm:$0xf0] }
 0x137   : > { %2561 = vmatpush.bf16.msrb.mxu2 %v8081_v56  ;;  %v1635_v56 = vpop.f32.mrf.mxu1  ;;  %v1649_v25 = vpop.f32.mrf.mxu2  ;;  %v8113_v10 = vor.u32 %v10380_v0, %v8110_v1  ;;  %v8548_v0 = vld [vmem:[#allocation6 + $0xa80] sm:$0xf]  ;;  %v10621_v1 = vld [vmem:[#allocation6 + $0xa8c] sm:$0xf0] }
 0x138   : > { %2575 = vmatpush.bf16.msrb.mxu3 %v8209_v19  ;;  %v10324_v19 = vld [vmem:[#allocation6 + $0x14c] sm:$0xf]  ;;  %v1636_v26 = vadd.f32 %v1635_v56, %v1621_v17 }
 0x139   : > { %2534 = vmatpush.bf16.msrb.mxu0 %v7809_v37 }
 0x13a   : > { %2548 = vmatpush.bf16.msrb.mxu1 %v7937_v42  ;;  %v1650_v37 = vadd.f32 %v1649_v25, %v1636_v26  ;;  %v10320_v42 = vld [vmem:[#allocation6 + $0x12c] sm:$0xf]  ;;  %v8452_v26 = vld [vmem:[#allocation6 + $0x9c0] sm:$0xf]  ;;  %v10597_v25 = vld [vmem:[#allocation6 + $0x9cc] sm:$0xf0] }
 0x13b   : > { %2562 = vmatpush.bf16.msrb.mxu2 %v8065_v39  ;;  %v7889_v39 = vor.u32 %v10324_v19, %v7886_v21  ;;  %v7873_v62 = vor.u32 %v10320_v42, %v7870_v47  ;;  %v8324_v19 = vld [vmem:[#allocation6 + $0x8c0] sm:$0xf]  ;;  %v10565_v21 = vld [vmem:[#allocation6 + $0x8cc] sm:$0xf0] }
 0x13c   : > { %2576 = vmatpush.bf16.msrb.mxu3 %v8193_v43  ;;  %v7998_v43 = vld [vmem:[#allocation6 + $0x238] sm:$0xf0]  ;;  %v11914_v48 = vadd.f32 %v1663_v45, %v1650_v37  ;;  %v8453_v37 = vor.u32 %v10597_v25, %v8452_v26  ;;  %v8709_v45 = vor.u32 %v10661_v35, %v8708_v31  ;;  %v10593_v42 = vld [vmem:[#allocation6 + $0x9ac] sm:$0xf0]  ;;  %v8564_v47 = vld [vmem:[#allocation6 + $0xaa0] sm:$0xf] }
 0x13d   : > { %2535 = vmatpush.bf16.msrb.mxu0 %v7793_v55  ;;  %v8001_v55 = vor.u32 %v10352_v36, %v7998_v43  ;;  %v8325_v36 = vor.u32 %v10565_v21, %v8324_v19  ;;  %v8308_v43 = vld [vmem:[#allocation6 + $0x8a0] sm:$0xf]  ;;  %v10581_v35 = vld [vmem:[#allocation6 + $0x94c] sm:$0xf0] }
 0x13e   : > { %2549 = vmatpush.bf16.msrb.mxu1 %v7921_v63  ;;  %v7982_v63 = vld [vmem:[#allocation6 + $0x218] sm:$0xf0]  ;;  %v8260_v21 = vld [vmem:[#allocation6 + $0x840] sm:$0xf] }
 0x13f   : > { %2563 = vmatpush.bf16.msrb.mxu2 %v8049_v58  ;;  %v8129_v58 = vor.u32 %v10384_v44, %v8126_v34  ;;  %v7985_v15 = vor.u32 %v10348_v61, %v7982_v63  ;;  %v10561_v44 = vld [vmem:[#allocation6 + $0x8ac] sm:$0xf0]  ;;  %v8436_v34 = vld [vmem:[#allocation6 + $0x9a0] sm:$0xf]  ;;  %v11924_v2 = vpop.f32.mrf.mxu2 }
 0x140   : > { %2577 = vmatpush.bf16.msrb.mxu3 %v8177_v59  ;;  %v10316_v59 = vld [vmem:[#allocation6 + $0x10c] sm:$0xf]  ;;  %v8292_v61 = vld [vmem:[#allocation6 + $0x880] sm:$0xf] }
 0x141   : > { %2536 = vmatpush.bf16.msrb.mxu0 %v7777_v6  ;;  %v7729_v6 = vor.u32 %v10284_v52, %v7726_v53  ;;  %v7857_v14 = vor.u32 %v10316_v59, %v7854_v60  ;;  %v8692_v52 = vld [vmem:[#allocation6 + $0xba0] sm:$0xf]  ;;  %v10657_v53 = vld [vmem:[#allocation6 + $0xbac] sm:$0xf0]  ;;  %v11922_v59 = vpop.f32.mrf.mxu1 }
 0x142   : > { %2550 = vmatpush.bf16.msrb.mxu1 %v7905_v11  ;;  %v8724_v11 = vld [vmem:[#allocation6 + $0xbe0] sm:$0xf] }
 0x143   : > { %2564 = vmatpush.bf16.msrb.mxu2 %v8033_v41  ;;  %v10601_v41 = vld [vmem:[#allocation6 + $0x9ec] sm:$0xf0]  ;;  %v8420_v63 = vld [vmem:[#allocation6 + $0x980] sm:$0xf] }
 0x144   : > { %2578 = vmatpush.bf16.msrb.mxu3 %v8161_v7  ;;  %v8596_v7 = vld [vmem:[#allocation6 + $0xae0] sm:$0xf]  ;;  %v8469_v17 = vor.u32 %v10601_v41, %v8468_v5  ;;  %v8549_v41 = vor.u32 %v10621_v1, %v8548_v0  ;;  %v2590_v1 = vld [vmem:[#allocation2 + $0x10] sm:$0xfc] }
 0x145   : > { %2537 = vmatpush.bf16.msrb.mxu0 %v7761_v23  ;;  %v8597_v56 = vor.u32 %v10633_v8, %v8596_v7  ;;  %v8725_v23 = vor.u32 %v10665_v12, %v8724_v11  ;;  %v8276_v7 = vld [vmem:[#allocation6 + $0x860] sm:$0xf]  ;;  %v10553_v8 = vld [vmem:[#allocation6 + $0x86c] sm:$0xf0] }
 0x146   : > { %2551 = vmatpush.bf16.msrb.mxu1 %v7889_v39  ;;  %v10585_v12 = vld [vmem:[#allocation6 + $0x96c] sm:$0xf0]  ;;  %v8277_v19 = vor.u32 %v10553_v8, %v8276_v7  ;;  %v8388_v31 = vld [vmem:[#allocation6 + $0x940] sm:$0xf] }
 0x147   : > { %2565 = vmatpush.bf16.msrb.mxu2 %v8017_v28  ;;  %v8580_v28 = vld [vmem:[#allocation6 + $0xac0] sm:$0xf]  ;;  %v11932_v8 = vld [vmem:[#allocation6 + $0x90c] sm:$0xf0] }
 0x148   : > { %2579 = vmatpush.bf16.msrb.mxu3 %v8145_v29  ;;  %v10629_v29 = vld [vmem:[#allocation6 + $0xacc] sm:$0xf0]  ;;  %v11930_v7 = vld [vmem:[#allocation6 + $0x900] sm:$0xf] }
 0x149   : > { %2538 = vmatpush.bf16.msrb.mxu0 %v7745_v49  ;;  %v8581_v39 = vor.u32 %v10629_v29, %v8580_v28  ;;  %v10625_v49 = vld [vmem:[#allocation6 + $0xaac] sm:$0xf0] }
 0x14a   : > { %2552 = vmatpush.bf16.msrb.mxu1 %v7873_v62  ;;  %v8565_v60 = vor.u32 %v10625_v49, %v8564_v47  ;;  %v10557_v62 = vld [vmem:[#allocation6 + $0x88c] sm:$0xf0] }
 0x14b   : > { %2566 = vmatpush.bf16.msrb.mxu2 %v8001_v55  ;;  %v8309_v55 = vor.u32 %v10561_v44, %v8308_v43  ;;  %v8293_v5 = vor.u32 %v10557_v62, %v8292_v61  ;;  %v10549_v29 = vld [vmem:[#allocation6 + $0x84c] sm:$0xf0]  ;;  %v8644_v44 = vld [vmem:[#allocation6 + $0xb40] sm:$0xf] }
 0x14c   : > { %2580 = vmatpush.bf16.msrb.mxu3 %v8129_v58  ;;  %v11920_v58 = vpop.f32.mrf.mxu0  ;;  %v10613_v43 = vld [vmem:[#allocation6 + $0xa4c] sm:$0xf0] }
 0x14d   : > { %2539 = vmatpush.bf16.msrb.mxu0 %v7729_v6  ;;  %v10545_v47 = vld [vmem:[#allocation6 + $0x82c] sm:$0xf0] }
 0x14e   : > { %2553 = vmatpush.bf16.msrb.mxu1 %v7857_v14  ;;  %v8532_v14 = vld [vmem:[#allocation6 + $0xa60] sm:$0xf]  ;;  %v10609_v62 = vld [vmem:[#allocation6 + $0xa2c] sm:$0xf0] }
 0x14f   : > { %2567 = vmatpush.bf16.msrb.mxu2 %v7985_v15  ;;  %v8404_v15 = vld [vmem:[#allocation6 + $0x960] sm:$0xf] }
 0x150   : > { %2581 = vmatpush.bf16.msrb.mxu3 %v8113_v10  ;;  %2540 = vmatmul.bf16.vlgmr.msrb.gmra.mxu0 %v11874_v24  ;;  %v8437_v24 = vor.u32 %v10593_v42, %v8436_v34  ;;  %v11926_v10 = vpop.f32.mrf.mxu3  ;;  %v8405_v25 = vor.u32 %v10585_v12, %v8404_v15  ;;  %v8244_v42 = vld [vmem:[#allocation6 + $0x820] sm:$0xf]  ;;  %v2595_v15 = vld [vmem:[#allocation2 + $0x58] sm:$0x3] }
 0x151   : > { %3398 = vmatpush.bf16.msra.mxu0 %v8341_v16  ;;  %2554 = vmatmul.bf16.vlgmr.msrb.gmra.mxu1 %v11881_v38  ;;  %v10589_v38 = vld [vmem:[#allocation6 + $0x98c] sm:$0xf0]  ;;  %v2592_v12 = vld [vmem:[#allocation2 + $0x40] sm:$0x3] }
 0x152   : > { %3412 = vmatpush.bf16.msra.mxu1 %v8469_v17  ;;  %2568 = vmatmul.bf16.vlgmr.msrb.gmra.mxu2 %v11871_v20  ;;  %v8693_v20 = vor.u32 %v10657_v53, %v8692_v52  ;;  %v8421_v6 = vor.u32 %v10589_v38, %v8420_v63  ;;  %v10617_v16 = vld [vmem:[#allocation6 + $0xa6c] sm:$0xf0]  ;;  %v8660_v17 = vld [vmem:[#allocation6 + $0xb60] sm:$0xf]  ;;  %v8261_v52 = vor.u32 %v10549_v29, %v8260_v21  ;;  %v2593_v21 = vld [vmem:[#allocation2 + $0x48] sm:$0x3] }
 0x153   : > { %3426 = vmatpush.bf16.msra.mxu2 %v8597_v56  ;;  %2582 = vmatmul.bf16.vlgmr.msrb.gmra.mxu3 %v11877_v30  ;;  %v8676_v30 = vld [vmem:[#allocation6 + $0xb80] sm:$0xf]  ;;  %v10649_v56 = vld [vmem:[#allocation6 + $0xb6c] sm:$0xf0]  ;;  %v8533_v28 = vor.u32 %v10617_v16, %v8532_v14  ;;  %v8245_v14 = vor.u32 %v10545_v47, %v8244_v42  ;;  %v2598_v29 = vpack.c.bf16 %v11769_v46, %v2590_v1 }
 0x154   : > { %3440 = vmatpush.bf16.msra.mxu3 %v8725_v23  ;;  %v8677_v11 = vor.u32 %v10653_v4, %v8676_v30  ;;  %v1677_v26 = vpop.f32.mrf.mxu0  ;;  %v1691_v23 = vpop.f32.mrf.mxu1  ;;  %v8372_v53 = vld [vmem:[#allocation6 + $0x920] sm:$0xf]  ;;  %v2594_v30 = vld [vmem:[#allocation2 + $0x50] sm:$0x3]  ;;  %v2601_v47 = vpack.c.bf16 %v2593_v21, %v2593_v21  ;;  %v8357_v46 = vor.u32 %v11932_v8, %v11930_v7 }
 0x155   : > { %3399 = vmatpush.bf16.msra.mxu0 %v8325_v36  ;;  %v1692_v36 = vadd.f32 %v1691_v23, %v1677_v26  ;;  %v1705_v34 = vpop.f32.mrf.mxu2  ;;  %v8628_v63 = vld [vmem:[#allocation6 + $0xb20] sm:$0xf]  ;;  %v10605_v23 = vld [vmem:[#allocation6 + $0xa0c] sm:$0xf0] }
 0x156   : > { %3413 = vmatpush.bf16.msra.mxu1 %v8453_v37  ;;  %v8661_v37 = vor.u32 %v10649_v56, %v8660_v17  ;;  %v8484_v56 = vld [vmem:[#allocation6 + $0xa00] sm:$0xf]  ;;  %v2746_v7 = vrot.slane %v2601_v47, 1 }
 0x157   : > { %3427 = vmatpush.bf16.msra.mxu2 %v8581_v39  ;;  %v8516_v39 = vld [vmem:[#allocation6 + $0xa40] sm:$0xf]  ;;  %v1706_v49 = vadd.f32 %v1705_v34, %v1692_v36  ;;  %v8342_v36 = vld [vmem:[#allocation6 + $0x8f0] sm:$0xf0]  ;;  %v10599_v34 = vld [vmem:[#allocation6 + $0x9e4] sm:$0xf] }
 0x158   : > { %3441 = vmatpush.bf16.msra.mxu3 %v8709_v45  ;;  %v10645_v45 = vld [vmem:[#allocation6 + $0xb4c] sm:$0xf0]  ;;  %v8517_v61 = vor.u32 %v10613_v43, %v8516_v39  ;;  %v1719_v38 = vpop.f32.mrf.mxu3  ;;  %v2603_v39 = vpack.c.bf16 %v2595_v15, %v2595_v15 }
 0x159   : > { %3400 = vmatpush.bf16.msra.mxu0 %v8309_v55  ;;  %v10577_v55 = vld [vmem:[#allocation6 + $0x92c] sm:$0xf0]  ;;  %v8645_v0 = vor.u32 %v10645_v45, %v8644_v44  ;;  %v11928_v4 = vadd.f32 %v1719_v38, %v1706_v49  ;;  %v2600_v44 = vpack.c.bf16 %v2592_v12, %v2592_v12  ;;  %v8470_v45 = vld [vmem:[#allocation6 + $0x9f0] sm:$0xf0]  ;;  %v10627_v12 = vld [vmem:[#allocation6 + $0xac4] sm:$0xf] }
 0x15a   : > { %3414 = vmatpush.bf16.msra.mxu1 %v8437_v24  ;;  %v8500_v24 = vld [vmem:[#allocation6 + $0xa20] sm:$0xf]  ;;  %v8373_v16 = vor.u32 %v10577_v55, %v8372_v53  ;;  %v10631_v55 = vld [vmem:[#allocation6 + $0xae4] sm:$0xf]  ;;  %v8473_v1 = vor.u32 %v10599_v34, %v8470_v45  ;;  %v8694_v45 = vld [vmem:[#allocation6 + $0xbb0] sm:$0xf0] }
 0x15b   : > { %3428 = vmatpush.bf16.msra.mxu2 %v8565_v60  ;;  %v8389_v60 = vor.u32 %v10581_v35, %v8388_v31  ;;  %v8501_v17 = vor.u32 %v10609_v62, %v8500_v24  ;;  %v2602_v31 = vpack.c.bf16 %v2594_v30, %v2594_v30  ;;  %v10567_v35 = vld [vmem:[#allocation6 + $0x8e4] sm:$0xf]  ;;  %v8598_v24 = vld [vmem:[#allocation6 + $0xaf0] sm:$0xf0] }
 0x15c   : > { %3442 = vmatpush.bf16.msra.mxu3 %v8693_v20  ;;  %v10641_v20 = vld [vmem:[#allocation6 + $0xb2c] sm:$0xf0]  ;;  %v8601_v30 = vor.u32 %v10631_v55, %v8598_v24  ;;  %v11940_v15 = vpop.f32.mrf.mxu0  ;;  %v10655_v34 = vld [vmem:[#allocation6 + $0xba4] sm:$0xf]  ;;  %v8294_v55 = vld [vmem:[#allocation6 + $0x890] sm:$0xf0] }
 0x15d   : > { %3401 = vmatpush.bf16.msra.mxu0 %v8293_v5  ;;  %v2591_v5 = vld [vmem:[#allocation2 + $0x18] sm:$0xfc]  ;;  %v8629_v26 = vor.u32 %v10641_v20, %v8628_v63  ;;  %v2749_v62 = vrot.slane %v2602_v31, 1  ;;  %v2752_v63 = vrot.slane %v2603_v39, 1  ;;  %v10563_v20 = vld [vmem:[#allocation6 + $0x8c4] sm:$0xf] }
 0x15e   : > { %3415 = vmatpush.bf16.msra.mxu1 %v8421_v6  ;;  %v8228_v6 = vld [vmem:[#allocation6 + $0x800] sm:$0xf]  ;;  %v10559_v31 = vld [vmem:[#allocation6 + $0x8a4] sm:$0xf]  ;;  %v8438_v39 = vld [vmem:[#allocation6 + $0x9b0] sm:$0xf0] }
 0x15f   : > { %3429 = vmatpush.bf16.msra.mxu2 %v8549_v41  ;;  %v10541_v41 = vld [vmem:[#allocation6 + $0x80c] sm:$0xf0]  ;;  %v10587_v24 = vld [vmem:[#allocation6 + $0x984] sm:$0xf] }
 0x160   : > { %3443 = vmatpush.bf16.msra.mxu3 %v8677_v11  ;;  %v2588_v11 = vld [vmem:[#allocation2] sm:$0xfc]  ;;  %v8229_v49 = vor.u32 %v10541_v41, %v8228_v6 }
 0x161   : > { %3402 = vmatpush.bf16.msra.mxu0 %v8277_v19  ;;  %v2589_v19 = vld [vmem:[#allocation2 + $0x8] sm:$0xfc]  ;;  %v2596_v43 = vpack.c.bf16 %v11803_v13, %v2588_v11  ;;  %v8726_v13 = vld [vmem:[#allocation6 + $0xbf0] sm:$0xf0]  ;;  %v10595_v6 = vld [vmem:[#allocation6 + $0x9c4] sm:$0xf] }
 0x162   : > { %3416 = vmatpush.bf16.msra.mxu1 %v8405_v25  ;;  %v8612_v25 = vld [vmem:[#allocation6 + $0xb00] sm:$0xf]  ;;  %v2597_v42 = vpack.c.bf16 %v11825_v33, %v2589_v19  ;;  %v8454_v11 = vld [vmem:[#allocation6 + $0x9d0] sm:$0xf0] }
 0x163   : > { %3430 = vmatpush.bf16.msra.mxu2 %v8533_v28  ;;  %v10637_v28 = vld [vmem:[#allocation6 + $0xb0c] sm:$0xf0]  ;;  %v2742_v38 = vrot.slane %v2596_v43, 1  ;;  %v10623_v43 = vld [vmem:[#allocation6 + $0xaa4] sm:$0xf] }
 0x164   : > { %3444 = vmatpush.bf16.msra.mxu3 %v8661_v37  ;;  %v2599_v37 = vpack.c.bf16 %v11773_v54, %v2591_v5  ;;  %v8613_v53 = vor.u32 %v10637_v28, %v8612_v25  ;;  %v8345_v54 = vor.u32 %v10567_v35, %v8342_v36  ;;  %v8326_v5 = vld [vmem:[#allocation6 + $0x8d0] sm:$0xf0]  ;;  %v2745_v41 = vrot.slane %v2597_v42, 1  ;;  %v11951_v28 = vpop.f32.mrf.mxu1  ;;  %v10591_v36 = vld [vmem:[#allocation6 + $0x9a4] sm:$0xf]  ;;  %v11959_v42 = vpop.f32.mrf.mxu2 }
 0x165   : > { %3403 = vmatpush.bf16.msra.mxu0 %v8261_v52  ;;  %v8485_v52 = vor.u32 %v10605_v23, %v8484_v56  ;;  %v8710_v56 = vld [vmem:[#allocation6 + $0xbd0] sm:$0xf0]  ;;  %v8329_v21 = vor.u32 %v10563_v20, %v8326_v5  ;;  %v8457_v23 = vor.u32 %v10595_v6, %v8454_v11  ;;  %v10583_v6 = vld [vmem:[#allocation6 + $0x964] sm:$0xf] }
 0x166   : > { %3417 = vmatpush.bf16.msra.mxu1 %v8389_v60  ;;  %v10663_v60 = vld [vmem:[#allocation6 + $0xbe4] sm:$0xf]  ;;  %v2751_v33 = vrot.slane %v2599_v37, 1  ;;  %v8310_v35 = vld [vmem:[#allocation6 + $0x8b0] sm:$0xf0] }
 0x167   : > { %3431 = vmatpush.bf16.msra.mxu2 %v8517_v61  ;;  %v2748_v61 = vrot.slane %v2598_v29, 1  ;;  %v8729_v8 = vor.u32 %v10663_v60, %v8726_v13  ;;  %v11954_v29 = vsel %vm2741_vm3, %v2745_v41, %v2746_v7  ;;  %v8313_v47 = vor.u32 %v10559_v31, %v8310_v35  ;;  %v10619_v13 = vld [vmem:[#allocation6 + $0xa84] sm:$0xf]  ;;  %v8278_v5 = vld [vmem:[#allocation6 + $0x870] sm:$0xf0] }
 0x168   : > { %3445 = vmatpush.bf16.msra.mxu3 %v8645_v0  ;;  %v2743_v0 = vrot.slane %v2600_v44, 1  ;;  %v11946_v19 = vsel %vm2741_vm3, %v2751_v33, %v2752_v63  ;;  %v8566_v44 = vld [vmem:[#allocation6 + $0xab0] sm:$0xf0]  ;;  %v8697_v60 = vor.u32 %v10655_v34, %v8694_v45  ;;  %v10547_v31 = vld [vmem:[#allocation6 + $0x844] sm:$0xf] }
 0x169   : > { %3404 = vmatpush.bf16.msra.mxu0 %v8245_v14  ;;  %v8582_v14 = vld [vmem:[#allocation6 + $0xad0] sm:$0xf0] }
 0x16a   : > { %3418 = vmatpush.bf16.msra.mxu1 %v8373_v16  ;;  %v11943_v16 = vsel %vm2741_vm3, %v2748_v61, %v2749_v62  ;;  %v8585_v25 = vor.u32 %v10627_v12, %v8582_v14  ;;  %v8550_v61 = vld [vmem:[#allocation6 + $0xa90] sm:$0xf0]  ;;  %v10651_v62 = vld [vmem:[#allocation6 + $0xb84] sm:$0xf] }
 0x16b   : > { %3432 = vmatpush.bf16.msra.mxu2 %v8501_v17  ;;  %v10659_v17 = vld [vmem:[#allocation6 + $0xbc4] sm:$0xf]  ;;  %v8678_v33 = vld [vmem:[#allocation6 + $0xb90] sm:$0xf0] }
 0x16c   : > { %3446 = vmatpush.bf16.msra.mxu3 %v8629_v26  ;;  %v11949_v26 = vsel %vm2741_vm3, %v2742_v38, %v2743_v0  ;;  %v8713_v37 = vor.u32 %v10659_v17, %v8710_v56  ;;  %v8681_v41 = vor.u32 %v10651_v62, %v8678_v33  ;;  %v8406_v7 = vld [vmem:[#allocation6 + $0x970] sm:$0xf0]  ;;  %v10647_v14 = vld [vmem:[#allocation6 + $0xb64] sm:$0xf] }
 0x16d   : > { %3405 = vmatpush.bf16.msra.mxu0 %v8229_v49  ;;  %v8441_v49 = vor.u32 %v10591_v36, %v8438_v39  ;;  %v2373_v63 = vpop.f32.mrf.mxu0  ;;  %v8534_v11 = vld [vmem:[#allocation6 + $0xa70] sm:$0xf0]  ;;  %v10579_v36 = vld [vmem:[#allocation6 + $0x944] sm:$0xf] }
 0x16e   : > { %3419 = vmatpush.bf16.msra.mxu1 %v8357_v46  ;;  %v8569_v46 = vor.u32 %v10623_v43, %v8566_v44  ;;  %v2374_v38 = vadd.f32 %v2373_v63, %v11890_v9  ;;  %v2387_v12 = vpop.f32.mrf.mxu1  ;;  %v8662_v17 = vld [vmem:[#allocation6 + $0xb70] sm:$0xf0]  ;;  %v10611_v44 = vld [vmem:[#allocation6 + $0xa44] sm:$0xf] }
 0x16f   : > { %3433 = vmatpush.bf16.msra.mxu2 %v8485_v52  ;;  %v11962_v52 = vpop.f32.mrf.mxu3  ;;  %v8262_v35 = vld [vmem:[#allocation6 + $0x850] sm:$0xf0]  ;;  %v10607_v33 = vld [vmem:[#allocation6 + $0xa24] sm:$0xf] }
 0x170   : > { %3447 = vmatpush.bf16.msra.mxu3 %v8613_v53  ;;  %3406 = vmatmul.bf16.vlgmr.msra.gmra.mxu0 %v11949_v26  ;;  %v10555_v53 = vld [vmem:[#allocation6 + $0x884] sm:$0xf]  ;;  %v2388_v56 = vadd.f32 %v2387_v12, %v2374_v38  ;;  %v8390_v43 = vld [vmem:[#allocation6 + $0x950] sm:$0xf0] }
 0x171   : > { %3454 = vmatpush.bf16.msrb.mxu0 %v8345_v54  ;;  %3420 = vmatmul.bf16.vlgmr.msra.gmra.mxu1 %v11954_v29  ;;  %v8422_v54 = vld [vmem:[#allocation6 + $0x990] sm:$0xf0]  ;;  %v8297_v20 = vor.u32 %v10555_v53, %v8294_v55  ;;  %v8265_v53 = vor.u32 %v10547_v31, %v8262_v35  ;;  %v8393_v55 = vor.u32 %v10579_v36, %v8390_v43  ;;  %v8604_v31 = vld [vmem:[#allocation6 + $0xae8] sm:$0xf]  ;;  %v10634_v35 = vld [vmem:[#allocation6 + $0xaf4] sm:$0xf0] }
 0x172   : > { %3468 = vmatpush.bf16.msrb.mxu1 %v8473_v1  ;;  %3434 = vmatmul.bf16.vlgmr.msra.gmra.mxu2 %v11943_v16  ;;  %v8425_v0 = vor.u32 %v10587_v24, %v8422_v54  ;;  %v8553_v1 = vor.u32 %v10619_v13, %v8550_v61  ;;  %v8518_v34 = vld [vmem:[#allocation6 + $0xa50] sm:$0xf0]  ;;  %v10575_v13 = vld [vmem:[#allocation6 + $0x924] sm:$0xf]  ;;  %v10666_v43 = vld [vmem:[#allocation6 + $0xbf4] sm:$0xf0] }
 0x173   : > { %3482 = vmatpush.bf16.msrb.mxu2 %v8601_v30  ;;  %3448 = vmatmul.bf16.vlgmr.msra.gmra.mxu3 %v11946_v19  ;;  %v10551_v30 = vld [vmem:[#allocation6 + $0x864] sm:$0xf]  ;;  %v8521_v24 = vor.u32 %v10611_v44, %v8518_v34  ;;  %v8246_v54 = vld [vmem:[#allocation6 + $0x830] sm:$0xf0] }
 0x174   : > { %3496 = vmatpush.bf16.msrb.mxu3 %v8729_v8  ;;  %v10615_v8 = vld [vmem:[#allocation6 + $0xa64] sm:$0xf]  ;;  %v8374_v62 = vld [vmem:[#allocation6 + $0x930] sm:$0xf0] }
 0x175   : > { %3455 = vmatpush.bf16.msrb.mxu0 %v8329_v21  ;;  %v8281_v21 = vor.u32 %v10551_v30, %v8278_v5  ;;  %v8537_v9 = vor.u32 %v10615_v8, %v8534_v11  ;;  %v8502_v63 = vld [vmem:[#allocation6 + $0xa30] sm:$0xf0]  ;;  %v8377_v5 = vor.u32 %v10575_v13, %v8374_v62  ;;  %v10603_v8 = vld [vmem:[#allocation6 + $0xa04] sm:$0xf]  ;;  %v10630_v13 = vld [vmem:[#allocation6 + $0xad4] sm:$0xf0] }
 0x176   : > { %3469 = vmatpush.bf16.msrb.mxu1 %v8457_v23  ;;  %v8409_v23 = vor.u32 %v10583_v6, %v8406_v7  ;;  %v8630_v38 = vld [vmem:[#allocation6 + $0xb30] sm:$0xf0]  ;;  %v8505_v6 = vor.u32 %v10607_v33, %v8502_v63  ;;  %v8716_v62 = vld [vmem:[#allocation6 + $0xbc8] sm:$0xf]  ;;  %v10662_v33 = vld [vmem:[#allocation6 + $0xbd4] sm:$0xf0] }
 0x177   : > { %3483 = vmatpush.bf16.msrb.mxu2 %v8585_v25  ;;  %v2401_v25 = vpop.f32.mrf.mxu2  ;;  %v2415_v45 = vpop.f32.mrf.mxu3  ;;  %v8230_v30 = vld [vmem:[#allocation6 + $0x810] sm:$0xf0] }
 0x178   : > { %3497 = vmatpush.bf16.msrb.mxu3 %v8713_v37  ;;  %v8665_v37 = vor.u32 %v10647_v14, %v8662_v17  ;;  %v2402_v39 = vadd.f32 %v2401_v25, %v2388_v56  ;;  %v8358_v7 = vld [vmem:[#allocation6 + $0x910] sm:$0xf0]  ;;  %v10635_v14 = vld [vmem:[#allocation6 + $0xb04] sm:$0xf]  ;;  %v8348_v56 = vld [vmem:[#allocation6 + $0x8e8] sm:$0xf] }
 0x179   : > { %3456 = vmatpush.bf16.msrb.mxu0 %v8313_v47  ;;  %v10643_v47 = vld [vmem:[#allocation6 + $0xb44] sm:$0xf]  ;;  %v8486_v12 = vld [vmem:[#allocation6 + $0xa10] sm:$0xf0]  ;;  %v10602_v25 = vld [vmem:[#allocation6 + $0x9f4] sm:$0xf0] }
 0x17a   : > { %3470 = vmatpush.bf16.msrb.mxu1 %v8441_v49  ;;  %v8646_v49 = vld [vmem:[#allocation6 + $0xb50] sm:$0xf0] }
 0x17b   : > { %3484 = vmatpush.bf16.msrb.mxu2 %v8569_v46  ;;  %v11965_v46 = vadd.f32 %v2415_v45, %v2402_v39  ;;  %v8649_v61 = vor.u32 %v10643_v47, %v8646_v49  ;;  %v8614_v17 = vld [vmem:[#allocation6 + $0xb10] sm:$0xf0]  ;;  %v8732_v39 = vld [vmem:[#allocation6 + $0xbe8] sm:$0xf]  ;;  %v8605_v47 = vor.u32 %v10634_v35, %v8604_v31  ;;  %v10590_v35 = vld [vmem:[#allocation6 + $0x994] sm:$0xf0] }
 0x17c   : > { %3498 = vmatpush.bf16.msrb.mxu3 %v8697_v60  ;;  %v10543_v60 = vld [vmem:[#allocation6 + $0x824] sm:$0xf]  ;;  %v8617_v44 = vor.u32 %v10635_v14, %v8614_v17  ;;  %v8332_v49 = vld [vmem:[#allocation6 + $0x8c8] sm:$0xf] }
 0x17d   : > { %3457 = vmatpush.bf16.msrb.mxu0 %v8297_v20  ;;  %v10639_v20 = vld [vmem:[#allocation6 + $0xb24] sm:$0xf] }
 0x17e   : > { %3471 = vmatpush.bf16.msrb.mxu1 %v8425_v0  ;;  %v8249_v0 = vor.u32 %v10543_v60, %v8246_v54  ;;  %v8633_v11 = vor.u32 %v10639_v20, %v8630_v38  ;;  %v10598_v60 = vld [vmem:[#allocation6 + $0x9d4] sm:$0xf0]  ;;  %v8588_v54 = vld [vmem:[#allocation6 + $0xac8] sm:$0xf] }
 0x17f   : > { %3485 = vmatpush.bf16.msrb.mxu2 %v8553_v1  ;;  %v10539_v1 = vld [vmem:[#allocation6 + $0x804] sm:$0xf]  ;;  %v8589_v38 = vor.u32 %v10630_v13, %v8588_v54 }
 0x180   : > { %3499 = vmatpush.bf16.msrb.mxu3 %v8681_v41  ;;  %v10571_v41 = vld [vmem:[#allocation6 + $0x904] sm:$0xf] }
 0x181   : > { %3458 = vmatpush.bf16.msrb.mxu0 %v8281_v21  ;;  %v10570_v21 = vld [vmem:[#allocation6 + $0x8f4] sm:$0xf0]  ;;  %v8361_v36 = vor.u32 %v10571_v41, %v8358_v7  ;;  %v8572_v7 = vld [vmem:[#allocation6 + $0xaa8] sm:$0xf] }
 0x182   : > { %3472 = vmatpush.bf16.msrb.mxu1 %v8409_v23  ;;  %v8476_v23 = vld [vmem:[#allocation6 + $0x9e8] sm:$0xf]  ;;  %v8349_v34 = vor.u32 %v10570_v21, %v8348_v56  ;;  %v10594_v41 = vld [vmem:[#allocation6 + $0x9b4] sm:$0xf0] }
 0x183   : > { %3486 = vmatpush.bf16.msrb.mxu2 %v8537_v9  ;;  %v8233_v9 = vor.u32 %v10539_v1, %v8230_v30  ;;  %v8477_v45 = vor.u32 %v10602_v25, %v8476_v23  ;;  %v10562_v1 = vld [vmem:[#allocation6 + $0x8b4] sm:$0xf0]  ;;  %v8444_v30 = vld [vmem:[#allocation6 + $0x9a8] sm:$0xf]  ;;  %v11975_v25 = vpop.f32.mrf.mxu2 }
 0x184   : > { %3500 = vmatpush.bf16.msrb.mxu3 %v8665_v37  ;;  %v8489_v37 = vor.u32 %v10603_v8, %v8486_v12  ;;  %v10626_v8 = vld [vmem:[#allocation6 + $0xab4] sm:$0xf0]  ;;  %v8445_v17 = vor.u32 %v10594_v41, %v8444_v30  ;;  %v8300_v21 = vld [vmem:[#allocation6 + $0x888] sm:$0xf] }
 0x185   : > { %3459 = vmatpush.bf16.msrb.mxu0 %v8265_v53  ;;  %v10566_v53 = vld [vmem:[#allocation6 + $0x8d4] sm:$0xf0]  ;;  %v8573_v56 = vor.u32 %v10626_v8, %v8572_v7  ;;  %v8396_v7 = vld [vmem:[#allocation6 + $0x948] sm:$0xf] }
 0x186   : > { %3473 = vmatpush.bf16.msrb.mxu1 %v8393_v55  ;;  %v8460_v55 = vld [vmem:[#allocation6 + $0x9c8] sm:$0xf]  ;;  %v8333_v63 = vor.u32 %v10566_v53, %v8332_v49  ;;  %v10658_v12 = vld [vmem:[#allocation6 + $0xbb4] sm:$0xf0] }
 0x187   : > { %3487 = vmatpush.bf16.msrb.mxu2 %v8521_v24  ;;  %v8733_v24 = vor.u32 %v10666_v43, %v8732_v39  ;;  %v8461_v20 = vor.u32 %v10598_v60, %v8460_v55  ;;  %v10558_v23 = vld [vmem:[#allocation6 + $0x894] sm:$0xf0]  ;;  %v11977_v39 = vpop.f32.mrf.mxu3  ;;  %v8284_v55 = vld [vmem:[#allocation6 + $0x868] sm:$0xf] }
 0x188   : > { %3501 = vmatpush.bf16.msrb.mxu3 %v8649_v61  ;;  %v11967_v61 = vpop.f32.mrf.mxu0  ;;  %v8412_v60 = vld [vmem:[#allocation6 + $0x968] sm:$0xf]  ;;  %v10550_v41 = vld [vmem:[#allocation6 + $0x854] sm:$0xf0] }
 0x189   : > { %3460 = vmatpush.bf16.msrb.mxu0 %v8249_v0  ;;  %v8316_v0 = vld [vmem:[#allocation6 + $0x8a8] sm:$0xf] }
 0x18a   : > { %3474 = vmatpush.bf16.msrb.mxu1 %v8377_v5  ;;  %v11969_v5 = vpop.f32.mrf.mxu1  ;;  %v8317_v14 = vor.u32 %v10562_v1, %v8316_v0  ;;  %v10650_v0 = vld [vmem:[#allocation6 + $0xb74] sm:$0xf0] }
 0x18b   : > { %3488 = vmatpush.bf16.msrb.mxu2 %v8505_v6  ;;  %v8717_v6 = vor.u32 %v10662_v33, %v8716_v62  ;;  %v10586_v62 = vld [vmem:[#allocation6 + $0x974] sm:$0xf0]  ;;  %v8540_v33 = vld [vmem:[#allocation6 + $0xa68] sm:$0xf] }
 0x18c   : > { %3502 = vmatpush.bf16.msrb.mxu3 %v8633_v11  ;;  %v8700_v11 = vld [vmem:[#allocation6 + $0xba8] sm:$0xf] }
 0x18d   : > { %3461 = vmatpush.bf16.msrb.mxu0 %v8233_v9  ;;  %v8428_v9 = vld [vmem:[#allocation6 + $0x988] sm:$0xf]  ;;  %v8701_v31 = vor.u32 %v10658_v12, %v8700_v11  ;;  %v10582_v12 = vld [vmem:[#allocation6 + $0x954] sm:$0xf0] }
 0x18e   : > { %3475 = vmatpush.bf16.msrb.mxu1 %v8361_v36  ;;  %v8556_v36 = vld [vmem:[#allocation6 + $0xa88] sm:$0xf]  ;;  %v8429_v49 = vor.u32 %v10590_v35, %v8428_v9  ;;  %v10646_v9 = vld [vmem:[#allocation6 + $0xb54] sm:$0xf0] }
 0x18f   : > { %3489 = vmatpush.bf16.msrb.mxu2 %v8489_v37  ;;  %v10622_v37 = vld [vmem:[#allocation6 + $0xa94] sm:$0xf0] }
 0x190   : > { %3503 = vmatpush.bf16.msrb.mxu3 %v8617_v44  ;;  %3462 = vmatmul.bf16.vlgmr.msrb.gmra.mxu0 %v11949_v26  ;;  %v2429_v43 = vpop.f32.mrf.mxu0  ;;  %v8684_v44 = vld [vmem:[#allocation6 + $0xb88] sm:$0xf]  ;;  %v8557_v53 = vor.u32 %v10622_v37, %v8556_v36  ;;  %v8397_v36 = vor.u32 %v10582_v12, %v8396_v7  ;;  %v10600_v7 = vld [vmem:[#allocation6 + $0x9ec] sm:$0xf] }
 0x191   : > { %3510 = vmatpush.bf16.msra.mxu0 %v8349_v34  ;;  %3476 = vmatmul.bf16.vlgmr.msrb.gmra.mxu1 %v11954_v29  ;;  %v10654_v34 = vld [vmem:[#allocation6 + $0xb94] sm:$0xf0]  ;;  %v10632_v12 = vld [vmem:[#allocation6 + $0xaec] sm:$0xf] }
 0x192   : > { %3524 = vmatpush.bf16.msra.mxu1 %v8477_v45  ;;  %3490 = vmatmul.bf16.vlgmr.msrb.gmra.mxu2 %v11943_v16  ;;  %v2430_v45 = vadd.f32 %v2429_v43, %v11901_v32  ;;  %v8685_v54 = vor.u32 %v10654_v34, %v8684_v44  ;;  %v2443_v13 = vpop.f32.mrf.mxu1  ;;  %v8413_v32 = vor.u32 %v10586_v62, %v8412_v60  ;;  %v8252_v43 = vld [vmem:[#allocation6 + $0x828] sm:$0xf]  ;;  %v10546_v44 = vld [vmem:[#allocation6 + $0x834] sm:$0xf0] }
 0x193   : > { %3538 = vmatpush.bf16.msra.mxu2 %v8605_v47  ;;  %3504 = vmatmul.bf16.vlgmr.msrb.gmra.mxu3 %v11946_v19  ;;  %v8301_v47 = vor.u32 %v10558_v23, %v8300_v21  ;;  %v8652_v23 = vld [vmem:[#allocation6 + $0xb48] sm:$0xf]  ;;  %v8253_v60 = vor.u32 %v10546_v44, %v8252_v43  ;;  %v10564_v43 = vld [vmem:[#allocation6 + $0x8cc] sm:$0xf]  ;;  %v8334_v44 = vld [vmem:[#allocation6 + $0x8d8] sm:$0xf0] }
 0x194   : > { %3552 = vmatpush.bf16.msra.mxu3 %v8733_v24  ;;  %v10554_v24 = vld [vmem:[#allocation6 + $0x874] sm:$0xf0]  ;;  %v8380_v34 = vld [vmem:[#allocation6 + $0x928] sm:$0xf] }
 0x195   : > { %3511 = vmatpush.bf16.msra.mxu0 %v8333_v63  ;;  %v10618_v63 = vld [vmem:[#allocation6 + $0xa74] sm:$0xf0]  ;;  %v8285_v1 = vor.u32 %v10554_v24, %v8284_v55  ;;  %v2457_v11 = vpop.f32.mrf.mxu2  ;;  %v8636_v55 = vld [vmem:[#allocation6 + $0xb28] sm:$0xf] }
 0x196   : > { %3525 = vmatpush.bf16.msra.mxu1 %v8461_v20  ;;  %v2444_v20 = vadd.f32 %v2443_v13, %v2430_v45  ;;  %v8541_v30 = vor.u32 %v10618_v63, %v8540_v33  ;;  %v2471_v21 = vpop.f32.mrf.mxu3  ;;  %v8653_v45 = vor.u32 %v10646_v9, %v8652_v23  ;;  %v10642_v24 = vld [vmem:[#allocation6 + $0xb34] sm:$0xf0]  ;;  %v8364_v63 = vld [vmem:[#allocation6 + $0x908] sm:$0xf]  ;;  %v8734_v23 = vld [vmem:[#allocation6 + $0xbf8] sm:$0xf0] }
 0x197   : > { %3539 = vmatpush.bf16.msra.mxu2 %v8589_v38  ;;  %v8668_v38 = vld [vmem:[#allocation6 + $0xb68] sm:$0xf]  ;;  %v10542_v13 = vld [vmem:[#allocation6 + $0x814] sm:$0xf0] }
 0x198   : > { %3553 = vmatpush.bf16.msra.mxu3 %v8717_v6  ;;  %v8268_v6 = vld [vmem:[#allocation6 + $0x848] sm:$0xf]  ;;  %v8669_v8 = vor.u32 %v10650_v0, %v8668_v38  ;;  %v8637_v0 = vor.u32 %v10642_v24, %v8636_v55  ;;  %v11982_v55 = vpop.f32.mrf.mxu0  ;;  %v10660_v24 = vld [vmem:[#allocation6 + $0xbcc] sm:$0xf] }
 0x199   : > { %3512 = vmatpush.bf16.msra.mxu0 %v8317_v14  ;;  %v8524_v14 = vld [vmem:[#allocation6 + $0xa48] sm:$0xf] }
 0x19a   : > { %3526 = vmatpush.bf16.msra.mxu1 %v8445_v17  ;;  %v10614_v17 = vld [vmem:[#allocation6 + $0xa54] sm:$0xf0]  ;;  %v8492_v38 = vld [vmem:[#allocation6 + $0xa08] sm:$0xf] }
 0x19b   : > { %3540 = vmatpush.bf16.msra.mxu2 %v8573_v56  ;;  %v2458_v56 = vadd.f32 %v2457_v11, %v2444_v20  ;;  %v8525_v37 = vor.u32 %v10614_v17, %v8524_v14  ;;  %v10574_v20 = vld [vmem:[#allocation6 + $0x914] sm:$0xf0]  ;;  %v8478_v11 = vld [vmem:[#allocation6 + $0x9f8] sm:$0xf0] }
 0x19c   : > { %3554 = vmatpush.bf16.msra.mxu3 %v8701_v31  ;;  %v8269_v31 = vor.u32 %v10550_v41, %v8268_v6  ;;  %v10568_v6 = vld [vmem:[#allocation6 + $0x8ec] sm:$0xf]  ;;  %v8350_v41 = vld [vmem:[#allocation6 + $0x8f8] sm:$0xf0]  ;;  %v8365_v17 = vor.u32 %v10574_v20, %v8364_v63 }
 0x19d   : > { %3513 = vmatpush.bf16.msra.mxu0 %v8301_v47  ;;  %v11980_v35 = vadd.f32 %v2471_v21, %v2458_v56  ;;  %v10578_v47 = vld [vmem:[#allocation6 + $0x934] sm:$0xf0]  ;;  %v8606_v14 = vld [vmem:[#allocation6 + $0xaf8] sm:$0xf0]  ;;  %v10664_v21 = vld [vmem:[#allocation6 + $0xbec] sm:$0xf] }
 0x19e   : > { %3527 = vmatpush.bf16.msra.mxu1 %v8429_v49  ;;  %v8508_v49 = vld [vmem:[#allocation6 + $0xa28] sm:$0xf]  ;;  %v8381_v62 = vor.u32 %v10578_v47, %v8380_v34  ;;  %v10596_v34 = vld [vmem:[#allocation6 + $0x9cc] sm:$0xf]  ;;  %v8462_v47 = vld [vmem:[#allocation6 + $0x9d8] sm:$0xf0] }
 0x19f   : > { %3541 = vmatpush.bf16.msra.mxu2 %v8557_v53  ;;  %v10610_v53 = vld [vmem:[#allocation6 + $0xa34] sm:$0xf0]  ;;  %v10560_v63 = vld [vmem:[#allocation6 + $0x8ac] sm:$0xf]  ;;  %v8318_v20 = vld [vmem:[#allocation6 + $0x8b8] sm:$0xf0] }
 0x1a0   : > { %3555 = vmatpush.bf16.msra.mxu3 %v8685_v54  ;;  %v8236_v54 = vld [vmem:[#allocation6 + $0x808] sm:$0xf]  ;;  %v8509_v33 = vor.u32 %v10610_v53, %v8508_v49  ;;  %v10628_v49 = vld [vmem:[#allocation6 + $0xacc] sm:$0xf]  ;;  %v8590_v53 = vld [vmem:[#allocation6 + $0xad8] sm:$0xf0] }
 0x1a1   : > { %3514 = vmatpush.bf16.msra.mxu0 %v8285_v1  ;;  %v10606_v1 = vld [vmem:[#allocation6 + $0xa14] sm:$0xf0] }
 0x1a2   : > { %3528 = vmatpush.bf16.msra.mxu1 %v8413_v32  ;;  %v8620_v32 = vld [vmem:[#allocation6 + $0xb08] sm:$0xf]  ;;  %v8493_v56 = vor.u32 %v10606_v1, %v8492_v38  ;;  %v10592_v38 = vld [vmem:[#allocation6 + $0x9ac] sm:$0xf]  ;;  %v8446_v1 = vld [vmem:[#allocation6 + $0x9b8] sm:$0xf0] }
 0x1a3   : > { %3542 = vmatpush.bf16.msra.mxu2 %v8541_v30  ;;  %v10638_v30 = vld [vmem:[#allocation6 + $0xb14] sm:$0xf0] }
 0x1a4   : > { %3556 = vmatpush.bf16.msra.mxu3 %v8669_v8  ;;  %v8237_v8 = vor.u32 %v10542_v13, %v8236_v54  ;;  %v8621_v9 = vor.u32 %v10638_v30, %v8620_v32  ;;  %v8337_v54 = vor.u32 %v10564_v43, %v8334_v44  ;;  %v11984_v13 = vpop.f32.mrf.mxu1  ;;  %v10624_v32 = vld [vmem:[#allocation6 + $0xaac] sm:$0xf]  ;;  %v8574_v30 = vld [vmem:[#allocation6 + $0xab8] sm:$0xf0] }
 0x1a5   : > { %3515 = vmatpush.bf16.msra.mxu0 %v8269_v31  ;;  %v8353_v31 = vor.u32 %v10568_v6, %v8350_v41  ;;  %v10656_v6 = vld [vmem:[#allocation6 + $0xbac] sm:$0xf]  ;;  %v8702_v41 = vld [vmem:[#allocation6 + $0xbb8] sm:$0xf0] }
 0x1a6   : > { %3529 = vmatpush.bf16.msra.mxu1 %v8397_v36  ;;  %v8481_v36 = vor.u32 %v10600_v7, %v8478_v11  ;;  %v8321_v7 = vor.u32 %v10560_v63, %v8318_v20  ;;  %v8577_v11 = vor.u32 %v10624_v32, %v8574_v30  ;;  %v10652_v43 = vld [vmem:[#allocation6 + $0xb8c] sm:$0xf]  ;;  %v8686_v44 = vld [vmem:[#allocation6 + $0xb98] sm:$0xf0] }
 0x1a7   : > { %3543 = vmatpush.bf16.msra.mxu2 %v8525_v37  ;;  %v8609_v37 = vor.u32 %v10632_v12, %v8606_v14  ;;  %v10556_v12 = vld [vmem:[#allocation6 + $0x88c] sm:$0xf]  ;;  %v8302_v14 = vld [vmem:[#allocation6 + $0x898] sm:$0xf0] }
 0x1a8   : > { %3557 = vmatpush.bf16.msra.mxu3 %v8653_v45  ;;  %v8737_v45 = vor.u32 %v10664_v21, %v8734_v23  ;;  %v11992_v21 = vpop.f32.mrf.mxu3  ;;  %v8705_v23 = vor.u32 %v10656_v6, %v8702_v41  ;;  %v8414_v63 = vld [vmem:[#allocation6 + $0x978] sm:$0xf0]  ;;  %v10616_v20 = vld [vmem:[#allocation6 + $0xa6c] sm:$0xf] }
 0x1a9   : > { %3516 = vmatpush.bf16.msra.mxu0 %v8253_v60  ;;  %v8718_v60 = vld [vmem:[#allocation6 + $0xbd8] sm:$0xf0]  ;;  %v10548_v6 = vld [vmem:[#allocation6 + $0x84c] sm:$0xf] }
 0x1aa   : > { %3530 = vmatpush.bf16.msra.mxu1 %v8381_v62  ;;  %v8465_v62 = vor.u32 %v10596_v34, %v8462_v47  ;;  %v8270_v41 = vld [vmem:[#allocation6 + $0x858] sm:$0xf0] }
 0x1ab   : > { %3544 = vmatpush.bf16.msra.mxu2 %v8509_v33  ;;  %v8593_v33 = vor.u32 %v10628_v49, %v8590_v53 }
 0x1ac   : > { %3558 = vmatpush.bf16.msra.mxu3 %v8637_v0  ;;  %v8721_v0 = vor.u32 %v10660_v24, %v8718_v60  ;;  %v10552_v24 = vld [vmem:[#allocation6 + $0x86c] sm:$0xf]  ;;  %v8286_v60 = vld [vmem:[#allocation6 + $0x878] sm:$0xf0] }
 0x1ad   : > { %3517 = vmatpush.bf16.msra.mxu0 %v8237_v8  ;;  %v8449_v8 = vor.u32 %v10592_v38, %v8446_v1  ;;  %v8542_v38 = vld [vmem:[#allocation6 + $0xa78] sm:$0xf0]  ;;  %v8289_v32 = vor.u32 %v10552_v24, %v8286_v60  ;;  %v10608_v60 = vld [vmem:[#allocation6 + $0xa2c] sm:$0xf] }
 0x1ae   : > { %3531 = vmatpush.bf16.msra.mxu1 %v8365_v17  ;;  %v10588_v17 = vld [vmem:[#allocation6 + $0x98c] sm:$0xf]  ;;  %v2499_v53 = vpop.f32.mrf.mxu1  ;;  %v8670_v1 = vld [vmem:[#allocation6 + $0xb78] sm:$0xf0]  ;;  %v8545_v30 = vor.u32 %v10616_v20, %v8542_v38 }
 0x1af   : > { %3545 = vmatpush.bf16.msra.mxu2 %v8493_v56  ;;  %v11990_v56 = vpop.f32.mrf.mxu2  ;;  %v8382_v24 = vld [vmem:[#allocation6 + $0x938] sm:$0xf0]  ;;  %v10540_v20 = vld [vmem:[#allocation6 + $0x80c] sm:$0xf] }
 0x1b0   : > { %3559 = vmatpush.bf16.msra.mxu3 %v8621_v9  ;;  %3518 = vmatmul.bf16.vlgmr.msra.gmra.mxu0 %v11949_v26  ;;  %v8430_v9 = vld [vmem:[#allocation6 + $0x998] sm:$0xf0] }
 0x1b1   : > { %3566 = vmatpush.bf16.msrb.mxu0 %v8353_v31  ;;  %3532 = vmatmul.bf16.vlgmr.msra.gmra.mxu1 %v11954_v29  ;;  %v10620_v31 = vld [vmem:[#allocation6 + $0xa8c] sm:$0xf]  ;;  %v8433_v47 = vor.u32 %v10588_v17, %v8430_v9 }
 0x1b2   : > { %3580 = vmatpush.bf16.msrb.mxu1 %v8481_v36  ;;  %3546 = vmatmul.bf16.vlgmr.msra.gmra.mxu2 %v11943_v16  ;;  %v8558_v36 = vld [vmem:[#allocation6 + $0xa98] sm:$0xf0]  ;;  %v10612_v17 = vld [vmem:[#allocation6 + $0xa4c] sm:$0xf] }
 0x1b3   : > { %3594 = vmatpush.bf16.msrb.mxu2 %v8609_v37  ;;  %3560 = vmatmul.bf16.vlgmr.msra.gmra.mxu3 %v11946_v19  ;;  %v2485_v37 = vpop.f32.mrf.mxu0  ;;  %v8561_v49 = vor.u32 %v10620_v31, %v8558_v36  ;;  %v10644_v31 = vld [vmem:[#allocation6 + $0xb4c] sm:$0xf]  ;;  %v8654_v36 = vld [vmem:[#allocation6 + $0xb58] sm:$0xf0] }
 0x1b4   : > { %3608 = vmatpush.bf16.msrb.mxu3 %v8737_v45  ;;  %v2486_v34 = vadd.f32 %v2485_v37, %v11914_v48  ;;  %v8305_v45 = vor.u32 %v10556_v12, %v8302_v14  ;;  %v8398_v14 = vld [vmem:[#allocation6 + $0x958] sm:$0xf0]  ;;  %v8273_v37 = vor.u32 %v10548_v6, %v8270_v41  ;;  %v10604_v6 = vld [vmem:[#allocation6 + $0xa0c] sm:$0xf] }
 0x1b5   : > { %3567 = vmatpush.bf16.msrb.mxu0 %v8337_v54  ;;  %v10584_v54 = vld [vmem:[#allocation6 + $0x96c] sm:$0xf]  ;;  %v8494_v41 = vld [vmem:[#allocation6 + $0xa18] sm:$0xf0] }
 0x1b6   : > { %3581 = vmatpush.bf16.msrb.mxu1 %v8465_v62  ;;  %v8689_v62 = vor.u32 %v10652_v43, %v8686_v44  ;;  %v8417_v48 = vor.u32 %v10584_v54, %v8414_v63  ;;  %v2527_v12 = vpop.f32.mrf.mxu3  ;;  %v8510_v54 = vld [vmem:[#allocation6 + $0xa38] sm:$0xf0] }
 0x1b7   : > { %3595 = vmatpush.bf16.msrb.mxu2 %v8593_v33  ;;  %v2500_v33 = vadd.f32 %v2499_v53, %v2486_v34  ;;  %v8657_v53 = vor.u32 %v10644_v31, %v8654_v36  ;;  %v8836_v36 = vld [vmem:[#allocation9 + $0x4c0] sm:$0xf] }
 0x1b8   : > { %3609 = vmatpush.bf16.msrb.mxu3 %v8721_v0  ;;  %v10648_v0 = vld [vmem:[#allocation6 + $0xb6c] sm:$0xf] }
 0x1b9   : > { %3568 = vmatpush.bf16.msrb.mxu0 %v8321_v7  ;;  %v10580_v7 = vld [vmem:[#allocation6 + $0x94c] sm:$0xf] }
 0x1ba   : > { %3582 = vmatpush.bf16.msrb.mxu1 %v8449_v8  ;;  %v8673_v8 = vor.u32 %v10648_v0, %v8670_v1  ;;  %v8401_v44 = vor.u32 %v10580_v7, %v8398_v14  ;;  %v8513_v0 = vor.u32 %v10608_v60, %v8510_v54  ;;  %v8238_v1 = vld [vmem:[#allocation6 + $0x818] sm:$0xf0]  ;;  %v10636_v7 = vld [vmem:[#allocation6 + $0xb0c] sm:$0xf]  ;;  %v10813_v60 = vld [vmem:[#allocation9 + $0x48c] sm:$0xf0] }
 0x1bb   : > { %3596 = vmatpush.bf16.msrb.mxu2 %v8577_v11  ;;  %v2513_v11 = vpop.f32.mrf.mxu2  ;;  %v8241_v14 = vor.u32 %v10540_v20, %v8238_v1  ;;  %v10805_v1 = vld [vmem:[#allocation9 + $0x44c] sm:$0xf0] }
 0x1bc   : > { %3610 = vmatpush.bf16.msrb.mxu3 %v8705_v23  ;;  %v8526_v23 = vld [vmem:[#allocation6 + $0xa58] sm:$0xf0]  ;;  %v2514_v9 = vadd.f32 %v2513_v11, %v2500_v33  ;;  %v8852_v11 = vld [vmem:[#allocation9 + $0x4e0] sm:$0xf] }
 0x1bd   : > { %3569 = vmatpush.bf16.msrb.mxu0 %v8305_v45  ;;  %v8529_v34 = vor.u32 %v10612_v17, %v8526_v23  ;;  %v10544_v45 = vld [vmem:[#allocation6 + $0x82c] sm:$0xf]  ;;  %v8638_v33 = vld [vmem:[#allocation6 + $0xb38] sm:$0xf0]  ;;  %v8497_v23 = vor.u32 %v10604_v6, %v8494_v41 }
 0x1be   : > { %3583 = vmatpush.bf16.msrb.mxu1 %v8433_v47  ;;  %v11995_v43 = vadd.f32 %v2527_v12, %v2514_v9  ;;  %v8254_v47 = vld [vmem:[#allocation6 + $0x838] sm:$0xf0]  ;;  %v10825_v12 = vld [vmem:[#allocation9 + $0x4ec] sm:$0xf0] }
 0x1bf   : > { %3597 = vmatpush.bf16.msrb.mxu2 %v8561_v49  ;;  %v10576_v49 = vld [vmem:[#allocation6 + $0x92c] sm:$0xf]  ;;  %v8257_v63 = vor.u32 %v10544_v45, %v8254_v47  ;;  %v8853_v31 = vor.u32 %v10825_v12, %v8852_v11  ;;  %v8820_v47 = vld [vmem:[#allocation9 + $0x4a0] sm:$0xf]  ;;  %v10857_v11 = vld [vmem:[#allocation9 + $0x5ec] sm:$0xf0] }
 0x1c0   : > { %3611 = vmatpush.bf16.msrb.mxu3 %v8689_v62  ;;  %v10640_v62 = vld [vmem:[#allocation6 + $0xb2c] sm:$0xf]  ;;  %v8385_v38 = vor.u32 %v10576_v49, %v8382_v24  ;;  %v10817_v49 = vld [vmem:[#allocation9 + $0x4ac] sm:$0xf0]  ;;  %v8804_v24 = vld [vmem:[#allocation9 + $0x480] sm:$0xf] }
 0x1c1   : > { %3570 = vmatpush.bf16.msrb.mxu0 %v8289_v32  ;;  %v10572_v32 = vld [vmem:[#allocation6 + $0x90c] sm:$0xf]  ;;  %v8805_v20 = vor.u32 %v10813_v60, %v8804_v24  ;;  %v8838_v24 = vld [vmem:[#allocation9 + $0x4d0] sm:$0xf0]  ;;  %v8948_v60 = vld [vmem:[#allocation9 + $0x5a0] sm:$0xf] }
 0x1c2   : > { %3584 = vmatpush.bf16.msrb.mxu1 %v8417_v48  ;;  %v8366_v48 = vld [vmem:[#allocation6 + $0x918] sm:$0xf0] }
 0x1c3   : > { %3598 = vmatpush.bf16.msrb.mxu2 %v8545_v30  ;;  %v8641_v30 = vor.u32 %v10640_v62, %v8638_v33  ;;  %v8369_v17 = vor.u32 %v10572_v32, %v8366_v48  ;;  %v12005_v54 = vpop.f32.mrf.mxu2  ;;  %v12007_v62 = vpop.f32.mrf.mxu3 }
 0x1c4   : > { %3612 = vmatpush.bf16.msrb.mxu3 %v8673_v8  ;;  %v8622_v8 = vld [vmem:[#allocation6 + $0xb18] sm:$0xf0] }
 0x1c5   : > { %3571 = vmatpush.bf16.msrb.mxu0 %v8273_v37  ;;  %v8625_v9 = vor.u32 %v10636_v7, %v8622_v8  ;;  %v10821_v37 = vld [vmem:[#allocation9 + $0x4cc] sm:$0xf0]  ;;  %v8756_v7 = vld [vmem:[#allocation9 + $0x420] sm:$0xf] }
 0x1c6   : > { %3585 = vmatpush.bf16.msrb.mxu1 %v8401_v44  ;;  %v11997_v44 = vpop.f32.mrf.mxu0  ;;  %v8837_v45 = vor.u32 %v10821_v37, %v8836_v36  ;;  %v10801_v8 = vld [vmem:[#allocation9 + $0x42c] sm:$0xf0]  ;;  %v8964_v36 = vld [vmem:[#allocation9 + $0x5c0] sm:$0xf] }
 0x1c7   : > { %3599 = vmatpush.bf16.msrb.mxu2 %v8529_v34  ;;  %v11999_v34 = vpop.f32.mrf.mxu1  ;;  %v8757_v12 = vor.u32 %v10801_v8, %v8756_v7  ;;  %v10853_v37 = vld [vmem:[#allocation9 + $0x5cc] sm:$0xf0]  ;;  %v10811_v7 = vld [vmem:[#allocation9 + $0x484] sm:$0xf]  ;;  %v8806_v8 = vld [vmem:[#allocation9 + $0x490] sm:$0xf0] }
 0x1c8   : > { %3613 = vmatpush.bf16.msrb.mxu3 %v8657_v53  ;;  %v8821_v53 = vor.u32 %v10817_v49, %v8820_v47  ;;  %v8965_v47 = vor.u32 %v10853_v37, %v8964_v36  ;;  %v8900_v37 = vld [vmem:[#allocation9 + $0x540] sm:$0xf] }
 0x1c9   : > { %3572 = vmatpush.bf16.msrb.mxu0 %v8257_v63 }
 0x1ca   : > { %3586 = vmatpush.bf16.msrb.mxu1 %v8385_v38  ;;  %v8788_v38 = vld [vmem:[#allocation9 + $0x460] sm:$0xf] }
 0x1cb   : > { %3600 = vmatpush.bf16.msrb.mxu2 %v8513_v0 }
 0x1cc   : > { %3614 = vmatpush.bf16.msrb.mxu3 %v8641_v30 }
 0x1cd   : > { %3573 = vmatpush.bf16.msrb.mxu0 %v8241_v14 }
 0x1ce   : > { %3587 = vmatpush.bf16.msrb.mxu1 %v8369_v17  ;;  %v2541_v33 = vpop.f32.mrf.mxu0  ;;  %v8740_v17 = vld [vmem:[#allocation9 + $0x400] sm:$0xf] }
 0x1cf   : > { %3601 = vmatpush.bf16.msrb.mxu2 %v8497_v23  ;;  %v2542_v63 = vadd.f32 %v2541_v33, %v11928_v4  ;;  %v8980_v4 = vld [vmem:[#allocation9 + $0x5e0] sm:$0xf]  ;;  %v10797_v23 = vld [vmem:[#allocation9 + $0x40c] sm:$0xf0] }
 0x1d0   : > { %3615 = vmatpush.bf16.msrb.mxu3 %v8625_v9  ;;  %3574 = vmatmul.bf16.vlgmr.msrb.gmra.mxu0 %v11949_v26  ;;  %v2555_v26 = vpop.f32.mrf.mxu1  ;;  %v8981_v14 = vor.u32 %v10857_v11, %v8980_v4  ;;  %v10823_v9 = vld [vmem:[#allocation9 + $0x4e4] sm:$0xf]  ;;  %v10849_v33 = vld [vmem:[#allocation9 + $0x5ac] sm:$0xf0] }
 0x1d1   : > { %4677 = vmatpush.bf16.msra.mxu0 %v8853_v31  ;;  %3588 = vmatmul.bf16.vlgmr.msrb.gmra.mxu1 %v11954_v29  ;;  %v10809_v29 = vld [vmem:[#allocation9 + $0x46c] sm:$0xf0]  ;;  %v2556_v0 = vadd.f32 %v2555_v26, %v2542_v63  ;;  %v8854_v31 = vld [vmem:[#allocation9 + $0x4f0] sm:$0xf0]  ;;  %v8949_v63 = vor.u32 %v10849_v33, %v8948_v60  ;;  %v12024_v33 = vld [vmem:[#allocation8] sm:$0xf] }
 0x1d2   : > { %3602 = vmatmul.bf16.vlgmr.msrb.gmra.mxu2 %v11943_v16  ;;  %v8789_v16 = vor.u32 %v10809_v29, %v8788_v38  ;;  %4691 = vmatpush.bf16.msra.mxu1 %v8981_v14  ;;  %v8857_v49 = vor.u32 %v10823_v9, %v8854_v31  ;;  %v10815_v38 = vld [vmem:[#allocation9 + $0x4a4] sm:$0xf]  ;;  %v8822_v29 = vld [vmem:[#allocation9 + $0x4b0] sm:$0xf0]  ;;  %v8809_v14 = vor.u32 %v10811_v7, %v8806_v8  ;;  %v8868_v7 = vld [vmem:[#allocation9 + $0x500] sm:$0xf] }
 0x1d3   : > { %3616 = vmatmul.bf16.vlgmr.msrb.gmra.mxu3 %v11946_v19  ;;  %v8772_v19 = vld [vmem:[#allocation9 + $0x440] sm:$0xf]  ;;  %v10807_v9 = vld [vmem:[#allocation9 + $0x464] sm:$0xf]  ;;  %v8790_v31 = vld [vmem:[#allocation9 + $0x470] sm:$0xf0] }
 0x1d4   : > { %v8773_v6 = vor.u32 %v10805_v1, %v8772_v19  ;;  %v10845_v19 = vld [vmem:[#allocation9 + $0x58c] sm:$0xf0] }
 0x1d5   : > { %4678 = vmatpush.bf16.msra.mxu0 %v8837_v45  ;;  %v2569_v32 = vpop.f32.mrf.mxu2  ;;  %v8741_v45 = vor.u32 %v10797_v23, %v8740_v17  ;;  %v10829_v8 = vld [vmem:[#allocation9 + $0x50c] sm:$0xf0] }
 0x1d6   : > { %v2570_v48 = vadd.f32 %v2569_v32, %v2556_v0  ;;  %v2583_v30 = vpop.f32.mrf.mxu3  ;;  %4692 = vmatpush.bf16.msra.mxu1 %v8965_v47  ;;  %v8825_v32 = vor.u32 %v10815_v38, %v8822_v29  ;;  %v8793_v47 = vor.u32 %v10807_v9, %v8790_v31  ;;  %v10889_v9 = vld [vmem:[#allocation9 + $0x6ec] sm:$0xf0] }
 0x1d8   : > { %v12010_v41 = vadd.f32 %v2583_v30, %v2570_v48  ;;  %v12014_v0 = vpop.f32.mrf.mxu1  ;;  %v8916_v48 = vld [vmem:[#allocation9 + $0x560] sm:$0xf]  ;;  %v10841_v30 = vld [vmem:[#allocation9 + $0x56c] sm:$0xf0] }
 0x1d9   : > { %4679 = vmatpush.bf16.msra.mxu0 %v8821_v53  ;;  %v10819_v53 = vld [vmem:[#allocation9 + $0x4c4] sm:$0xf]  ;;  %v8917_v4 = vor.u32 %v10841_v30, %v8916_v48  ;;  %v8758_v30 = vld [vmem:[#allocation9 + $0x430] sm:$0xf0] }
 0x1da   : > { %v8841_v26 = vor.u32 %v10819_v53, %v8838_v24  ;;  %4693 = vmatpush.bf16.msra.mxu1 %v8949_v63  ;;  %v10803_v53 = vld [vmem:[#allocation9 + $0x444] sm:$0xf]  ;;  %v8774_v24 = vld [vmem:[#allocation9 + $0x450] sm:$0xf0]  ;;  %v10833_v63 = vld [vmem:[#allocation9 + $0x52c] sm:$0xf0] }
 0x1dd   : > { %4680 = vmatpush.bf16.msra.mxu0 %v8805_v20  ;;  %v12012_v20 = vpop.f32.mrf.mxu0  ;;  %v12018_v11 = vpop.f32.mrf.mxu2 }
 0x1e1   : > { %4681 = vmatpush.bf16.msra.mxu0 %v8789_v16  ;;  %v8932_v16 = vld [vmem:[#allocation9 + $0x580] sm:$0xf] }
 0x1e2   : > { %v8933_v1 = vor.u32 %v10845_v19, %v8932_v16  ;;  %v8777_v19 = vor.u32 %v10803_v53, %v8774_v24 }
 0x1e4   : > { %4694 = vmatpush.bf16.msra.mxu1 %v8933_v1 }
 0x1e5   : > { %4682 = vmatpush.bf16.msra.mxu0 %v8773_v6  ;;  %v1526_v6 = vadd.f32 %v11894_v22, %v11892_v18 }
 0x1e7   : > { %v1540_v17 = vadd.f32 %v11896_v27, %v1526_v6  ;;  %v8884_v27 = vld [vmem:[#allocation9 + $0x520] sm:$0xf] }
 0x1e8   : > { %4695 = vmatpush.bf16.msra.mxu1 %v8917_v4  ;;  %v8885_v16 = vor.u32 %v10833_v63, %v8884_v27  ;;  %v9092_v27 = vld [vmem:[#allocation9 + $0x6c0] sm:$0xf]  ;;  %v10885_v63 = vld [vmem:[#allocation9 + $0x6cc] sm:$0xf0] }
 0x1e9   : > { %4683 = vmatpush.bf16.msra.mxu0 %v8757_v12  ;;  %v12020_v12 = vpop.f32.mrf.mxu3 }
 0x1ed   : > { %4684 = vmatpush.bf16.msra.mxu0 %v8741_v45  ;;  %v3407_v23 = vpop.f32.mrf.mxu0  ;;  %v10837_v45 = vld [vmem:[#allocation9 + $0x54c] sm:$0xf0] }
 0x1ee   : > { %v3421_v36 = vpop.f32.mrf.mxu1  ;;  %v8901_v22 = vor.u32 %v10837_v45, %v8900_v37  ;;  %v10855_v37 = vld [vmem:[#allocation9 + $0x5e4] sm:$0xf]  ;;  %v8982_v45 = vld [vmem:[#allocation9 + $0x5f0] sm:$0xf0] }
 0x1ef   : > { %v3422_v18 = vadd.f32 %v3421_v36, %v3407_v23  ;;  %v9108_v23 = vld [vmem:[#allocation9 + $0x6e0] sm:$0xf]  ;;  %v8985_v53 = vor.u32 %v10855_v37, %v8982_v45 }
 0x1f0   : > { %4696 = vmatpush.bf16.msra.mxu1 %v8901_v22  ;;  %v9109_v36 = vor.u32 %v10889_v9, %v9108_v23  ;;  %v9060_v23 = vld [vmem:[#allocation9 + $0x680] sm:$0xf] }
 0x1f1   : > { %4733 = vmatpush.bf16.msrb.mxu0 %v8857_v49  ;;  %v1554_v49 = vadd.f32 %v11898_v40, %v1540_v17  ;;  %v10799_v40 = vld [vmem:[#allocation9 + $0x424] sm:$0xf]  ;;  %v8869_v17 = vor.u32 %v10829_v8, %v8868_v7 }
 0x1f2   : > { %v8761_v31 = vor.u32 %v10799_v40, %v8758_v30  ;;  %4705 = vmatpush.bf16.msra.mxu2 %v9109_v36  ;;  %v9076_v30 = vld [vmem:[#allocation9 + $0x6a0] sm:$0xf]  ;;  %v10847_v8 = vld [vmem:[#allocation9 + $0x5a4] sm:$0xf]  ;;  %v8934_v36 = vld [vmem:[#allocation9 + $0x590] sm:$0xf0] }
 0x1f4   : > { %4697 = vmatpush.bf16.msra.mxu1 %v8885_v16  ;;  %v8966_v16 = vld [vmem:[#allocation9 + $0x5d0] sm:$0xf0] }
 0x1f5   : > { %4734 = vmatpush.bf16.msrb.mxu0 %v8841_v26  ;;  %v3435_v60 = vpop.f32.mrf.mxu2  ;;  %v2376_v26 = vadd.f32 %v11967_v61, %v1554_v49  ;;  %v3409_v48 = vpop.f32.mrf.mxu0  ;;  %v8742_v49 = vld [vmem:[#allocation9 + $0x410] sm:$0xf0] }
 0x1f6   : > { %v3436_v38 = vadd.f32 %v3435_v60, %v3422_v18  ;;  %v3449_v29 = vpop.f32.mrf.mxu3  ;;  %v3423_v6 = vpop.f32.mrf.mxu1 }
 0x1f7   : > { %v2390_v4 = vadd.f32 %v11969_v5, %v2376_v26  ;;  %v3424_v61 = vadd.f32 %v3423_v6, %v3409_v48  ;;  %v10881_v6 = vld [vmem:[#allocation9 + $0x6ac] sm:$0xf0] }
 0x1f8   : > { %v3450_v1 = vadd.f32 %v3449_v29, %v3436_v38  ;;  %4698 = vmatpush.bf16.msra.mxu1 %v8869_v17  ;;  %v9093_v38 = vor.u32 %v10885_v63, %v9092_v27  ;;  %v10851_v29 = vld [vmem:[#allocation9 + $0x5c4] sm:$0xf]  ;;  %v9077_v7 = vor.u32 %v10881_v6, %v9076_v30  ;;  %v9028_v63 = vld [vmem:[#allocation9 + $0x640] sm:$0xf] }
 0x1f9   : > { %4735 = vmatpush.bf16.msrb.mxu0 %v8825_v32  ;;  %v3631_v32 = vperm.slane %v12024_v33, 0  ;;  %v2404_v18 = vadd.f32 %v11975_v25, %v2390_v4  ;;  %v8969_v48 = vor.u32 %v10851_v29, %v8966_v16  ;;  %v8950_v4 = vld [vmem:[#allocation9 + $0x5b0] sm:$0xf0] }
 0x1fa   : > { %4706 = vmatpush.bf16.msra.mxu2 %v9093_v38  ;;  %v10835_v38 = vld [vmem:[#allocation9 + $0x544] sm:$0xf] }
 0x1fb   : > { %v2418_v25 = vadd.f32 %v11977_v39, %v2404_v18  ;;  %v10877_v39 = vld [vmem:[#allocation9 + $0x68c] sm:$0xf0]  ;;  %v1582_v18 = vadd.f32 %v11908_v51, %v11906_v50 }
 0x1fc   : > { %4747 = vmatpush.bf16.msrb.mxu1 %v8985_v53  ;;  %v9061_v9 = vor.u32 %v10877_v39, %v9060_v23  ;;  %v8886_v39 = vld [vmem:[#allocation9 + $0x530] sm:$0xf0] }
 0x1fd   : > { %4736 = vmatpush.bf16.msrb.mxu0 %v8809_v14  ;;  %v3622_v14 = vadd.f32 %v3450_v1, %v11965_v46  ;;  %v3437_v24 = vpop.f32.mrf.mxu2  ;;  %v1596_v27 = vadd.f32 %v11910_v57, %v1582_v18  ;;  %v9012_v57 = vld [vmem:[#allocation9 + $0x620] sm:$0xf]  ;;  %v8844_v18 = vld [vmem:[#allocation9 + $0x4c8] sm:$0xf] }
 0x1fe   : > { %v3438_v46 = vadd.f32 %v3437_v24, %v3424_v61  ;;  %v3451_v60 = vpop.f32.mrf.mxu3  ;;  %v8953_v61 = vor.u32 %v10847_v8, %v8950_v4  ;;  %4707 = vmatpush.bf16.msra.mxu2 %v9077_v7  ;;  %v10839_v24 = vld [vmem:[#allocation9 + $0x564] sm:$0xf]  ;;  %v10865_v7 = vld [vmem:[#allocation9 + $0x62c] sm:$0xf0] }
 0x1ff   : > { %v3639_v22 = vadd.f32 %v3631_v32, %v3622_v14  ;;  %v10831_v8 = vld [vmem:[#allocation9 + $0x524] sm:$0xf]  ;;  %v9013_v23 = vor.u32 %v10865_v7, %v9012_v57  ;;  %v10818_v57 = vld [vmem:[#allocation9 + $0x4b4] sm:$0xf0] }
 0x200   : > { %v3452_v1 = vadd.f32 %v3451_v60, %v3438_v46  ;;  %4748 = vmatpush.bf16.msrb.mxu1 %v8969_v48  ;;  %v1610_v48 = vadd.f32 %v11912_v3, %v1596_v27  ;;  %v8889_v3 = vor.u32 %v10831_v8, %v8886_v39 }
 0x201   : > { %4737 = vmatpush.bf16.msrb.mxu0 %v8793_v47  ;;  %v10795_v47 = vld [vmem:[#allocation9 + $0x404] sm:$0xf]  ;;  %v3647_v5 = vmax.f32 %v3639_v22, 0.0 }
 0x202   : > { %v8745_v26 = vor.u32 %v10795_v47, %v8742_v49  ;;  %v3626_v40 = vadd.f32 %v3452_v1, %v2418_v25  ;;  %4708 = vmatpush.bf16.msra.mxu2 %v9061_v9  ;;  %v9044_v47 = vld [vmem:[#allocation9 + $0x660] sm:$0xf]  ;;  %v10873_v49 = vld [vmem:[#allocation9 + $0x66c] sm:$0xf0]  ;;  %v8902_v25 = vld [vmem:[#allocation9 + $0x550] sm:$0xf0]  ;;  %v2432_v4 = vadd.f32 %v11982_v55, %v1610_v48 }
 0x203   : > { %v9045_v53 = vor.u32 %v10873_v49, %v9044_v47  ;;  %v8905_v1 = vor.u32 %v10835_v38, %v8902_v25  ;;  %v8996_v55 = vld [vmem:[#allocation9 + $0x600] sm:$0xf]  ;;  %v10887_v48 = vld [vmem:[#allocation9 + $0x6e4] sm:$0xf] }
 0x204   : > { %v3643_v14 = vadd.f32 %v3631_v32, %v3626_v40  ;;  %4749 = vmatpush.bf16.msrb.mxu1 %v8953_v61  ;;  %v8860_v61 = vld [vmem:[#allocation9 + $0x4e8] sm:$0xf]  ;;  %v9236_v25 = vld [vmem:[#allocation9 + $0x7e0] sm:$0xf] }
 0x205   : > { %4738 = vmatpush.bf16.msrb.mxu0 %v8777_v19  ;;  %v3663_v19 = vrot.slane %v3647_v5, 7  ;;  %v8918_v5 = vld [vmem:[#allocation9 + $0x570] sm:$0xf0] }
 0x206   : > { %v3651_v17 = vmax.f32 %v3643_v14, 0.0  ;;  %v8921_v60 = vor.u32 %v10839_v24, %v8918_v5  ;;  %4709 = vmatpush.bf16.msra.mxu2 %v9045_v53  ;;  %v10861_v5 = vld [vmem:[#allocation9 + $0x60c] sm:$0xf0] }
 0x207   : > { %3687 = vst [vmem:[#allocation2] sm:$0xfe] %v3663_v19 }
 0x208   : > { %v3667_v37 = vrot.slane %v3651_v17, 7  ;;  %v10826_v17 = vld [vmem:[#allocation9 + $0x4f4] sm:$0xf0] }
 0x209   : > { %4739 = vmatpush.bf16.msrb.mxu0 %v8761_v31  ;;  %v10843_v31 = vld [vmem:[#allocation9 + $0x584] sm:$0xf]  ;;  %v8861_v24 = vor.u32 %v10826_v17, %v8860_v61 }
 0x20a   : > { %v8937_v45 = vor.u32 %v10843_v31, %v8934_v36  ;;  %v12035_v32 = vsel %vm484_vm0, %v3663_v19, %v3667_v37  ;;  %3695 = vst [vmem:[#allocation2 + $0x40] sm:$0x1] %v3667_v37 }
 0x20b   : > { %3691 = vst [vmem:[#allocation2 + $0x20] sm:$0xff] %v12035_v32 }
 0x20c   : > { %4750 = vmatpush.bf16.msrb.mxu1 %v8937_v45  ;;  %v3632_v45 = vperm.slane %v12024_v33, 1 }
 0x20d   : > { %4740 = vmatpush.bf16.msrb.mxu0 %v8745_v26  ;;  %v3463_v51 = vpop.f32.mrf.mxu0  ;;  %v10869_v26 = vld [vmem:[#allocation9 + $0x64c] sm:$0xf0] }
 0x20e   : > { %v3840_v22 = vld [vmem:[#allocation2] sm:$0xfe]  ;;  %v3477_v29 = vpop.f32.mrf.mxu1  ;;  %v9029_v16 = vor.u32 %v10869_v26, %v9028_v63  ;;  %v8870_v63 = vld [vmem:[#allocation9 + $0x510] sm:$0xf0] }
 0x20f   : > { %v3848_v46 = vpack.c.bf16 %v12035_v32, %v3840_v22  ;;  %v3478_v19 = vadd.f32 %v3477_v29, %v3463_v51  ;;  %v8997_v51 = vor.u32 %v10861_v5, %v8996_v55 }
 0x210   : > { %4751 = vmatpush.bf16.msrb.mxu1 %v8921_v60  ;;  %4710 = vmatpush.bf16.msra.mxu2 %v9029_v16  ;;  %v2446_v60 = vadd.f32 %v11984_v13, %v2432_v4  ;;  %v9220_v4 = vld [vmem:[#allocation9 + $0x7c0] sm:$0xf] }
 0x211   : > { %v3988_v50 = vshll.u32 %v3848_v46, 16  ;;  %v3844_v40 = vld [vmem:[#allocation2 + $0x40] sm:$0x1]  ;;  %v3986_v36 = vshrl.u32 %v3848_v46, 16  ;;  %v10827_v46 = vld [vmem:[#allocation9 + $0x504] sm:$0xf] }
 0x212   : > { %v3852_v6 = vpack.c.bf16 %v3844_v40, %v3844_v40  ;;  %v8873_v16 = vor.u32 %v10827_v46, %v8870_v63  ;;  %v9110_v40 = vld [vmem:[#allocation9 + $0x6f0] sm:$0xf0]  ;;  %v10810_v46 = vld [vmem:[#allocation9 + $0x474] sm:$0xf0]  ;;  %v9188_v63 = vld [vmem:[#allocation9 + $0x780] sm:$0xf] }
 0x213   : > { %v3990_v30 = vrot.slane %v3988_v50, 1  ;;  %v10822_v50 = vld [vmem:[#allocation9 + $0x4d4] sm:$0xf0]  ;;  %v9113_v7 = vor.u32 %v10887_v48, %v9110_v40  ;;  %v8780_v40 = vld [vmem:[#allocation9 + $0x448] sm:$0xf] }
 0x214   : > { %4752 = vmatpush.bf16.msrb.mxu1 %v8905_v1  ;;  %v3993_v37 = vshll.u32 %v3852_v6, 16  ;;  %4711 = vmatpush.bf16.msra.mxu2 %v9013_v23  ;;  %v2460_v1 = vadd.f32 %v11990_v56, %v2446_v60  ;;  %v8828_v6 = vld [vmem:[#allocation9 + $0x4a8] sm:$0xf]  ;;  %v10883_v56 = vld [vmem:[#allocation9 + $0x6c4] sm:$0xf] }
 0x215   : > { %v3491_v14 = vpop.f32.mrf.mxu2  ;;  %v3465_v47 = vpop.f32.mrf.mxu0  ;;  %v3991_v49 = vor.u32 %v3990_v30, %v3986_v36  ;;  %v9078_v60 = vld [vmem:[#allocation9 + $0x6b0] sm:$0xf0] }
 0x216   : > { %v3492_v9 = vadd.f32 %v3491_v14, %v3478_v19  ;;  %v3505_v31 = vpop.f32.mrf.mxu3  ;;  %v3995_v53 = vrot.slane %v3993_v37, 1  ;;  %v3479_v27 = vpop.f32.mrf.mxu1  ;;  %v10921_v19 = vld [vmem:[#allocation9 + $0x7ec] sm:$0xf0]  ;;  %v2474_v36 = vadd.f32 %v11992_v21, %v2460_v1 }
 0x217   : > { %v3480_v38 = vadd.f32 %v3479_v27, %v3465_v47  ;;  %v9237_v13 = vor.u32 %v10921_v19, %v9236_v25  ;;  %v10917_v14 = vld [vmem:[#allocation9 + $0x7cc] sm:$0xf0]  ;;  %v10814_v47 = vld [vmem:[#allocation9 + $0x494] sm:$0xf0]  ;;  %v9062_v19 = vld [vmem:[#allocation9 + $0x690] sm:$0xf0] }
 0x218   : > { %v3506_v22 = vadd.f32 %v3505_v31, %v3492_v9  ;;  %4753 = vmatpush.bf16.msrb.mxu1 %v8889_v3  ;;  %v12046_v29 = vsel %vm807_vm1, %v3991_v49, %v3995_v53  ;;  %4712 = vmatpush.bf16.msra.mxu2 %v8997_v51  ;;  %v9221_v39 = vor.u32 %v10917_v14, %v9220_v4  ;;  %v9094_v9 = vld [vmem:[#allocation9 + $0x6d0] sm:$0xf0]  ;;  %v9204_v49 = vld [vmem:[#allocation9 + $0x7a0] sm:$0xf]  ;;  %v10913_v53 = vld [vmem:[#allocation9 + $0x7ac] sm:$0xf0] }
 0x219   : > { %4685 = vmatmul.bf16.vlgmr.msra.gmra.mxu0 %v12046_v29  ;;  %4719 = vmatpush.bf16.msra.mxu3 %v9237_v13  ;;  %v9097_v31 = vor.u32 %v10883_v56, %v9094_v9  ;;  %v9205_v5 = vor.u32 %v10913_v53, %v9204_v49  ;;  %v8796_v51 = vld [vmem:[#allocation9 + $0x468] sm:$0xf]  ;;  %v10871_v4 = vld [vmem:[#allocation9 + $0x664] sm:$0xf]  ;;  %v9046_v14 = vld [vmem:[#allocation9 + $0x670] sm:$0xf0] }
 0x21a   : > { %v3623_v26 = vadd.f32 %v3506_v22, %v11980_v35  ;;  %4789 = vmatpush.bf16.msra.mxu0 %v8861_v24  ;;  %v8845_v35 = vor.u32 %v10822_v50, %v8844_v18  ;;  %v8829_v18 = vor.u32 %v10818_v57, %v8828_v6  ;;  %v8812_v22 = vld [vmem:[#allocation9 + $0x488] sm:$0xf]  ;;  %v10879_v24 = vld [vmem:[#allocation9 + $0x6a4] sm:$0xf]  ;;  %v8797_v48 = vor.u32 %v10810_v46, %v8796_v51  ;;  %v9172_v6 = vld [vmem:[#allocation9 + $0x760] sm:$0xf] }
 0x21b   : > { %v9081_v27 = vor.u32 %v10879_v24, %v9078_v60  ;;  %v8813_v21 = vor.u32 %v10814_v47, %v8812_v22  ;;  %v10905_v57 = vld [vmem:[#allocation9 + $0x76c] sm:$0xf0]  ;;  %v8748_v47 = vld [vmem:[#allocation9 + $0x408] sm:$0xf]  ;;  %v10798_v49 = vld [vmem:[#allocation9 + $0x414] sm:$0xf0] }
 0x21c   : > { %v3640_v30 = vadd.f32 %v3632_v45, %v3623_v26  ;;  %4754 = vmatpush.bf16.msrb.mxu1 %v8873_v16  ;;  %4761 = vmatpush.bf16.msrb.mxu2 %v9113_v7  ;;  %v10909_v26 = vld [vmem:[#allocation9 + $0x78c] sm:$0xf0]  ;;  %v10858_v60 = vld [vmem:[#allocation9 + $0x5f4] sm:$0xf0]  ;;  %v9140_v51 = vld [vmem:[#allocation9 + $0x720] sm:$0xf] }
 0x21d   : > { %v3493_v8 = vpop.f32.mrf.mxu2  ;;  %4720 = vmatpush.bf16.msra.mxu3 %v9221_v39  ;;  %v9189_v25 = vor.u32 %v10909_v26, %v9188_v63  ;;  %v9156_v39 = vld [vmem:[#allocation9 + $0x740] sm:$0xf]  ;;  %v10901_v9 = vld [vmem:[#allocation9 + $0x74c] sm:$0xf0] }
 0x21e   : > { %v3648_v61 = vmax.f32 %v3640_v30, 0.0  ;;  %v3494_v17 = vadd.f32 %v3493_v8, %v3480_v38  ;;  %v3507_v23 = vpop.f32.mrf.mxu3  ;;  %4790 = vmatpush.bf16.msra.mxu0 %v8845_v35  ;;  %v10875_v38 = vld [vmem:[#allocation9 + $0x684] sm:$0xf]  ;;  %v10806_v30 = vld [vmem:[#allocation9 + $0x454] sm:$0xf0]  ;;  %v9173_v8 = vor.u32 %v10905_v57, %v9172_v6 }
 0x21f   : > { %v9065_v1 = vor.u32 %v10875_v38, %v9062_v19  ;;  %v10897_v46 = vld [vmem:[#allocation9 + $0x72c] sm:$0xf0]  ;;  %v10820_v6 = vld [vmem:[#allocation9 + $0x4cc] sm:$0xf] }
 0x220   : > { %v3664_v37 = vrot.slane %v3648_v61, 7  ;;  %v3508_v3 = vadd.f32 %v3507_v23, %v3494_v17  ;;  %4762 = vmatpush.bf16.msrb.mxu2 %v9097_v31  ;;  %v9049_v61 = vor.u32 %v10871_v4, %v9046_v14  ;;  %v10802_v23 = vld [vmem:[#allocation9 + $0x434] sm:$0xf0]  ;;  %v9141_v38 = vor.u32 %v10897_v46, %v9140_v51  ;;  %v9124_v4 = vld [vmem:[#allocation9 + $0x700] sm:$0xf] }
 0x221   : > { %4721 = vmatpush.bf16.msra.mxu3 %v9205_v5  ;;  %v8988_v5 = vld [vmem:[#allocation9 + $0x5e8] sm:$0xf]  ;;  %v10893_v14 = vld [vmem:[#allocation9 + $0x70c] sm:$0xf0]  ;;  %v10850_v51 = vld [vmem:[#allocation9 + $0x5b4] sm:$0xf0] }
 0x222   : > { %3688 = vst [vmem:[#allocation2 + $0x8] sm:$0xfe] %v3664_v37  ;;  %v3627_v55 = vadd.f32 %v3508_v3, %v2474_v36  ;;  %4791 = vmatpush.bf16.msra.mxu0 %v8829_v18  ;;  %v10867_v3 = vld [vmem:[#allocation9 + $0x644] sm:$0xf]  ;;  %v9030_v18 = vld [vmem:[#allocation9 + $0x650] sm:$0xf0]  ;;  %v8989_v57 = vor.u32 %v10858_v60, %v8988_v5 }
 0x223   : > { %v9033_v53 = vor.u32 %v10867_v3, %v9030_v18  ;;  %v9222_v46 = vld [vmem:[#allocation9 + $0x7d0] sm:$0xf0] }
 0x224   : > { %v3644_v50 = vadd.f32 %v3632_v45, %v3627_v55  ;;  %4763 = vmatpush.bf16.msrb.mxu2 %v9081_v27  ;;  %v1638_v45 = vadd.f32 %v11922_v59, %v11920_v58  ;;  %v8781_v58 = vor.u32 %v10806_v30, %v8780_v40  ;;  %v8764_v59 = vld [vmem:[#allocation9 + $0x428] sm:$0xf]  ;;  %v8862_v27 = vld [vmem:[#allocation9 + $0x4f8] sm:$0xf0] }
 0x225   : > { %4722 = vmatpush.bf16.msra.mxu3 %v9189_v25  ;;  %v8765_v55 = vor.u32 %v10802_v23, %v8764_v59  ;;  %v9014_v25 = vld [vmem:[#allocation9 + $0x630] sm:$0xf0]  ;;  %v8846_v23 = vld [vmem:[#allocation9 + $0x4d8] sm:$0xf0] }
 0x226   : > { %v3652_v16 = vmax.f32 %v3644_v50, 0.0  ;;  %4792 = vmatpush.bf16.msra.mxu0 %v8813_v21  ;;  %v1652_v17 = vadd.f32 %v11924_v2, %v1638_v45  ;;  %v10824_v2 = vld [vmem:[#allocation9 + $0x4ec] sm:$0xf] }
 0x228   : > { %v3669_v13 = vrot.slane %v3652_v16, 7  ;;  %4764 = vmatpush.bf16.msrb.mxu2 %v9065_v1  ;;  %v1666_v50 = vadd.f32 %v11926_v10, %v1652_v17  ;;  %v10863_v16 = vld [vmem:[#allocation9 + $0x624] sm:$0xf]  ;;  %v8749_v10 = vor.u32 %v10798_v49, %v8748_v47 }
 0x229   : > { %v3841_v35 = vld [vmem:[#allocation2 + $0x8] sm:$0xfe]  ;;  %4741 = vmatmul.bf16.vlgmr.msrb.gmra.mxu0 %v12046_v29  ;;  %4723 = vmatpush.bf16.msra.mxu3 %v9173_v8  ;;  %v8865_v8 = vor.u32 %v10824_v2, %v8862_v27  ;;  %v8830_v2 = vld [vmem:[#allocation9 + $0x4b8] sm:$0xf0] }
 0x22a   : > { %v12058_v7 = vsel %vm484_vm0, %v3664_v37, %v3669_v13  ;;  %3696 = vst [vmem:[#allocation2 + $0x48] sm:$0x1] %v3669_v13  ;;  %4793 = vmatpush.bf16.msra.mxu0 %v8797_v48  ;;  %v9157_v37 = vor.u32 %v10901_v9, %v9156_v39  ;;  %v2488_v19 = vadd.f32 %v11997_v44, %v1666_v50  ;;  %v3633_v13 = vperm.slane %v12024_v33, 2  ;;  %v8998_v9 = vld [vmem:[#allocation9 + $0x610] sm:$0xf0] }
 0x22b   : > { %3692 = vst [vmem:[#allocation2 + $0x28] sm:$0xff] %v12058_v7  ;;  %v3849_v56 = vpack.c.bf16 %v12058_v7, %v3841_v35  ;;  %v9017_v48 = vor.u32 %v10863_v16, %v9014_v25  ;;  %v9125_v39 = vor.u32 %v10893_v14, %v9124_v4  ;;  %v10919_v49 = vld [vmem:[#allocation9 + $0x7e4] sm:$0xf]  ;;  %v10812_v25 = vld [vmem:[#allocation9 + $0x48c] sm:$0xf] }
 0x22c   : > { %4765 = vmatpush.bf16.msrb.mxu2 %v9049_v61  ;;  %v10859_v61 = vld [vmem:[#allocation9 + $0x604] sm:$0xf]  ;;  %v2502_v3 = vadd.f32 %v11999_v34, %v2488_v19  ;;  %v8814_v19 = vld [vmem:[#allocation9 + $0x498] sm:$0xf0]  ;;  %v10808_v14 = vld [vmem:[#allocation9 + $0x46c] sm:$0xf] }
 0x22d   : > { %v3519_v31 = vpop.f32.mrf.mxu0  ;;  %v4000_v36 = vshll.u32 %v3849_v56, 16  ;;  %4724 = vmatpush.bf16.msra.mxu3 %v9157_v37  ;;  %v3998_v45 = vshrl.u32 %v3849_v56, 16  ;;  %v10854_v37 = vld [vmem:[#allocation9 + $0x5d4] sm:$0xf0]  ;;  %v9001_v56 = vor.u32 %v10859_v61, %v8998_v9  ;;  %v10915_v27 = vld [vmem:[#allocation9 + $0x7c4] sm:$0xf]  ;;  %v8817_v4 = vor.u32 %v10812_v25, %v8814_v19 }
 0x22e   : > { %v3533_v22 = vpop.f32.mrf.mxu1  ;;  %4794 = vmatpush.bf16.msra.mxu0 %v8781_v58  ;;  %v2516_v5 = vadd.f32 %v12005_v54, %v2502_v3  ;;  %v9225_v54 = vor.u32 %v10915_v27, %v9222_v46  ;;  %v9158_v27 = vld [vmem:[#allocation9 + $0x750] sm:$0xf0]  ;;  %v8892_v46 = vld [vmem:[#allocation9 + $0x528] sm:$0xf]  ;;  %v10895_v25 = vld [vmem:[#allocation9 + $0x724] sm:$0xf] }
 0x22f   : > { %v3534_v24 = vadd.f32 %v3533_v22, %v3519_v31  ;;  %v4002_v26 = vrot.slane %v4000_v36, 1  ;;  %v8972_v36 = vld [vmem:[#allocation9 + $0x5c8] sm:$0xf]  ;;  %v9142_v19 = vld [vmem:[#allocation9 + $0x730] sm:$0xf0] }
 0x230   : > { %4766 = vmatpush.bf16.msrb.mxu2 %v9033_v53  ;;  %v9238_v53 = vld [vmem:[#allocation9 + $0x7f0] sm:$0xf0]  ;;  %v8973_v34 = vor.u32 %v10854_v37, %v8972_v36  ;;  %v10804_v36 = vld [vmem:[#allocation9 + $0x44c] sm:$0xf]  ;;  %v8782_v37 = vld [vmem:[#allocation9 + $0x458] sm:$0xf0] }
 0x231   : > { %v3845_v21 = vld [vmem:[#allocation2 + $0x48] sm:$0x1]  ;;  %4725 = vmatpush.bf16.msra.mxu3 %v9141_v38  ;;  %v4003_v44 = vor.u32 %v4002_v26, %v3998_v45  ;;  %v9206_v45 = vld [vmem:[#allocation9 + $0x7b0] sm:$0xf0] }
 0x232   : > { %v3853_v63 = vpack.c.bf16 %v3845_v21, %v3845_v21  ;;  %4795 = vmatpush.bf16.msra.mxu0 %v8765_v55  ;;  %v9241_v55 = vor.u32 %v10919_v49, %v9238_v53  ;;  %v8956_v21 = vld [vmem:[#allocation9 + $0x5a8] sm:$0xf]  ;;  %v10838_v53 = vld [vmem:[#allocation9 + $0x554] sm:$0xf0] }
 0x233   : > { %v8908_v49 = vld [vmem:[#allocation9 + $0x548] sm:$0xf] }
 0x234   : > { %v4005_v35 = vshll.u32 %v3853_v63, 16  ;;  %4767 = vmatpush.bf16.msrb.mxu2 %v9017_v48 }
 0x235   : > { %v3547_v1 = vpop.f32.mrf.mxu2  ;;  %v3521_v59 = vpop.f32.mrf.mxu0  ;;  %4726 = vmatpush.bf16.msra.mxu3 %v9125_v39 }
 0x236   : > { %v3548_v40 = vadd.f32 %v3547_v1, %v3534_v24  ;;  %v3561_v30 = vpop.f32.mrf.mxu3  ;;  %v4007_v17 = vrot.slane %v4005_v35, 1  ;;  %v3535_v31 = vpop.f32.mrf.mxu1  ;;  %4796 = vmatpush.bf16.msra.mxu0 %v8749_v10  ;;  %v8849_v24 = vor.u32 %v10820_v6, %v8846_v23  ;;  %v2530_v1 = vadd.f32 %v12007_v62, %v2516_v5  ;;  %v10911_v10 = vld [vmem:[#allocation9 + $0x7a4] sm:$0xf]  ;;  %v8940_v35 = vld [vmem:[#allocation9 + $0x588] sm:$0xf] }
 0x237   : > { %v3536_v22 = vadd.f32 %v3535_v31, %v3521_v59  ;;  %v10846_v6 = vld [vmem:[#allocation9 + $0x594] sm:$0xf0]  ;;  %v10907_v59 = vld [vmem:[#allocation9 + $0x784] sm:$0xf] }
 0x238   : > { %v3562_v58 = vadd.f32 %v3561_v30, %v3548_v40  ;;  %v12070_v47 = vsel %vm807_vm1, %v4003_v44, %v4007_v17  ;;  %4768 = vmatpush.bf16.msrb.mxu2 %v9001_v56  ;;  %v8957_v30 = vor.u32 %v10850_v51, %v8956_v21  ;;  %v8941_v62 = vor.u32 %v10846_v6, %v8940_v35  ;;  %v9190_v44 = vld [vmem:[#allocation9 + $0x790] sm:$0xf0]  ;;  %v8924_v17 = vld [vmem:[#allocation9 + $0x568] sm:$0xf]  ;;  %v10842_v23 = vld [vmem:[#allocation9 + $0x574] sm:$0xf0] }
 0x239   : > { %4699 = vmatmul.bf16.vlgmr.msra.gmra.mxu1 %v12070_v47  ;;  %4797 = vmatmul.bf16.vlgmr.msra.gmra.mxu0 %v12046_v29  ;;  %v9193_v9 = vor.u32 %v10907_v59, %v9190_v44  ;;  %v8925_v3 = vor.u32 %v10842_v23, %v8924_v17  ;;  %v9364_v35 = vld [vmem:[#allocation9 + $0xe0] sm:$0xf]  ;;  %v10697_v6 = vld [vmem:[#allocation9 + $0xec] sm:$0xf0]  ;;  %v9116_v17 = vld [vmem:[#allocation9 + $0x6e8] sm:$0xf] }
 0x23a   : > { %v3624_v18 = vadd.f32 %v3562_v58, %v11995_v43  ;;  %4845 = vmatpush.bf16.msrb.mxu0 %v8865_v8  ;;  %4803 = vmatpush.bf16.msra.mxu1 %v8989_v57  ;;  %v10816_v43 = vld [vmem:[#allocation9 + $0x4ac] sm:$0xf]  ;;  %v9209_v8 = vor.u32 %v10911_v10, %v9206_v45  ;;  %v8798_v58 = vld [vmem:[#allocation9 + $0x478] sm:$0xf0]  ;;  %v10890_v23 = vld [vmem:[#allocation9 + $0x6f4] sm:$0xf0] }
 0x23b   : > { %4775 = vmatpush.bf16.msrb.mxu3 %v9241_v55  ;;  %v8833_v16 = vor.u32 %v10816_v43, %v8830_v2  ;;  %v8801_v31 = vor.u32 %v10808_v14, %v8798_v58  ;;  %v10899_v2 = vld [vmem:[#allocation9 + $0x744] sm:$0xf]  ;;  %v8750_v10 = vld [vmem:[#allocation9 + $0x418] sm:$0xf0] }
 0x23c   : > { %v3641_v60 = vadd.f32 %v3633_v13, %v3624_v18  ;;  %v10903_v18 = vld [vmem:[#allocation9 + $0x764] sm:$0xf]  ;;  %v8990_v14 = vld [vmem:[#allocation9 + $0x5f8] sm:$0xf0] }
 0x23d   : > { %v3549_v50 = vpop.f32.mrf.mxu2 }
 0x23e   : > { %v3649_v63 = vmax.f32 %v3641_v60, 0.0  ;;  %v3550_v26 = vadd.f32 %v3549_v50, %v3536_v22  ;;  %v3563_v38 = vpop.f32.mrf.mxu3  ;;  %4846 = vmatpush.bf16.msrb.mxu0 %v8849_v24  ;;  %4804 = vmatpush.bf16.msra.mxu1 %v8973_v34  ;;  %v9174_v22 = vld [vmem:[#allocation9 + $0x770] sm:$0xf0]  ;;  %v8785_v60 = vor.u32 %v10804_v36, %v8782_v37  ;;  %v10800_v34 = vld [vmem:[#allocation9 + $0x42c] sm:$0xf]  ;;  %v9365_v36 = vor.u32 %v10697_v6, %v9364_v35 }
 0x23f   : > { %4776 = vmatpush.bf16.msrb.mxu3 %v9225_v54  ;;  %v9177_v5 = vor.u32 %v10903_v18, %v9174_v22  ;;  %v10891_v37 = vld [vmem:[#allocation9 + $0x704] sm:$0xf]  ;;  %v9348_v22 = vld [vmem:[#allocation9 + $0xc0] sm:$0xf]  ;;  %v10685_v35 = vld [vmem:[#allocation9 + $0x8c] sm:$0xf0] }
 0x240   : > { %v3665_v48 = vrot.slane %v3649_v63, 7  ;;  %v3564_v40 = vadd.f32 %v3563_v38, %v3550_v26  ;;  %v10834_v63 = vld [vmem:[#allocation9 + $0x534] sm:$0xf0]  ;;  %v9161_v38 = vor.u32 %v10899_v2, %v9158_v27 }
 0x241   : > { %v10886_v2 = vld [vmem:[#allocation9 + $0x6d4] sm:$0xf0] }
 0x242   : > { %3689 = vst [vmem:[#allocation2 + $0x10] sm:$0xfe] %v3665_v48  ;;  %v3628_v57 = vadd.f32 %v3564_v40, %v2530_v1  ;;  %4847 = vmatpush.bf16.msrb.mxu0 %v8833_v16  ;;  %4805 = vmatpush.bf16.msra.mxu1 %v8957_v30  ;;  %v8876_v16 = vld [vmem:[#allocation9 + $0x508] sm:$0xf]  ;;  %v10830_v40 = vld [vmem:[#allocation9 + $0x514] sm:$0xf0] }
 0x243   : > { %4777 = vmatpush.bf16.msrb.mxu3 %v9209_v8  ;;  %v10796_v30 = vld [vmem:[#allocation9 + $0x40c] sm:$0xf]  ;;  %v8877_v59 = vor.u32 %v10830_v40, %v8876_v16 }
 0x244   : > { %v3645_v61 = vadd.f32 %v3633_v13, %v3628_v57  ;;  %v1694_v13 = vadd.f32 %v11951_v28, %v11940_v15  ;;  %v8909_v15 = vor.u32 %v10838_v53, %v8908_v49  ;;  %v8766_v28 = vld [vmem:[#allocation9 + $0x438] sm:$0xf0]  ;;  %v8753_v44 = vor.u32 %v10796_v30, %v8750_v10  ;;  %v10848_v16 = vld [vmem:[#allocation9 + $0x5ac] sm:$0xf] }
 0x245   : > { %v8769_v54 = vor.u32 %v10800_v34, %v8766_v28  ;;  %v9100_v28 = vld [vmem:[#allocation9 + $0x6c8] sm:$0xf] }
 0x246   : > { %v3653_v39 = vmax.f32 %v3645_v61, 0.0  ;;  %4848 = vmatpush.bf16.msrb.mxu0 %v8817_v4  ;;  %4806 = vmatpush.bf16.msra.mxu1 %v8941_v62  ;;  %v1708_v50 = vadd.f32 %v11959_v42, %v1694_v13  ;;  %v10856_v4 = vld [vmem:[#allocation9 + $0x5ec] sm:$0xf]  ;;  %v9145_v61 = vor.u32 %v10895_v25, %v9142_v19  ;;  %v10693_v13 = vld [vmem:[#allocation9 + $0xcc] sm:$0xf0] }
 0x247   : > { %4778 = vmatpush.bf16.msrb.mxu3 %v9193_v9  ;;  %v8993_v18 = vor.u32 %v10856_v4, %v8990_v14  ;;  %v8958_v25 = vld [vmem:[#allocation9 + $0x5b8] sm:$0xf0]  ;;  %v10844_v4 = vld [vmem:[#allocation9 + $0x58c] sm:$0xf] }
 0x248   : > { %v3671_v56 = vrot.slane %v3653_v39, 7  ;;  %v1722_v42 = vadd.f32 %v11962_v52, %v1708_v50  ;;  %v8942_v14 = vld [vmem:[#allocation9 + $0x598] sm:$0xf0] }
 0x249   : > { %v3842_v24 = vld [vmem:[#allocation2 + $0x10] sm:$0xfe]  ;;  %4755 = vmatmul.bf16.vlgmr.msrb.gmra.mxu1 %v12070_v47 }
 0x24a   : > { %v12083_v55 = vsel %vm484_vm0, %v3665_v48, %v3671_v56  ;;  %3697 = vst [vmem:[#allocation2 + $0x50] sm:$0x1] %v3671_v56  ;;  %4849 = vmatpush.bf16.msrb.mxu0 %v8801_v31  ;;  %4807 = vmatpush.bf16.msra.mxu1 %v8925_v3  ;;  %v8893_v48 = vor.u32 %v10834_v63, %v8892_v46  ;;  %v9126_v56 = vld [vmem:[#allocation9 + $0x710] sm:$0xf0]  ;;  %v3634_v3 = vperm.slane %v12024_v33, 3 }
 0x24b   : > { %3693 = vst [vmem:[#allocation2 + $0x30] sm:$0xff] %v12083_v55  ;;  %v3850_v43 = vpack.c.bf16 %v12083_v55, %v3842_v24  ;;  %4779 = vmatpush.bf16.msrb.mxu3 %v9177_v5  ;;  %v2544_v62 = vadd.f32 %v12012_v20, %v1722_v42  ;;  %v9117_v24 = vor.u32 %v10890_v23, %v9116_v17  ;;  %v10852_v5 = vld [vmem:[#allocation9 + $0x5cc] sm:$0xf]  ;;  %v9332_v63 = vld [vmem:[#allocation9 + $0xa0] sm:$0xf] }
 0x24c   : > { %v9129_v27 = vor.u32 %v10891_v37, %v9126_v56  ;;  %v8961_v42 = vor.u32 %v10848_v16, %v8958_v25  ;;  %v9300_v17 = vld [vmem:[#allocation9 + $0x60] sm:$0xf]  ;;  %v10681_v23 = vld [vmem:[#allocation9 + $0x6c] sm:$0xf0]  ;;  %v9036_v33 = vld [vmem:[#allocation9 + $0x648] sm:$0xf] }
 0x24d   : > { %v3575_v21 = vpop.f32.mrf.mxu0  ;;  %v4012_v26 = vshll.u32 %v3850_v43, 16  ;;  %v4010_v52 = vshrl.u32 %v3850_v43, 16  ;;  %v2558_v34 = vadd.f32 %v12014_v0, %v2544_v62  ;;  %v10878_v62 = vld [vmem:[#allocation9 + $0x694] sm:$0xf0]  ;;  %v9301_v56 = vor.u32 %v10681_v23, %v9300_v17  ;;  %v10828_v16 = vld [vmem:[#allocation9 + $0x50c] sm:$0xf] }
 0x24e   : > { %v3589_v51 = vpop.f32.mrf.mxu1  ;;  %4850 = vmatpush.bf16.msrb.mxu0 %v8785_v60  ;;  %4808 = vmatpush.bf16.msra.mxu1 %v8909_v15  ;;  %v8974_v60 = vld [vmem:[#allocation9 + $0x5d8] sm:$0xf0]  ;;  %v9252_v25 = vld [vmem:[#allocation9] sm:$0xf] }
 0x24f   : > { %v3590_v1 = vadd.f32 %v3589_v51, %v3575_v21  ;;  %v4014_v8 = vrot.slane %v4012_v26, 1  ;;  %4780 = vmatpush.bf16.msrb.mxu3 %v9161_v38  ;;  %v9349_v51 = vor.u32 %v10693_v13, %v9348_v22  ;;  %v2572_v46 = vadd.f32 %v12018_v11, %v2558_v34  ;;  %v10689_v26 = vld [vmem:[#allocation9 + $0xac] sm:$0xf0]  ;;  %v9084_v11 = vld [vmem:[#allocation9 + $0x6a8] sm:$0xf] }
 0x250   : > { %v8977_v0 = vor.u32 %v10852_v5, %v8974_v60  ;;  %v9333_v30 = vor.u32 %v10689_v26, %v9332_v63  ;;  %v9284_v22 = vld [vmem:[#allocation9 + $0x40] sm:$0xf]  ;;  %v10677_v13 = vld [vmem:[#allocation9 + $0x4c] sm:$0xf0] }
 0x251   : > { %v3846_v45 = vld [vmem:[#allocation2 + $0x50] sm:$0x1]  ;;  %v4015_v49 = vor.u32 %v4014_v8, %v4010_v52  ;;  %v8926_v52 = vld [vmem:[#allocation9 + $0x578] sm:$0xf0]  ;;  %v9285_v34 = vor.u32 %v10677_v13, %v9284_v22  ;;  %v9476_v17 = vld [vmem:[#allocation9 + $0x1c0] sm:$0xf] }
 0x252   : > { %v3854_v57 = vpack.c.bf16 %v3846_v45, %v3846_v45  ;;  %4851 = vmatpush.bf16.msrb.mxu0 %v8769_v54  ;;  %4809 = vmatpush.bf16.msra.mxu1 %v8893_v48  ;;  %v9316_v45 = vld [vmem:[#allocation9 + $0x80] sm:$0xf]  ;;  %v9228_v22 = vld [vmem:[#allocation9 + $0x7c8] sm:$0xf]  ;;  %v10918_v13 = vld [vmem:[#allocation9 + $0x7d4] sm:$0xf0] }
 0x253   : > { %4781 = vmatpush.bf16.msrb.mxu3 %v9145_v61  ;;  %v9068_v61 = vld [vmem:[#allocation9 + $0x688] sm:$0xf] }
 0x254   : > { %v4017_v31 = vshll.u32 %v3854_v57, 16 }
 0x255   : > { %v3603_v58 = vpop.f32.mrf.mxu2  ;;  %v3577_v15 = vpop.f32.mrf.mxu0 }
 0x256   : > { %v3604_v39 = vadd.f32 %v3603_v58, %v3590_v1  ;;  %v3617_v9 = vpop.f32.mrf.mxu3  ;;  %v4019_v53 = vrot.slane %v4017_v31, 1  ;;  %v3591_v43 = vpop.f32.mrf.mxu1  ;;  %4852 = vmatpush.bf16.msrb.mxu0 %v8753_v44  ;;  %4810 = vmatpush.bf16.msra.mxu1 %v8877_v59  ;;  %v10882_v1 = vld [vmem:[#allocation9 + $0x6b4] sm:$0xf0]  ;;  %v9317_v59 = vor.u32 %v10685_v35, %v9316_v45  ;;  %v8945_v44 = vor.u32 %v10844_v4, %v8942_v14  ;;  %v9052_v31 = vld [vmem:[#allocation9 + $0x668] sm:$0xf] }
 0x257   : > { %v3592_v54 = vadd.f32 %v3591_v43, %v3577_v15  ;;  %4782 = vmatpush.bf16.msrb.mxu3 %v9129_v27  ;;  %v9085_v8 = vor.u32 %v10882_v1, %v9084_v11  ;;  %v9268_v43 = vld [vmem:[#allocation9 + $0x20] sm:$0xf]  ;;  %v8878_v1 = vld [vmem:[#allocation9 + $0x518] sm:$0xf0]  ;;  %v9244_v4 = vld [vmem:[#allocation9 + $0x7e8] sm:$0xf] }
 0x258   : > { %v3618_v20 = vadd.f32 %v3617_v9, %v3604_v39  ;;  %v12095_v21 = vsel %vm807_vm1, %v4015_v49, %v4019_v53  ;;  %v10840_v9 = vld [vmem:[#allocation9 + $0x56c] sm:$0xf]  ;;  %v10922_v14 = vld [vmem:[#allocation9 + $0x7f4] sm:$0xf0] }
 0x259   : > { %4713 = vmatmul.bf16.vlgmr.msra.gmra.mxu2 %v12095_v21  ;;  %4853 = vmatmul.bf16.vlgmr.msrb.gmra.mxu0 %v12046_v29  ;;  %v2586_v29 = vadd.f32 %v12020_v12, %v2572_v46  ;;  %v9069_v12 = vor.u32 %v10878_v62, %v9068_v61  ;;  %v10836_v53 = vld [vmem:[#allocation9 + $0x54c] sm:$0xf]  ;;  %v9020_v46 = vld [vmem:[#allocation9 + $0x628] sm:$0xf] }
 0x25a   : > { %v3625_v50 = vadd.f32 %v3618_v20, %v12010_v41  ;;  %5541 = vmatpush.bf16.msra.mxu0 %v9365_v36  ;;  %4859 = vmatpush.bf16.msrb.mxu1 %v8993_v18  ;;  %v9101_v41 = vor.u32 %v10886_v2, %v9100_v28  ;;  %v10874_v36 = vld [vmem:[#allocation9 + $0x674] sm:$0xf0]  ;;  %v8929_v18 = vor.u32 %v10840_v9, %v8926_v52  ;;  %v10673_v28 = vld [vmem:[#allocation9 + $0x2c] sm:$0xf0]  ;;  %v9350_v9 = vld [vmem:[#allocation9 + $0xd0] sm:$0xf0] }
 0x25b   : > { %4817 = vmatpush.bf16.msra.mxu2 %v9117_v24  ;;  %4811 = vmatmul.bf16.vlgmr.msra.gmra.mxu1 %v12070_v47  ;;  %v9053_v49 = vor.u32 %v10874_v36, %v9052_v31  ;;  %v8910_v24 = vld [vmem:[#allocation9 + $0x558] sm:$0xf0]  ;;  %v9269_v63 = vor.u32 %v10673_v28, %v9268_v43  ;;  %v9245_v36 = vor.u32 %v10922_v14, %v9244_v4  ;;  %v10880_v28 = vld [vmem:[#allocation9 + $0x6ac] sm:$0xf]  ;;  %v9412_v4 = vld [vmem:[#allocation9 + $0x140] sm:$0xf] }
 0x25c   : > { %v3642_v38 = vadd.f32 %v3634_v3, %v3625_v50  ;;  %v8913_v15 = vor.u32 %v10836_v53, %v8910_v24  ;;  %v10832_v50 = vld [vmem:[#allocation9 + $0x52c] sm:$0xf]  ;;  %v9460_v24 = vld [vmem:[#allocation9 + $0x1a0] sm:$0xf]  ;;  %v9229_v43 = vor.u32 %v10918_v13, %v9228_v22  ;;  %v9022_v13 = vld [vmem:[#allocation9 + $0x638] sm:$0xf0] }
 0x25d   : > { %v3605_v19 = vpop.f32.mrf.mxu2  ;;  %v10864_v22 = vld [vmem:[#allocation9 + $0x62c] sm:$0xf] }
 0x25e   : > { %v3650_v48 = vmax.f32 %v3642_v38, 0.0  ;;  %v3606_v40 = vadd.f32 %v3605_v19, %v3592_v54  ;;  %5542 = vmatpush.bf16.msra.mxu0 %v9349_v51  ;;  %v3619_v10 = vpop.f32.mrf.mxu3  ;;  %4860 = vmatpush.bf16.msrb.mxu1 %v8977_v0  ;;  %v8894_v51 = vld [vmem:[#allocation9 + $0x538] sm:$0xf0]  ;;  %v10866_v0 = vld [vmem:[#allocation9 + $0x634] sm:$0xf0] }
 0x25f   : > { %4818 = vmatpush.bf16.msra.mxu2 %v9101_v41  ;;  %v8897_v38 = vor.u32 %v10832_v50, %v8894_v51  ;;  %v9004_v54 = vld [vmem:[#allocation9 + $0x608] sm:$0xf]  ;;  %v10862_v41 = vld [vmem:[#allocation9 + $0x614] sm:$0xf0]  ;;  %v10669_v19 = vld [vmem:[#allocation9 + $0xc] sm:$0xf0]  ;;  %v9021_v11 = vor.u32 %v10866_v0, %v9020_v46 }
 0x260   : > { %v3666_v6 = vrot.slane %v3650_v48, 7  ;;  %v3620_v57 = vadd.f32 %v3619_v10, %v3606_v40  ;;  %v10695_v48 = vld [vmem:[#allocation9 + $0xe4] sm:$0xf]  ;;  %v9366_v40 = vld [vmem:[#allocation9 + $0xf0] sm:$0xf0]  ;;  %v9253_v45 = vor.u32 %v10669_v19, %v9252_v25  ;;  %v9005_v62 = vor.u32 %v10862_v41, %v9004_v54 }
 0x261   : > { %v9492_v10 = vld [vmem:[#allocation9 + $0x1e0] sm:$0xf]  ;;  %v9369_v61 = vor.u32 %v10695_v48, %v9366_v40  ;;  %v10914_v50 = vld [vmem:[#allocation9 + $0x7b4] sm:$0xf0]  ;;  %v10876_v54 = vld [vmem:[#allocation9 + $0x68c] sm:$0xf] }
 0x262   : > { %3690 = vst [vmem:[#allocation2 + $0x18] sm:$0xfe] %v3666_v6  ;;  %v3629_v58 = vadd.f32 %v3620_v57, %v2586_v29  ;;  %5543 = vmatpush.bf16.msra.mxu0 %v9333_v30  ;;  %4861 = vmatpush.bf16.msrb.mxu1 %v8961_v42  ;;  %v10729_v42 = vld [vmem:[#allocation9 + $0x1ec] sm:$0xf0]  ;;  %v9118_v57 = vld [vmem:[#allocation9 + $0x6f8] sm:$0xf0] }
 0x263   : > { %4819 = vmatpush.bf16.msra.mxu2 %v9085_v8  ;;  %v8881_v8 = vor.u32 %v10828_v16, %v8878_v1  ;;  %v9444_v46 = vld [vmem:[#allocation9 + $0x180] sm:$0xf]  ;;  %v9070_v41 = vld [vmem:[#allocation9 + $0x698] sm:$0xf0]  ;;  %v9196_v16 = vld [vmem:[#allocation9 + $0x788] sm:$0xf] }
 0x264   : > { %v3646_v39 = vadd.f32 %v3634_v3, %v3629_v58  ;;  %v10870_v3 = vld [vmem:[#allocation9 + $0x654] sm:$0xf0]  ;;  %v9428_v1 = vld [vmem:[#allocation9 + $0x160] sm:$0xf]  ;;  %v9073_v48 = vor.u32 %v10876_v54, %v9070_v41  ;;  %v10713_v40 = vld [vmem:[#allocation9 + $0x16c] sm:$0xf0] }
 0x265   : > { %v9037_v27 = vor.u32 %v10870_v3, %v9036_v33  ;;  %v10910_v25 = vld [vmem:[#allocation9 + $0x794] sm:$0xf0]  ;;  %v9246_v41 = vld [vmem:[#allocation9 + $0x7f8] sm:$0xf0] }
 0x266   : > { %v3654_v37 = vmax.f32 %v3646_v39, 0.0  ;;  %5544 = vmatpush.bf16.msra.mxu0 %v9317_v59  ;;  %4862 = vmatpush.bf16.msrb.mxu1 %v8945_v44  ;;  %v9493_v44 = vor.u32 %v10729_v42, %v9492_v10  ;;  %v10725_v39 = vld [vmem:[#allocation9 + $0x1cc] sm:$0xf0]  ;;  %v9302_v10 = vld [vmem:[#allocation9 + $0x70] sm:$0xf0]  ;;  %v9197_v42 = vor.u32 %v10910_v25, %v9196_v16 }
 0x267   : > { %4820 = vmatpush.bf16.msra.mxu2 %v9069_v12  ;;  %v10691_v12 = vld [vmem:[#allocation9 + $0xc4] sm:$0xf]  ;;  %v9372_v16 = vld [vmem:[#allocation9 + $0xe8] sm:$0xf]  ;;  %v10698_v25 = vld [vmem:[#allocation9 + $0xf4] sm:$0xf0] }
 0x268   : > { %v3673_v20 = vrot.slane %v3654_v37, 7  ;;  %v3700_v37 = vld [vmem:[#allocation2] sm:$0xff]  ;;  %v9353_v53 = vor.u32 %v10691_v12, %v9350_v9 }
 0x269   : > { %v3843_v5 = vld [vmem:[#allocation2 + $0x18] sm:$0xfe]  ;;  %4769 = vmatmul.bf16.vlgmr.msrb.gmra.mxu2 %v12095_v21  ;;  %v12117_v33 = vpack.c.bf16 %v12035_v32, %v3700_v37  ;;  %v10671_v37 = vld [vmem:[#allocation9 + $0x24] sm:$0xf] }
 0x26a   : > { %v12107_v60 = vsel %vm484_vm0, %v3666_v6, %v3673_v20  ;;  %3698 = vst [vmem:[#allocation2 + $0x58] sm:$0x1] %v3673_v20  ;;  %5545 = vmatpush.bf16.msra.mxu0 %v9301_v56  ;;  %4863 = vmatpush.bf16.msrb.mxu1 %v8929_v18  ;;  %v10888_v6 = vld [vmem:[#allocation9 + $0x6ec] sm:$0xf]  ;;  %v9102_v18 = vld [vmem:[#allocation9 + $0x6d8] sm:$0xf0] }
 0x26b   : > { %3694 = vst [vmem:[#allocation2 + $0x38] sm:$0xff] %v12107_v60  ;;  %v3851_v2 = vpack.c.bf16 %v12107_v60, %v3843_v5  ;;  %4821 = vmatpush.bf16.msra.mxu2 %v9053_v49  ;;  %v9121_v23 = vor.u32 %v10888_v6, %v9118_v57  ;;  %v10884_v56 = vld [vmem:[#allocation9 + $0x6cc] sm:$0xf]  ;;  %v9477_v49 = vor.u32 %v10725_v39, %v9476_v17  ;;  %v10721_v5 = vld [vmem:[#allocation9 + $0x1ac] sm:$0xf0] }
 0x26c   : > { %v9105_v3 = vor.u32 %v10884_v56, %v9102_v18  ;;  %v9461_v32 = vor.u32 %v10721_v5, %v9460_v24  ;;  %v10906_v6 = vld [vmem:[#allocation9 + $0x774] sm:$0xf0]  ;;  %v9429_v57 = vor.u32 %v10713_v40, %v9428_v1  ;;  %v9038_v17 = vld [vmem:[#allocation9 + $0x658] sm:$0xf0]  ;;  %v9270_v56 = vld [vmem:[#allocation9 + $0x30] sm:$0xf0] }
 0x26d   : > { %v4024_v26 = vshll.u32 %v3851_v2, 16  ;;  %v4022_v58 = vshrl.u32 %v3851_v2, 16  ;;  %v9086_v2 = vld [vmem:[#allocation9 + $0x6b8] sm:$0xf0]  ;;  %v10902_v39 = vld [vmem:[#allocation9 + $0x754] sm:$0xf0] }
 0x26e   : > { %5546 = vmatpush.bf16.msra.mxu0 %v9285_v34  ;;  %4864 = vmatpush.bf16.msrb.mxu1 %v8913_v15  ;;  %v10687_v34 = vld [vmem:[#allocation9 + $0xa4] sm:$0xf]  ;;  %v9334_v15 = vld [vmem:[#allocation9 + $0xb0] sm:$0xf0]  ;;  %v9089_v0 = vor.u32 %v10880_v28, %v9086_v2  ;;  %v10860_v5 = vld [vmem:[#allocation9 + $0x60c] sm:$0xf] }
 0x26f   : > { %4822 = vmatpush.bf16.msra.mxu2 %v9037_v27  ;;  %v4026_v29 = vrot.slane %v4024_v26, 1  ;;  %v9212_v27 = vld [vmem:[#allocation9 + $0x7a8] sm:$0xf]  ;;  %v9337_v51 = vor.u32 %v10687_v34, %v9334_v15  ;;  %v10683_v26 = vld [vmem:[#allocation9 + $0x84] sm:$0xf]  ;;  %v9025_v15 = vor.u32 %v10864_v22, %v9022_v13 }
 0x270   : > { %v9380_v34 = vld [vmem:[#allocation9 + $0x100] sm:$0xf]  ;;  %v10894_v28 = vld [vmem:[#allocation9 + $0x714] sm:$0xf0]  ;;  %v10701_v2 = vld [vmem:[#allocation9 + $0x10c] sm:$0xf0] }
 0x271   : > { %v3847_v30 = vld [vmem:[#allocation2 + $0x58] sm:$0x1]  ;;  %v4027_v52 = vor.u32 %v4026_v29, %v4022_v58  ;;  %v9180_v29 = vld [vmem:[#allocation9 + $0x768] sm:$0xf]  ;;  %v10715_v13 = vld [vmem:[#allocation9 + $0x184] sm:$0xf] }
 0x272   : > { %5547 = vmatpush.bf16.msra.mxu0 %v9269_v63  ;;  %v3855_v35 = vpack.c.bf16 %v3847_v30, %v3847_v30  ;;  %4865 = vmatpush.bf16.msrb.mxu1 %v8897_v38  ;;  %v10717_v63 = vld [vmem:[#allocation9 + $0x18c] sm:$0xf0]  ;;  %v9318_v38 = vld [vmem:[#allocation9 + $0x90] sm:$0xf0]  ;;  %v10679_v30 = vld [vmem:[#allocation9 + $0x64] sm:$0xf] }
 0x273   : > { %4823 = vmatpush.bf16.msra.mxu2 %v9021_v11  ;;  %v9445_v19 = vor.u32 %v10717_v63, %v9444_v46  ;;  %v9321_v11 = vor.u32 %v10683_v26, %v9318_v38  ;;  %v9286_v58 = vld [vmem:[#allocation9 + $0x50] sm:$0xf0]  ;;  %v10727_v46 = vld [vmem:[#allocation9 + $0x1e4] sm:$0xf]  ;;  %v10920_v63 = vld [vmem:[#allocation9 + $0x7ec] sm:$0xf] }
 0x274   : > { %v4029_v59 = vshll.u32 %v3855_v35, 16  ;;  %v9054_v35 = vld [vmem:[#allocation9 + $0x678] sm:$0xf0]  ;;  %v9620_v26 = vld [vmem:[#allocation9 + $0x2e0] sm:$0xf]  ;;  %v3701_v40 = vld [vmem:[#allocation2 + $0x8] sm:$0xff] }
 0x275   : > { %v10761_v38 = vld [vmem:[#allocation9 + $0x2ec] sm:$0xf0] }
 0x276   : > { %5548 = vmatpush.bf16.msra.mxu0 %v9253_v45  ;;  %v4031_v31 = vrot.slane %v4029_v59, 1  ;;  %4866 = vmatpush.bf16.msrb.mxu1 %v8881_v8  ;;  %v10872_v45 = vld [vmem:[#allocation9 + $0x66c] sm:$0xf]  ;;  %v9305_v8 = vor.u32 %v10679_v30, %v9302_v10  ;;  %v9181_v59 = vor.u32 %v10906_v6, %v9180_v29  ;;  %v9604_v10 = vld [vmem:[#allocation9 + $0x2c0] sm:$0xf] }
 0x277   : > { %4824 = vmatpush.bf16.msra.mxu2 %v9005_v62  ;;  %v9057_v14 = vor.u32 %v10872_v45, %v9054_v35  ;;  %v10675_v62 = vld [vmem:[#allocation9 + $0x44] sm:$0xf]  ;;  %v10916_v30 = vld [vmem:[#allocation9 + $0x7cc] sm:$0xf]  ;;  %v9373_v45 = vor.u32 %v10698_v25, %v9372_v16  ;;  %v10757_v35 = vld [vmem:[#allocation9 + $0x2cc] sm:$0xf0] }
 0x278   : > { %v12113_v20 = vsel %vm807_vm1, %v4027_v52, %v4031_v31  ;;  %v9289_v9 = vor.u32 %v10675_v62, %v9286_v58  ;;  %v9396_v52 = vld [vmem:[#allocation9 + $0x120] sm:$0xf]  ;;  %v10723_v29 = vld [vmem:[#allocation9 + $0x1c4] sm:$0xf]  ;;  %v9478_v6 = vld [vmem:[#allocation9 + $0x1d0] sm:$0xf0] }
 0x279   : > { %4727 = vmatmul.bf16.vlgmr.msra.gmra.mxu3 %v12113_v20  ;;  %4867 = vmatmul.bf16.vlgmr.msrb.gmra.mxu1 %v12070_v47  ;;  %v9213_v47 = vor.u32 %v10914_v50, %v9212_v27  ;;  %v10667_v27 = vld [vmem:[#allocation9 + $0x4] sm:$0xf]  ;;  %v9254_v50 = vld [vmem:[#allocation9 + $0x10] sm:$0xf0]  ;;  %v9481_v62 = vor.u32 %v10723_v29, %v9478_v6  ;;  %v10912_v58 = vld [vmem:[#allocation9 + $0x7ac] sm:$0xf] }
 0x27a   : > { %5597 = vmatpush.bf16.msrb.mxu0 %v9369_v61  ;;  %5555 = vmatpush.bf16.msra.mxu1 %v9493_v44  ;;  %v10709_v61 = vld [vmem:[#allocation9 + $0x14c] sm:$0xf0]  ;;  %v10868_v44 = vld [vmem:[#allocation9 + $0x64c] sm:$0xf]  ;;  %v9257_v54 = vor.u32 %v10667_v27, %v9254_v50  ;;  %v10711_v50 = vld [vmem:[#allocation9 + $0x164] sm:$0xf] }
 0x27b   : > { %4873 = vmatpush.bf16.msrb.mxu2 %v9121_v23  ;;  %4831 = vmatpush.bf16.msra.mxu3 %v9245_v36  ;;  %v9164_v23 = vld [vmem:[#allocation9 + $0x748] sm:$0xf]  ;;  %v9413_v12 = vor.u32 %v10709_v61, %v9412_v4  ;;  %v9041_v31 = vor.u32 %v10868_v44, %v9038_v17  ;;  %v10705_v36 = vld [vmem:[#allocation9 + $0x12c] sm:$0xf0]  ;;  %v10694_v4 = vld [vmem:[#allocation9 + $0xd4] sm:$0xf0]  ;;  %v9605_v61 = vor.u32 %v10757_v35, %v9604_v10 }
 0x27c   : > { %5549 = vmatmul.bf16.vlgmr.msra.gmra.mxu0 %v12117_v33  ;;  %4825 = vmatmul.bf16.vlgmr.msra.gmra.mxu2 %v12095_v21  ;;  %v9165_v18 = vor.u32 %v10902_v39, %v9164_v23  ;;  %v9397_v24 = vor.u32 %v10705_v36, %v9396_v52  ;;  %v10753_v23 = vld [vmem:[#allocation9 + $0x2ac] sm:$0xf0]  ;;  %v10719_v39 = vld [vmem:[#allocation9 + $0x1a4] sm:$0xf]  ;;  %v9340_v52 = vld [vmem:[#allocation9 + $0xa8] sm:$0xf] }
 0x27d   : > { %v10745_v27 = vld [vmem:[#allocation9 + $0x26c] sm:$0xf0]  ;;  %v10707_v25 = vld [vmem:[#allocation9 + $0x144] sm:$0xf]  ;;  %v10896_v10 = vld [vmem:[#allocation9 + $0x72c] sm:$0xf] }
 0x27e   : > { %5556 = vmatpush.bf16.msra.mxu1 %v9477_v49  ;;  %5598 = vmatpush.bf16.msrb.mxu0 %v9353_v53  ;;  %v9148_v49 = vld [vmem:[#allocation9 + $0x728] sm:$0xf]  ;;  %v10898_v53 = vld [vmem:[#allocation9 + $0x734] sm:$0xf0]  ;;  %v10741_v16 = vld [vmem:[#allocation9 + $0x24c] sm:$0xf0] }
 0x27f   : > { %4874 = vmatpush.bf16.msrb.mxu2 %v9105_v3  ;;  %4832 = vmatpush.bf16.msra.mxu3 %v9229_v43  ;;  %v9273_v3 = vor.u32 %v10671_v37, %v9270_v56  ;;  %v9132_v43 = vld [vmem:[#allocation9 + $0x708] sm:$0xf]  ;;  %v10908_v37 = vld [vmem:[#allocation9 + $0x78c] sm:$0xf]  ;;  %v9572_v56 = vld [vmem:[#allocation9 + $0x280] sm:$0xf] }
 0x280   : > { %v9133_v1 = vor.u32 %v10894_v28, %v9132_v43  ;;  %v9556_v43 = vld [vmem:[#allocation9 + $0x260] sm:$0xf]  ;;  %v10737_v29 = vld [vmem:[#allocation9 + $0x22c] sm:$0xf0]  ;;  %v10703_v6 = vld [vmem:[#allocation9 + $0x124] sm:$0xf] }
 0x282   : > { %5557 = vmatpush.bf16.msra.mxu1 %v9461_v32  ;;  %5599 = vmatpush.bf16.msrb.mxu0 %v9337_v51  ;;  %v9149_v32 = vor.u32 %v10898_v53, %v9148_v49  ;;  %v9006_v51 = vld [vmem:[#allocation9 + $0x618] sm:$0xf0]  ;;  %v9446_v49 = vld [vmem:[#allocation9 + $0x190] sm:$0xf0] }
 0x283   : > { %4875 = vmatpush.bf16.msrb.mxu2 %v9089_v0  ;;  %4833 = vmatpush.bf16.msra.mxu3 %v9213_v47  ;;  %v9494_v0 = vld [vmem:[#allocation9 + $0x1f0] sm:$0xf0]  ;;  %v9381_v47 = vor.u32 %v10701_v2, %v9380_v34  ;;  %v9198_v53 = vld [vmem:[#allocation9 + $0x798] sm:$0xf0]  ;;  %v9449_v34 = vor.u32 %v10715_v13, %v9446_v49  ;;  %v10730_v49 = vld [vmem:[#allocation9 + $0x1f4] sm:$0xf0] }
 0x284   : > { %v9201_v28 = vor.u32 %v10908_v37, %v9198_v53  ;;  %v10793_v37 = vld [vmem:[#allocation9 + $0x3ec] sm:$0xf0]  ;;  %v10696_v53 = vld [vmem:[#allocation9 + $0xec] sm:$0xf] }
 0x286   : > { %5558 = vmatpush.bf16.msra.mxu1 %v9445_v19  ;;  %5600 = vmatpush.bf16.msrb.mxu0 %v9321_v11  ;;  %v9009_v19 = vor.u32 %v10860_v5, %v9006_v51  ;;  %v9497_v11 = vor.u32 %v10727_v46, %v9494_v0  ;;  %v9182_v51 = vld [vmem:[#allocation9 + $0x778] sm:$0xf0]  ;;  %v9308_v46 = vld [vmem:[#allocation9 + $0x68] sm:$0xf]  ;;  %v10682_v0 = vld [vmem:[#allocation9 + $0x74] sm:$0xf0] }
 0x287   : > { %4876 = vmatpush.bf16.msrb.mxu2 %v9073_v48  ;;  %4834 = vmatpush.bf16.msra.mxu3 %v9197_v42  ;;  %v9621_v48 = vor.u32 %v10761_v38, %v9620_v26  ;;  %v9249_v42 = vor.u32 %v10920_v63, %v9246_v41  ;;  %v9557_v63 = vor.u32 %v10745_v27, %v9556_v43  ;;  %v10900_v38 = vld [vmem:[#allocation9 + $0x74c] sm:$0xf]  ;;  %v10789_v27 = vld [vmem:[#allocation9 + $0x3cc] sm:$0xf0] }
 0x288   : > { %v9309_v41 = vor.u32 %v10682_v0, %v9308_v46  ;;  %v9606_v46 = vld [vmem:[#allocation9 + $0x2d0] sm:$0xf0]  ;;  %v9484_v0 = vld [vmem:[#allocation9 + $0x1c8] sm:$0xf] }
 0x289   : > { %4783 = vmatmul.bf16.vlgmr.msrb.gmra.mxu3 %v12113_v20 }
 0x28a   : > { %5559 = vmatpush.bf16.msra.mxu1 %v9429_v57  ;;  %5601 = vmatpush.bf16.msrb.mxu0 %v9305_v8  ;;  %v9230_v57 = vld [vmem:[#allocation9 + $0x7d8] sm:$0xf0]  ;;  %v9356_v8 = vld [vmem:[#allocation9 + $0xc8] sm:$0xf] }
 0x28b   : > { %4877 = vmatpush.bf16.msrb.mxu2 %v9057_v14  ;;  %4835 = vmatpush.bf16.msra.mxu3 %v9181_v59  ;;  %v12124_v14 = vpack.c.bf16 %v12058_v7, %v3701_v40  ;;  %v9588_v59 = vld [vmem:[#allocation9 + $0x2a0] sm:$0xf]  ;;  %v9233_v44 = vor.u32 %v10916_v30, %v9230_v57  ;;  %v9357_v17 = vor.u32 %v10694_v4, %v9356_v8  ;;  %v9398_v57 = vld [vmem:[#allocation9 + $0x130] sm:$0xf0]  ;;  %v9150_v8 = vld [vmem:[#allocation9 + $0x738] sm:$0xf0] }
 0x28c   : > { %v9589_v7 = vor.u32 %v10753_v23, %v9588_v59  ;;  %v9276_v4 = vld [vmem:[#allocation9 + $0x28] sm:$0xf]  ;;  %v10892_v59 = vld [vmem:[#allocation9 + $0x70c] sm:$0xf]  ;;  %v10733_v23 = vld [vmem:[#allocation9 + $0x20c] sm:$0xf0] }
 0x28e   : > { %5560 = vmatpush.bf16.msra.mxu1 %v9413_v12  ;;  %5602 = vmatpush.bf16.msrb.mxu0 %v9289_v9  ;;  %v9462_v12 = vld [vmem:[#allocation9 + $0x1b0] sm:$0xf0]  ;;  %v9214_v9 = vld [vmem:[#allocation9 + $0x7b8] sm:$0xf0] }
 0x28f   : > { %4878 = vmatpush.bf16.msrb.mxu2 %v9041_v31  ;;  %4836 = vmatpush.bf16.msra.mxu3 %v9165_v18  ;;  %v10690_v31 = vld [vmem:[#allocation9 + $0xb4] sm:$0xf0]  ;;  %v9465_v36 = vor.u32 %v10719_v39, %v9462_v12  ;;  %v9217_v18 = vor.u32 %v10912_v58, %v9214_v9  ;;  %v9401_v58 = vor.u32 %v10703_v6, %v9398_v57  ;;  %v10699_v9 = vld [vmem:[#allocation9 + $0x104] sm:$0xf] }
 0x290   : > { %v9341_v22 = vor.u32 %v10690_v31, %v9340_v52  ;;  %v9153_v39 = vor.u32 %v10896_v10, %v9150_v8  ;;  %v9382_v52 = vld [vmem:[#allocation9 + $0x110] sm:$0xf0]  ;;  %v9260_v31 = vld [vmem:[#allocation9 + $0x8] sm:$0xf]  ;;  %v10688_v10 = vld [vmem:[#allocation9 + $0xac] sm:$0xf] }
 0x291   : > { %v9385_v13 = vor.u32 %v10699_v9, %v9382_v52  ;;  %v9574_v8 = vld [vmem:[#allocation9 + $0x290] sm:$0xf0] }
 0x292   : > { %5561 = vmatpush.bf16.msra.mxu1 %v9397_v24  ;;  %5603 = vmatpush.bf16.msrb.mxu0 %v9273_v3  ;;  %v9324_v24 = vld [vmem:[#allocation9 + $0x88] sm:$0xf]  ;;  %v10686_v3 = vld [vmem:[#allocation9 + $0x94] sm:$0xf0] }
 0x293   : > { %4879 = vmatpush.bf16.msrb.mxu2 %v9025_v15  ;;  %4837 = vmatpush.bf16.msra.mxu3 %v9149_v32  ;;  %v10904_v15 = vld [vmem:[#allocation9 + $0x76c] sm:$0xf]  ;;  %v9325_v2 = vor.u32 %v10686_v3, %v9324_v24  ;;  %v9430_v32 = vld [vmem:[#allocation9 + $0x170] sm:$0xf0]  ;;  %v9374_v24 = vld [vmem:[#allocation9 + $0xf8] sm:$0xf0] }
 0x294   : > { %v9433_v26 = vor.u32 %v10711_v50, %v9430_v32  ;;  %v9377_v32 = vor.u32 %v10696_v53, %v9374_v24 }
 0x296   : > { %5562 = vmatpush.bf16.msra.mxu1 %v9381_v47  ;;  %5604 = vmatpush.bf16.msrb.mxu0 %v9257_v54  ;;  %v9540_v47 = vld [vmem:[#allocation9 + $0x240] sm:$0xf]  ;;  %v9185_v54 = vor.u32 %v10904_v15, %v9182_v51  ;;  %v10755_v51 = vld [vmem:[#allocation9 + $0x2c4] sm:$0xf] }
 0x297   : > { %4880 = vmatpush.bf16.msrb.mxu2 %v9009_v19  ;;  %4838 = vmatpush.bf16.msra.mxu3 %v9133_v1  ;;  %v9414_v19 = vld [vmem:[#allocation9 + $0x150] sm:$0xf0]  ;;  %v9292_v1 = vld [vmem:[#allocation9 + $0x48] sm:$0xf]  ;;  %v9541_v40 = vor.u32 %v10741_v16, %v9540_v47  ;;  %v9716_v16 = vld [vmem:[#allocation9 + $0x3a0] sm:$0xf] }
 0x298   : > { %v9417_v30 = vor.u32 %v10707_v25, %v9414_v19  ;;  %v10785_v25 = vld [vmem:[#allocation9 + $0x3ac] sm:$0xf0] }
 0x299   : > { %5563 = vmatmul.bf16.vlgmr.msra.gmra.mxu1 %v12124_v14  ;;  %5605 = vmatmul.bf16.vlgmr.msrb.gmra.mxu0 %v12117_v33 }
 0x29a   : > { %5611 = vmatpush.bf16.msrb.mxu1 %v9497_v11  ;;  %5653 = vmatpush.bf16.msra.mxu0 %v9373_v45  ;;  %v9166_v11 = vld [vmem:[#allocation9 + $0x758] sm:$0xf0] }
 0x29b   : > { %5569 = vmatpush.bf16.msra.mxu2 %v9621_v48  ;;  %4887 = vmatpush.bf16.msrb.mxu3 %v9249_v42  ;;  %v10678_v48 = vld [vmem:[#allocation9 + $0x54] sm:$0xf0]  ;;  %v9524_v42 = vld [vmem:[#allocation9 + $0x220] sm:$0xf]  ;;  %v9169_v45 = vor.u32 %v10900_v38, %v9166_v11  ;;  %v9358_v38 = vld [vmem:[#allocation9 + $0xd8] sm:$0xf0] }
 0x29c   : > { %4881 = vmatmul.bf16.vlgmr.msrb.gmra.mxu2 %v12095_v21  ;;  %4839 = vmatmul.bf16.vlgmr.msra.gmra.mxu3 %v12113_v20  ;;  %v10749_v21 = vld [vmem:[#allocation9 + $0x28c] sm:$0xf0]  ;;  %v9293_v35 = vor.u32 %v10678_v48, %v9292_v1  ;;  %v10751_v1 = vld [vmem:[#allocation9 + $0x2a4] sm:$0xf]  ;;  %v9590_v48 = vld [vmem:[#allocation9 + $0x2b0] sm:$0xf0] }
 0x29d   : > { %v9573_v5 = vor.u32 %v10749_v21, %v9572_v56  ;;  %v10759_v56 = vld [vmem:[#allocation9 + $0x2e4] sm:$0xf] }
 0x29e   : > { %5612 = vmatpush.bf16.msrb.mxu1 %v9481_v62  ;;  %5654 = vmatpush.bf16.msra.mxu0 %v9357_v17  ;;  %v9525_v62 = vor.u32 %v10737_v29, %v9524_v42  ;;  %v9508_v17 = vld [vmem:[#allocation9 + $0x200] sm:$0xf]  ;;  %v9342_v42 = vld [vmem:[#allocation9 + $0xb8] sm:$0xf0]  ;;  %v10781_v29 = vld [vmem:[#allocation9 + $0x38c] sm:$0xf0] }
 0x29f   : > { %5570 = vmatpush.bf16.msra.mxu2 %v9605_v61  ;;  %4888 = vmatpush.bf16.msrb.mxu3 %v9233_v44  ;;  %v10674_v61 = vld [vmem:[#allocation9 + $0x34] sm:$0xf0]  ;;  %v9134_v44 = vld [vmem:[#allocation9 + $0x718] sm:$0xf0]  ;;  %v9509_v21 = vor.u32 %v10733_v23, %v9508_v17  ;;  %v9345_v57 = vor.u32 %v10688_v10, %v9342_v42  ;;  %v10731_v10 = vld [vmem:[#allocation9 + $0x204] sm:$0xf] }
 0x2a0   : > { %v9277_v12 = vor.u32 %v10674_v61, %v9276_v4  ;;  %v9137_v3 = vor.u32 %v10892_v59, %v9134_v44  ;;  %v9452_v4 = vld [vmem:[#allocation9 + $0x188] sm:$0xf]  ;;  %v10684_v59 = vld [vmem:[#allocation9 + $0x8c] sm:$0xf]  ;;  %v9326_v44 = vld [vmem:[#allocation9 + $0x98] sm:$0xf0] }
 0x2a1   : > { %v9329_v52 = vor.u32 %v10684_v59, %v9326_v44  ;;  %v9510_v42 = vld [vmem:[#allocation9 + $0x210] sm:$0xf0]  ;;  %v10762_v59 = vld [vmem:[#allocation9 + $0x2f4] sm:$0xf0]  ;;  %v10728_v44 = vld [vmem:[#allocation9 + $0x1ec] sm:$0xf] }
 0x2a2   : > { %5613 = vmatpush.bf16.msrb.mxu1 %v9465_v36  ;;  %5655 = vmatpush.bf16.msra.mxu0 %v9341_v22  ;;  %v9748_v36 = vld [vmem:[#allocation9 + $0x3e0] sm:$0xf]  ;;  %v9500_v22 = vld [vmem:[#allocation9 + $0x1e8] sm:$0xf] }
 0x2a3   : > { %5571 = vmatpush.bf16.msra.mxu2 %v9589_v7  ;;  %4889 = vmatpush.bf16.msrb.mxu3 %v9217_v18  ;;  %v10670_v7 = vld [vmem:[#allocation9 + $0x14] sm:$0xf0]  ;;  %v9622_v18 = vld [vmem:[#allocation9 + $0x2f0] sm:$0xf0]  ;;  %v9749_v15 = vor.u32 %v10793_v37, %v9748_v36  ;;  %v9501_v50 = vor.u32 %v10730_v49, %v9500_v22  ;;  %v9436_v36 = vld [vmem:[#allocation9 + $0x168] sm:$0xf] }
 0x2a4   : > { %v9625_v43 = vor.u32 %v10759_v56, %v9622_v18  ;;  %v10714_v37 = vld [vmem:[#allocation9 + $0x174] sm:$0xf0]  ;;  %v10680_v56 = vld [vmem:[#allocation9 + $0x6c] sm:$0xf]  ;;  %v9310_v18 = vld [vmem:[#allocation9 + $0x78] sm:$0xf0] }
 0x2a5   : > { %v10773_v49 = vld [vmem:[#allocation9 + $0x34c] sm:$0xf0]  ;;  %v9437_v53 = vor.u32 %v10714_v37, %v9436_v36  ;;  %v9313_v24 = vor.u32 %v10680_v56, %v9310_v18  ;;  %v3703_v56 = vld [vmem:[#allocation2 + $0x18] sm:$0xff]  ;;  %v10787_v18 = vld [vmem:[#allocation9 + $0x3c4] sm:$0xf] }
 0x2a6   : > { %5614 = vmatpush.bf16.msrb.mxu1 %v9449_v34  ;;  %5656 = vmatpush.bf16.msra.mxu0 %v9325_v2  ;;  %v12130_v34 = vpop.f32.mrf.mxu0  ;;  %v9732_v2 = vld [vmem:[#allocation9 + $0x3c0] sm:$0xf] }
 0x2a7   : > { %5572 = vmatpush.bf16.msra.mxu2 %v9573_v5  ;;  %4890 = vmatpush.bf16.msrb.mxu3 %v9201_v28  ;;  %v9261_v5 = vor.u32 %v10670_v7, %v9260_v31  ;;  %v3702_v28 = vld [vmem:[#allocation2 + $0x10] sm:$0xff]  ;;  %v10743_v31 = vld [vmem:[#allocation9 + $0x264] sm:$0xf]  ;;  %v9558_v7 = vld [vmem:[#allocation9 + $0x270] sm:$0xf0] }
 0x2a8   : > { %v12133_v47 = vpack.c.bf16 %v12083_v55, %v3702_v28  ;;  %v9717_v55 = vor.u32 %v10785_v25, %v9716_v16  ;;  %v10710_v28 = vld [vmem:[#allocation9 + $0x154] sm:$0xf0]  ;;  %v9404_v16 = vld [vmem:[#allocation9 + $0x128] sm:$0xf] }
 0x2a9   : > { %v10706_v25 = vld [vmem:[#allocation9 + $0x134] sm:$0xf0] }
 0x2aa   : > { %5615 = vmatpush.bf16.msrb.mxu1 %v9433_v26  ;;  %5657 = vmatpush.bf16.msra.mxu0 %v9309_v41  ;;  %v10692_v26 = vld [vmem:[#allocation9 + $0xcc] sm:$0xf]  ;;  %v9609_v41 = vor.u32 %v10755_v51, %v9606_v46 }
 0x2ab   : > { %5573 = vmatpush.bf16.msra.mxu2 %v9557_v63  ;;  %4891 = vmatpush.bf16.msrb.mxu3 %v9185_v54  ;;  %v10726_v63 = vld [vmem:[#allocation9 + $0x1d4] sm:$0xf0]  ;;  %v9733_v54 = vor.u32 %v10789_v27, %v9732_v2  ;;  %v9361_v11 = vor.u32 %v10692_v26, %v9358_v38  ;;  %v10676_v2 = vld [vmem:[#allocation9 + $0x4c] sm:$0xf]  ;;  %v9294_v27 = vld [vmem:[#allocation9 + $0x58] sm:$0xf0] }
 0x2ac   : > { %v9485_v19 = vor.u32 %v10726_v63, %v9484_v0  ;;  %v9652_v0 = vld [vmem:[#allocation9 + $0x320] sm:$0xf]  ;;  %v10769_v63 = vld [vmem:[#allocation9 + $0x32c] sm:$0xf0]  ;;  %v9297_v38 = vor.u32 %v10676_v2, %v9294_v27 }
 0x2ae   : > { %5616 = vmatpush.bf16.msrb.mxu1 %v9417_v30  ;;  %5658 = vmatpush.bf16.msra.mxu0 %v9293_v35  ;;  %v10722_v30 = vld [vmem:[#allocation9 + $0x1b4] sm:$0xf0]  ;;  %v9700_v35 = vld [vmem:[#allocation9 + $0x380] sm:$0xf]  ;;  %v4688_v61 = vpop.f32.mrf.mxu0 }
 0x2af   : > { %5574 = vmatpush.bf16.msra.mxu2 %v9541_v40  ;;  %4892 = vmatpush.bf16.msrb.mxu3 %v9169_v45  ;;  %v9468_v40 = vld [vmem:[#allocation9 + $0x1a8] sm:$0xf]  ;;  %v9593_v45 = vor.u32 %v10751_v1, %v9590_v48  ;;  %v9701_v17 = vor.u32 %v10781_v29, %v9700_v35  ;;  %v9636_v1 = vld [vmem:[#allocation9 + $0x300] sm:$0xf]  ;;  %v9653_v48 = vor.u32 %v10769_v63, %v9652_v0  ;;  %v10702_v29 = vld [vmem:[#allocation9 + $0x114] sm:$0xf0] }
 0x2b0   : > { %v9469_v6 = vor.u32 %v10722_v30, %v9468_v40  ;;  %v10765_v30 = vld [vmem:[#allocation9 + $0x30c] sm:$0xf0]  ;;  %v9388_v35 = vld [vmem:[#allocation9 + $0x108] sm:$0xf] }
 0x2b2   : > { %5617 = vmatpush.bf16.msrb.mxu1 %v9401_v58  ;;  %5659 = vmatpush.bf16.msra.mxu0 %v9277_v12  ;;  %v10718_v58 = vld [vmem:[#allocation9 + $0x194] sm:$0xf0]  ;;  %v10777_v12 = vld [vmem:[#allocation9 + $0x36c] sm:$0xf0] }
 0x2b3   : > { %5575 = vmatpush.bf16.msra.mxu2 %v9525_v62  ;;  %4893 = vmatpush.bf16.msrb.mxu3 %v9153_v39  ;;  %v9684_v39 = vld [vmem:[#allocation9 + $0x360] sm:$0xf]  ;;  %v9453_v9 = vor.u32 %v10718_v58, %v9452_v4  ;;  %v9750_v4 = vld [vmem:[#allocation9 + $0x3f0] sm:$0xf0]  ;;  %v9628_v58 = vld [vmem:[#allocation9 + $0x2e8] sm:$0xf] }
 0x2b4   : > { %v9685_v22 = vor.u32 %v10777_v12, %v9684_v39  ;;  %v9502_v39 = vld [vmem:[#allocation9 + $0x1f8] sm:$0xf0]  ;;  %v9876_v12 = vld [vmem:[#allocation9 + $0x8e0] sm:$0xf]  ;;  %v9629_v37 = vor.u32 %v10762_v59, %v9628_v58 }
 0x2b6   : > { %5618 = vmatpush.bf16.msrb.mxu1 %v9385_v13  ;;  %5660 = vmatpush.bf16.msra.mxu0 %v9261_v5  ;;  %v12139_v62 = vpop.f32.mrf.mxu1  ;;  %v9668_v13 = vld [vmem:[#allocation9 + $0x340] sm:$0xf]  ;;  %v9542_v5 = vld [vmem:[#allocation9 + $0x250] sm:$0xf0] }
 0x2b7   : > { %5576 = vmatpush.bf16.msra.mxu2 %v9509_v21  ;;  %4894 = vmatpush.bf16.msrb.mxu3 %v9137_v3  ;;  %v9561_v21 = vor.u32 %v10743_v31, %v9558_v7  ;;  %v10739_v3 = vld [vmem:[#allocation9 + $0x244] sm:$0xf]  ;;  %v9669_v51 = vor.u32 %v10773_v49, %v9668_v13  ;;  %v9612_v49 = vld [vmem:[#allocation9 + $0x2c8] sm:$0xf] }
 0x2b8   : > { %v9545_v46 = vor.u32 %v10739_v3, %v9542_v5  ;;  %v9486_v3 = vld [vmem:[#allocation9 + $0x1d8] sm:$0xf0]  ;;  %v9860_v5 = vld [vmem:[#allocation9 + $0x8c0] sm:$0xf] }
 0x2b9   : > { %5619 = vmatmul.bf16.vlgmr.msrb.gmra.mxu1 %v12124_v14  ;;  %5661 = vmatmul.bf16.vlgmr.msra.gmra.mxu0 %v12117_v33 }
 0x2ba   : > { %5667 = vmatpush.bf16.msra.mxu1 %v9501_v50  ;;  %5709 = vmatpush.bf16.msrb.mxu0 %v9377_v32  ;;  %v4742_v32 = vpop.f32.mrf.mxu0 }
 0x2bb   : > { %5583 = vmatpush.bf16.msra.mxu3 %v9749_v15  ;;  %5625 = vmatpush.bf16.msrb.mxu2 %v9625_v43  ;;  %v9420_v15 = vld [vmem:[#allocation9 + $0x148] sm:$0xf] }
 0x2bc   : > { %4895 = vmatmul.bf16.vlgmr.msrb.gmra.mxu3 %v12113_v20  ;;  %5577 = vmatmul.bf16.vlgmr.msra.gmra.mxu2 %v12133_v47  ;;  %v10747_v20 = vld [vmem:[#allocation9 + $0x284] sm:$0xf]  ;;  %v9421_v26 = vor.u32 %v10710_v28, %v9420_v15  ;;  %v10949_v15 = vld [vmem:[#allocation9 + $0x8cc] sm:$0xf0] }
 0x2bd   : > { %v9577_v23 = vor.u32 %v10747_v20, %v9574_v8  ;;  %v9262_v20 = vld [vmem:[#allocation9 + $0x18] sm:$0xf0]  ;;  %v10791_v8 = vld [vmem:[#allocation9 + $0x3e4] sm:$0xf]  ;;  %v9861_v63 = vor.u32 %v10949_v15, %v9860_v5 }
 0x2be   : > { %5668 = vmatpush.bf16.msra.mxu1 %v9485_v19  ;;  %5710 = vmatpush.bf16.msrb.mxu0 %v9361_v11  ;;  %v4702_v43 = vpop.f32.mrf.mxu1  ;;  %v10672_v19 = vld [vmem:[#allocation9 + $0x2c] sm:$0xf]  ;;  %v9278_v11 = vld [vmem:[#allocation9 + $0x38] sm:$0xf0]  ;;  %v9753_v36 = vor.u32 %v10791_v8, %v9750_v4  ;;  %v9686_v8 = vld [vmem:[#allocation9 + $0x370] sm:$0xf0] }
 0x2bf   : > { %5584 = vmatpush.bf16.msra.mxu3 %v9733_v54  ;;  %5626 = vmatpush.bf16.msrb.mxu2 %v9609_v41  ;;  %v12141_v50 = vadd.f32 %v4702_v43, %v4688_v61  ;;  %v10735_v54 = vld [vmem:[#allocation9 + $0x224] sm:$0xf]  ;;  %v9526_v41 = vld [vmem:[#allocation9 + $0x230] sm:$0xf0]  ;;  %v12146_v43 = vpack.c.bf16 %v12107_v60, %v3703_v56  ;;  %v9470_v60 = vld [vmem:[#allocation9 + $0x1b8] sm:$0xf0] }
 0x2c0   : > { %v9529_v40 = vor.u32 %v10735_v54, %v9526_v41  ;;  %v10720_v54 = vld [vmem:[#allocation9 + $0x1ac] sm:$0xf]  ;;  %v9844_v41 = vld [vmem:[#allocation9 + $0x8a0] sm:$0xf] }
 0x2c2   : > { %5669 = vmatpush.bf16.msra.mxu1 %v9469_v6  ;;  %5711 = vmatpush.bf16.msrb.mxu0 %v9345_v57  ;;  %v10668_v6 = vld [vmem:[#allocation9 + $0xc] sm:$0xf]  ;;  %v4744_v7 = vpop.f32.mrf.mxu0 }
 0x2c3   : > { %5585 = vmatpush.bf16.msra.mxu3 %v9717_v55  ;;  %5627 = vmatpush.bf16.msrb.mxu2 %v9593_v45  ;;  %v9405_v55 = vor.u32 %v10706_v25, %v9404_v16  ;;  %v9281_v45 = vor.u32 %v10672_v19, %v9278_v11  ;;  %v9265_v31 = vor.u32 %v10668_v6, %v9262_v20  ;;  %v10945_v16 = vld [vmem:[#allocation9 + $0x8ac] sm:$0xf0]  ;;  %v10779_v11 = vld [vmem:[#allocation9 + $0x384] sm:$0xf] }
 0x2c4   : > { %v10775_v20 = vld [vmem:[#allocation9 + $0x364] sm:$0xf] }
 0x2c6   : > { %5670 = vmatpush.bf16.msra.mxu1 %v9453_v9  ;;  %5712 = vmatpush.bf16.msrb.mxu0 %v9329_v52  ;;  %v4756_v57 = vpop.f32.mrf.mxu1  ;;  %v10953_v9 = vld [vmem:[#allocation9 + $0x8ec] sm:$0xf0]  ;;  %v9389_v52 = vor.u32 %v10702_v29, %v9388_v35  ;;  %v9828_v35 = vld [vmem:[#allocation9 + $0x880] sm:$0xf] }
 0x2c7   : > { %5586 = vmatpush.bf16.msra.mxu3 %v9701_v17  ;;  %5628 = vmatpush.bf16.msrb.mxu2 %v9577_v23  ;;  %v12143_v61 = vadd.f32 %v4756_v57, %v4742_v32  ;;  %v9637_v17 = vor.u32 %v10765_v30, %v9636_v1  ;;  %v9513_v23 = vor.u32 %v10731_v10, %v9510_v42  ;;  %v10783_v32 = vld [vmem:[#allocation9 + $0x3a4] sm:$0xf]  ;;  %v9702_v1 = vld [vmem:[#allocation9 + $0x390] sm:$0xf0]  ;;  %v9580_v30 = vld [vmem:[#allocation9 + $0x288] sm:$0xf] }
 0x2c8   : > { %v9877_v13 = vor.u32 %v10953_v9, %v9876_v12  ;;  %v10750_v10 = vld [vmem:[#allocation9 + $0x294] sm:$0xf0]  ;;  %v10716_v42 = vld [vmem:[#allocation9 + $0x18c] sm:$0xf]  ;;  %v10941_v29 = vld [vmem:[#allocation9 + $0x88c] sm:$0xf0]  ;;  %v9705_v6 = vor.u32 %v10779_v11, %v9702_v1 }
 0x2c9   : > { %v9581_v57 = vor.u32 %v10750_v10, %v9580_v30  ;;  %v9829_v59 = vor.u32 %v10941_v29, %v9828_v35  ;;  %v9812_v12 = vld [vmem:[#allocation9 + $0x860] sm:$0xf]  ;;  %v10937_v9 = vld [vmem:[#allocation9 + $0x86c] sm:$0xf0]  ;;  %v10734_v30 = vld [vmem:[#allocation9 + $0x214] sm:$0xf0] }
 0x2ca   : > { %5671 = vmatpush.bf16.msra.mxu1 %v9437_v53  ;;  %5713 = vmatpush.bf16.msrb.mxu0 %v9313_v24  ;;  %v10758_v53 = vld [vmem:[#allocation9 + $0x2d4] sm:$0xf0]  ;;  %v10724_v24 = vld [vmem:[#allocation9 + $0x1cc] sm:$0xf]  ;;  %v9390_v35 = vld [vmem:[#allocation9 + $0x118] sm:$0xf0] }
 0x2cb   : > { %5587 = vmatpush.bf16.msra.mxu3 %v9685_v22  ;;  %5629 = vmatpush.bf16.msrb.mxu2 %v9561_v21  ;;  %v9734_v22 = vld [vmem:[#allocation9 + $0x3d0] sm:$0xf0]  ;;  %v9505_v21 = vor.u32 %v10728_v44, %v9502_v39  ;;  %v9613_v27 = vor.u32 %v10758_v53, %v9612_v49  ;;  %v9489_v0 = vor.u32 %v10724_v24, %v9486_v3  ;;  %v9564_v44 = vld [vmem:[#allocation9 + $0x268] sm:$0xf]  ;;  %v9438_v39 = vld [vmem:[#allocation9 + $0x178] sm:$0xf0] }
 0x2cc   : > { %v9737_v2 = vor.u32 %v10787_v18, %v9734_v22  ;;  %v9813_v18 = vor.u32 %v10937_v9, %v9812_v12  ;;  %v9548_v22 = vld [vmem:[#allocation9 + $0x248] sm:$0xf]  ;;  %v9422_v49 = vld [vmem:[#allocation9 + $0x158] sm:$0xf0]  ;;  %v9796_v53 = vld [vmem:[#allocation9 + $0x840] sm:$0xf] }
 0x2cd   : > { %v10933_v24 = vld [vmem:[#allocation9 + $0x84c] sm:$0xf0]  ;;  %v9764_v29 = vld [vmem:[#allocation9 + $0x800] sm:$0xf]  ;;  %v9878_v12 = vld [vmem:[#allocation9 + $0x8f0] sm:$0xf0] }
 0x2ce   : > { %5672 = vmatpush.bf16.msra.mxu1 %v9421_v26  ;;  %5714 = vmatpush.bf16.msrb.mxu0 %v9297_v38  ;;  %v4758_v28 = vpop.f32.mrf.mxu1  ;;  %v9596_v26 = vld [vmem:[#allocation9 + $0x2a8] sm:$0xf]  ;;  %v10754_v38 = vld [vmem:[#allocation9 + $0x2b4] sm:$0xf0] }
 0x2cf   : > { %5588 = vmatpush.bf16.msra.mxu3 %v9669_v51  ;;  %5630 = vmatpush.bf16.msrb.mxu2 %v9545_v46  ;;  %v9718_v51 = vld [vmem:[#allocation9 + $0x3b0] sm:$0xf0]  ;;  %v12148_v46 = vadd.f32 %v4758_v28, %v4744_v7  ;;  %v9597_v19 = vor.u32 %v10754_v38, %v9596_v26  ;;  %v10738_v26 = vld [vmem:[#allocation9 + $0x234] sm:$0xf0]  ;;  %v10704_v38 = vld [vmem:[#allocation9 + $0x12c] sm:$0xf] }
 0x2d0   : > { %v9721_v25 = vor.u32 %v10783_v32, %v9718_v51 }
 0x2d2   : > { %5673 = vmatpush.bf16.msra.mxu1 %v9405_v55  ;;  %5715 = vmatpush.bf16.msrb.mxu0 %v9281_v45  ;;  %v4798_v55 = vpop.f32.mrf.mxu0  ;;  %v9454_v45 = vld [vmem:[#allocation9 + $0x198] sm:$0xf0] }
 0x2d3   : > { %5589 = vmatpush.bf16.msra.mxu3 %v9653_v48  ;;  %5631 = vmatpush.bf16.msrb.mxu2 %v9529_v40  ;;  %v9473_v48 = vor.u32 %v10720_v54, %v9470_v60  ;;  %v9845_v40 = vor.u32 %v10945_v16, %v9844_v41  ;;  %v9457_v58 = vor.u32 %v10716_v42, %v9454_v45  ;;  %v9406_v54 = vld [vmem:[#allocation9 + $0x138] sm:$0xf0]  ;;  %v9780_v60 = vld [vmem:[#allocation9 + $0x820] sm:$0xf]  ;;  %v10929_v41 = vld [vmem:[#allocation9 + $0x82c] sm:$0xf0] }
 0x2d4   : > { %v10763_v16 = vld [vmem:[#allocation9 + $0x304] sm:$0xf]  ;;  %v9409_v42 = vor.u32 %v10704_v38, %v9406_v54  ;;  %v10700_v45 = vld [vmem:[#allocation9 + $0x10c] sm:$0xf]  ;;  %v9724_v38 = vld [vmem:[#allocation9 + $0x3a8] sm:$0xf] }
 0x2d5   : > { %v9393_v9 = vor.u32 %v10700_v45, %v9390_v35  ;;  %v10786_v54 = vld [vmem:[#allocation9 + $0x3b4] sm:$0xf0] }
 0x2d6   : > { %5674 = vmatpush.bf16.msra.mxu1 %v9389_v52  ;;  %5716 = vmatpush.bf16.msrb.mxu0 %v9265_v31  ;;  %v9689_v31 = vor.u32 %v10775_v20, %v9686_v8  ;;  %v10794_v20 = vld [vmem:[#allocation9 + $0x3f4] sm:$0xf0] }
 0x2d7   : > { %5590 = vmatpush.bf16.msra.mxu3 %v9637_v17  ;;  %5632 = vmatpush.bf16.msrb.mxu2 %v9513_v23  ;;  %v10746_v17 = vld [vmem:[#allocation9 + $0x274] sm:$0xf0]  ;;  %v10712_v23 = vld [vmem:[#allocation9 + $0x16c] sm:$0xf] }
 0x2d8   : > { %v9565_v7 = vor.u32 %v10746_v17, %v9564_v44  ;;  %v9441_v56 = vor.u32 %v10712_v23, %v9438_v39  ;;  %v10004_v44 = vld [vmem:[#allocation9 + $0x9e0] sm:$0xf]  ;;  %v10985_v39 = vld [vmem:[#allocation9 + $0x9ec] sm:$0xf0] }
 0x2d9   : > { %5675 = vmatmul.bf16.vlgmr.msra.gmra.mxu1 %v12124_v14  ;;  %5717 = vmatmul.bf16.vlgmr.msrb.gmra.mxu0 %v12117_v33  ;;  %v4812_v33 = vpop.f32.mrf.mxu1 }
 0x2da   : > { %5723 = vmatpush.bf16.msrb.mxu1 %v9505_v21  ;;  %6574 = vmatpush.bf16.msra.mxu0 %v9877_v13  ;;  %v12154_v4 = vadd.f32 %v4812_v33, %v4798_v55  ;;  %v10742_v21 = vld [vmem:[#allocation9 + $0x254] sm:$0xf0]  ;;  %v10708_v13 = vld [vmem:[#allocation9 + $0x14c] sm:$0xf]  ;;  %v4800_v3 = vpop.f32.mrf.mxu0  ;;  %v9781_v55 = vor.u32 %v10929_v41, %v9780_v60  ;;  %v5765_v33 = vld [vmem:[#allocation2] sm:$0xfc] }
 0x2db   : > { %5639 = vmatpush.bf16.msrb.mxu3 %v9753_v36  ;;  %5681 = vmatpush.bf16.msra.mxu2 %v9629_v37  ;;  %v10771_v36 = vld [vmem:[#allocation9 + $0x344] sm:$0xf]  ;;  %v9670_v37 = vld [vmem:[#allocation9 + $0x350] sm:$0xf0]  ;;  %v9549_v28 = vor.u32 %v10742_v21, %v9548_v22  ;;  %v9425_v51 = vor.u32 %v10708_v13, %v9422_v49  ;;  %v9740_v21 = vld [vmem:[#allocation9 + $0x3c8] sm:$0xf]  ;;  %v10005_v49 = vor.u32 %v10985_v39, %v10004_v44 }
 0x2dc   : > { %5591 = vmatmul.bf16.vlgmr.msra.gmra.mxu3 %v12146_v43  ;;  %5633 = vmatmul.bf16.vlgmr.msrb.gmra.mxu2 %v12133_v47  ;;  %v12156_v52 = vpop.f32.mrf.mxu2  ;;  %v9673_v15 = vor.u32 %v10771_v36, %v9670_v37  ;;  %v10790_v13 = vld [vmem:[#allocation9 + $0x3d4] sm:$0xf0] }
 0x2de   : > { %5724 = vmatpush.bf16.msrb.mxu1 %v9489_v0  ;;  %6575 = vmatpush.bf16.msra.mxu0 %v9861_v63  ;;  %v9797_v0 = vor.u32 %v10933_v24, %v9796_v53  ;;  %v9532_v63 = vld [vmem:[#allocation9 + $0x228] sm:$0xf]  ;;  %v10756_v24 = vld [vmem:[#allocation9 + $0x2cc] sm:$0xf] }
 0x2df   : > { %5640 = vmatpush.bf16.msrb.mxu3 %v9737_v2  ;;  %5682 = vmatpush.bf16.msra.mxu2 %v9613_v27  ;;  %v10767_v2 = vld [vmem:[#allocation9 + $0x324] sm:$0xf]  ;;  %v9654_v27 = vld [vmem:[#allocation9 + $0x330] sm:$0xf0]  ;;  %v9533_v1 = vor.u32 %v10738_v26, %v9532_v63  ;;  %v9741_v63 = vor.u32 %v10790_v13, %v9740_v21 }
 0x2e0   : > { %v9657_v11 = vor.u32 %v10767_v2, %v9654_v27  ;;  %v10947_v2 = vld [vmem:[#allocation9 + $0x8c4] sm:$0xf]  ;;  %v9862_v27 = vld [vmem:[#allocation9 + $0x8d0] sm:$0xf0] }
 0x2e1   : > { %v4814_v5 = vpop.f32.mrf.mxu1  ;;  %v9865_v41 = vor.u32 %v10947_v2, %v9862_v27  ;;  %v9814_v21 = vld [vmem:[#allocation9 + $0x870] sm:$0xf0]  ;;  %v9924_v2 = vld [vmem:[#allocation9 + $0x940] sm:$0xf] }
 0x2e2   : > { %5725 = vmatpush.bf16.msrb.mxu1 %v9473_v48  ;;  %6576 = vmatpush.bf16.msra.mxu0 %v9845_v40  ;;  %v12158_v32 = vadd.f32 %v4814_v5, %v4800_v3  ;;  %v9638_v48 = vld [vmem:[#allocation9 + $0x310] sm:$0xf0]  ;;  %v9516_v40 = vld [vmem:[#allocation9 + $0x208] sm:$0xf]  ;;  %v9614_v3 = vld [vmem:[#allocation9 + $0x2d8] sm:$0xf0] }
 0x2e3   : > { %5641 = vmatpush.bf16.msrb.mxu3 %v9721_v25  ;;  %5683 = vmatpush.bf16.msra.mxu2 %v9597_v19  ;;  %v5769_v25 = vld [vmem:[#allocation2 + $0x40] sm:$0x3]  ;;  %v9641_v17 = vor.u32 %v10763_v16, %v9638_v48  ;;  %v9517_v23 = vor.u32 %v10734_v30, %v9516_v40  ;;  %v9988_v5 = vld [vmem:[#allocation9 + $0x9c0] sm:$0xf]  ;;  %v9617_v26 = vor.u32 %v10756_v24, %v9614_v3  ;;  %v10752_v16 = vld [vmem:[#allocation9 + $0x2ac] sm:$0xf] }
 0x2e4   : > { %v4716_v19 = vpop.f32.mrf.mxu2  ;;  %v5777_v8 = vpack.c.bf16 %v5769_v25, %v5769_v25  ;;  %v9598_v25 = vld [vmem:[#allocation9 + $0x2b8] sm:$0xf0]  ;;  %v9846_v48 = vld [vmem:[#allocation9 + $0x8b0] sm:$0xf0]  ;;  %v9725_v40 = vor.u32 %v10786_v54, %v9724_v38  ;;  %v9676_v24 = vld [vmem:[#allocation9 + $0x348] sm:$0xf] }
 0x2e5   : > { %v12161_v10 = vadd.f32 %v4716_v19, %v12141_v50  ;;  %v10951_v50 = vld [vmem:[#allocation9 + $0x8e4] sm:$0xf]  ;;  %v9972_v19 = vld [vmem:[#allocation9 + $0x9a0] sm:$0xf]  ;;  %v9601_v30 = vor.u32 %v10752_v16, %v9598_v25  ;;  %v10774_v3 = vld [vmem:[#allocation9 + $0x354] sm:$0xf0] }
 0x2e6   : > { %5726 = vmatpush.bf16.msrb.mxu1 %v9457_v58  ;;  %6577 = vmatpush.bf16.msra.mxu0 %v9829_v59  ;;  %v10760_v58 = vld [vmem:[#allocation9 + $0x2ec] sm:$0xf]  ;;  %v9630_v59 = vld [vmem:[#allocation9 + $0x2f8] sm:$0xf0]  ;;  %v5919_v22 = vrot.slane %v5777_v8, 1  ;;  %v9881_v53 = vor.u32 %v10951_v50, %v9878_v12  ;;  %v9677_v16 = vor.u32 %v10774_v3, %v9676_v24 }
 0x2e7   : > { %5642 = vmatpush.bf16.msrb.mxu3 %v9705_v6  ;;  %5684 = vmatpush.bf16.msra.mxu2 %v9581_v57  ;;  %v10925_v6 = vld [vmem:[#allocation9 + $0x80c] sm:$0xf0]  ;;  %v9756_v57 = vld [vmem:[#allocation9 + $0x3e8] sm:$0xf]  ;;  %v9633_v37 = vor.u32 %v10760_v58, %v9630_v59  ;;  %v10939_v58 = vld [vmem:[#allocation9 + $0x884] sm:$0xf] }
 0x2e8   : > { %v9757_v36 = vor.u32 %v10794_v20, %v9756_v57  ;;  %v10973_v8 = vld [vmem:[#allocation9 + $0x98c] sm:$0xf0]  ;;  %v9692_v50 = vld [vmem:[#allocation9 + $0x368] sm:$0xf]  ;;  %v10778_v12 = vld [vmem:[#allocation9 + $0x374] sm:$0xf0] }
 0x2e9   : > { %v10954_v24 = vld [vmem:[#allocation9 + $0x8f4] sm:$0xf0] }
 0x2ea   : > { %5727 = vmatpush.bf16.msrb.mxu1 %v9441_v56  ;;  %6578 = vmatpush.bf16.msra.mxu0 %v9813_v18  ;;  %v11182_v56 = vld [vmem:[#allocation2 + $0x20] sm:$0xff] }
 0x2eb   : > { %5643 = vmatpush.bf16.msrb.mxu3 %v9689_v31  ;;  %5685 = vmatpush.bf16.msra.mxu2 %v9565_v7  ;;  %v9765_v31 = vor.u32 %v10925_v6, %v9764_v29  ;;  %v12163_v7 = vpop.f32.mrf.mxu0  ;;  %v5773_v18 = vpack.c.bf16 %v11182_v56, %v5765_v33  ;;  %v10748_v29 = vld [vmem:[#allocation9 + $0x28c] sm:$0xf]  ;;  %v9582_v33 = vld [vmem:[#allocation9 + $0x298] sm:$0xf0]  ;;  %v9956_v6 = vld [vmem:[#allocation9 + $0x980] sm:$0xf] }
 0x2ec   : > { %v9585_v39 = vor.u32 %v10748_v29, %v9582_v33  ;;  %v9940_v56 = vld [vmem:[#allocation9 + $0x960] sm:$0xf]  ;;  %v5770_v29 = vld [vmem:[#allocation2 + $0x48] sm:$0x3] }
 0x2ee   : > { %5728 = vmatpush.bf16.msrb.mxu1 %v9425_v51  ;;  %6579 = vmatpush.bf16.msra.mxu0 %v9797_v0  ;;  %v5918_v0 = vrot.slane %v5773_v18, 1  ;;  %v10969_v18 = vld [vmem:[#allocation9 + $0x96c] sm:$0xf0] }
 0x2ef   : > { %5644 = vmatpush.bf16.msrb.mxu3 %v9673_v15  ;;  %5686 = vmatpush.bf16.msra.mxu2 %v9549_v28  ;;  %v4770_v15 = vpop.f32.mrf.mxu2  ;;  %v10981_v28 = vld [vmem:[#allocation9 + $0x9cc] sm:$0xf0] }
 0x2f0   : > { %v12166_v51 = vadd.f32 %v4770_v15, %v12143_v61  ;;  %v9989_v60 = vor.u32 %v10981_v28, %v9988_v5  ;;  %v12171_v61 = vsel %vm2741_vm3, %v5918_v0, %v5919_v22  ;;  %v10935_v22 = vld [vmem:[#allocation9 + $0x864] sm:$0xf]  ;;  %v10740_v15 = vld [vmem:[#allocation9 + $0x24c] sm:$0xf]  ;;  %v9550_v28 = vld [vmem:[#allocation9 + $0x258] sm:$0xf0] }
 0x2f1   : > { %v9817_v5 = vor.u32 %v10935_v22, %v9814_v21  ;;  %v9553_v25 = vor.u32 %v10740_v15, %v9550_v28  ;;  %v10132_v22 = vld [vmem:[#allocation9 + $0xae0] sm:$0xf]  ;;  %v11017_v21 = vld [vmem:[#allocation9 + $0xaec] sm:$0xf0]  ;;  %v11183_v15 = vld [vmem:[#allocation2 + $0x28] sm:$0xff] }
 0x2f2   : > { %5729 = vmatpush.bf16.msrb.mxu1 %v9409_v42  ;;  %6580 = vmatpush.bf16.msra.mxu0 %v9781_v55  ;;  %v9708_v42 = vld [vmem:[#allocation9 + $0x388] sm:$0xf]  ;;  %v10782_v55 = vld [vmem:[#allocation9 + $0x394] sm:$0xf0] }
 0x2f3   : > { %5645 = vmatpush.bf16.msrb.mxu3 %v9657_v11  ;;  %5687 = vmatpush.bf16.msra.mxu2 %v9533_v1  ;;  %v10977_v11 = vld [vmem:[#allocation9 + $0x9ac] sm:$0xf0]  ;;  %v10943_v1 = vld [vmem:[#allocation9 + $0x8a4] sm:$0xf]  ;;  %v4856_v57 = vpop.f32.mrf.mxu0 }
 0x2f4   : > { %v9973_v45 = vor.u32 %v10977_v11, %v9972_v19  ;;  %v9849_v35 = vor.u32 %v10943_v1, %v9846_v48  ;;  %v9660_v19 = vld [vmem:[#allocation9 + $0x328] sm:$0xf]  ;;  %v10770_v11 = vld [vmem:[#allocation9 + $0x334] sm:$0xf0] }
 0x2f6   : > { %5730 = vmatpush.bf16.msrb.mxu1 %v9393_v9  ;;  %6581 = vmatpush.bf16.msra.mxu0 %v9765_v31  ;;  %v4868_v44 = vpop.f32.mrf.mxu1  ;;  %v4701_v9 = vadd.f32 %v12139_v62, %v12130_v34  ;;  %v9957_v31 = vor.u32 %v10973_v8, %v9956_v6  ;;  %v9941_v62 = vor.u32 %v10969_v18, %v9940_v56  ;;  %v10732_v8 = vld [vmem:[#allocation9 + $0x20c] sm:$0xf] }
 0x2f7   : > { %5646 = vmatpush.bf16.msrb.mxu3 %v9641_v17  ;;  %5688 = vmatpush.bf16.msra.mxu2 %v9517_v23  ;;  %v4772_v20 = vpop.f32.mrf.mxu2  ;;  %v12179_v17 = vadd.f32 %v4868_v44, %v12163_v7  ;;  %v9709_v23 = vor.u32 %v10782_v55, %v9708_v42  ;;  %v9908_v42 = vld [vmem:[#allocation9 + $0x920] sm:$0xf]  ;;  %v10927_v55 = vld [vmem:[#allocation9 + $0x824] sm:$0xf]  ;;  %v9661_v6 = vor.u32 %v10770_v11, %v9660_v19  ;;  %v9868_v19 = vld [vmem:[#allocation9 + $0x8c8] sm:$0xf] }
 0x2f8   : > { %v12176_v59 = vadd.f32 %v4772_v20, %v12148_v46  ;;  %v9566_v46 = vld [vmem:[#allocation9 + $0x278] sm:$0xf0]  ;;  %v4715_v7 = vadd.f32 %v12156_v52, %v4701_v9  ;;  %v9798_v52 = vld [vmem:[#allocation9 + $0x850] sm:$0xf0]  ;;  %v10766_v20 = vld [vmem:[#allocation9 + $0x314] sm:$0xf0]  ;;  %v5778_v56 = vpack.c.bf16 %v5770_v29, %v5770_v29 }
 0x2f9   : > { %5731 = vmatmul.bf16.vlgmr.msrb.gmra.mxu1 %v12124_v14  ;;  %6582 = vmatmul.bf16.vlgmr.msra.gmra.mxu0 %v12171_v61  ;;  %v9830_v14 = vld [vmem:[#allocation9 + $0x890] sm:$0xf0]  ;;  %v5766_v9 = vld [vmem:[#allocation2 + $0x8] sm:$0xfc]  ;;  %v10950_v11 = vld [vmem:[#allocation9 + $0x8d4] sm:$0xf0] }
 0x2fa   : > { %6588 = vmatpush.bf16.msra.mxu1 %v10005_v49  ;;  %6630 = vmatpush.bf16.msrb.mxu0 %v9881_v53  ;;  %v9693_v49 = vor.u32 %v10778_v12, %v9692_v50  ;;  %v10957_v50 = vld [vmem:[#allocation9 + $0x90c] sm:$0xf0]  ;;  %v10923_v12 = vld [vmem:[#allocation9 + $0x804] sm:$0xf]  ;;  %v5774_v28 = vpack.c.bf16 %v11183_v15, %v5766_v9  ;;  %v10100_v29 = vld [vmem:[#allocation9 + $0xaa0] sm:$0xf] }
 0x2fb   : > { %5695 = vmatpush.bf16.msra.mxu3 %v9757_v36  ;;  %5737 = vmatpush.bf16.msrb.mxu2 %v9633_v37  ;;  %v9833_v36 = vor.u32 %v10939_v58, %v9830_v14  ;;  %v10744_v37 = vld [vmem:[#allocation9 + $0x26c] sm:$0xf]  ;;  %v5550_v27 = vpop.f32.mrf.mxu0  ;;  %v9518_v58 = vld [vmem:[#allocation9 + $0x218] sm:$0xf0]  ;;  %v11005_v9 = vld [vmem:[#allocation9 + $0xa8c] sm:$0xf0] }
 0x2fc   : > { %5647 = vmatmul.bf16.vlgmr.msrb.gmra.mxu3 %v12146_v43  ;;  %5689 = vmatmul.bf16.vlgmr.msra.gmra.mxu2 %v12133_v47  ;;  %v4728_v13 = vpop.f32.mrf.mxu3  ;;  %v9569_v53 = vor.u32 %v10744_v37, %v9566_v46  ;;  %v10792_v37 = vld [vmem:[#allocation9 + $0x3ec] sm:$0xf]  ;;  %v9758_v46 = vld [vmem:[#allocation9 + $0x3f8] sm:$0xf0]  ;;  %v11001_v15 = vld [vmem:[#allocation9 + $0xa6c] sm:$0xf0] }
 0x2fd   : > { %v4729_v34 = vadd.f32 %v4728_v13, %v4715_v7  ;;  %v10983_v7 = vld [vmem:[#allocation9 + $0x9e4] sm:$0xf]  ;;  %v9521_v13 = vor.u32 %v10732_v8, %v9518_v58  ;;  %v10946_v8 = vld [vmem:[#allocation9 + $0x8b4] sm:$0xf0] }
 0x2fe   : > { %6589 = vmatpush.bf16.msra.mxu1 %v9989_v60  ;;  %6631 = vmatpush.bf16.msrb.mxu0 %v9865_v41  ;;  %v4870_v54 = vpop.f32.mrf.mxu1 }
 0x2ff   : > { %5696 = vmatpush.bf16.msra.mxu3 %v9741_v63  ;;  %5738 = vmatpush.bf16.msrb.mxu2 %v9617_v26  ;;  %v4826_v0 = vpop.f32.mrf.mxu2  ;;  %v10965_v63 = vld [vmem:[#allocation9 + $0x94c] sm:$0xf0]  ;;  %v10931_v26 = vld [vmem:[#allocation9 + $0x844] sm:$0xf]  ;;  %v12187_v60 = vadd.f32 %v5550_v27, %v4729_v34  ;;  %v12189_v41 = vadd.f32 %v4870_v54, %v4856_v57  ;;  %v9742_v27 = vld [vmem:[#allocation9 + $0x3d8] sm:$0xf0] }
 0x300   : > { %v12185_v38 = vadd.f32 %v4826_v0, %v12154_v4  ;;  %v9925_v1 = vor.u32 %v10965_v63, %v9924_v2  ;;  %v9801_v48 = vor.u32 %v10931_v26, %v9798_v52  ;;  %v10961_v4 = vld [vmem:[#allocation9 + $0x92c] sm:$0xf0]  ;;  %v10788_v2 = vld [vmem:[#allocation9 + $0x3cc] sm:$0xf]  ;;  %v10116_v26 = vld [vmem:[#allocation9 + $0xac0] sm:$0xf] }
 0x301   : > { %v9909_v44 = vor.u32 %v10961_v4, %v9908_v42  ;;  %v11013_v52 = vld [vmem:[#allocation9 + $0xacc] sm:$0xf0]  ;;  %v10979_v54 = vld [vmem:[#allocation9 + $0x9c4] sm:$0xf]  ;;  %v10784_v4 = vld [vmem:[#allocation9 + $0x3ac] sm:$0xf] }
 0x302   : > { %6590 = vmatpush.bf16.msra.mxu1 %v9973_v45  ;;  %6632 = vmatpush.bf16.msrb.mxu0 %v9849_v35  ;;  %v9782_v45 = vld [vmem:[#allocation9 + $0x830] sm:$0xf0]  ;;  %v9644_v35 = vld [vmem:[#allocation9 + $0x308] sm:$0xf]  ;;  %v10117_v42 = vor.u32 %v11013_v52, %v10116_v26 }
 0x303   : > { %5697 = vmatpush.bf16.msra.mxu3 %v9725_v40  ;;  %5739 = vmatpush.bf16.msrb.mxu2 %v9601_v30  ;;  %v10736_v40 = vld [vmem:[#allocation9 + $0x22c] sm:$0xf]  ;;  %v9534_v30 = vld [vmem:[#allocation9 + $0x238] sm:$0xf0] }
 0x304   : > { %v4730_v33 = vpop.f32.mrf.mxu3  ;;  %v9537_v57 = vor.u32 %v10736_v40, %v9534_v30  ;;  %v5921_v40 = vrot.slane %v5774_v28, 1  ;;  %v9745_v30 = vor.u32 %v10788_v2, %v9742_v27  ;;  %v9942_v28 = vld [vmem:[#allocation9 + $0x970] sm:$0xf0]  ;;  %v10938_v2 = vld [vmem:[#allocation9 + $0x874] sm:$0xf0] }
 0x305   : > { %v12192_v14 = vadd.f32 %v4730_v33, %v12161_v10  ;;  %v9645_v10 = vor.u32 %v10766_v20, %v9644_v35  ;;  %v9869_v35 = vor.u32 %v10950_v11, %v9868_v19  ;;  %v11009_v33 = vld [vmem:[#allocation9 + $0xaac] sm:$0xf0]  ;;  %v9852_v20 = vld [vmem:[#allocation9 + $0x8a8] sm:$0xf]  ;;  %v10963_v19 = vld [vmem:[#allocation9 + $0x944] sm:$0xf] }
 0x306   : > { %6591 = vmatpush.bf16.msra.mxu1 %v9957_v31  ;;  %6633 = vmatpush.bf16.msrb.mxu0 %v9833_v36  ;;  %v9766_v36 = vld [vmem:[#allocation9 + $0x810] sm:$0xf0] }
 0x307   : > { %5698 = vmatpush.bf16.msra.mxu3 %v9709_v23  ;;  %5740 = vmatpush.bf16.msrb.mxu2 %v9585_v39  ;;  %v9785_v23 = vor.u32 %v10927_v55, %v9782_v45  ;;  %v9892_v39 = vld [vmem:[#allocation9 + $0x900] sm:$0xf]  ;;  %v4828_v31 = vpop.f32.mrf.mxu2  ;;  %v9769_v34 = vor.u32 %v10923_v12, %v9766_v36  ;;  %v9726_v55 = vld [vmem:[#allocation9 + $0x3b8] sm:$0xf0] }
 0x308   : > { %v12195_v18 = vadd.f32 %v4828_v31, %v12158_v32  ;;  %v9893_v3 = vor.u32 %v10957_v50, %v9892_v39  ;;  %v5922_v32 = vrot.slane %v5778_v56, 1  ;;  %v9729_v58 = vor.u32 %v10784_v4, %v9726_v55  ;;  %v9710_v39 = vld [vmem:[#allocation9 + $0x398] sm:$0xf0]  ;;  %v10084_v12 = vld [vmem:[#allocation9 + $0xa80] sm:$0xf] }
 0x309   : > { %v10971_v31 = vld [vmem:[#allocation9 + $0x984] sm:$0xf]  ;;  %v10942_v56 = vld [vmem:[#allocation9 + $0x894] sm:$0xf0] }
 0x30a   : > { %6592 = vmatpush.bf16.msra.mxu1 %v9941_v62  ;;  %6634 = vmatpush.bf16.msrb.mxu0 %v9817_v5  ;;  %v9761_v62 = vor.u32 %v10792_v37, %v9758_v46  ;;  %v10133_v5 = vor.u32 %v11017_v21, %v10132_v22  ;;  %v9958_v37 = vld [vmem:[#allocation9 + $0x990] sm:$0xf0]  ;;  %v9836_v46 = vld [vmem:[#allocation9 + $0x888] sm:$0xf]  ;;  %v10934_v4 = vld [vmem:[#allocation9 + $0x854] sm:$0xf0] }
 0x30b   : > { %5699 = vmatpush.bf16.msra.mxu3 %v9693_v49  ;;  %5741 = vmatpush.bf16.msrb.mxu2 %v9569_v53  ;;  %v10006_v49 = vld [vmem:[#allocation9 + $0x9f0] sm:$0xf0]  ;;  %v9884_v53 = vld [vmem:[#allocation9 + $0x8e8] sm:$0xf] }
 0x30c   : > { %v10009_v0 = vor.u32 %v10983_v7, %v10006_v49  ;;  %v9885_v63 = vor.u32 %v10954_v24, %v9884_v53  ;;  %v10085_v49 = vor.u32 %v11005_v9, %v10084_v12  ;;  %v10776_v53 = vld [vmem:[#allocation9 + $0x36c] sm:$0xf]  ;;  %v9694_v24 = vld [vmem:[#allocation9 + $0x378] sm:$0xf0] }
 0x30e   : > { %6593 = vmatpush.bf16.msra.mxu1 %v9925_v1  ;;  %6635 = vmatpush.bf16.msrb.mxu0 %v9801_v48  ;;  %v12198_v48 = vpop.f32.mrf.mxu0 }
 0x30f   : > { %5700 = vmatpush.bf16.msra.mxu3 %v9677_v16  ;;  %5742 = vmatpush.bf16.msrb.mxu2 %v9553_v25  ;;  %v4784_v16 = vpop.f32.mrf.mxu3  ;;  %v9990_v25 = vld [vmem:[#allocation9 + $0x9d0] sm:$0xf0] }
 0x310   : > { %v4785_v1 = vadd.f32 %v4784_v16, %v12166_v51  ;;  %v9993_v45 = vor.u32 %v10979_v54, %v9990_v25  ;;  %v12203_v51 = vsel %vm2741_vm3, %v5921_v40, %v5922_v32  ;;  %v9820_v32 = vld [vmem:[#allocation9 + $0x868] sm:$0xf]  ;;  %v10052_v16 = vld [vmem:[#allocation9 + $0xa40] sm:$0xf]  ;;  %v10997_v25 = vld [vmem:[#allocation9 + $0xa4c] sm:$0xf0]  ;;  %v5553_v40 = vadd.f32 %v12198_v48, %v12192_v14 }
 0x311   : > { %v9821_v52 = vor.u32 %v10938_v2, %v9820_v32  ;;  %v10134_v32 = vld [vmem:[#allocation9 + $0xaf0] sm:$0xf0]  ;;  %v10012_v2 = vld [vmem:[#allocation9 + $0x9e8] sm:$0xf] }
 0x312   : > { %6594 = vmatpush.bf16.msra.mxu1 %v9909_v44  ;;  %6636 = vmatpush.bf16.msrb.mxu0 %v9785_v23  ;;  %v10101_v44 = vor.u32 %v11009_v33, %v10100_v29  ;;  %v10780_v23 = vld [vmem:[#allocation9 + $0x38c] sm:$0xf] }
 0x313   : > { %5701 = vmatpush.bf16.msra.mxu3 %v9661_v6  ;;  %5743 = vmatpush.bf16.msrb.mxu2 %v9537_v57  ;;  %v10975_v6 = vld [vmem:[#allocation9 + $0x9a4] sm:$0xf]  ;;  %v9974_v57 = vld [vmem:[#allocation9 + $0x9b0] sm:$0xf0] }
 0x314   : > { %v9977_v50 = vor.u32 %v10975_v6, %v9974_v57  ;;  %v10053_v6 = vor.u32 %v10997_v25, %v10052_v16  ;;  %v9662_v57 = vld [vmem:[#allocation9 + $0x338] sm:$0xf0] }
 0x316   : > { %6595 = vmatpush.bf16.msra.mxu1 %v9893_v3  ;;  %6637 = vmatpush.bf16.msrb.mxu0 %v9769_v34  ;;  %v5564_v21 = vpop.f32.mrf.mxu1  ;;  %v9961_v34 = vor.u32 %v10971_v31, %v9958_v37  ;;  %v9646_v31 = vld [vmem:[#allocation9 + $0x318] sm:$0xf0]  ;;  %v10989_v37 = vld [vmem:[#allocation9 + $0xa0c] sm:$0xf0] }
 0x317   : > { %5702 = vmatpush.bf16.msra.mxu3 %v9645_v10  ;;  %5744 = vmatpush.bf16.msrb.mxu2 %v9521_v13  ;;  %v4786_v36 = vpop.f32.mrf.mxu3  ;;  %v12209_v7 = vadd.f32 %v5564_v21, %v12187_v60  ;;  %v5606_v10 = vpop.f32.mrf.mxu0  ;;  %v9713_v13 = vor.u32 %v10780_v23, %v9710_v39  ;;  %v9697_v60 = vor.u32 %v10776_v53, %v9694_v24  ;;  %v9788_v23 = vld [vmem:[#allocation9 + $0x828] sm:$0xf]  ;;  %v10930_v39 = vld [vmem:[#allocation9 + $0x834] sm:$0xf0] }
 0x318   : > { %v4787_v22 = vadd.f32 %v4786_v36, %v12176_v59  ;;  %v12211_v3 = vadd.f32 %v5606_v10, %v4785_v1  ;;  %v10967_v59 = vld [vmem:[#allocation9 + $0x964] sm:$0xf]  ;;  %v10020_v36 = vld [vmem:[#allocation9 + $0xa00] sm:$0xf] }
 0x319   : > { %6596 = vmatmul.bf16.vlgmr.msra.gmra.mxu1 %v12203_v51  ;;  %6638 = vmatmul.bf16.vlgmr.msrb.gmra.mxu0 %v12171_v61  ;;  %v9945_v26 = vor.u32 %v10967_v59, %v9942_v28  ;;  %v10955_v10 = vld [vmem:[#allocation9 + $0x904] sm:$0xf] }
 0x31a   : > { %6644 = vmatpush.bf16.msrb.mxu1 %v10009_v0  ;;  %6686 = vmatpush.bf16.msra.mxu0 %v9885_v63  ;;  %v10772_v0 = vld [vmem:[#allocation9 + $0x34c] sm:$0xf]  ;;  %v9678_v63 = vld [vmem:[#allocation9 + $0x358] sm:$0xf0]  ;;  %v11015_v28 = vld [vmem:[#allocation9 + $0xae4] sm:$0xf] }
 0x31b   : > { %5751 = vmatpush.bf16.msrb.mxu3 %v9761_v62  ;;  %6602 = vmatpush.bf16.msra.mxu2 %v10133_v5  ;;  %v9837_v62 = vor.u32 %v10942_v56, %v9836_v46  ;;  %v10068_v5 = vld [vmem:[#allocation9 + $0xa60] sm:$0xf]  ;;  %v9681_v33 = vor.u32 %v10772_v0, %v9678_v63  ;;  %v5767_v46 = vld [vmem:[#allocation2 + $0x10] sm:$0xfc]  ;;  %v10986_v0 = vld [vmem:[#allocation9 + $0x9f4] sm:$0xf0] }
 0x31c   : > { %5703 = vmatmul.bf16.vlgmr.msra.gmra.mxu3 %v12146_v43  ;;  %5745 = vmatmul.bf16.vlgmr.msrb.gmra.mxu2 %v12133_v47  ;;  %v9853_v47 = vor.u32 %v10946_v8, %v9852_v20  ;;  %v10069_v27 = vor.u32 %v11001_v15, %v10068_v5  ;;  %v10036_v8 = vld [vmem:[#allocation9 + $0xa20] sm:$0xf]  ;;  %v11049_v5 = vld [vmem:[#allocation9 + $0xbec] sm:$0xf0]  ;;  %v10952_v63 = vld [vmem:[#allocation9 + $0x8ec] sm:$0xf] }
 0x31e   : > { %6645 = vmatpush.bf16.msrb.mxu1 %v9993_v45  ;;  %6687 = vmatpush.bf16.msra.mxu0 %v9869_v35  ;;  %v5566_v45 = vpop.f32.mrf.mxu1 }
 0x31f   : > { %5752 = vmatpush.bf16.msrb.mxu3 %v9745_v30  ;;  %6603 = vmatpush.bf16.msra.mxu2 %v10117_v42  ;;  %v4882_v54 = vpop.f32.mrf.mxu2  ;;  %v4840_v1 = vpop.f32.mrf.mxu3  ;;  %v9926_v30 = vld [vmem:[#allocation9 + $0x950] sm:$0xf0]  ;;  %v9804_v42 = vld [vmem:[#allocation9 + $0x848] sm:$0xf]  ;;  %v12221_v35 = vadd.f32 %v5566_v45, %v5553_v40  ;;  %v11045_v40 = vld [vmem:[#allocation9 + $0xbcc] sm:$0xf0] }
 0x320   : > { %v12214_v11 = vadd.f32 %v4882_v54, %v12179_v17  ;;  %v12219_v55 = vadd.f32 %v4840_v1, %v12185_v38  ;;  %v5608_v29 = vpop.f32.mrf.mxu0  ;;  %v10768_v17 = vld [vmem:[#allocation9 + $0x32c] sm:$0xf]  ;;  %v9929_v14 = vor.u32 %v10963_v19, %v9926_v30  ;;  %v9805_v48 = vor.u32 %v10934_v4, %v9804_v42  ;;  %v10959_v38 = vld [vmem:[#allocation9 + $0x924] sm:$0xf]  ;;  %v10244_v1 = vld [vmem:[#allocation9 + $0xbc0] sm:$0xf] }
 0x321   : > { %v12223_v20 = vadd.f32 %v5608_v29, %v4787_v22  ;;  %v9665_v12 = vor.u32 %v10768_v17, %v9662_v57  ;;  %v9789_v22 = vor.u32 %v10930_v39, %v9788_v23  ;;  %v11184_v54 = vld [vmem:[#allocation2 + $0x30] sm:$0xff]  ;;  %v10137_v19 = vor.u32 %v11015_v28, %v10134_v32  ;;  %v11011_v4 = vld [vmem:[#allocation9 + $0xac4] sm:$0xf]  ;;  %v10118_v45 = vld [vmem:[#allocation9 + $0xad0] sm:$0xf0] }
 0x322   : > { %6646 = vmatpush.bf16.msrb.mxu1 %v9977_v50  ;;  %6688 = vmatpush.bf16.msra.mxu0 %v9853_v47  ;;  %v10764_v50 = vld [vmem:[#allocation9 + $0x30c] sm:$0xf]  ;;  %v5775_v16 = vpack.c.bf16 %v11184_v54, %v5767_v46  ;;  %v10013_v30 = vor.u32 %v10986_v0, %v10012_v2  ;;  %v9996_v29 = vld [vmem:[#allocation9 + $0x9c8] sm:$0xf]  ;;  %v9870_v17 = vld [vmem:[#allocation9 + $0x8d8] sm:$0xf0] }
 0x323   : > { %5753 = vmatpush.bf16.msrb.mxu3 %v9729_v58  ;;  %6604 = vmatpush.bf16.msra.mxu2 %v10101_v44  ;;  %v10993_v58 = vld [vmem:[#allocation9 + $0xa2c] sm:$0xf0]  ;;  %v9910_v44 = vld [vmem:[#allocation9 + $0x930] sm:$0xf0]  ;;  %v5771_v47 = vld [vmem:[#allocation2 + $0x50] sm:$0x3] }
 0x324   : > { %v10037_v9 = vor.u32 %v10993_v58, %v10036_v8  ;;  %v9913_v56 = vor.u32 %v10959_v38, %v9910_v44  ;;  %v5779_v15 = vpack.c.bf16 %v5771_v47, %v5771_v47  ;;  %v5924_v57 = vrot.slane %v5775_v16, 1  ;;  %v10228_v8 = vld [vmem:[#allocation9 + $0xba0] sm:$0xf]  ;;  %v11041_v58 = vld [vmem:[#allocation9 + $0xbac] sm:$0xf0] }
 0x325   : > { %v11007_v39 = vld [vmem:[#allocation9 + $0xaa4] sm:$0xf]  ;;  %v9980_v47 = vld [vmem:[#allocation9 + $0x9a8] sm:$0xf]  ;;  %v10212_v46 = vld [vmem:[#allocation9 + $0xb80] sm:$0xf] }
 0x326   : > { %6647 = vmatpush.bf16.msrb.mxu1 %v9961_v34  ;;  %6689 = vmatpush.bf16.msra.mxu0 %v9837_v62  ;;  %v10926_v34 = vld [vmem:[#allocation9 + $0x814] sm:$0xf0]  ;;  %v10260_v62 = vld [vmem:[#allocation9 + $0xbe0] sm:$0xf]  ;;  %v10936_v16 = vld [vmem:[#allocation9 + $0x86c] sm:$0xf] }
 0x327   : > { %5754 = vmatpush.bf16.msrb.mxu3 %v9713_v13  ;;  %6605 = vmatpush.bf16.msra.mxu2 %v10085_v49  ;;  %v4884_v21 = vpop.f32.mrf.mxu2  ;;  %v9894_v13 = vld [vmem:[#allocation9 + $0x910] sm:$0xf0]  ;;  %v9772_v49 = vld [vmem:[#allocation9 + $0x808] sm:$0xf]  ;;  %v4842_v24 = vpop.f32.mrf.mxu3  ;;  %v10261_v25 = vor.u32 %v11049_v5, %v10260_v62  ;;  %v10196_v2 = vld [vmem:[#allocation9 + $0xb60] sm:$0xf] }
 0x328   : > { %v12226_v53 = vadd.f32 %v4884_v21, %v12189_v41  ;;  %v12229_v59 = vadd.f32 %v4842_v24, %v12195_v18  ;;  %v9897_v41 = vor.u32 %v10955_v10, %v9894_v13  ;;  %v5925_v18 = vrot.slane %v5779_v15, 1  ;;  %v10086_v10 = vld [vmem:[#allocation9 + $0xa90] sm:$0xf0]  ;;  %v9964_v13 = vld [vmem:[#allocation9 + $0x988] sm:$0xf] }
 0x329   : > { %v10940_v24 = vld [vmem:[#allocation9 + $0x88c] sm:$0xf]  ;;  %v10970_v54 = vld [vmem:[#allocation9 + $0x974] sm:$0xf0] }
 0x32a   : > { %6648 = vmatpush.bf16.msrb.mxu1 %v9945_v26  ;;  %6690 = vmatpush.bf16.msra.mxu0 %v9821_v52  ;;  %v9886_v26 = vld [vmem:[#allocation9 + $0x8f8] sm:$0xf0]  ;;  %v9773_v52 = vor.u32 %v10926_v34, %v9772_v49  ;;  %v12232_v38 = vsel %vm2741_vm3, %v5924_v57, %v5925_v18  ;;  %v10974_v49 = vld [vmem:[#allocation9 + $0x994] sm:$0xf0]  ;;  %v10932_v57 = vld [vmem:[#allocation9 + $0x84c] sm:$0xf] }
 0x32b   : > { %5755 = vmatpush.bf16.msrb.mxu3 %v9697_v60  ;;  %6606 = vmatpush.bf16.msra.mxu2 %v10069_v27  ;;  %v9649_v60 = vor.u32 %v10764_v50, %v9646_v31  ;;  %v10021_v27 = vor.u32 %v10989_v37, %v10020_v36  ;;  %v9889_v42 = vor.u32 %v10952_v63, %v9886_v26  ;;  %v10102_v50 = vld [vmem:[#allocation9 + $0xab0] sm:$0xf0]  ;;  %v9854_v31 = vld [vmem:[#allocation9 + $0x8b8] sm:$0xf0]  ;;  %v10999_v26 = vld [vmem:[#allocation9 + $0xa64] sm:$0xf] }
 0x32c   : > { %v10229_v36 = vor.u32 %v11041_v58, %v10228_v8  ;;  %v10105_v37 = vor.u32 %v11007_v39, %v10102_v50  ;;  %v9838_v34 = vld [vmem:[#allocation9 + $0x898] sm:$0xf0]  ;;  %v9965_v32 = vor.u32 %v10974_v49, %v9964_v13  ;;  %v10164_v39 = vld [vmem:[#allocation9 + $0xb20] sm:$0xf]  ;;  %v11025_v50 = vld [vmem:[#allocation9 + $0xb2c] sm:$0xf0] }
 0x32d   : > { %v9841_v63 = vor.u32 %v10940_v24, %v9838_v34  ;;  %v11021_v13 = vld [vmem:[#allocation9 + $0xb0c] sm:$0xf0] }
 0x32e   : > { %6649 = vmatpush.bf16.msrb.mxu1 %v9929_v14  ;;  %6691 = vmatpush.bf16.msra.mxu0 %v9805_v48  ;;  %v10245_v14 = vor.u32 %v11045_v40, %v10244_v1  ;;  %v10121_v48 = vor.u32 %v11011_v4, %v10118_v45  ;;  %v10180_v1 = vld [vmem:[#allocation9 + $0xb40] sm:$0xf]  ;;  %v11029_v40 = vld [vmem:[#allocation9 + $0xb4c] sm:$0xf0]  ;;  %v10054_v45 = vld [vmem:[#allocation9 + $0xa50] sm:$0xf0] }
 0x32f   : > { %5756 = vmatpush.bf16.msrb.mxu3 %v9681_v33  ;;  %6607 = vmatpush.bf16.msra.mxu2 %v10053_v6  ;;  %v10982_v33 = vld [vmem:[#allocation9 + $0x9d4] sm:$0xf0]  ;;  %v10948_v6 = vld [vmem:[#allocation9 + $0x8cc] sm:$0xf]  ;;  %v10181_v58 = vor.u32 %v11029_v40, %v10180_v1 }
 0x330   : > { %v9997_v44 = vor.u32 %v10982_v33, %v9996_v29  ;;  %v9873_v23 = vor.u32 %v10948_v6, %v9870_v17  ;;  %v9932_v29 = vld [vmem:[#allocation9 + $0x948] sm:$0xf]  ;;  %v10966_v33 = vld [vmem:[#allocation9 + $0x954] sm:$0xf0] }
 0x331   : > { %v11185_v1 = vld [vmem:[#allocation2 + $0x38] sm:$0xff] }
 0x332   : > { %6650 = vmatpush.bf16.msrb.mxu1 %v9913_v56  ;;  %6692 = vmatpush.bf16.msra.mxu0 %v9789_v22  ;;  %v11037_v56 = vld [vmem:[#allocation9 + $0xb8c] sm:$0xf0]  ;;  %v11003_v22 = vld [vmem:[#allocation9 + $0xa84] sm:$0xf] }
 0x333   : > { %5757 = vmatpush.bf16.msrb.mxu3 %v9665_v12  ;;  %6608 = vmatpush.bf16.msra.mxu2 %v10037_v9  ;;  %v10978_v12 = vld [vmem:[#allocation9 + $0x9b4] sm:$0xf0]  ;;  %v10944_v9 = vld [vmem:[#allocation9 + $0x8ac] sm:$0xf]  ;;  %v10213_v15 = vor.u32 %v11037_v56, %v10212_v46  ;;  %v10089_v28 = vor.u32 %v11003_v22, %v10086_v10  ;;  %v9790_v46 = vld [vmem:[#allocation9 + $0x838] sm:$0xf0] }
 0x334   : > { %v9981_v21 = vor.u32 %v10978_v12, %v9980_v47  ;;  %v10991_v12 = vld [vmem:[#allocation9 + $0xa24] sm:$0xf]  ;;  %v5768_v56 = vld [vmem:[#allocation2 + $0x18] sm:$0xfc]  ;;  %v5772_v22 = vld [vmem:[#allocation2 + $0x58] sm:$0x3] }
 0x335   : > { %v10148_v10 = vld [vmem:[#allocation9 + $0xb00] sm:$0xf]  ;;  %v5776_v40 = vpack.c.bf16 %v11185_v1, %v5768_v56  ;;  %v10998_v1 = vld [vmem:[#allocation9 + $0xa54] sm:$0xf0] }
 0x336   : > { %6651 = vmatpush.bf16.msrb.mxu1 %v9897_v41  ;;  %6693 = vmatpush.bf16.msra.mxu0 %v9773_v52  ;;  %v5620_v62 = vpop.f32.mrf.mxu1  ;;  %v5662_v5 = vpop.f32.mrf.mxu0  ;;  %v10070_v41 = vld [vmem:[#allocation9 + $0xa70] sm:$0xf0]  ;;  %v9948_v52 = vld [vmem:[#allocation9 + $0x968] sm:$0xf] }
 0x337   : > { %5758 = vmatpush.bf16.msrb.mxu3 %v9649_v60  ;;  %6609 = vmatpush.bf16.msra.mxu2 %v10021_v27  ;;  %v11033_v60 = vld [vmem:[#allocation9 + $0xb6c] sm:$0xf0]  ;;  %v12239_v27 = vadd.f32 %v5620_v62, %v12211_v3  ;;  %v12242_v0 = vadd.f32 %v5662_v5, %v12219_v55  ;;  %v10073_v18 = vor.u32 %v10999_v26, %v10070_v41  ;;  %v10022_v62 = vld [vmem:[#allocation9 + $0xa10] sm:$0xf0]  ;;  %v9900_v5 = vld [vmem:[#allocation9 + $0x908] sm:$0xf] }
 0x338   : > { %v9949_v3 = vor.u32 %v10970_v54, %v9948_v52  ;;  %v5780_v26 = vpack.c.bf16 %v5772_v22, %v5772_v22  ;;  %v10262_v41 = vld [vmem:[#allocation9 + $0xbf0] sm:$0xf0]  ;;  %v10140_v52 = vld [vmem:[#allocation9 + $0xae8] sm:$0xf]  ;;  %v11018_v54 = vld [vmem:[#allocation9 + $0xaf4] sm:$0xf0] }
 0x339   : > { %6652 = vmatmul.bf16.vlgmr.msrb.gmra.mxu1 %v12203_v51  ;;  %6694 = vmatmul.bf16.vlgmr.msra.gmra.mxu0 %v12171_v61  ;;  %v10214_v22 = vld [vmem:[#allocation9 + $0xb90] sm:$0xf0] }
 0x33a   : > { %6700 = vmatpush.bf16.msra.mxu1 %v10013_v30  ;;  %6742 = vmatpush.bf16.msrb.mxu0 %v9889_v42  ;;  %v10995_v30 = vld [vmem:[#allocation9 + $0xa44] sm:$0xf] }
 0x33b   : > { %6616 = vmatpush.bf16.msra.mxu3 %v10261_v25  ;;  %6658 = vmatpush.bf16.msrb.mxu2 %v10137_v19  ;;  %v9822_v25 = vld [vmem:[#allocation9 + $0x878] sm:$0xf0]  ;;  %v10197_v19 = vor.u32 %v11033_v60, %v10196_v2  ;;  %v10924_v2 = vld [vmem:[#allocation9 + $0x80c] sm:$0xf] }
 0x33c   : > { %5759 = vmatmul.bf16.vlgmr.msrb.gmra.mxu3 %v12146_v43  ;;  %6610 = vmatmul.bf16.vlgmr.msra.gmra.mxu2 %v12232_v38  ;;  %v9857_v43 = vor.u32 %v10944_v9, %v9854_v31  ;;  %v9825_v42 = vor.u32 %v10936_v16, %v9822_v25  ;;  %v10038_v9 = vld [vmem:[#allocation9 + $0xa30] sm:$0xf0]  ;;  %v9916_v31 = vld [vmem:[#allocation9 + $0x928] sm:$0xf]  ;;  %v9774_v60 = vld [vmem:[#allocation9 + $0x818] sm:$0xf0]  ;;  %v10149_v16 = vor.u32 %v11021_v13, %v10148_v10 }
 0x33d   : > { %v10972_v10 = vld [vmem:[#allocation9 + $0x98c] sm:$0xf]  ;;  %v9966_v13 = vld [vmem:[#allocation9 + $0x998] sm:$0xf0] }
 0x33e   : > { %6701 = vmatpush.bf16.msra.mxu1 %v9997_v44  ;;  %6743 = vmatpush.bf16.msrb.mxu0 %v9873_v23  ;;  %v5664_v8 = vpop.f32.mrf.mxu0  ;;  %v10057_v44 = vor.u32 %v10995_v30, %v10054_v45  ;;  %v9933_v23 = vor.u32 %v10966_v33, %v9932_v29  ;;  %v10246_v45 = vld [vmem:[#allocation9 + $0xbd0] sm:$0xf0]  ;;  %v10124_v29 = vld [vmem:[#allocation9 + $0xac8] sm:$0xf]  ;;  %v11014_v33 = vld [vmem:[#allocation9 + $0xad4] sm:$0xf0] }
 0x33f   : > { %6617 = vmatpush.bf16.msra.mxu3 %v10245_v14  ;;  %6659 = vmatpush.bf16.msrb.mxu2 %v10121_v48  ;;  %v4896_v55 = vpop.f32.mrf.mxu3  ;;  %v5578_v4 = vpop.f32.mrf.mxu2  ;;  %v9806_v14 = vld [vmem:[#allocation9 + $0x858] sm:$0xf0] }
 0x340   : > { %v12245_v6 = vadd.f32 %v4896_v55, %v12214_v11  ;;  %v12248_v17 = vadd.f32 %v5578_v4, %v12209_v7  ;;  %v5622_v48 = vpop.f32.mrf.mxu1  ;;  %v12254_v11 = vadd.f32 %v5664_v8, %v12229_v59  ;;  %v9809_v7 = vor.u32 %v10932_v57, %v9806_v14  ;;  %v11043_v55 = vld [vmem:[#allocation9 + $0xbc4] sm:$0xf]  ;;  %v10980_v14 = vld [vmem:[#allocation9 + $0x9cc] sm:$0xf] }
 0x341   : > { %v12251_v47 = vadd.f32 %v5622_v48, %v12223_v20  ;;  %v10987_v20 = vld [vmem:[#allocation9 + $0xa04] sm:$0xf]  ;;  %v5927_v57 = vrot.slane %v5776_v40, 1  ;;  %v9998_v48 = vld [vmem:[#allocation9 + $0x9d8] sm:$0xf0] }
 0x342   : > { %6702 = vmatpush.bf16.msra.mxu1 %v9981_v21  ;;  %6744 = vmatpush.bf16.msrb.mxu0 %v9857_v43  ;;  %v10165_v21 = vor.u32 %v11025_v50, %v10164_v39  ;;  %v10041_v43 = vor.u32 %v10991_v12, %v10038_v9  ;;  %v10025_v25 = vor.u32 %v10987_v20, %v10022_v62  ;;  %v10230_v50 = vld [vmem:[#allocation9 + $0xbb0] sm:$0xf0]  ;;  %v11010_v12 = vld [vmem:[#allocation9 + $0xab4] sm:$0xf0]  ;;  %v10976_v9 = vld [vmem:[#allocation9 + $0x9ac] sm:$0xf] }
 0x343   : > { %6618 = vmatpush.bf16.msra.mxu3 %v10229_v36  ;;  %6660 = vmatpush.bf16.msrb.mxu2 %v10105_v37  ;;  %v10962_v36 = vld [vmem:[#allocation9 + $0x934] sm:$0xf0]  ;;  %v10928_v37 = vld [vmem:[#allocation9 + $0x82c] sm:$0xf]  ;;  %v10001_v39 = vor.u32 %v10980_v14, %v9998_v48  ;;  %v9918_v48 = vld [vmem:[#allocation9 + $0x938] sm:$0xf0] }
 0x344   : > { %v9917_v59 = vor.u32 %v10962_v36, %v9916_v31  ;;  %v9793_v49 = vor.u32 %v10928_v37, %v9790_v46  ;;  %v9982_v31 = vld [vmem:[#allocation9 + $0x9b8] sm:$0xf0]  ;;  %v11035_v46 = vld [vmem:[#allocation9 + $0xb84] sm:$0xf]  ;;  %v10960_v14 = vld [vmem:[#allocation9 + $0x92c] sm:$0xf] }
 0x345   : > { %v9985_v56 = vor.u32 %v10976_v9, %v9982_v31  ;;  %v10990_v9 = vld [vmem:[#allocation9 + $0xa14] sm:$0xf0] }
 0x346   : > { %6703 = vmatpush.bf16.msra.mxu1 %v9965_v32  ;;  %6745 = vmatpush.bf16.msrb.mxu0 %v9841_v63  ;;  %v11047_v63 = vld [vmem:[#allocation9 + $0xbe4] sm:$0xf] }
 0x347   : > { %6619 = vmatpush.bf16.msra.mxu3 %v10213_v15  ;;  %6661 = vmatpush.bf16.msrb.mxu2 %v10089_v28  ;;  %v4898_v24 = vpop.f32.mrf.mxu3  ;;  %v5580_v34 = vpop.f32.mrf.mxu2  ;;  %v10958_v15 = vld [vmem:[#allocation9 + $0x914] sm:$0xf0]  ;;  %v10265_v30 = vor.u32 %v11047_v63, %v10262_v41  ;;  %v10968_v63 = vld [vmem:[#allocation9 + $0x96c] sm:$0xf] }
 0x348   : > { %v12257_v28 = vadd.f32 %v4898_v24, %v12226_v53  ;;  %v12260_v32 = vadd.f32 %v5580_v34, %v12221_v35  ;;  %v9901_v53 = vor.u32 %v10958_v15, %v9900_v5  ;;  %v9777_v35 = vor.u32 %v10924_v2, %v9774_v60  ;;  %v11031_v34 = vld [vmem:[#allocation9 + $0xb64] sm:$0xf]  ;;  %v10198_v15 = vld [vmem:[#allocation9 + $0xb70] sm:$0xf0]  ;;  %v10076_v2 = vld [vmem:[#allocation9 + $0xa68] sm:$0xf] }
 0x349   : > { %v9969_v5 = vor.u32 %v10972_v10, %v9966_v13  ;;  %v11002_v60 = vld [vmem:[#allocation9 + $0xa74] sm:$0xf0]  ;;  %v10201_v41 = vor.u32 %v11031_v34, %v10198_v15  ;;  %v10126_v34 = vld [vmem:[#allocation9 + $0xad8] sm:$0xf0]  ;;  %v10236_v15 = vld [vmem:[#allocation9 + $0xba8] sm:$0xf] }
 0x34a   : > { %6704 = vmatpush.bf16.msra.mxu1 %v9949_v3  ;;  %6746 = vmatpush.bf16.msrb.mxu0 %v9825_v42  ;;  %v10141_v3 = vor.u32 %v11018_v54, %v10140_v52  ;;  %v5928_v42 = vrot.slane %v5780_v26, 1  ;;  %v9950_v26 = vld [vmem:[#allocation9 + $0x978] sm:$0xf0]  ;;  %v10077_v52 = vor.u32 %v11002_v60, %v10076_v2  ;;  %v11027_v54 = vld [vmem:[#allocation9 + $0xb44] sm:$0xf] }
 0x34b   : > { %6620 = vmatpush.bf16.msra.mxu3 %v10197_v19  ;;  %6662 = vmatpush.bf16.msrb.mxu2 %v10073_v18  ;;  %v10984_v19 = vld [vmem:[#allocation9 + $0x9ec] sm:$0xf]  ;;  %v10014_v18 = vld [vmem:[#allocation9 + $0x9f8] sm:$0xf0]  ;;  %v11042_v2 = vld [vmem:[#allocation9 + $0xbb4] sm:$0xf0] }
 0x34c   : > { %v10017_v4 = vor.u32 %v10984_v19, %v10014_v18  ;;  %v12263_v8 = vsel %vm2741_vm3, %v5927_v57, %v5928_v42  ;;  %v10060_v18 = vld [vmem:[#allocation9 + $0xa48] sm:$0xf]  ;;  %v10994_v57 = vld [vmem:[#allocation9 + $0xa34] sm:$0xf0]  ;;  %v11008_v60 = vld [vmem:[#allocation9 + $0xaac] sm:$0xf] }
 0x34e   : > { %6705 = vmatpush.bf16.msra.mxu1 %v9933_v23  ;;  %6747 = vmatpush.bf16.msrb.mxu0 %v9809_v7  ;;  %v11039_v23 = vld [vmem:[#allocation9 + $0xba4] sm:$0xf]  ;;  %v10108_v7 = vld [vmem:[#allocation9 + $0xaa8] sm:$0xf] }
 0x34f   : > { %6621 = vmatpush.bf16.msra.mxu3 %v10181_v58  ;;  %6663 = vmatpush.bf16.msrb.mxu2 %v10057_v44  ;;  %v10249_v58 = vor.u32 %v11043_v55, %v10246_v45  ;;  %v10125_v44 = vor.u32 %v11014_v33, %v10124_v29  ;;  %v10233_v36 = vor.u32 %v11039_v23, %v10230_v50  ;;  %v10166_v33 = vld [vmem:[#allocation9 + $0xb30] sm:$0xf0]  ;;  %v11019_v23 = vld [vmem:[#allocation9 + $0xb04] sm:$0xf] }
 0x350   : > { %v10109_v37 = vor.u32 %v11010_v12, %v10108_v7  ;;  %v10061_v55 = vor.u32 %v10998_v1, %v10060_v18  ;;  %v9921_v50 = vor.u32 %v10960_v14, %v9918_v48  ;;  %v10028_v12 = vld [vmem:[#allocation9 + $0xa08] sm:$0xf] }
 0x351   : > { %v10029_v10 = vor.u32 %v10990_v9, %v10028_v12  ;;  %v10204_v1 = vld [vmem:[#allocation9 + $0xb68] sm:$0xf] }
 0x352   : > { %6706 = vmatpush.bf16.msra.mxu1 %v9917_v59  ;;  %6748 = vmatpush.bf16.msrb.mxu0 %v9793_v49  ;;  %v10217_v49 = vor.u32 %v11035_v46, %v10214_v22  ;;  %v10268_v46 = vld [vmem:[#allocation9 + $0xbe8] sm:$0xf]  ;;  %v11016_v22 = vld [vmem:[#allocation9 + $0xaec] sm:$0xf] }
 0x353   : > { %6622 = vmatpush.bf16.msra.mxu3 %v10165_v21  ;;  %6664 = vmatpush.bf16.msrb.mxu2 %v10041_v43  ;;  %v10092_v21 = vld [vmem:[#allocation9 + $0xa88] sm:$0xf]  ;;  %v11006_v43 = vld [vmem:[#allocation9 + $0xa94] sm:$0xf0] }
 0x354   : > { %v10093_v24 = vor.u32 %v11006_v43, %v10092_v21  ;;  %v10142_v21 = vld [vmem:[#allocation9 + $0xaf8] sm:$0xf0] }
 0x356   : > { %6707 = vmatpush.bf16.msra.mxu1 %v9901_v53  ;;  %6749 = vmatpush.bf16.msrb.mxu0 %v9777_v35  ;;  %v5676_v20 = vpop.f32.mrf.mxu1  ;;  %v5718_v59 = vpop.f32.mrf.mxu0  ;;  %v10964_v53 = vld [vmem:[#allocation9 + $0x94c] sm:$0xf]  ;;  %v9934_v35 = vld [vmem:[#allocation9 + $0x958] sm:$0xf0] }
 0x357   : > { %6623 = vmatpush.bf16.msra.mxu3 %v10149_v16  ;;  %6665 = vmatpush.bf16.msrb.mxu2 %v10025_v25  ;;  %v12273_v62 = vadd.f32 %v5718_v59, %v12245_v6  ;;  %v9953_v16 = vor.u32 %v10968_v63, %v9950_v26  ;;  %v10145_v59 = vor.u32 %v11016_v22, %v10142_v21  ;;  %v10110_v63 = vld [vmem:[#allocation9 + $0xab8] sm:$0xf0]  ;;  %v11048_v22 = vld [vmem:[#allocation9 + $0xbec] sm:$0xf] }
 0x358   : > { %v10237_v26 = vor.u32 %v11042_v2, %v10236_v15  ;;  %v10270_v21 = vld [vmem:[#allocation9 + $0xbf8] sm:$0xf0]  ;;  %v11032_v15 = vld [vmem:[#allocation9 + $0xb6c] sm:$0xf] }
 0x359   : > { %6708 = vmatmul.bf16.vlgmr.msra.gmra.mxu1 %v12203_v51  ;;  %6750 = vmatmul.bf16.vlgmr.msrb.gmra.mxu0 %v12171_v61  ;;  %v12270_v61 = vadd.f32 %v5676_v20, %v12242_v0  ;;  %v10182_v0 = vld [vmem:[#allocation9 + $0xb50] sm:$0xf0]  ;;  %v10206_v2 = vld [vmem:[#allocation9 + $0xb78] sm:$0xf0] }
 0x35a   : > { %6756 = vmatpush.bf16.msrb.mxu1 %v10017_v4  ;;  %6624 = vmatmul.bf16.vlgmr.msra.gmra.mxu3 %v12263_v8  ;;  %v10185_v42 = vor.u32 %v11027_v54, %v10182_v0  ;;  %v11023_v4 = vld [vmem:[#allocation9 + $0xb24] sm:$0xf]  ;;  %v11038_v54 = vld [vmem:[#allocation9 + $0xb94] sm:$0xf0] }
 0x35b   : > { %6672 = vmatpush.bf16.msrb.mxu3 %v10265_v30  ;;  %6714 = vmatpush.bf16.msra.mxu2 %v10141_v3 }
 0x35c   : > { %6666 = vmatmul.bf16.vlgmr.msrb.gmra.mxu2 %v12232_v38 }
 0x35e   : > { %6757 = vmatpush.bf16.msrb.mxu1 %v10001_v39  ;;  %v5678_v30 = vpop.f32.mrf.mxu1  ;;  %v5720_v3 = vpop.f32.mrf.mxu0  ;;  %v10150_v39 = vld [vmem:[#allocation9 + $0xb10] sm:$0xf0] }
 0x35f   : > { %6673 = vmatpush.bf16.msrb.mxu3 %v10249_v58  ;;  %6715 = vmatpush.bf16.msra.mxu2 %v10125_v44  ;;  %v5592_v25 = vpop.f32.mrf.mxu3  ;;  %v5634_v19 = vpop.f32.mrf.mxu2  ;;  %v12282_v45 = vadd.f32 %v5678_v30, %v12254_v11  ;;  %v12285_v29 = vadd.f32 %v5720_v3, %v12257_v28  ;;  %v10169_v58 = vor.u32 %v11023_v4, %v10166_v33  ;;  %v10956_v28 = vld [vmem:[#allocation9 + $0x90c] sm:$0xf]  ;;  %v11030_v4 = vld [vmem:[#allocation9 + $0xb54] sm:$0xf0] }
 0x360   : > { %v12276_v6 = vadd.f32 %v5592_v25, %v12248_v17  ;;  %v12279_v40 = vadd.f32 %v5634_v19, %v12239_v27  ;;  %v9937_v17 = vor.u32 %v10964_v53, %v9934_v35  ;;  %v10044_v27 = vld [vmem:[#allocation9 + $0xa28] sm:$0xf]  ;;  %v10153_v43 = vor.u32 %v11019_v23, %v10150_v39  ;;  %v10094_v25 = vld [vmem:[#allocation9 + $0xa98] sm:$0xf0]  ;;  %v11034_v53 = vld [vmem:[#allocation9 + $0xb74] sm:$0xf0] }
 0x361   : > { %v10045_v44 = vor.u32 %v10994_v57, %v10044_v27  ;;  %v11000_v30 = vld [vmem:[#allocation9 + $0xa6c] sm:$0xf]  ;;  %v10205_v3 = vor.u32 %v11034_v53, %v10204_v1  ;;  %v10062_v57 = vld [vmem:[#allocation9 + $0xa58] sm:$0xf0]  ;;  %v10172_v23 = vld [vmem:[#allocation9 + $0xb28] sm:$0xf] }
 0x362   : > { %6758 = vmatpush.bf16.msrb.mxu1 %v9985_v56  ;;  %v11050_v56 = vld [vmem:[#allocation9 + $0xbf4] sm:$0xf0]  ;;  %v10996_v27 = vld [vmem:[#allocation9 + $0xa4c] sm:$0xf]  ;;  %v10158_v1 = vld [vmem:[#allocation9 + $0xb18] sm:$0xf0] }
 0x363   : > { %6674 = vmatpush.bf16.msrb.mxu3 %v10233_v36  ;;  %6716 = vmatpush.bf16.msra.mxu2 %v10109_v37  ;;  %v9902_v37 = vld [vmem:[#allocation9 + $0x918] sm:$0xf0]  ;;  %v10269_v20 = vor.u32 %v11050_v56, %v10268_v46  ;;  %v11026_v39 = vld [vmem:[#allocation9 + $0xb34] sm:$0xf0] }
 0x364   : > { %v9905_v13 = vor.u32 %v10956_v28, %v9902_v37  ;;  %v10173_v12 = vor.u32 %v11026_v39, %v10172_v23  ;;  %v10156_v28 = vld [vmem:[#allocation9 + $0xb08] sm:$0xf]  ;;  %v10988_v37 = vld [vmem:[#allocation9 + $0xa0c] sm:$0xf]  ;;  %v10030_v56 = vld [vmem:[#allocation9 + $0xa18] sm:$0xf0] }
 0x366   : > { %6759 = vmatpush.bf16.msrb.mxu1 %v9969_v5 }
 0x367   : > { %6675 = vmatpush.bf16.msrb.mxu3 %v10217_v49  ;;  %6717 = vmatpush.bf16.msra.mxu2 %v10093_v24  ;;  %v5594_v7 = vpop.f32.mrf.mxu3  ;;  %v5636_v11 = vpop.f32.mrf.mxu2  ;;  %v10252_v49 = vld [vmem:[#allocation9 + $0xbc8] sm:$0xf]  ;;  %v11046_v24 = vld [vmem:[#allocation9 + $0xbd4] sm:$0xf0] }
 0x368   : > { %v12288_v31 = vadd.f32 %v5594_v7, %v12260_v32  ;;  %v12291_v36 = vadd.f32 %v5636_v11, %v12251_v47  ;;  %v11012_v32 = vld [vmem:[#allocation9 + $0xacc] sm:$0xf]  ;;  %v10253_v47 = vor.u32 %v11046_v24, %v10252_v49  ;;  %v10046_v11 = vld [vmem:[#allocation9 + $0xa38] sm:$0xf0] }
 0x369   : > { %v10129_v5 = vor.u32 %v11012_v32, %v10126_v34  ;;  %v10992_v7 = vld [vmem:[#allocation9 + $0xa2c] sm:$0xf]  ;;  %v10254_v49 = vld [vmem:[#allocation9 + $0xbd8] sm:$0xf0] }
 0x36a   : > { %6760 = vmatpush.bf16.msrb.mxu1 %v9953_v16  ;;  %v11004_v16 = vld [vmem:[#allocation9 + $0xa8c] sm:$0xf]  ;;  %v10049_v9 = vor.u32 %v10992_v7, %v10046_v11  ;;  %v10238_v34 = vld [vmem:[#allocation9 + $0xbb8] sm:$0xf0]  ;;  %v12320_v11 = vld [vmem:[#allocation11] sm:$0xf] }
 0x36b   : > { %6676 = vmatpush.bf16.msrb.mxu3 %v10201_v41  ;;  %6718 = vmatpush.bf16.msra.mxu2 %v10077_v52  ;;  %v10113_v41 = vor.u32 %v11008_v60, %v10110_v63  ;;  %v10220_v52 = vld [vmem:[#allocation9 + $0xb88] sm:$0xf]  ;;  %v10097_v18 = vor.u32 %v11004_v16, %v10094_v25  ;;  %v11040_v32 = vld [vmem:[#allocation9 + $0xbac] sm:$0xf]  ;;  %v10209_v60 = vor.u32 %v11032_v15, %v10206_v2 }
 0x36c   : > { %v10221_v19 = vor.u32 %v11038_v54, %v10220_v52  ;;  %v11028_v63 = vld [vmem:[#allocation9 + $0xb4c] sm:$0xf] }
 0x36d   : > { %v11024_v25 = vld [vmem:[#allocation9 + $0xb2c] sm:$0xf] }
 0x36e   : > { %6761 = vmatpush.bf16.msrb.mxu1 %v9937_v17 }
 0x36f   : > { %6677 = vmatpush.bf16.msrb.mxu3 %v10185_v42  ;;  %6719 = vmatpush.bf16.msra.mxu2 %v10061_v55  ;;  %v10188_v55 = vld [vmem:[#allocation9 + $0xb48] sm:$0xf] }
 0x372   : > { %6762 = vmatpush.bf16.msrb.mxu1 %v9921_v50 }
 0x373   : > { %6678 = vmatpush.bf16.msrb.mxu3 %v10169_v58  ;;  %6720 = vmatpush.bf16.msra.mxu2 %v10045_v44  ;;  %v10065_v44 = vor.u32 %v10996_v27, %v10062_v57 }
 0x376   : > { %6763 = vmatpush.bf16.msrb.mxu1 %v9905_v13  ;;  %v5732_v0 = vpop.f32.mrf.mxu1  ;;  %v10033_v13 = vor.u32 %v10988_v37, %v10030_v56  ;;  %v6583_v27 = vpop.f32.mrf.mxu0 }
 0x377   : > { %6679 = vmatpush.bf16.msrb.mxu3 %v10153_v43  ;;  %6721 = vmatpush.bf16.msra.mxu2 %v10029_v10  ;;  %v12297_v35 = vadd.f32 %v5732_v0, %v12273_v62  ;;  %v10189_v62 = vor.u32 %v11030_v4, %v10188_v55 }
 0x379   : > { %6764 = vmatmul.bf16.vlgmr.msrb.gmra.mxu1 %v12203_v51  ;;  %v10078_v51 = vld [vmem:[#allocation9 + $0xa78] sm:$0xf0] }
 0x37a   : > { %6680 = vmatmul.bf16.vlgmr.msrb.gmra.mxu3 %v12263_v8  ;;  %6722 = vmatmul.bf16.vlgmr.msra.gmra.mxu2 %v12232_v38  ;;  %v10081_v42 = vor.u32 %v11000_v30, %v10078_v51 }
 0x37b   : > { %6728 = vmatpush.bf16.msra.mxu3 %v10269_v20  ;;  %6770 = vmatpush.bf16.msrb.mxu2 %v10145_v59  ;;  %v10273_v20 = vor.u32 %v11048_v22, %v10270_v21  ;;  %v11044_v59 = vld [vmem:[#allocation9 + $0xbcc] sm:$0xf] }
 0x37c   : > { %v10257_v24 = vor.u32 %v11044_v59, %v10254_v49 }
 0x37e   : > { %v5734_v58 = vpop.f32.mrf.mxu1  ;;  %v6585_v23 = vpop.f32.mrf.mxu0 }
 0x37f   : > { %6729 = vmatpush.bf16.msra.mxu3 %v10253_v47  ;;  %6771 = vmatpush.bf16.msrb.mxu2 %v10129_v5  ;;  %v5648_v17 = vpop.f32.mrf.mxu3  ;;  %v5690_v33 = vpop.f32.mrf.mxu2  ;;  %v5735_v50 = vadd.f32 %v5734_v58, %v12285_v29  ;;  %v10222_v47 = vld [vmem:[#allocation9 + $0xb98] sm:$0xf0] }
 0x380   : > { %v12300_v14 = vadd.f32 %v5648_v17, %v12279_v40  ;;  %v5691_v48 = vadd.f32 %v5690_v33, %v12270_v61  ;;  %v11022_v40 = vld [vmem:[#allocation9 + $0xb14] sm:$0xf0] }
 0x381   : > { %v10157_v29 = vor.u32 %v11022_v40, %v10156_v28  ;;  %v6807_v28 = vperm.slane %v12320_v11, 0 }
 0x383   : > { %6730 = vmatpush.bf16.msra.mxu3 %v10237_v26  ;;  %6772 = vmatpush.bf16.msrb.mxu2 %v10113_v41  ;;  %v10190_v26 = vld [vmem:[#allocation9 + $0xb58] sm:$0xf0] }
 0x387   : > { %6731 = vmatpush.bf16.msra.mxu3 %v10221_v19  ;;  %6773 = vmatpush.bf16.msrb.mxu2 %v10097_v18  ;;  %v5650_v46 = vpop.f32.mrf.mxu3  ;;  %v5692_v61 = vpop.f32.mrf.mxu2  ;;  %v10174_v19 = vld [vmem:[#allocation9 + $0xb38] sm:$0xf0]  ;;  %v11020_v18 = vld [vmem:[#allocation9 + $0xb0c] sm:$0xf] }
 0x388   : > { %v12305_v43 = vadd.f32 %v5650_v46, %v12291_v36  ;;  %v5693_v10 = vadd.f32 %v5692_v61, %v12282_v45  ;;  %v10241_v36 = vor.u32 %v11040_v32, %v10238_v34  ;;  %v11036_v45 = vld [vmem:[#allocation9 + $0xb8c] sm:$0xf]  ;;  %v10177_v0 = vor.u32 %v11024_v25, %v10174_v19 }
 0x389   : > { %v10225_v5 = vor.u32 %v11036_v45, %v10222_v47 }
 0x38b   : > { %6732 = vmatpush.bf16.msra.mxu3 %v10205_v3  ;;  %6774 = vmatpush.bf16.msrb.mxu2 %v10081_v42  ;;  %v10161_v42 = vor.u32 %v11020_v18, %v10158_v1 }
 0x38f   : > { %6733 = vmatpush.bf16.msra.mxu3 %v10189_v62  ;;  %6775 = vmatpush.bf16.msrb.mxu2 %v10065_v44 }
 0x393   : > { %6734 = vmatpush.bf16.msra.mxu3 %v10173_v12  ;;  %6776 = vmatpush.bf16.msrb.mxu2 %v10049_v9 }
 0x396   : > { %v6597_v33 = vpop.f32.mrf.mxu1 }
 0x397   : > { %6735 = vmatpush.bf16.msra.mxu3 %v10157_v29  ;;  %6777 = vmatpush.bf16.msrb.mxu2 %v10033_v13  ;;  %v6598_v62 = vadd.f32 %v6597_v33, %v6583_v27 }
 0x39a   : > { %6736 = vmatmul.bf16.vlgmr.msra.gmra.mxu3 %v12263_v8  ;;  %6778 = vmatmul.bf16.vlgmr.msrb.gmra.mxu2 %v12232_v38  ;;  %v10193_v38 = vor.u32 %v11028_v63, %v10190_v26  ;;  %v6808_v63 = vperm.slane %v12320_v11, 1 }
 0x39b   : > { %6784 = vmatpush.bf16.msrb.mxu3 %v10273_v20  ;;  %v6639_v20 = vpop.f32.mrf.mxu0 }
 0x39e   : > { %v6599_v58 = vpop.f32.mrf.mxu1 }
 0x39f   : > { %6785 = vmatpush.bf16.msrb.mxu3 %v10257_v24  ;;  %v5704_v41 = vpop.f32.mrf.mxu3  ;;  %v5746_v52 = vpop.f32.mrf.mxu2 }
 0x3a0   : > { %v12310_v54 = vadd.f32 %v5704_v41, %v5691_v48  ;;  %v5747_v16 = vadd.f32 %v5746_v52, %v12297_v35 }
 0x3a3   : > { %6786 = vmatpush.bf16.msrb.mxu3 %v10241_v36  ;;  %v6641_v36 = vpop.f32.mrf.mxu0 }
 0x3a7   : > { %6787 = vmatpush.bf16.msrb.mxu3 %v10225_v5  ;;  %v5706_v53 = vpop.f32.mrf.mxu3  ;;  %v5748_v30 = vpop.f32.mrf.mxu2 }
 0x3a8   : > { %v12313_v51 = vadd.f32 %v5706_v53, %v5693_v10  ;;  %v5749_v3 = vadd.f32 %v5748_v30, %v5735_v50  ;;  %v6600_v50 = vadd.f32 %v6599_v58, %v6585_v23  ;;  %v6809_v23 = vperm.slane %v12320_v11, 2 }
 0x3ab   : > { %6788 = vmatpush.bf16.msrb.mxu3 %v10209_v60 }
 0x3af   : > { %6789 = vmatpush.bf16.msrb.mxu3 %v10193_v38 }
 0x3b3   : > { %6790 = vmatpush.bf16.msrb.mxu3 %v10177_v0 }
 0x3b6   : > { %v6653_v29 = vpop.f32.mrf.mxu1  ;;  %v6695_v1 = vpop.f32.mrf.mxu0 }
 0x3b7   : > { %6791 = vmatpush.bf16.msrb.mxu3 %v10161_v42  ;;  %v6654_v24 = vadd.f32 %v6653_v29, %v6639_v20 }
 0x3ba   : > { %6792 = vmatmul.bf16.vlgmr.msrb.gmra.mxu3 %v12263_v8 }
 0x3be   : > { %v6655_v32 = vpop.f32.mrf.mxu1  ;;  %v6697_v33 = vpop.f32.mrf.mxu0 }
 0x3bf   : > { %v5760_v55 = vpop.f32.mrf.mxu3  ;;  %v6611_v57 = vpop.f32.mrf.mxu2  ;;  %v6656_v47 = vadd.f32 %v6655_v32, %v6641_v36 }
 0x3c0   : > { %v12316_v4 = vadd.f32 %v5760_v55, %v5747_v16  ;;  %v6612_v44 = vadd.f32 %v6611_v57, %v6598_v62 }
 0x3c7   : > { %v5762_v35 = vpop.f32.mrf.mxu3  ;;  %v6613_v39 = vpop.f32.mrf.mxu2 }
 0x3c8   : > { %v12318_v17 = vadd.f32 %v5762_v35, %v5749_v3  ;;  %v6614_v8 = vadd.f32 %v6613_v39, %v6600_v50 }
 0x3d6   : > { %v6709_v0 = vpop.f32.mrf.mxu1 }
 0x3dd   : > { %v6625_v48 = vpop.f32.mrf.mxu3 }
 0x3de   : > { %v6626_v7 = vadd.f32 %v6625_v48, %v6612_v44  ;;  %v6711_v55 = vpop.f32.mrf.mxu1 }
 0x3df   : > { %v6667_v59 = vpop.f32.mrf.mxu2  ;;  %v6712_v57 = vadd.f32 %v6711_v55, %v6697_v33  ;;  %v6908_v33 = vld [vmem:[%s12456_s5] sm:$0xff] }
 0x3e0   : > { %v6798_v9 = vadd.f32 %v6626_v7, %v12276_v6  ;;  %v6668_v34 = vadd.f32 %v6667_v59, %v6654_v24 }
 0x3e2   : > { %v12325_v46 = vadd.f32 %v6807_v28, %v6798_v9 }
 0x3e5   : > { %v6627_v12 = vpop.f32.mrf.mxu3 }
 0x3e6   : > { %v6628_v40 = vadd.f32 %v6627_v12, %v6614_v8 }
 0x3e7   : > { %v6669_v45 = vpop.f32.mrf.mxu2 }
 0x3e8   : > { %v6802_v37 = vadd.f32 %v6628_v40, %v12288_v31  ;;  %v6670_v15 = vadd.f32 %v6669_v45, %v6656_v47  ;;  %v6810_v45 = vperm.slane %v12320_v11, 3 }
 0x3ea   : > { %v12327_v61 = vadd.f32 %v6807_v28, %v6802_v37 }
 0x3ec   : > { %v6823_v56 = vadd.f32 %v12327_v61, %v12325_v46 }
 0x3ee   : > { %v6824_v22 = vrot.slane %v6823_v56, 4 }
 0x3f0   : > { %v6825_v21 = vadd.f32 %v6824_v22, %v6823_v56  ;;  %v6751_v56 = vpop.f32.mrf.mxu0 }
 0x3f2   : > { %v6826_v10 = vrot.slane %v6825_v21, 2 }
 0x3f4   : > { %v6827_v13 = vadd.f32 %v6826_v10, %v6825_v21 }
 0x3f6   : > { %v6828_v6 = vrot.slane %v6827_v13, 1  ;;  %v6765_v40 = vpop.f32.mrf.mxu1 }
 0x3f8   : > { %v12331_v49 = vadd.f32 %v6828_v6, %v6827_v13  ;;  %v6753_v59 = vpop.f32.mrf.mxu0 }
 0x3fa   : > { %6861 = vrot.lane.b32.xlu1 %v12331_v49, %s11530_s17  ;;  %6853 = vrot.lane.b32.xlu0 %v12331_v49, %s11531_s23 }
 0x3fd   : > { %v6681_v31 = vpop.f32.mrf.mxu3  ;;  %v6723_v53 = vpop.f32.mrf.mxu2 }
 0x3fe   : > { %v6682_v5 = vadd.f32 %v6681_v31, %v6668_v34  ;;  %v6767_v13 = vpop.f32.mrf.mxu1 }
 0x3ff   : > { %v6768_v31 = vadd.f32 %v6767_v13, %v6753_v59  ;;  %v6939_v13 = vld [vmem:[#allocation15] sm:$0x1] }
 0x400   : > { %v6799_v60 = vadd.f32 %v6682_v5, %v12300_v14 }
 0x402   : > { %6857 = vrot.lane.b32.xlu0 %v12331_v49, %s11532_s20  ;;  %v12342_v52 = vadd.f32 %v6808_v63, %v6799_v60 }
 0x405   : > { %v6683_v2 = vpop.f32.mrf.mxu3  ;;  %v6725_v27 = vpop.f32.mrf.mxu2 }
 0x406   : > { %v6684_v26 = vadd.f32 %v6683_v2, %v6670_v15  ;;  %v6726_v62 = vadd.f32 %v6725_v27, %v6712_v57  ;;  %v6938_v57 = vld [vmem:[#allocation14] sm:$0xff] }
 0x407   : > { %6959 = vmatpush.msra.mxu1 %v6938_v57 }
 0x408   : > { %v6803_v41 = vadd.f32 %v6684_v26, %v12305_v43  ;;  %v6710_v43 = vadd.f32 %v6709_v0, %v6695_v1 }
 0x40a   : > { %v12344_v16 = vadd.f32 %v6808_v63, %v6803_v41  ;;  %v6724_v35 = vadd.f32 %v6723_v53, %v6710_v43 }
 0x40c   : > { %v6830_v38 = vadd.f32 %v12344_v16, %v12342_v52 }
 0x40e   : > { %v6831_v25 = vrot.slane %v6830_v38, 4 }
 0x410   : > { %v6832_v19 = vadd.f32 %v6831_v25, %v6830_v38 }
 0x412   : > { %v6833_v18 = vrot.slane %v6832_v19, 2 }
 0x414   : > { %v6834_v30 = vadd.f32 %v6833_v18, %v6832_v19 }
 0x416   : > { %v6835_v14 = vrot.slane %v6834_v30, 1 }
 0x418   : > { %v12348_v3 = vadd.f32 %v6835_v14, %v6834_v30 }
 0x41a   : > { %6871 = vrot.lane.b32.xlu2 %v12348_v3, %s11532_s20  ;;  %6867 = vrot.lane.b32.xlu1 %v12348_v3, %s11531_s23 }
 0x41d   : > { %v6737_v42 = vpop.f32.mrf.mxu3  ;;  %v6779_v22 = vpop.f32.mrf.mxu2 }
 0x41e   : > { %v6738_v48 = vadd.f32 %v6737_v42, %v6724_v35  ;;  %v6909_v35 = vld [vmem:[%s12456_s5 + $0x8] sm:$0xff] }
 0x420   : > { %v6800_v44 = vadd.f32 %v6738_v48, %v12310_v54 }
 0x422   : > { %6875 = vrot.lane.b32.xlu2 %v12348_v3, %s11530_s17  ;;  %v12359_v7 = vadd.f32 %v6809_v23, %v6800_v44 }
 0x425   : > { %v6739_v58 = vpop.f32.mrf.mxu3  ;;  %v6781_v6 = vpop.f32.mrf.mxu2 }
 0x426   : > { %v6740_v39 = vadd.f32 %v6739_v58, %v6726_v62  ;;  %v6782_v32 = vadd.f32 %v6781_v6, %v6768_v31 }
 0x428   : > { %v6804_v50 = vadd.f32 %v6740_v39, %v12313_v51  ;;  %v6766_v51 = vadd.f32 %v6765_v40, %v6751_v56 }
 0x42a   : > { %v12361_v8 = vadd.f32 %v6809_v23, %v6804_v50  ;;  %v6780_v20 = vadd.f32 %v6779_v22, %v6766_v51 }
 0x42c   : > { %v6837_v12 = vadd.f32 %v12361_v8, %v12359_v7 }
 0x42e   : > { %v6838_v9 = vrot.slane %v6837_v12, 4 }
 0x430   : > { %v6839_v28 = vadd.f32 %v6838_v9, %v6837_v12 }
 0x432   : > { %v6840_v37 = vrot.slane %v6839_v28, 2 }
 0x434   : > { %v6841_v21 = vadd.f32 %v6840_v37, %v6839_v28 }
 0x436   : > { %v6842_v54 = vrot.slane %v6841_v21, 1 }
 0x438   : > { %v6843_v10 = vadd.f32 %v6842_v54, %v6841_v21  ;;  %v6912_v54 = vld [vmem:[#allocation12] sm:$0x1] }
 0x43a   : > { %6889 = vrot.lane.b32.xlu2 %v6843_v10, %s11530_s17  ;;  %6885 = vrot.lane.b32.xlu1 %v6843_v10, %s11532_s20 }
 0x43b   : > { %6881 = vrot.lane.b32.xlu0 %v6843_v10, %s11531_s23 }
 0x43d   : > { %v6793_v29 = vpop.f32.mrf.mxu3 }
 0x43e   : > { %v6794_v24 = vadd.f32 %v6793_v29, %v6780_v20 }
 0x440   : > { %v6801_v36 = vadd.f32 %v6794_v24, %v12316_v4  ;;  %v6911_v4 = vld [vmem:[%s12456_s5 + $0x18] sm:$0xff] }
 0x441   : > { %6929 = vmatpush.msra.mxu0 %v6911_v4 }
 0x442   : > { %v12371_v15 = vadd.f32 %v6810_v45, %v6801_v36 }
 0x445   : > { %v6795_v34 = vpop.f32.mrf.mxu3 }
 0x446   : > { %v6796_v47 = vadd.f32 %v6795_v34, %v6782_v32 }
 0x448   : > { %v6805_v5 = vadd.f32 %v6796_v47, %v12318_v17  ;;  %v6910_v17 = vld [vmem:[%s12456_s5 + $0x10] sm:$0xff] }
 0x449   : > { %6930 = vmatpush.msra.mxu0 %v6910_v17 }
 0x44a   : > { %v12373_v2 = vadd.f32 %v6810_v45, %v6805_v5 }
 0x44b   : > { %6931 = vmatpush.msra.mxu0 %v6909_v35 }
 0x44c   : > { %v6844_v60 = vadd.f32 %v12373_v2, %v12371_v15 }
 0x44d   : > { %6932 = vmatpush.msra.mxu0 %v6908_v33  ;;  %v11187_v33 = vld [vmem:[%s11723_s26 + $0x8] sm:$0xff] }
 0x44e   : > { %v6845_v63 = vrot.slane %v6844_v60, 4 }
 0x450   : > { %v6846_v26 = vadd.f32 %v6845_v63, %v6844_v60 }
 0x452   : > { %v6847_v41 = vrot.slane %v6846_v26, 2 }
 0x454   : > { %v6848_v38 = vadd.f32 %v6847_v41, %v6846_v26 }
 0x456   : > { %v6849_v25 = vrot.slane %v6848_v38, 1 }
 0x458   : > { %v6850_v19 = vadd.f32 %v6849_v25, %v6848_v38 }
 0x45a   : > { %6903 = vrot.lane.b32.xlu2 %v6850_v19, %s11530_s17  ;;  %6899 = vrot.lane.b32.xlu1 %v6850_v19, %s11532_s20 }
 0x45b   : > { %6895 = vrot.lane.b32.xlu0 %v6850_v19, %s11531_s23 }
 0x46c   : > { %v6854_v11 = vpop.permute.xlu0 %6853  ;;  %v6862_v1 = vpop.permute.xlu1 %6861 }
 0x46d   : > { %v6856_v18 = vadd.f32 %v6854_v11, %v12331_v49 }
 0x474   : > { %v6858_v0 = vpop.permute.xlu0 %6857  ;;  %v6872_v14 = vpop.permute.xlu2 %6871 }
 0x475   : > { %v6860_v53 = vadd.f32 %v6858_v0, %v6856_v18 }
 0x477   : > { %v6864_v30 = vadd.f32 %v6862_v1, %v6860_v53 }
 0x479   : > { %v6865_v43 = vadd.f32 %v6864_v30, %v12348_v3 }
 0x47c   : > { %v6876_v49 = vpop.permute.xlu2 %6875 }
 0x48c   : > { %v6868_v42 = vpop.permute.xlu1 %6867 }
 0x48d   : > { %v6870_v55 = vadd.f32 %v6868_v42, %v6865_v43 }
 0x48f   : > { %v6874_v27 = vadd.f32 %v6872_v14, %v6870_v55  ;;  %v11186_v55 = vld [vmem:[%s11723_s26] sm:$0xff] }
 0x491   : > { %v6878_v48 = vadd.f32 %v6876_v49, %v6874_v27 }
 0x493   : > { %v6879_v58 = vadd.f32 %v6878_v48, %v6843_v10  ;;  %v11192_v48 = vld [vmem:[%s11723_s26 + $0x30] sm:$0xff] }
 0x494   : > { %v6890_v39 = vpop.permute.xlu2 %6889 }
 0x4ac   : > { %v6886_v3 = vpop.permute.xlu1 %6885 }
 0x4ad   : > { %v6882_v62 = vpop.permute.xlu0 %6881 }
 0x4ae   : > { %v6884_v44 = vadd.f32 %v6882_v62, %v6879_v58 }
 0x4b0   : > { %v6888_v23 = vadd.f32 %v6886_v3, %v6884_v44 }
 0x4b2   : > { %v6892_v50 = vadd.f32 %v6890_v39, %v6888_v23 }
 0x4b4   : > { %v6893_v12 = vadd.f32 %v6892_v50, %v6850_v19  ;;  %v6904_v56 = vpop.permute.xlu2 %6903 }
 0x4cc   : > { %v6900_v40 = vpop.permute.xlu1 %6899 }
 0x4cd   : > { %v6896_v9 = vpop.permute.xlu0 %6895 }
 0x4ce   : > { %v6898_v28 = vadd.f32 %v6896_v9, %v6893_v12 }
 0x4d0   : > { %v6902_v37 = vadd.f32 %v6900_v40, %v6898_v28 }
 0x4d2   : > { %v6906_v22 = vadd.f32 %v6904_v56, %v6902_v37 }
 0x4d4   : > { %v6907_v21 = vmul.f32 0.00390625, %v6906_v22 }
 0x4d6   : > { %10274 = vmatmul.msk.f32.vlgmr.msra.gmra.mxu0 %vm6913_vm4, %v6907_v21 }
 0x553   : > { %v6934_v29 = vpop.f32.mrf.mxu0 }
 0x554   : > { %v6935_v51 = vadd.f32 %v6934_v29, %v6912_v54 }
 0x556   : > { %v6937_v10 = vmax.f32 %v6935_v51, 0.0 }
 0x558   : > { %10275 = vmatmul.msk.f32.vlgmr.msra.gmra.mxu1 %vm6940_vm5, %v6937_v10 }
 0x5d5   : > { %v6961_v20 = vpop.f32.mrf.mxu1 }
 0x5d6   : > { %v6962_v59 = vadd.f32 %v6961_v20, %v6939_v13 }
 0x5d8   : > { %v10276_v6 = vmul.f32 -1.442695, %v6962_v59 }
 0x5da   : > { %11178 = vpow2.f32 %v10276_v6 }
 0x5e0   : > { %v11179_v31 = vpop.eup %11178 }
 0x5e1   : > { %v6967_v24 = vadd.f32 1.0, %v11179_v31 }
 0x5e3   : > { %11180 = vrcp.f32 %v6967_v24  ;;  %v6979_v45 = vand.u32 2147483648, %v6967_v24  ;;  %v6977_v5 = vand.u32 2147483647, %v6967_v24  ;;  %vm6973_vm7 = vweird.f32 %v6967_v24 }
 0x5e5   : > { %v6980_v63 = vor.u32 1.1754944e-38, %v6979_v45  ;;  %vm6978_vm9 = vcmp.eq.f32.partialorder %v6977_v5, 8.507059e+37 }
 0x5e9   : > { %v11181_v32 = vpop.eup %11180 }
 0x5ea   : > { %v6969_v34 = vmul.f32 %v11181_v32, %v6967_v24  ;;  %vm6974_vm6 = vweird.f32 %v11181_v32 }
 0x5eb   : > { %vm6975_vm8 = vmor %vm6973_vm7, %vm6974_vm6 }
 0x5ec   : > { %v6970_v36 = vsub.f32 1.0, %v6969_v34 }
 0x5ee   : > { %v6971_v47 = vmul.f32 %v11181_v32, %v6970_v36 }
 0x5f0   : > { %v6972_v60 = vadd.f32 %v11181_v32, %v6971_v47 }
 0x5f2   : > { %v6976_v26 = vsel %vm6975_vm8, %v11181_v32, %v6972_v60 }
 0x5f3   : > { %v6981_v41 = vsel %vm6978_vm9, %v6980_v63, %v6976_v26 }
 0x5f4   : > { %6990 = vrot.lane.b32.xlu2 %v6981_v41, %s11531_s23  ;;  %6987 = vrot.lane.b32.xlu1 %v6981_v41, %s11532_s20  ;;  %s7035_s23 = scalar_lea.hbm %s12460_s9, %s11051_s18  ;;  %s458_s20 = scalar_lea.vmem [#allocation17], %s7193_s2 }
 0x5f5   : > { %6984 = vrot.lane.b32.xlu0 %v6981_v41, %s11530_s17  ;;  %s7036_s27 = sshll.u32 %s458_s20, 4  ;;  %s7038_s24 = sshll.u32 %s7035_s23, 4  ;;  %s7037_s27 = int_to_ptr.vmem [resolvable:$true] %s7036_s27  ;;  %s7039_s24 = int_to_ptr.hbm [resolvable:$true] %s7038_s24 }
 0x5f6   : > { %s7024_s2 = scalar_lea.sflag [#allocation5], %s11717_s21  ;;  %s11448_s15 = sshra.s32 %s7039_s24, 4  ;;  %s11449_s15 = int_to_ptr.hbm [resolvable:$true] %s11448_s15 }
 0x5f7   : > { %s11450_s3 = scalar_lea.hbm %s11449_s15, 64  ;;  %p11455_p13 = scmp.lt.s32.totalorder %s11449_s15, %s12460_s9 }
 0x5f8   : > { %p11451_p1 = scmp.ne.s32.totalorder %s11449_s15, %s11450_s3 }
 0x5fa   : > { %p11452_p3 = pnand %p11451_p1, %p11684_p0 }
 0x5fc   : > { %p11453_p5 = pneg %p11452_p3 }
 0x64e   : > { %v6991_v4 = vpop.permute.xlu2 %6990 }
 0x666   : > { %v6988_v38 = vpop.permute.xlu1 %6987 }
 0x667   : > { %v6985_v25 = vpop.permute.xlu0 %6984 }
 0x668   : > { %v6993_v19 = vsel %vm6913_vm4, %v6981_v41, %v6985_v25 }
 0x669   : > { %v6995_v17 = vsel %vm6994_vm10, %v6993_v19, %v6988_v38 }
 0x66a   : > { %v6997_v11 = vsel %vm6996_vm11, %v6995_v17, %v6991_v4 }
 0x66b   : > { %v6998_v0 = vperm.slane %v6997_v11, 0 }
 0x66d   : > { %v6999_v18 = vmul.f32 %v6998_v0, %v12325_v46  ;;  %v7000_v1 = vmul.f32 %v6998_v0, %v12342_v52  ;;  %v7001_v53 = vmul.f32 %v6998_v0, %v12359_v7  ;;  %v7002_v30 = vmul.f32 %v6998_v0, %v12371_v15  ;;  %v11188_v52 = vld [vmem:[%s11723_s26 + $0x10] sm:$0xff]  ;;  %v11189_v15 = vld [vmem:[%s11723_s26 + $0x18] sm:$0xff] }
 0x66e   : > { %v7003_v14 = vmul.f32 %v6998_v0, %v12327_v61  ;;  %v7004_v42 = vmul.f32 %v6998_v0, %v12344_v16  ;;  %v7005_v43 = vmul.f32 %v6998_v0, %v12361_v8  ;;  %v7006_v7 = vmul.f32 %v6998_v0, %v12373_v2  ;;  %v11190_v61 = vld [vmem:[%s11723_s26 + $0x20] sm:$0xff]  ;;  %v11191_v8 = vld [vmem:[%s11723_s26 + $0x28] sm:$0xff]  ;;  %v11193_v2 = vld [vmem:[%s11723_s26 + $0x38] sm:$0xff]  ;;  %s11454_s26 = scalar_lea.hbm %s12460_s9, 128 }
 0x66f   : > { %v7007_v35 = vadd.f32 %v11186_v55, %v6999_v18  ;;  %v7008_v46 = vadd.f32 %v11187_v33, %v7000_v1  ;;  %v7009_v27 = vadd.f32 %v11188_v52, %v7001_v53  ;;  %v7010_v57 = vadd.f32 %v11189_v15, %v7002_v30  ;;  %p11456_p7 = scmp.lt.s32.totalorder %s11454_s26, %s11450_s3 }
 0x670   : > { %v7011_v16 = vadd.f32 %v11190_v61, %v7003_v14  ;;  %v7012_v49 = vadd.f32 %v11191_v8, %v7004_v42  ;;  %v7013_v62 = vadd.f32 %v11192_v48, %v7005_v43  ;;  %v7014_v58 = vadd.f32 %v11193_v2, %v7006_v7 }
 0x671   : > { %7015 = vst [vmem:[%s458_s20] sm:$0xff] %v7007_v35  ;;  %p11457_p8 = por %p11456_p7, %p11455_p13 }
 0x672   : > { %7016 = vst [vmem:[%s458_s20 + $0x8] sm:$0xff] %v7008_v46 }
 0x673   : > { %7017 = vst [vmem:[%s458_s20 + $0x10] sm:$0xff] %v7009_v27  ;;  %p11458_p9 = pnand %p11457_p8, %p11453_p5 }
 0x674   : > { %7018 = vst [vmem:[%s458_s20 + $0x18] sm:$0xff] %v7010_v57 }
 0x675   : > { %7019 = vst [vmem:[%s458_s20 + $0x20] sm:$0xff] %v7011_v16 }
 0x676   : > { %7020 = vst [vmem:[%s458_s20 + $0x28] sm:$0xff] %v7012_v49 }
 0x677   : > { %7021 = vst [vmem:[%s458_s20 + $0x30] sm:$0xff] %v7013_v62 }
 0x678   : > { %7022 = vst [vmem:[%s458_s20 + $0x38] sm:$0xff] %v7014_v58 }
 0x679   : > { %11461 = shalt.err (!%p11458_p9)
}
 0x67a   : > { %s11533_s21 = smov 512  }
 0x67b   : > { %11082 = dma.vmem_to_hbm [thread:$0]  (%p11684_p0), %s7037_s27, 1024, %s7039_s24, %s7024_s2, %s11533_s21, %s11533_s21, %s11530_s17  }
 0x67c PF: > { %s7053_s18 = sand.u32 1, %s11504_s30   ;;  %p12478_p10 = scmp.ge.s32.totalorder %s11516_s12, 2 }
 0x67d   : > { %s7054_s16 = scalar_lea.sflag [#allocation5], %s7053_s18 }
 0x67e   : > { %p11111_p11 = pnand %p12478_p10, %p11690_p6 }
 0x680   : > { %p11112_p12 = pneg %p11111_p11 }
 0x682   : > { %11499 = dma.done.wait (%p11112_p12), %s7054_s16, 1024  }
 0x683   : > { %11501 = vsyncadd (%p11112_p12), %s7054_s16, 4294966272  ;;  %p26_p2 = scmp.ge.s32.totalorder %s11660_s25, 4   ;;  %s12479_s30 = smov %s11508_s10 }
 0x684   : > { %s12480_s10 = smov %s11512_s11  ;;  %s12481_s11 = smov %s11672_s19 }
 0x685   : > { %s12482_s12 = smov %s11660_s25  ;;  %28 = sbr.rel (!%p26_p2) target bundleno = 14 (0xe), region = 134 }
 0x68a   :  { %7060 = vsyncpa [#allocation4], 1 }
 0x68b   :  { %7062 = vsyncpa [#allocation4 + $0x1], 1 }
 0x68c   :  { %7063 = vsyncpa [#allocation7], 1 }
 0x68d   :  { %7064 = vsyncpa [#allocation10], 1 }
 0x68e   :  { %7065 = vsyncpa [#allocation13], 1 }
 0x68f   :  { %7066 = vsyncpa [#allocation16], 1 }
 0x690   :  { %7067 = vsyncpa [#allocation5], 1 }
 0x691   :  { %7069 = vsyncpa [#allocation5 + $0x1], 1 }

</bundles_post_ra>
